<compile_context>
chip_gen: v7x
topology: tpu7x:2x2x1
jax: 0.10.0
libtpu: 0.0.40
codegen_flags: <defaults>
</compile_context>

<pallas_src>
import numpy as np
import jax
import jax.numpy as jnp
from jax import lax
from jax.experimental import pallas as pl
from jax.experimental.pallas import tpu as pltpu


# ----------------------------- fused Pallas kernel -----------------------------

def _cnn2d_kernel(x_ref, s24_ref, e1_ref, ds11_ref, rw1_ref, g2_ref,
                  ds4_ref, rw2_ref, f1_ref, w2t_ref,
                  feat_ref, probs_ref,
                  u1_scr, d1_scr, d2_scr):
    """Whole cnn2d forward for a small batch; one invocation, VMEM-resident."""
    f32 = jnp.float32
    batch, d = x_ref.shape
    s24 = s24_ref[...]                                          # [24, d]

    for b in range(batch):                     # static unroll (batch is tiny)
        # ---- torch.clamp + one-hot image, built in-kernel (iota + compare) ----
        xr = jnp.clip(x_ref[b:b + 1, :], 0, 12)                 # [1, d] int32
        vals = jnp.broadcast_to(xr, (d, d))                     # [j, i] -> x[i]
        jio = lax.broadcasted_iota(jnp.int32, (d, d), 0)        # [j, i] -> j
        mt = (jio == vals).astype(f32)                          # M.T: [x[i] == j]

        # ---- nn.Upsample(size=[24,24], nearest)  ==  S24 @ M @ S24.T ----
        t = lax.dot_general(s24, mt, (((1,), (1,)), ((), ())),
                            preferred_element_type=f32)         # [24, d]
        u1_scr[...] = lax.dot_general(t, s24, (((1,), (1,)), ((), ())),
                                      preferred_element_type=f32)   # [24, 24]

        # ---- Conv2d(1, 20, 3, 1, bias=False): 9 row-shifted matmuls ----
        c1 = jnp.zeros((22, 22 * 20), f32)                      # [ho, w*20 + c]
        for k in range(9):
            dy = k // 3
            c1 = c1 + jnp.dot(u1_scr[pl.ds(dy, 22), :], e1_ref[k],
                              preferred_element_type=f32)
        # nn.Dropout(): identity in eval mode
        # TODO(synk): train-mode dropout random masking not reproduced.

        # ---- nn.Upsample(size=[11,11], nearest) via selection matmuls ----
        d1_scr[...] = jnp.dot(
            jnp.dot(ds11_ref[...], c1, preferred_element_type=f32),
            rw1_ref[...], preferred_element_type=f32)           # [11, 11*20]

        # ---- Conv2d(20, 15, 3, 1, bias=False): 9 row-shifted matmuls ----
        c2 = jnp.zeros((9, 9 * 15), f32)                        # [ho, w*15 + c]
        for k in range(9):
            dy = k // 3
            c2 = c2 + jnp.dot(d1_scr[pl.ds(dy, 9), :], g2_ref[k],
                              preferred_element_type=f32)
        # nn.Dropout(): identity in eval mode

        # ---- nn.Upsample(size=[4,4], nearest) ----
        d2_scr[...] = jnp.dot(
            jnp.dot(ds4_ref[...], c2, preferred_element_type=f32),
            rw2_ref[...], preferred_element_type=f32)           # [4, 4*15]

        # ---- nn.Flatten() (NCHW order) + nn.Linear(240, 78); the flatten
        #      permutation is folded into the per-row weight slabs f1_ref[h] ----
        feat = jnp.dot(d2_scr[pl.ds(0, 1), :], f1_ref[0],
                       preferred_element_type=f32)              # [1, 78]
        for h in range(1, 4):
            feat = feat + jnp.dot(d2_scr[pl.ds(h, 1), :], f1_ref[h],
                                  preferred_element_type=f32)

        # ---- nn.Linear(78, 2) + nn.Softmax(dim=-1) ----
        logits = jnp.dot(feat, w2t_ref[...], preferred_element_type=f32)  # [1, 2]
        m = jnp.max(logits, axis=-1, keepdims=True)
        e = jnp.exp(logits - m)
        s = jnp.sum(e, axis=-1, keepdims=True)
        probs = e * pl.reciprocal(s, approx=True)

        feat_ref[b:b + 1, :] = feat
        probs_ref[b:b + 1, :] = probs


# ------------------------------ host-side setup --------------------------------

def init_params(seed=42):
    k1, k2, k3, k4 = jax.random.split(jax.random.PRNGKey(seed), 4)
    return {
        "conv1": jax.random.normal(k1, (20, 1, 3, 3), jnp.float32) * 0.1,   # OIHW
        "conv2": jax.random.normal(k2, (15, 20, 3, 3), jnp.float32) * 0.1,  # OIHW
        "fc1": jax.random.normal(k3, (78, 240), jnp.float32) * 0.05,        # [out, in]
        "fc2": jax.random.normal(k4, (2, 78), jnp.float32) * 0.1,           # [out, in]
    }


def _nearest_idx(out_size, in_size):
    # PyTorch nn.Upsample(mode='nearest'): src = floor(dst * in / out)
    return (np.arange(out_size) * in_size) // out_size


def _build_constants(params, d):
    """Fold im2col, nearest resampling and the NCHW flatten into static
    structured matrices so the kernel body is purely small 2-D matmuls."""
    w1 = np.asarray(params["conv1"], np.float32)     # [20, 1, 3, 3]
    w2 = np.asarray(params["conv2"], np.float32)     # [15, 20, 3, 3]
    fc1 = np.asarray(params["fc1"], np.float32)      # [78, 240]
    fc2 = np.asarray(params["fc2"], np.float32)      # [2, 78]
    C1, C2 = w1.shape[0], w2.shape[0]                # 20, 15

    # upsample d -> 24 selection matrix
    r24 = _nearest_idx(24, d)
    s24 = np.zeros((24, d), np.float32)
    s24[np.arange(24), r24] = 1.0

    # conv1 (Cin=1): e1[k][wi, w*C1 + c] = w1[c, 0, dy, dx] iff wi == w + dx
    e1 = np.zeros((9, 24, 22 * C1), np.float32)
    for k in range(9):
        dy, dx = divmod(k, 3)
        for w in range(22):
            e1[k, w + dx, w * C1:(w + 1) * C1] = w1[:, 0, dy, dx]

    # downsample 22 -> 11 (rows) and its channel-flattened column version
    r11 = _nearest_idx(11, 22)
    ds11 = np.zeros((11, 22), np.float32)
    ds11[np.arange(11), r11] = 1.0
    rw1 = np.zeros((22 * C1, 11 * C1), np.float32)
    for w in range(11):
        rw1[r11[w] * C1 + np.arange(C1), w * C1 + np.arange(C1)] = 1.0

    # conv2: g2[k][(wo+dx)*C1 + ci, wo*C2 + co] = w2[co, ci, dy, dx]
    g2 = np.zeros((9, 11 * C1, 9 * C2), np.float32)
    for k in range(9):
        dy, dx = divmod(k, 3)
        blk = w2[:, :, dy, dx].T                     # [ci, co]
        for wo in range(9):
            g2[k, (wo + dx) * C1:(wo + dx + 1) * C1,
               wo * C2:(wo + 1) * C2] = blk

    # downsample 9 -> 4
    r4 = _nearest_idx(4, 9)
    ds4 = np.zeros((4, 9), np.float32)
    ds4[np.arange(4), r4] = 1.0
    rw2 = np.zeros((9 * C2, 4 * C2), np.float32)
    for w in range(4):
        rw2[r4[w] * C2 + np.arange(C2), w * C2 + np.arange(C2)] = 1.0

    # flatten (PyTorch NCHW order: idx = c*(4*4) + h*4 + w) folded into fc1
    f1 = np.zeros((4, 4 * C2, 78), np.float32)
    for h in range(4):
        for w in range(4):
            for c in range(C2):
                f1[h, w * C2 + c, :] = fc1[:, c * 16 + h * 4 + w]

    w2t = fc2.T.copy()                               # [78, 2]
    return tuple(jnp.asarray(a)
                 for a in (s24, e1, ds11, rw1, g2, ds4, rw2, f1, w2t))


def build_cnn2d_forward(params, d):
    # Static resolution of PyTorch's `max_ = max(int(x.max()), d)` host sync:
    # x is clamped to [0, 12], so for d >= 13 max_ == d at trace time.
    assert d >= 13, "static max_ requires d >= 13 (clamp upper bound + 1)"
    consts = _build_constants(params, d)

    @jax.jit
    def forward(x):
        batch = x.shape[0]
        feat, probs = pl.pallas_call(
            _cnn2d_kernel,
            out_shape=(jax.ShapeDtypeStruct((batch, 78), jnp.float32),
                       jax.ShapeDtypeStruct((batch, 2), jnp.float32)),
            scratch_shapes=[pltpu.VMEM((24, 24), jnp.float32),
                            pltpu.VMEM((11, 11 * 20), jnp.float32),
                            pltpu.VMEM((4, 4 * 15), jnp.float32)],
        )(x.astype(jnp.int32), *consts)
        return probs, feat

    return forward


# --------------------------- pure-JAX reference (test) -------------------------

def _reference_forward(x, params):
    """Pure-JAX reference with PyTorch semantics (for the numerical self-check)."""
    f32 = jnp.float32
    hi = lax.Precision.HIGHEST
    x = jnp.clip(x, 0, 12).astype(jnp.int32)
    batch, d = x.shape
    oh = jax.nn.one_hot(x, d, dtype=f32)[:, :, :, None]      # NHWC, C=1

    def up(t, size):
        rows = (jnp.arange(size[0]) * t.shape[1]) // size[0]
        cols = (jnp.arange(size[1]) * t.shape[2]) // size[1]
        return jnp.take(jnp.take(t, rows, axis=1), cols, axis=2)

    def conv(t, w_oihw):
        dn = lax.conv_dimension_numbers(t.shape, w_oihw.shape,
                                        ("NHWC", "OIHW", "NHWC"))
        return lax.conv_general_dilated(t, w_oihw, (1, 1), "VALID",
                                        dimension_numbers=dn, precision=hi)

    h = up(oh, (24, 24))
    h = conv(h, params["conv1"])
    h = up(h, (11, 11))
    h = conv(h, params["conv2"])
    h = up(h, (4, 4))
    h = jnp.transpose(h, (0, 3, 1, 2)).reshape(batch, -1)    # NCHW flatten
    feature = jnp.dot(h, params["fc1"].T, precision=hi)
    logits = jnp.dot(feature, params["fc2"].T, precision=hi)
    return jax.nn.softmax(logits, axis=-1), feature


# ------------------------------------ main --------------------------------------

if __name__ == "__main__":
    batch, d = 2, 16
    params = init_params(42)
    forward = build_cnn2d_forward(params, d)

    x = jax.random.randint(jax.random.PRNGKey(0), (batch, d), 0, 13,
                           dtype=jnp.int32)

    probs, feature = forward(x)
    jax.block_until_ready((probs, feature))

    assert probs.shape == (batch, 2) and feature.shape == (batch, 78)
    assert bool(jnp.all(jnp.isfinite(probs))) and bool(jnp.all(jnp.isfinite(feature)))
    assert bool(jnp.all(jnp.abs(jnp.sum(probs, axis=-1) - 1.0) < 1e-2))

    # numerical self-check against a pure-JAX reference of the PyTorch module
    p_ref, f_ref = _reference_forward(x, params)
    f_tol = 1e-2 * (1.0 + float(jnp.max(jnp.abs(f_ref))))
    assert float(jnp.max(jnp.abs(feature - f_ref))) < f_tol, "feature mismatch"
    assert float(jnp.max(jnp.abs(probs - p_ref))) < 2e-2, "probs mismatch"

    print("KERNEL_OK")
</pallas_src>

<mosaic_0001>
module attributes {stable_mosaic.version = 11 : i64} {
  func.func @_cnn2d_kernel(%arg0: memref<2x16xi32, #tpu.memory_space<vmem>>, %arg1: memref<24x16xf32, #tpu.memory_space<vmem>>, %arg2: memref<9x24x440xf32, #tpu.memory_space<vmem>>, %arg3: memref<11x22xf32, #tpu.memory_space<vmem>>, %arg4: memref<440x220xf32, #tpu.memory_space<vmem>>, %arg5: memref<9x220x135xf32, #tpu.memory_space<vmem>>, %arg6: memref<4x9xf32, #tpu.memory_space<vmem>>, %arg7: memref<135x60xf32, #tpu.memory_space<vmem>>, %arg8: memref<4x60x78xf32, #tpu.memory_space<vmem>>, %arg9: memref<78x2xf32, #tpu.memory_space<vmem>>, %arg10: memref<2x78xf32, #tpu.memory_space<vmem>>, %arg11: memref<2x2xf32, #tpu.memory_space<vmem>>, %arg12: memref<24x24xf32, #tpu.memory_space<vmem>>, %arg13: memref<11x220xf32, #tpu.memory_space<vmem>>, %arg14: memref<4x60xf32, #tpu.memory_space<vmem>>) attributes {dimension_semantics = [], scalar_prefetch = 0 : i64, scratch_operands = 3 : i64, tpu.core_type = #tpu.core_type<tc>} {
    %c0 = arith.constant 0 : index
    %c0_0 = arith.constant 0 : index
    %0 = vector.load %arg1[%c0, %c0_0] : memref<24x16xf32, #tpu.memory_space<vmem>>, vector<24x16xf32>
    %c0_1 = arith.constant 0 : index
    %c0_2 = arith.constant 0 : index
    %1 = vector.load %arg0[%c0_1, %c0_2] : memref<2x16xi32, #tpu.memory_space<vmem>>, vector<1x16xi32>
    %c0_i32 = arith.constant 0 : i32
    %c12_i32 = arith.constant 12 : i32
    %2 = vector.broadcast %c0_i32 : i32 to vector<1x16xi32>
    %3 = arith.maxsi %2, %1 : vector<1x16xi32>
    %4 = vector.broadcast %c12_i32 : i32 to vector<1x16xi32>
    %5 = arith.minsi %4, %3 : vector<1x16xi32>
    %6 = vector.shape_cast %5 : vector<1x16xi32> to vector<1x16xi32>
    %7 = vector.broadcast %6 : vector<1x16xi32> to vector<16x16xi32>
    %8 = tpu.iota {dimensions = array<i32: 0>} : vector<16x16xi32>
    %9 = arith.cmpi eq, %8, %7 : vector<16x16xi32>
    %10 = arith.extui %9 : vector<16x16xi1> to vector<16x16xi32>
    %11 = arith.sitofp %10 : vector<16x16xi32> to vector<16x16xf32>
    %cst = arith.constant dense<0.000000e+00> : vector<24x16xf32>
    %12 = tpu.matmul %0, %11, %cst {dimension_numbers = #tpu.dot_dimension_numbers<[1], [1], [0], [0], [0, 0, 1, 0], [], []>} : vector<24x16xf32>, vector<16x16xf32>, vector<24x16xf32> -> vector<24x16xf32>
    %cst_3 = arith.constant dense<0.000000e+00> : vector<24x24xf32>
    %13 = tpu.matmul %12, %0, %cst_3 {dimension_numbers = #tpu.dot_dimension_numbers<[1], [1], [0], [0], [0, 0, 1, 0], [], []>} : vector<24x16xf32>, vector<24x16xf32>, vector<24x24xf32> -> vector<24x24xf32>
    %c0_4 = arith.constant 0 : index
    %c0_5 = arith.constant 0 : index
    %14 = vector.load %arg12[%c0_4, %c0_5] : memref<24x24xf32, #tpu.memory_space<vmem>>, vector<24x24xf32>
    tpu.vector_store %arg12[%c0_4, %c0_5], %13 {strides = array<i32>} : memref<24x24xf32, #tpu.memory_space<vmem>>, vector<24x24xf32>,
    %cst_6 = arith.constant 0.000000e+00 : f32
    %15 = vector.broadcast %cst_6 : f32 to vector<22x440xf32>
    %c0_7 = arith.constant 0 : index
    %c0_8 = arith.constant 0 : index
    %16 = vector.load %arg12[%c0_7, %c0_8] : memref<24x24xf32, #tpu.memory_space<vmem>>, vector<22x24xf32>
    %c0_9 = arith.constant 0 : index
    %c0_10 = arith.constant 0 : index
    %c0_11 = arith.constant 0 : index
    %17 = vector.load %arg2[%c0_9, %c0_10, %c0_11] : memref<9x24x440xf32, #tpu.memory_space<vmem>>, vector<1x24x440xf32>
    %18 = vector.shape_cast %17 : vector<1x24x440xf32> to vector<24x440xf32>
    %cst_12 = arith.constant dense<0.000000e+00> : vector<22x440xf32>
    %19 = tpu.matmul %16, %18, %cst_12 {dimension_numbers = #tpu.dot_dimension_numbers<[1], [0], [0], [1], [0, 0, 1, 1], [], []>} : vector<22x24xf32>, vector<24x440xf32>, vector<22x440xf32> -> vector<22x440xf32>
    %20 = arith.addf %15, %19 : vector<22x440xf32>
    %c0_13 = arith.constant 0 : index
    %c0_14 = arith.constant 0 : index
    %21 = vector.load %arg12[%c0_13, %c0_14] : memref<24x24xf32, #tpu.memory_space<vmem>>, vector<22x24xf32>
    %c1 = arith.constant 1 : index
    %c0_15 = arith.constant 0 : index
    %c0_16 = arith.constant 0 : index
    %22 = vector.load %arg2[%c1, %c0_15, %c0_16] : memref<9x24x440xf32, #tpu.memory_space<vmem>>, vector<1x24x440xf32>
    %23 = vector.shape_cast %22 : vector<1x24x440xf32> to vector<24x440xf32>
    %cst_17 = arith.constant dense<0.000000e+00> : vector<22x440xf32>
    %24 = tpu.matmul %21, %23, %cst_17 {dimension_numbers = #tpu.dot_dimension_numbers<[1], [0], [0], [1], [0, 0, 1, 1], [], []>} : vector<22x24xf32>, vector<24x440xf32>, vector<22x440xf32> -> vector<22x440xf32>
    %25 = arith.addf %20, %24 : vector<22x440xf32>
    %c0_18 = arith.constant 0 : index
    %c0_19 = arith.constant 0 : index
    %26 = vector.load %arg12[%c0_18, %c0_19] : memref<24x24xf32, #tpu.memory_space<vmem>>, vector<22x24xf32>
    %c2 = arith.constant 2 : index
    %c0_20 = arith.constant 0 : index
    %c0_21 = arith.constant 0 : index
    %27 = vector.load %arg2[%c2, %c0_20, %c0_21] : memref<9x24x440xf32, #tpu.memory_space<vmem>>, vector<1x24x440xf32>
    %28 = vector.shape_cast %27 : vector<1x24x440xf32> to vector<24x440xf32>
    %cst_22 = arith.constant dense<0.000000e+00> : vector<22x440xf32>
    %29 = tpu.matmul %26, %28, %cst_22 {dimension_numbers = #tpu.dot_dimension_numbers<[1], [0], [0], [1], [0, 0, 1, 1], [], []>} : vector<22x24xf32>, vector<24x440xf32>, vector<22x440xf32> -> vector<22x440xf32>
    %30 = arith.addf %25, %29 : vector<22x440xf32>
    %c1_23 = arith.constant 1 : index
    %c0_24 = arith.constant 0 : index
    %31 = vector.load %arg12[%c1_23, %c0_24] : memref<24x24xf32, #tpu.memory_space<vmem>>, vector<22x24xf32>
    %c3 = arith.constant 3 : index
    %c0_25 = arith.constant 0 : index
    %c0_26 = arith.constant 0 : index
    %32 = vector.load %arg2[%c3, %c0_25, %c0_26] : memref<9x24x440xf32, #tpu.memory_space<vmem>>, vector<1x24x440xf32>
    %33 = vector.shape_cast %32 : vector<1x24x440xf32> to vector<24x440xf32>
    %cst_27 = arith.constant dense<0.000000e+00> : vector<22x440xf32>
    %34 = tpu.matmul %31, %33, %cst_27 {dimension_numbers = #tpu.dot_dimension_numbers<[1], [0], [0], [1], [0, 0, 1, 1], [], []>} : vector<22x24xf32>, vector<24x440xf32>, vector<22x440xf32> -> vector<22x440xf32>
    %35 = arith.addf %30, %34 : vector<22x440xf32>
    %c1_28 = arith.constant 1 : index
    %c0_29 = arith.constant 0 : index
    %36 = vector.load %arg12[%c1_28, %c0_29] : memref<24x24xf32, #tpu.memory_space<vmem>>, vector<22x24xf32>
    %c4 = arith.constant 4 : index
    %c0_30 = arith.constant 0 : index
    %c0_31 = arith.constant 0 : index
    %37 = vector.load %arg2[%c4, %c0_30, %c0_31] : memref<9x24x440xf32, #tpu.memory_space<vmem>>, vector<1x24x440xf32>
    %38 = vector.shape_cast %37 : vector<1x24x440xf32> to vector<24x440xf32>
    %cst_32 = arith.constant dense<0.000000e+00> : vector<22x440xf32>
    %39 = tpu.matmul %36, %38, %cst_32 {dimension_numbers = #tpu.dot_dimension_numbers<[1], [0], [0], [1], [0, 0, 1, 1], [], []>} : vector<22x24xf32>, vector<24x440xf32>, vector<22x440xf32> -> vector<22x440xf32>
    %40 = arith.addf %35, %39 : vector<22x440xf32>
    %c1_33 = arith.constant 1 : index
    %c0_34 = arith.constant 0 : index
    %41 = vector.load %arg12[%c1_33, %c0_34] : memref<24x24xf32, #tpu.memory_space<vmem>>, vector<22x24xf32>
    %c5 = arith.constant 5 : index
    %c0_35 = arith.constant 0 : index
    %c0_36 = arith.constant 0 : index
    %42 = vector.load %arg2[%c5, %c0_35, %c0_36] : memref<9x24x440xf32, #tpu.memory_space<vmem>>, vector<1x24x440xf32>
    %43 = vector.shape_cast %42 : vector<1x24x440xf32> to vector<24x440xf32>
    %cst_37 = arith.constant dense<0.000000e+00> : vector<22x440xf32>
    %44 = tpu.matmul %41, %43, %cst_37 {dimension_numbers = #tpu.dot_dimension_numbers<[1], [0], [0], [1], [0, 0, 1, 1], [], []>} : vector<22x24xf32>, vector<24x440xf32>, vector<22x440xf32> -> vector<22x440xf32>
    %45 = arith.addf %40, %44 : vector<22x440xf32>
    %c2_38 = arith.constant 2 : index
    %c0_39 = arith.constant 0 : index
    %46 = vector.load %arg12[%c2_38, %c0_39] : memref<24x24xf32, #tpu.memory_space<vmem>>, vector<22x24xf32>
    %c6 = arith.constant 6 : index
    %c0_40 = arith.constant 0 : index
    %c0_41 = arith.constant 0 : index
    %47 = vector.load %arg2[%c6, %c0_40, %c0_41] : memref<9x24x440xf32, #tpu.memory_space<vmem>>, vector<1x24x440xf32>
    %48 = vector.shape_cast %47 : vector<1x24x440xf32> to vector<24x440xf32>
    %cst_42 = arith.constant dense<0.000000e+00> : vector<22x440xf32>
    %49 = tpu.matmul %46, %48, %cst_42 {dimension_numbers = #tpu.dot_dimension_numbers<[1], [0], [0], [1], [0, 0, 1, 1], [], []>} : vector<22x24xf32>, vector<24x440xf32>, vector<22x440xf32> -> vector<22x440xf32>
    %50 = arith.addf %45, %49 : vector<22x440xf32>
    %c2_43 = arith.constant 2 : index
    %c0_44 = arith.constant 0 : index
    %51 = vector.load %arg12[%c2_43, %c0_44] : memref<24x24xf32, #tpu.memory_space<vmem>>, vector<22x24xf32>
    %c7 = arith.constant 7 : index
    %c0_45 = arith.constant 0 : index
    %c0_46 = arith.constant 0 : index
    %52 = vector.load %arg2[%c7, %c0_45, %c0_46] : memref<9x24x440xf32, #tpu.memory_space<vmem>>, vector<1x24x440xf32>
    %53 = vector.shape_cast %52 : vector<1x24x440xf32> to vector<24x440xf32>
    %cst_47 = arith.constant dense<0.000000e+00> : vector<22x440xf32>
    %54 = tpu.matmul %51, %53, %cst_47 {dimension_numbers = #tpu.dot_dimension_numbers<[1], [0], [0], [1], [0, 0, 1, 1], [], []>} : vector<22x24xf32>, vector<24x440xf32>, vector<22x440xf32> -> vector<22x440xf32>
    %55 = arith.addf %50, %54 : vector<22x440xf32>
    %c2_48 = arith.constant 2 : index
    %c0_49 = arith.constant 0 : index
    %56 = vector.load %arg12[%c2_48, %c0_49] : memref<24x24xf32, #tpu.memory_space<vmem>>, vector<22x24xf32>
    %c8 = arith.constant 8 : index
    %c0_50 = arith.constant 0 : index
    %c0_51 = arith.constant 0 : index
    %57 = vector.load %arg2[%c8, %c0_50, %c0_51] : memref<9x24x440xf32, #tpu.memory_space<vmem>>, vector<1x24x440xf32>
    %58 = vector.shape_cast %57 : vector<1x24x440xf32> to vector<24x440xf32>
    %cst_52 = arith.constant dense<0.000000e+00> : vector<22x440xf32>
    %59 = tpu.matmul %56, %58, %cst_52 {dimension_numbers = #tpu.dot_dimension_numbers<[1], [0], [0], [1], [0, 0, 1, 1], [], []>} : vector<22x24xf32>, vector<24x440xf32>, vector<22x440xf32> -> vector<22x440xf32>
    %60 = arith.addf %55, %59 : vector<22x440xf32>
    %c0_53 = arith.constant 0 : index
    %c0_54 = arith.constant 0 : index
    %61 = vector.load %arg3[%c0_53, %c0_54] : memref<11x22xf32, #tpu.memory_space<vmem>>, vector<11x22xf32>
    %cst_55 = arith.constant dense<0.000000e+00> : vector<11x440xf32>
    %62 = tpu.matmul %61, %60, %cst_55 {dimension_numbers = #tpu.dot_dimension_numbers<[1], [0], [0], [1], [0, 0, 1, 1], [], []>} : vector<11x22xf32>, vector<22x440xf32>, vector<11x440xf32> -> vector<11x440xf32>
    %c0_56 = arith.constant 0 : index
    %c0_57 = arith.constant 0 : index
    %63 = vector.load %arg4[%c0_56, %c0_57] : memref<440x220xf32, #tpu.memory_space<vmem>>, vector<440x220xf32>
    %cst_58 = arith.constant dense<0.000000e+00> : vector<11x220xf32>
    %64 = tpu.matmul %62, %63, %cst_58 {dimension_numbers = #tpu.dot_dimension_numbers<[1], [0], [0], [1], [0, 0, 1, 1], [], []>} : vector<11x440xf32>, vector<440x220xf32>, vector<11x220xf32> -> vector<11x220xf32>
    %c0_59 = arith.constant 0 : index
    %c0_60 = arith.constant 0 : index
    %65 = vector.load %arg13[%c0_59, %c0_60] : memref<11x220xf32, #tpu.memory_space<vmem>>, vector<11x220xf32>
    tpu.vector_store %arg13[%c0_59, %c0_60], %64 {strides = array<i32>} : memref<11x220xf32, #tpu.memory_space<vmem>>, vector<11x220xf32>,
    %cst_61 = arith.constant 0.000000e+00 : f32
    %66 = vector.broadcast %cst_61 : f32 to vector<9x135xf32>
    %c0_62 = arith.constant 0 : index
    %c0_63 = arith.constant 0 : index
    %67 = vector.load %arg13[%c0_62, %c0_63] : memref<11x220xf32, #tpu.memory_space<vmem>>, vector<9x220xf32>
    %c0_64 = arith.constant 0 : index
    %c0_65 = arith.constant 0 : index
    %c0_66 = arith.constant 0 : index
    %68 = vector.load %arg5[%c0_64, %c0_65, %c0_66] : memref<9x220x135xf32, #tpu.memory_space<vmem>>, vector<1x220x135xf32>
    %69 = vector.shape_cast %68 : vector<1x220x135xf32> to vector<220x135xf32>
    %cst_67 = arith.constant dense<0.000000e+00> : vector<9x135xf32>
    %70 = tpu.matmul %67, %69, %cst_67 {dimension_numbers = #tpu.dot_dimension_numbers<[1], [0], [0], [1], [0, 0, 1, 1], [], []>} : vector<9x220xf32>, vector<220x135xf32>, vector<9x135xf32> -> vector<9x135xf32>
    %71 = arith.addf %66, %70 : vector<9x135xf32>
    %c0_68 = arith.constant 0 : index
    %c0_69 = arith.constant 0 : index
    %72 = vector.load %arg13[%c0_68, %c0_69] : memref<11x220xf32, #tpu.memory_space<vmem>>, vector<9x220xf32>
    %c1_70 = arith.constant 1 : index
    %c0_71 = arith.constant 0 : index
    %c0_72 = arith.constant 0 : index
    %73 = vector.load %arg5[%c1_70, %c0_71, %c0_72] : memref<9x220x135xf32, #tpu.memory_space<vmem>>, vector<1x220x135xf32>
    %74 = vector.shape_cast %73 : vector<1x220x135xf32> to vector<220x135xf32>
    %cst_73 = arith.constant dense<0.000000e+00> : vector<9x135xf32>
    %75 = tpu.matmul %72, %74, %cst_73 {dimension_numbers = #tpu.dot_dimension_numbers<[1], [0], [0], [1], [0, 0, 1, 1], [], []>} : vector<9x220xf32>, vector<220x135xf32>, vector<9x135xf32> -> vector<9x135xf32>
    %76 = arith.addf %71, %75 : vector<9x135xf32>
    %c0_74 = arith.constant 0 : index
    %c0_75 = arith.constant 0 : index
    %77 = vector.load %arg13[%c0_74, %c0_75] : memref<11x220xf32, #tpu.memory_space<vmem>>, vector<9x220xf32>
    %c2_76 = arith.constant 2 : index
    %c0_77 = arith.constant 0 : index
    %c0_78 = arith.constant 0 : index
    %78 = vector.load %arg5[%c2_76, %c0_77, %c0_78] : memref<9x220x135xf32, #tpu.memory_space<vmem>>, vector<1x220x135xf32>
    %79 = vector.shape_cast %78 : vector<1x220x135xf32> to vector<220x135xf32>
    %cst_79 = arith.constant dense<0.000000e+00> : vector<9x135xf32>
    %80 = tpu.matmul %77, %79, %cst_79 {dimension_numbers = #tpu.dot_dimension_numbers<[1], [0], [0], [1], [0, 0, 1, 1], [], []>} : vector<9x220xf32>, vector<220x135xf32>, vector<9x135xf32> -> vector<9x135xf32>
    %81 = arith.addf %76, %80 : vector<9x135xf32>
    %c1_80 = arith.constant 1 : index
    %c0_81 = arith.constant 0 : index
    %82 = vector.load %arg13[%c1_80, %c0_81] : memref<11x220xf32, #tpu.memory_space<vmem>>, vector<9x220xf32>
    %c3_82 = arith.constant 3 : index
    %c0_83 = arith.constant 0 : index
    %c0_84 = arith.constant 0 : index
    %83 = vector.load %arg5[%c3_82, %c0_83, %c0_84] : memref<9x220x135xf32, #tpu.memory_space<vmem>>, vector<1x220x135xf32>
    %84 = vector.shape_cast %83 : vector<1x220x135xf32> to vector<220x135xf32>
    %cst_85 = arith.constant dense<0.000000e+00> : vector<9x135xf32>
    %85 = tpu.matmul %82, %84, %cst_85 {dimension_numbers = #tpu.dot_dimension_numbers<[1], [0], [0], [1], [0, 0, 1, 1], [], []>} : vector<9x220xf32>, vector<220x135xf32>, vector<9x135xf32> -> vector<9x135xf32>
    %86 = arith.addf %81, %85 : vector<9x135xf32>
    %c1_86 = arith.constant 1 : index
    %c0_87 = arith.constant 0 : index
    %87 = vector.load %arg13[%c1_86, %c0_87] : memref<11x220xf32, #tpu.memory_space<vmem>>, vector<9x220xf32>
    %c4_88 = arith.constant 4 : index
    %c0_89 = arith.constant 0 : index
    %c0_90 = arith.constant 0 : index
    %88 = vector.load %arg5[%c4_88, %c0_89, %c0_90] : memref<9x220x135xf32, #tpu.memory_space<vmem>>, vector<1x220x135xf32>
    %89 = vector.shape_cast %88 : vector<1x220x135xf32> to vector<220x135xf32>
    %cst_91 = arith.constant dense<0.000000e+00> : vector<9x135xf32>
    %90 = tpu.matmul %87, %89, %cst_91 {dimension_numbers = #tpu.dot_dimension_numbers<[1], [0], [0], [1], [0, 0, 1, 1], [], []>} : vector<9x220xf32>, vector<220x135xf32>, vector<9x135xf32> -> vector<9x135xf32>
    %91 = arith.addf %86, %90 : vector<9x135xf32>
    %c1_92 = arith.constant 1 : index
    %c0_93 = arith.constant 0 : index
    %92 = vector.load %arg13[%c1_92, %c0_93] : memref<11x220xf32, #tpu.memory_space<vmem>>, vector<9x220xf32>
    %c5_94 = arith.constant 5 : index
    %c0_95 = arith.constant 0 : index
    %c0_96 = arith.constant 0 : index
    %93 = vector.load %arg5[%c5_94, %c0_95, %c0_96] : memref<9x220x135xf32, #tpu.memory_space<vmem>>, vector<1x220x135xf32>
    %94 = vector.shape_cast %93 : vector<1x220x135xf32> to vector<220x135xf32>
    %cst_97 = arith.constant dense<0.000000e+00> : vector<9x135xf32>
    %95 = tpu.matmul %92, %94, %cst_97 {dimension_numbers = #tpu.dot_dimension_numbers<[1], [0], [0], [1], [0, 0, 1, 1], [], []>} : vector<9x220xf32>, vector<220x135xf32>, vector<9x135xf32> -> vector<9x135xf32>
    %96 = arith.addf %91, %95 : vector<9x135xf32>
    %c2_98 = arith.constant 2 : index
    %c0_99 = arith.constant 0 : index
    %97 = vector.load %arg13[%c2_98, %c0_99] : memref<11x220xf32, #tpu.memory_space<vmem>>, vector<9x220xf32>
    %c6_100 = arith.constant 6 : index
    %c0_101 = arith.constant 0 : index
    %c0_102 = arith.constant 0 : index
    %98 = vector.load %arg5[%c6_100, %c0_101, %c0_102] : memref<9x220x135xf32, #tpu.memory_space<vmem>>, vector<1x220x135xf32>
    %99 = vector.shape_cast %98 : vector<1x220x135xf32> to vector<220x135xf32>
    %cst_103 = arith.constant dense<0.000000e+00> : vector<9x135xf32>
    %100 = tpu.matmul %97, %99, %cst_103 {dimension_numbers = #tpu.dot_dimension_numbers<[1], [0], [0], [1], [0, 0, 1, 1], [], []>} : vector<9x220xf32>, vector<220x135xf32>, vector<9x135xf32> -> vector<9x135xf32>
    %101 = arith.addf %96, %100 : vector<9x135xf32>
    %c2_104 = arith.constant 2 : index
    %c0_105 = arith.constant 0 : index
    %102 = vector.load %arg13[%c2_104, %c0_105] : memref<11x220xf32, #tpu.memory_space<vmem>>, vector<9x220xf32>
    %c7_106 = arith.constant 7 : index
    %c0_107 = arith.constant 0 : index
    %c0_108 = arith.constant 0 : index
    %103 = vector.load %arg5[%c7_106, %c0_107, %c0_108] : memref<9x220x135xf32, #tpu.memory_space<vmem>>, vector<1x220x135xf32>
    %104 = vector.shape_cast %103 : vector<1x220x135xf32> to vector<220x135xf32>
    %cst_109 = arith.constant dense<0.000000e+00> : vector<9x135xf32>
    %105 = tpu.matmul %102, %104, %cst_109 {dimension_numbers = #tpu.dot_dimension_numbers<[1], [0], [0], [1], [0, 0, 1, 1], [], []>} : vector<9x220xf32>, vector<220x135xf32>, vector<9x135xf32> -> vector<9x135xf32>
    %106 = arith.addf %101, %105 : vector<9x135xf32>
    %c2_110 = arith.constant 2 : index
    %c0_111 = arith.constant 0 : index
    %107 = vector.load %arg13[%c2_110, %c0_111] : memref<11x220xf32, #tpu.memory_space<vmem>>, vector<9x220xf32>
    %c8_112 = arith.constant 8 : index
    %c0_113 = arith.constant 0 : index
    %c0_114 = arith.constant 0 : index
    %108 = vector.load %arg5[%c8_112, %c0_113, %c0_114] : memref<9x220x135xf32, #tpu.memory_space<vmem>>, vector<1x220x135xf32>
    %109 = vector.shape_cast %108 : vector<1x220x135xf32> to vector<220x135xf32>
    %cst_115 = arith.constant dense<0.000000e+00> : vector<9x135xf32>
    %110 = tpu.matmul %107, %109, %cst_115 {dimension_numbers = #tpu.dot_dimension_numbers<[1], [0], [0], [1], [0, 0, 1, 1], [], []>} : vector<9x220xf32>, vector<220x135xf32>, vector<9x135xf32> -> vector<9x135xf32>
    %111 = arith.addf %106, %110 : vector<9x135xf32>
    %c0_116 = arith.constant 0 : index
    %c0_117 = arith.constant 0 : index
    %112 = vector.load %arg6[%c0_116, %c0_117] : memref<4x9xf32, #tpu.memory_space<vmem>>, vector<4x9xf32>
    %cst_118 = arith.constant dense<0.000000e+00> : vector<4x135xf32>
    %113 = tpu.matmul %112, %111, %cst_118 {dimension_numbers = #tpu.dot_dimension_numbers<[1], [0], [0], [1], [0, 0, 1, 1], [], []>} : vector<4x9xf32>, vector<9x135xf32>, vector<4x135xf32> -> vector<4x135xf32>
    %c0_119 = arith.constant 0 : index
    %c0_120 = arith.constant 0 : index
    %114 = vector.load %arg7[%c0_119, %c0_120] : memref<135x60xf32, #tpu.memory_space<vmem>>, vector<135x60xf32>
    %cst_121 = arith.constant dense<0.000000e+00> : vector<4x60xf32>
    %115 = tpu.matmul %113, %114, %cst_121 {dimension_numbers = #tpu.dot_dimension_numbers<[1], [0], [0], [1], [0, 0, 1, 1], [], []>} : vector<4x135xf32>, vector<135x60xf32>, vector<4x60xf32> -> vector<4x60xf32>
    %c0_122 = arith.constant 0 : index
    %c0_123 = arith.constant 0 : index
    %116 = vector.load %arg14[%c0_122, %c0_123] : memref<4x60xf32, #tpu.memory_space<vmem>>, vector<4x60xf32>
    tpu.vector_store %arg14[%c0_122, %c0_123], %115 {strides = array<i32>} : memref<4x60xf32, #tpu.memory_space<vmem>>, vector<4x60xf32>,
    %c0_124 = arith.constant 0 : index
    %c0_125 = arith.constant 0 : index
    %117 = vector.load %arg14[%c0_124, %c0_125] : memref<4x60xf32, #tpu.memory_space<vmem>>, vector<1x60xf32>
    %c0_126 = arith.constant 0 : index
    %c0_127 = arith.constant 0 : index
    %c0_128 = arith.constant 0 : index
    %118 = vector.load %arg8[%c0_126, %c0_127, %c0_128] : memref<4x60x78xf32, #tpu.memory_space<vmem>>, vector<1x60x78xf32>
    %119 = vector.shape_cast %118 : vector<1x60x78xf32> to vector<60x78xf32>
    %cst_129 = arith.constant dense<0.000000e+00> : vector<1x78xf32>
    %120 = tpu.matmul %117, %119, %cst_129 {dimension_numbers = #tpu.dot_dimension_numbers<[1], [0], [0], [1], [0, 0, 1, 1], [], []>} : vector<1x60xf32>, vector<60x78xf32>, vector<1x78xf32> -> vector<1x78xf32>
    %c1_130 = arith.constant 1 : index
    %c0_131 = arith.constant 0 : index
    %121 = vector.load %arg14[%c1_130, %c0_131] : memref<4x60xf32, #tpu.memory_space<vmem>>, vector<1x60xf32>
    %c1_132 = arith.constant 1 : index
    %c0_133 = arith.constant 0 : index
    %c0_134 = arith.constant 0 : index
    %122 = vector.load %arg8[%c1_132, %c0_133, %c0_134] : memref<4x60x78xf32, #tpu.memory_space<vmem>>, vector<1x60x78xf32>
    %123 = vector.shape_cast %122 : vector<1x60x78xf32> to vector<60x78xf32>
    %cst_135 = arith.constant dense<0.000000e+00> : vector<1x78xf32>
    %124 = tpu.matmul %121, %123, %cst_135 {dimension_numbers = #tpu.dot_dimension_numbers<[1], [0], [0], [1], [0, 0, 1, 1], [], []>} : vector<1x60xf32>, vector<60x78xf32>, vector<1x78xf32> -> vector<1x78xf32>
    %125 = arith.addf %120, %124 : vector<1x78xf32>
    %c2_136 = arith.constant 2 : index
    %c0_137 = arith.constant 0 : index
    %126 = vector.load %arg14[%c2_136, %c0_137] : memref<4x60xf32, #tpu.memory_space<vmem>>, vector<1x60xf32>
    %c2_138 = arith.constant 2 : index
    %c0_139 = arith.constant 0 : index
    %c0_140 = arith.constant 0 : index
    %127 = vector.load %arg8[%c2_138, %c0_139, %c0_140] : memref<4x60x78xf32, #tpu.memory_space<vmem>>, vector<1x60x78xf32>
    %128 = vector.shape_cast %127 : vector<1x60x78xf32> to vector<60x78xf32>
    %cst_141 = arith.constant dense<0.000000e+00> : vector<1x78xf32>
    %129 = tpu.matmul %126, %128, %cst_141 {dimension_numbers = #tpu.dot_dimension_numbers<[1], [0], [0], [1], [0, 0, 1, 1], [], []>} : vector<1x60xf32>, vector<60x78xf32>, vector<1x78xf32> -> vector<1x78xf32>
    %130 = arith.addf %125, %129 : vector<1x78xf32>
    %c3_142 = arith.constant 3 : index
    %c0_143 = arith.constant 0 : index
    %131 = vector.load %arg14[%c3_142, %c0_143] : memref<4x60xf32, #tpu.memory_space<vmem>>, vector<1x60xf32>
    %c3_144 = arith.constant 3 : index
    %c0_145 = arith.constant 0 : index
    %c0_146 = arith.constant 0 : index
    %132 = vector.load %arg8[%c3_144, %c0_145, %c0_146] : memref<4x60x78xf32, #tpu.memory_space<vmem>>, vector<1x60x78xf32>
    %133 = vector.shape_cast %132 : vector<1x60x78xf32> to vector<60x78xf32>
    %cst_147 = arith.constant dense<0.000000e+00> : vector<1x78xf32>
    %134 = tpu.matmul %131, %133, %cst_147 {dimension_numbers = #tpu.dot_dimension_numbers<[1], [0], [0], [1], [0, 0, 1, 1], [], []>} : vector<1x60xf32>, vector<60x78xf32>, vector<1x78xf32> -> vector<1x78xf32>
    %135 = arith.addf %130, %134 : vector<1x78xf32>
    %c0_148 = arith.constant 0 : index
    %c0_149 = arith.constant 0 : index
    %136 = vector.load %arg9[%c0_148, %c0_149] : memref<78x2xf32, #tpu.memory_space<vmem>>, vector<78x2xf32>
    %cst_150 = arith.constant dense<0.000000e+00> : vector<1x2xf32>
    %137 = tpu.matmul %135, %136, %cst_150 {dimension_numbers = #tpu.dot_dimension_numbers<[1], [0], [0], [1], [0, 0, 1, 1], [], []>} : vector<1x78xf32>, vector<78x2xf32>, vector<1x2xf32> -> vector<1x2xf32>
    %cst_151 = arith.constant dense<0xFF800000> : vector<1xf32>
    %138 = vector.multi_reduction <maximumf>, %137, %cst_151 [1] : vector<1x2xf32> to vector<1xf32>
    %139 = vector.shape_cast %138 : vector<1xf32> to vector<1x1xf32>
    %140 = vector.broadcast %139 : vector<1x1xf32> to vector<1x2xf32>
    %141 = arith.subf %137, %140 : vector<1x2xf32>
    %142 = math.exp %141 : vector<1x2xf32>
    %cst_152 = arith.constant dense<0.000000e+00> : vector<1xf32>
    %143 = vector.multi_reduction <add>, %142, %cst_152 [1] : vector<1x2xf32> to vector<1xf32>
    %144 = vector.shape_cast %143 : vector<1xf32> to vector<1x1xf32>
    %145 = tpu.reciprocal %144 {approx = true} : vector<1x1xf32> -> vector<1x1xf32>
    %146 = vector.broadcast %145 : vector<1x1xf32> to vector<1x2xf32>
    %147 = arith.mulf %142, %146 : vector<1x2xf32>
    %c0_153 = arith.constant 0 : index
    %c0_154 = arith.constant 0 : index
    %148 = vector.load %arg10[%c0_153, %c0_154] : memref<2x78xf32, #tpu.memory_space<vmem>>, vector<1x78xf32>
    tpu.vector_store %arg10[%c0_153, %c0_154], %135 {strides = array<i32>} : memref<2x78xf32, #tpu.memory_space<vmem>>, vector<1x78xf32>,
    %c0_155 = arith.constant 0 : index
    %c0_156 = arith.constant 0 : index
    %149 = vector.load %arg11[%c0_155, %c0_156] : memref<2x2xf32, #tpu.memory_space<vmem>>, vector<1x2xf32>
    tpu.vector_store %arg11[%c0_155, %c0_156], %147 {strides = array<i32>} : memref<2x2xf32, #tpu.memory_space<vmem>>, vector<1x2xf32>,
    %c1_157 = arith.constant 1 : index
    %c0_158 = arith.constant 0 : index
    %150 = vector.load %arg0[%c1_157, %c0_158] : memref<2x16xi32, #tpu.memory_space<vmem>>, vector<1x16xi32>
    %c0_i32_159 = arith.constant 0 : i32
    %c12_i32_160 = arith.constant 12 : i32
    %151 = vector.broadcast %c0_i32_159 : i32 to vector<1x16xi32>
    %152 = arith.maxsi %151, %150 : vector<1x16xi32>
    %153 = vector.broadcast %c12_i32_160 : i32 to vector<1x16xi32>
    %154 = arith.minsi %153, %152 : vector<1x16xi32>
    %155 = vector.shape_cast %154 : vector<1x16xi32> to vector<1x16xi32>
    %156 = vector.broadcast %155 : vector<1x16xi32> to vector<16x16xi32>
    %157 = tpu.iota {dimensions = array<i32: 0>} : vector<16x16xi32>
    %158 = arith.cmpi eq, %157, %156 : vector<16x16xi32>
    %159 = arith.extui %158 : vector<16x16xi1> to vector<16x16xi32>
    %160 = arith.sitofp %159 : vector<16x16xi32> to vector<16x16xf32>
    %cst_161 = arith.constant dense<0.000000e+00> : vector<24x16xf32>
    %161 = tpu.matmul %0, %160, %cst_161 {dimension_numbers = #tpu.dot_dimension_numbers<[1], [1], [0], [0], [0, 0, 1, 0], [], []>} : vector<24x16xf32>, vector<16x16xf32>, vector<24x16xf32> -> vector<24x16xf32>
    %cst_162 = arith.constant dense<0.000000e+00> : vector<24x24xf32>
    %162 = tpu.matmul %161, %0, %cst_162 {dimension_numbers = #tpu.dot_dimension_numbers<[1], [1], [0], [0], [0, 0, 1, 0], [], []>} : vector<24x16xf32>, vector<24x16xf32>, vector<24x24xf32> -> vector<24x24xf32>
    %c0_163 = arith.constant 0 : index
    %c0_164 = arith.constant 0 : index
    %163 = vector.load %arg12[%c0_163, %c0_164] : memref<24x24xf32, #tpu.memory_space<vmem>>, vector<24x24xf32>
    tpu.vector_store %arg12[%c0_163, %c0_164], %162 {strides = array<i32>} : memref<24x24xf32, #tpu.memory_space<vmem>>, vector<24x24xf32>,
    %cst_165 = arith.constant 0.000000e+00 : f32
    %164 = vector.broadcast %cst_165 : f32 to vector<22x440xf32>
    %c0_166 = arith.constant 0 : index
    %c0_167 = arith.constant 0 : index
    %165 = vector.load %arg12[%c0_166, %c0_167] : memref<24x24xf32, #tpu.memory_space<vmem>>, vector<22x24xf32>
    %c0_168 = arith.constant 0 : index
    %c0_169 = arith.constant 0 : index
    %c0_170 = arith.constant 0 : index
    %166 = vector.load %arg2[%c0_168, %c0_169, %c0_170] : memref<9x24x440xf32, #tpu.memory_space<vmem>>, vector<1x24x440xf32>
    %167 = vector.shape_cast %166 : vector<1x24x440xf32> to vector<24x440xf32>
    %cst_171 = arith.constant dense<0.000000e+00> : vector<22x440xf32>
    %168 = tpu.matmul %165, %167, %cst_171 {dimension_numbers = #tpu.dot_dimension_numbers<[1], [0], [0], [1], [0, 0, 1, 1], [], []>} : vector<22x24xf32>, vector<24x440xf32>, vector<22x440xf32> -> vector<22x440xf32>
    %169 = arith.addf %164, %168 : vector<22x440xf32>
    %c0_172 = arith.constant 0 : index
    %c0_173 = arith.constant 0 : index
    %170 = vector.load %arg12[%c0_172, %c0_173] : memref<24x24xf32, #tpu.memory_space<vmem>>, vector<22x24xf32>
    %c1_174 = arith.constant 1 : index
    %c0_175 = arith.constant 0 : index
    %c0_176 = arith.constant 0 : index
    %171 = vector.load %arg2[%c1_174, %c0_175, %c0_176] : memref<9x24x440xf32, #tpu.memory_space<vmem>>, vector<1x24x440xf32>
    %172 = vector.shape_cast %171 : vector<1x24x440xf32> to vector<24x440xf32>
    %cst_177 = arith.constant dense<0.000000e+00> : vector<22x440xf32>
    %173 = tpu.matmul %170, %172, %cst_177 {dimension_numbers = #tpu.dot_dimension_numbers<[1], [0], [0], [1], [0, 0, 1, 1], [], []>} : vector<22x24xf32>, vector<24x440xf32>, vector<22x440xf32> -> vector<22x440xf32>
    %174 = arith.addf %169, %173 : vector<22x440xf32>
    %c0_178 = arith.constant 0 : index
    %c0_179 = arith.constant 0 : index
    %175 = vector.load %arg12[%c0_178, %c0_179] : memref<24x24xf32, #tpu.memory_space<vmem>>, vector<22x24xf32>
    %c2_180 = arith.constant 2 : index
    %c0_181 = arith.constant 0 : index
    %c0_182 = arith.constant 0 : index
    %176 = vector.load %arg2[%c2_180, %c0_181, %c0_182] : memref<9x24x440xf32, #tpu.memory_space<vmem>>, vector<1x24x440xf32>
    %177 = vector.shape_cast %176 : vector<1x24x440xf32> to vector<24x440xf32>
    %cst_183 = arith.constant dense<0.000000e+00> : vector<22x440xf32>
    %178 = tpu.matmul %175, %177, %cst_183 {dimension_numbers = #tpu.dot_dimension_numbers<[1], [0], [0], [1], [0, 0, 1, 1], [], []>} : vector<22x24xf32>, vector<24x440xf32>, vector<22x440xf32> -> vector<22x440xf32>
    %179 = arith.addf %174, %178 : vector<22x440xf32>
    %c1_184 = arith.constant 1 : index
    %c0_185 = arith.constant 0 : index
    %180 = vector.load %arg12[%c1_184, %c0_185] : memref<24x24xf32, #tpu.memory_space<vmem>>, vector<22x24xf32>
    %c3_186 = arith.constant 3 : index
    %c0_187 = arith.constant 0 : index
    %c0_188 = arith.constant 0 : index
    %181 = vector.load %arg2[%c3_186, %c0_187, %c0_188] : memref<9x24x440xf32, #tpu.memory_space<vmem>>, vector<1x24x440xf32>
    %182 = vector.shape_cast %181 : vector<1x24x440xf32> to vector<24x440xf32>
    %cst_189 = arith.constant dense<0.000000e+00> : vector<22x440xf32>
    %183 = tpu.matmul %180, %182, %cst_189 {dimension_numbers = #tpu.dot_dimension_numbers<[1], [0], [0], [1], [0, 0, 1, 1], [], []>} : vector<22x24xf32>, vector<24x440xf32>, vector<22x440xf32> -> vector<22x440xf32>
    %184 = arith.addf %179, %183 : vector<22x440xf32>
    %c1_190 = arith.constant 1 : index
    %c0_191 = arith.constant 0 : index
    %185 = vector.load %arg12[%c1_190, %c0_191] : memref<24x24xf32, #tpu.memory_space<vmem>>, vector<22x24xf32>
    %c4_192 = arith.constant 4 : index
    %c0_193 = arith.constant 0 : index
    %c0_194 = arith.constant 0 : index
    %186 = vector.load %arg2[%c4_192, %c0_193, %c0_194] : memref<9x24x440xf32, #tpu.memory_space<vmem>>, vector<1x24x440xf32>
    %187 = vector.shape_cast %186 : vector<1x24x440xf32> to vector<24x440xf32>
    %cst_195 = arith.constant dense<0.000000e+00> : vector<22x440xf32>
    %188 = tpu.matmul %185, %187, %cst_195 {dimension_numbers = #tpu.dot_dimension_numbers<[1], [0], [0], [1], [0, 0, 1, 1], [], []>} : vector<22x24xf32>, vector<24x440xf32>, vector<22x440xf32> -> vector<22x440xf32>
    %189 = arith.addf %184, %188 : vector<22x440xf32>
    %c1_196 = arith.constant 1 : index
    %c0_197 = arith.constant 0 : index
    %190 = vector.load %arg12[%c1_196, %c0_197] : memref<24x24xf32, #tpu.memory_space<vmem>>, vector<22x24xf32>
    %c5_198 = arith.constant 5 : index
    %c0_199 = arith.constant 0 : index
    %c0_200 = arith.constant 0 : index
    %191 = vector.load %arg2[%c5_198, %c0_199, %c0_200] : memref<9x24x440xf32, #tpu.memory_space<vmem>>, vector<1x24x440xf32>
    %192 = vector.shape_cast %191 : vector<1x24x440xf32> to vector<24x440xf32>
    %cst_201 = arith.constant dense<0.000000e+00> : vector<22x440xf32>
    %193 = tpu.matmul %190, %192, %cst_201 {dimension_numbers = #tpu.dot_dimension_numbers<[1], [0], [0], [1], [0, 0, 1, 1], [], []>} : vector<22x24xf32>, vector<24x440xf32>, vector<22x440xf32> -> vector<22x440xf32>
    %194 = arith.addf %189, %193 : vector<22x440xf32>
    %c2_202 = arith.constant 2 : index
    %c0_203 = arith.constant 0 : index
    %195 = vector.load %arg12[%c2_202, %c0_203] : memref<24x24xf32, #tpu.memory_space<vmem>>, vector<22x24xf32>
    %c6_204 = arith.constant 6 : index
    %c0_205 = arith.constant 0 : index
    %c0_206 = arith.constant 0 : index
    %196 = vector.load %arg2[%c6_204, %c0_205, %c0_206] : memref<9x24x440xf32, #tpu.memory_space<vmem>>, vector<1x24x440xf32>
    %197 = vector.shape_cast %196 : vector<1x24x440xf32> to vector<24x440xf32>
    %cst_207 = arith.constant dense<0.000000e+00> : vector<22x440xf32>
    %198 = tpu.matmul %195, %197, %cst_207 {dimension_numbers = #tpu.dot_dimension_numbers<[1], [0], [0], [1], [0, 0, 1, 1], [], []>} : vector<22x24xf32>, vector<24x440xf32>, vector<22x440xf32> -> vector<22x440xf32>
    %199 = arith.addf %194, %198 : vector<22x440xf32>
    %c2_208 = arith.constant 2 : index
    %c0_209 = arith.constant 0 : index
    %200 = vector.load %arg12[%c2_208, %c0_209] : memref<24x24xf32, #tpu.memory_space<vmem>>, vector<22x24xf32>
    %c7_210 = arith.constant 7 : index
    %c0_211 = arith.constant 0 : index
    %c0_212 = arith.constant 0 : index
    %201 = vector.load %arg2[%c7_210, %c0_211, %c0_212] : memref<9x24x440xf32, #tpu.memory_space<vmem>>, vector<1x24x440xf32>
    %202 = vector.shape_cast %201 : vector<1x24x440xf32> to vector<24x440xf32>
    %cst_213 = arith.constant dense<0.000000e+00> : vector<22x440xf32>
    %203 = tpu.matmul %200, %202, %cst_213 {dimension_numbers = #tpu.dot_dimension_numbers<[1], [0], [0], [1], [0, 0, 1, 1], [], []>} : vector<22x24xf32>, vector<24x440xf32>, vector<22x440xf32> -> vector<22x440xf32>
    %204 = arith.addf %199, %203 : vector<22x440xf32>
    %c2_214 = arith.constant 2 : index
    %c0_215 = arith.constant 0 : index
    %205 = vector.load %arg12[%c2_214, %c0_215] : memref<24x24xf32, #tpu.memory_space<vmem>>, vector<22x24xf32>
    %c8_216 = arith.constant 8 : index
    %c0_217 = arith.constant 0 : index
    %c0_218 = arith.constant 0 : index
    %206 = vector.load %arg2[%c8_216, %c0_217, %c0_218] : memref<9x24x440xf32, #tpu.memory_space<vmem>>, vector<1x24x440xf32>
    %207 = vector.shape_cast %206 : vector<1x24x440xf32> to vector<24x440xf32>
    %cst_219 = arith.constant dense<0.000000e+00> : vector<22x440xf32>
    %208 = tpu.matmul %205, %207, %cst_219 {dimension_numbers = #tpu.dot_dimension_numbers<[1], [0], [0], [1], [0, 0, 1, 1], [], []>} : vector<22x24xf32>, vector<24x440xf32>, vector<22x440xf32> -> vector<22x440xf32>
    %209 = arith.addf %204, %208 : vector<22x440xf32>
    %c0_220 = arith.constant 0 : index
    %c0_221 = arith.constant 0 : index
    %210 = vector.load %arg3[%c0_220, %c0_221] : memref<11x22xf32, #tpu.memory_space<vmem>>, vector<11x22xf32>
    %cst_222 = arith.constant dense<0.000000e+00> : vector<11x440xf32>
    %211 = tpu.matmul %210, %209, %cst_222 {dimension_numbers = #tpu.dot_dimension_numbers<[1], [0], [0], [1], [0, 0, 1, 1], [], []>} : vector<11x22xf32>, vector<22x440xf32>, vector<11x440xf32> -> vector<11x440xf32>
    %c0_223 = arith.constant 0 : index
    %c0_224 = arith.constant 0 : index
    %212 = vector.load %arg4[%c0_223, %c0_224] : memref<440x220xf32, #tpu.memory_space<vmem>>, vector<440x220xf32>
    %cst_225 = arith.constant dense<0.000000e+00> : vector<11x220xf32>
    %213 = tpu.matmul %211, %212, %cst_225 {dimension_numbers = #tpu.dot_dimension_numbers<[1], [0], [0], [1], [0, 0, 1, 1], [], []>} : vector<11x440xf32>, vector<440x220xf32>, vector<11x220xf32> -> vector<11x220xf32>
    %c0_226 = arith.constant 0 : index
    %c0_227 = arith.constant 0 : index
    %214 = vector.load %arg13[%c0_226, %c0_227] : memref<11x220xf32, #tpu.memory_space<vmem>>, vector<11x220xf32>
    tpu.vector_store %arg13[%c0_226, %c0_227], %213 {strides = array<i32>} : memref<11x220xf32, #tpu.memory_space<vmem>>, vector<11x220xf32>,
    %cst_228 = arith.constant 0.000000e+00 : f32
    %215 = vector.broadcast %cst_228 : f32 to vector<9x135xf32>
    %c0_229 = arith.constant 0 : index
    %c0_230 = arith.constant 0 : index
    %216 = vector.load %arg13[%c0_229, %c0_230] : memref<11x220xf32, #tpu.memory_space<vmem>>, vector<9x220xf32>
    %c0_231 = arith.constant 0 : index
    %c0_232 = arith.constant 0 : index
    %c0_233 = arith.constant 0 : index
    %217 = vector.load %arg5[%c0_231, %c0_232, %c0_233] : memref<9x220x135xf32, #tpu.memory_space<vmem>>, vector<1x220x135xf32>
    %218 = vector.shape_cast %217 : vector<1x220x135xf32> to vector<220x135xf32>
    %cst_234 = arith.constant dense<0.000000e+00> : vector<9x135xf32>
    %219 = tpu.matmul %216, %218, %cst_234 {dimension_numbers = #tpu.dot_dimension_numbers<[1], [0], [0], [1], [0, 0, 1, 1], [], []>} : vector<9x220xf32>, vector<220x135xf32>, vector<9x135xf32> -> vector<9x135xf32>
    %220 = arith.addf %215, %219 : vector<9x135xf32>
    %c0_235 = arith.constant 0 : index
    %c0_236 = arith.constant 0 : index
    %221 = vector.load %arg13[%c0_235, %c0_236] : memref<11x220xf32, #tpu.memory_space<vmem>>, vector<9x220xf32>
    %c1_237 = arith.constant 1 : index
    %c0_238 = arith.constant 0 : index
    %c0_239 = arith.constant 0 : index
    %222 = vector.load %arg5[%c1_237, %c0_238, %c0_239] : memref<9x220x135xf32, #tpu.memory_space<vmem>>, vector<1x220x135xf32>
    %223 = vector.shape_cast %222 : vector<1x220x135xf32> to vector<220x135xf32>
    %cst_240 = arith.constant dense<0.000000e+00> : vector<9x135xf32>
    %224 = tpu.matmul %221, %223, %cst_240 {dimension_numbers = #tpu.dot_dimension_numbers<[1], [0], [0], [1], [0, 0, 1, 1], [], []>} : vector<9x220xf32>, vector<220x135xf32>, vector<9x135xf32> -> vector<9x135xf32>
    %225 = arith.addf %220, %224 : vector<9x135xf32>
    %c0_241 = arith.constant 0 : index
    %c0_242 = arith.constant 0 : index
    %226 = vector.load %arg13[%c0_241, %c0_242] : memref<11x220xf32, #tpu.memory_space<vmem>>, vector<9x220xf32>
    %c2_243 = arith.constant 2 : index
    %c0_244 = arith.constant 0 : index
    %c0_245 = arith.constant 0 : index
    %227 = vector.load %arg5[%c2_243, %c0_244, %c0_245] : memref<9x220x135xf32, #tpu.memory_space<vmem>>, vector<1x220x135xf32>
    %228 = vector.shape_cast %227 : vector<1x220x135xf32> to vector<220x135xf32>
    %cst_246 = arith.constant dense<0.000000e+00> : vector<9x135xf32>
    %229 = tpu.matmul %226, %228, %cst_246 {dimension_numbers = #tpu.dot_dimension_numbers<[1], [0], [0], [1], [0, 0, 1, 1], [], []>} : vector<9x220xf32>, vector<220x135xf32>, vector<9x135xf32> -> vector<9x135xf32>
    %230 = arith.addf %225, %229 : vector<9x135xf32>
    %c1_247 = arith.constant 1 : index
    %c0_248 = arith.constant 0 : index
    %231 = vector.load %arg13[%c1_247, %c0_248] : memref<11x220xf32, #tpu.memory_space<vmem>>, vector<9x220xf32>
    %c3_249 = arith.constant 3 : index
    %c0_250 = arith.constant 0 : index
    %c0_251 = arith.constant 0 : index
    %232 = vector.load %arg5[%c3_249, %c0_250, %c0_251] : memref<9x220x135xf32, #tpu.memory_space<vmem>>, vector<1x220x135xf32>
    %233 = vector.shape_cast %232 : vector<1x220x135xf32> to vector<220x135xf32>
    %cst_252 = arith.constant dense<0.000000e+00> : vector<9x135xf32>
    %234 = tpu.matmul %231, %233, %cst_252 {dimension_numbers = #tpu.dot_dimension_numbers<[1], [0], [0], [1], [0, 0, 1, 1], [], []>} : vector<9x220xf32>, vector<220x135xf32>, vector<9x135xf32> -> vector<9x135xf32>
    %235 = arith.addf %230, %234 : vector<9x135xf32>
    %c1_253 = arith.constant 1 : index
    %c0_254 = arith.constant 0 : index
    %236 = vector.load %arg13[%c1_253, %c0_254] : memref<11x220xf32, #tpu.memory_space<vmem>>, vector<9x220xf32>
    %c4_255 = arith.constant 4 : index
    %c0_256 = arith.constant 0 : index
    %c0_257 = arith.constant 0 : index
    %237 = vector.load %arg5[%c4_255, %c0_256, %c0_257] : memref<9x220x135xf32, #tpu.memory_space<vmem>>, vector<1x220x135xf32>
    %238 = vector.shape_cast %237 : vector<1x220x135xf32> to vector<220x135xf32>
    %cst_258 = arith.constant dense<0.000000e+00> : vector<9x135xf32>
    %239 = tpu.matmul %236, %238, %cst_258 {dimension_numbers = #tpu.dot_dimension_numbers<[1], [0], [0], [1], [0, 0, 1, 1], [], []>} : vector<9x220xf32>, vector<220x135xf32>, vector<9x135xf32> -> vector<9x135xf32>
    %240 = arith.addf %235, %239 : vector<9x135xf32>
    %c1_259 = arith.constant 1 : index
    %c0_260 = arith.constant 0 : index
    %241 = vector.load %arg13[%c1_259, %c0_260] : memref<11x220xf32, #tpu.memory_space<vmem>>, vector<9x220xf32>
    %c5_261 = arith.constant 5 : index
    %c0_262 = arith.constant 0 : index
    %c0_263 = arith.constant 0 : index
    %242 = vector.load %arg5[%c5_261, %c0_262, %c0_263] : memref<9x220x135xf32, #tpu.memory_space<vmem>>, vector<1x220x135xf32>
    %243 = vector.shape_cast %242 : vector<1x220x135xf32> to vector<220x135xf32>
    %cst_264 = arith.constant dense<0.000000e+00> : vector<9x135xf32>
    %244 = tpu.matmul %241, %243, %cst_264 {dimension_numbers = #tpu.dot_dimension_numbers<[1], [0], [0], [1], [0, 0, 1, 1], [], []>} : vector<9x220xf32>, vector<220x135xf32>, vector<9x135xf32> -> vector<9x135xf32>
    %245 = arith.addf %240, %244 : vector<9x135xf32>
    %c2_265 = arith.constant 2 : index
    %c0_266 = arith.constant 0 : index
    %246 = vector.load %arg13[%c2_265, %c0_266] : memref<11x220xf32, #tpu.memory_space<vmem>>, vector<9x220xf32>
    %c6_267 = arith.constant 6 : index
    %c0_268 = arith.constant 0 : index
    %c0_269 = arith.constant 0 : index
    %247 = vector.load %arg5[%c6_267, %c0_268, %c0_269] : memref<9x220x135xf32, #tpu.memory_space<vmem>>, vector<1x220x135xf32>
    %248 = vector.shape_cast %247 : vector<1x220x135xf32> to vector<220x135xf32>
    %cst_270 = arith.constant dense<0.000000e+00> : vector<9x135xf32>
    %249 = tpu.matmul %246, %248, %cst_270 {dimension_numbers = #tpu.dot_dimension_numbers<[1], [0], [0], [1], [0, 0, 1, 1], [], []>} : vector<9x220xf32>, vector<220x135xf32>, vector<9x135xf32> -> vector<9x135xf32>
    %250 = arith.addf %245, %249 : vector<9x135xf32>
    %c2_271 = arith.constant 2 : index
    %c0_272 = arith.constant 0 : index
    %251 = vector.load %arg13[%c2_271, %c0_272] : memref<11x220xf32, #tpu.memory_space<vmem>>, vector<9x220xf32>
    %c7_273 = arith.constant 7 : index
    %c0_274 = arith.constant 0 : index
    %c0_275 = arith.constant 0 : index
    %252 = vector.load %arg5[%c7_273, %c0_274, %c0_275] : memref<9x220x135xf32, #tpu.memory_space<vmem>>, vector<1x220x135xf32>
    %253 = vector.shape_cast %252 : vector<1x220x135xf32> to vector<220x135xf32>
    %cst_276 = arith.constant dense<0.000000e+00> : vector<9x135xf32>
    %254 = tpu.matmul %251, %253, %cst_276 {dimension_numbers = #tpu.dot_dimension_numbers<[1], [0], [0], [1], [0, 0, 1, 1], [], []>} : vector<9x220xf32>, vector<220x135xf32>, vector<9x135xf32> -> vector<9x135xf32>
    %255 = arith.addf %250, %254 : vector<9x135xf32>
    %c2_277 = arith.constant 2 : index
    %c0_278 = arith.constant 0 : index
    %256 = vector.load %arg13[%c2_277, %c0_278] : memref<11x220xf32, #tpu.memory_space<vmem>>, vector<9x220xf32>
    %c8_279 = arith.constant 8 : index
    %c0_280 = arith.constant 0 : index
    %c0_281 = arith.constant 0 : index
    %257 = vector.load %arg5[%c8_279, %c0_280, %c0_281] : memref<9x220x135xf32, #tpu.memory_space<vmem>>, vector<1x220x135xf32>
    %258 = vector.shape_cast %257 : vector<1x220x135xf32> to vector<220x135xf32>
    %cst_282 = arith.constant dense<0.000000e+00> : vector<9x135xf32>
    %259 = tpu.matmul %256, %258, %cst_282 {dimension_numbers = #tpu.dot_dimension_numbers<[1], [0], [0], [1], [0, 0, 1, 1], [], []>} : vector<9x220xf32>, vector<220x135xf32>, vector<9x135xf32> -> vector<9x135xf32>
    %260 = arith.addf %255, %259 : vector<9x135xf32>
    %c0_283 = arith.constant 0 : index
    %c0_284 = arith.constant 0 : index
    %261 = vector.load %arg6[%c0_283, %c0_284] : memref<4x9xf32, #tpu.memory_space<vmem>>, vector<4x9xf32>
    %cst_285 = arith.constant dense<0.000000e+00> : vector<4x135xf32>
    %262 = tpu.matmul %261, %260, %cst_285 {dimension_numbers = #tpu.dot_dimension_numbers<[1], [0], [0], [1], [0, 0, 1, 1], [], []>} : vector<4x9xf32>, vector<9x135xf32>, vector<4x135xf32> -> vector<4x135xf32>
    %c0_286 = arith.constant 0 : index
    %c0_287 = arith.constant 0 : index
    %263 = vector.load %arg7[%c0_286, %c0_287] : memref<135x60xf32, #tpu.memory_space<vmem>>, vector<135x60xf32>
    %cst_288 = arith.constant dense<0.000000e+00> : vector<4x60xf32>
    %264 = tpu.matmul %262, %263, %cst_288 {dimension_numbers = #tpu.dot_dimension_numbers<[1], [0], [0], [1], [0, 0, 1, 1], [], []>} : vector<4x135xf32>, vector<135x60xf32>, vector<4x60xf32> -> vector<4x60xf32>
    %c0_289 = arith.constant 0 : index
    %c0_290 = arith.constant 0 : index
    %265 = vector.load %arg14[%c0_289, %c0_290] : memref<4x60xf32, #tpu.memory_space<vmem>>, vector<4x60xf32>
    tpu.vector_store %arg14[%c0_289, %c0_290], %264 {strides = array<i32>} : memref<4x60xf32, #tpu.memory_space<vmem>>, vector<4x60xf32>,
    %c0_291 = arith.constant 0 : index
    %c0_292 = arith.constant 0 : index
    %266 = vector.load %arg14[%c0_291, %c0_292] : memref<4x60xf32, #tpu.memory_space<vmem>>, vector<1x60xf32>
    %c0_293 = arith.constant 0 : index
    %c0_294 = arith.constant 0 : index
    %c0_295 = arith.constant 0 : index
    %267 = vector.load %arg8[%c0_293, %c0_294, %c0_295] : memref<4x60x78xf32, #tpu.memory_space<vmem>>, vector<1x60x78xf32>
    %268 = vector.shape_cast %267 : vector<1x60x78xf32> to vector<60x78xf32>
    %cst_296 = arith.constant dense<0.000000e+00> : vector<1x78xf32>
    %269 = tpu.matmul %266, %268, %cst_296 {dimension_numbers = #tpu.dot_dimension_numbers<[1], [0], [0], [1], [0, 0, 1, 1], [], []>} : vector<1x60xf32>, vector<60x78xf32>, vector<1x78xf32> -> vector<1x78xf32>
    %c1_297 = arith.constant 1 : index
    %c0_298 = arith.constant 0 : index
    %270 = vector.load %arg14[%c1_297, %c0_298] : memref<4x60xf32, #tpu.memory_space<vmem>>, vector<1x60xf32>
    %c1_299 = arith.constant 1 : index
    %c0_300 = arith.constant 0 : index
    %c0_301 = arith.constant 0 : index
    %271 = vector.load %arg8[%c1_299, %c0_300, %c0_301] : memref<4x60x78xf32, #tpu.memory_space<vmem>>, vector<1x60x78xf32>
    %272 = vector.shape_cast %271 : vector<1x60x78xf32> to vector<60x78xf32>
    %cst_302 = arith.constant dense<0.000000e+00> : vector<1x78xf32>
    %273 = tpu.matmul %270, %272, %cst_302 {dimension_numbers = #tpu.dot_dimension_numbers<[1], [0], [0], [1], [0, 0, 1, 1], [], []>} : vector<1x60xf32>, vector<60x78xf32>, vector<1x78xf32> -> vector<1x78xf32>
    %274 = arith.addf %269, %273 : vector<1x78xf32>
    %c2_303 = arith.constant 2 : index
    %c0_304 = arith.constant 0 : index
    %275 = vector.load %arg14[%c2_303, %c0_304] : memref<4x60xf32, #tpu.memory_space<vmem>>, vector<1x60xf32>
    %c2_305 = arith.constant 2 : index
    %c0_306 = arith.constant 0 : index
    %c0_307 = arith.constant 0 : index
    %276 = vector.load %arg8[%c2_305, %c0_306, %c0_307] : memref<4x60x78xf32, #tpu.memory_space<vmem>>, vector<1x60x78xf32>
    %277 = vector.shape_cast %276 : vector<1x60x78xf32> to vector<60x78xf32>
    %cst_308 = arith.constant dense<0.000000e+00> : vector<1x78xf32>
    %278 = tpu.matmul %275, %277, %cst_308 {dimension_numbers = #tpu.dot_dimension_numbers<[1], [0], [0], [1], [0, 0, 1, 1], [], []>} : vector<1x60xf32>, vector<60x78xf32>, vector<1x78xf32> -> vector<1x78xf32>
    %279 = arith.addf %274, %278 : vector<1x78xf32>
    %c3_309 = arith.constant 3 : index
    %c0_310 = arith.constant 0 : index
    %280 = vector.load %arg14[%c3_309, %c0_310] : memref<4x60xf32, #tpu.memory_space<vmem>>, vector<1x60xf32>
    %c3_311 = arith.constant 3 : index
    %c0_312 = arith.constant 0 : index
    %c0_313 = arith.constant 0 : index
    %281 = vector.load %arg8[%c3_311, %c0_312, %c0_313] : memref<4x60x78xf32, #tpu.memory_space<vmem>>, vector<1x60x78xf32>
    %282 = vector.shape_cast %281 : vector<1x60x78xf32> to vector<60x78xf32>
    %cst_314 = arith.constant dense<0.000000e+00> : vector<1x78xf32>
    %283 = tpu.matmul %280, %282, %cst_314 {dimension_numbers = #tpu.dot_dimension_numbers<[1], [0], [0], [1], [0, 0, 1, 1], [], []>} : vector<1x60xf32>, vector<60x78xf32>, vector<1x78xf32> -> vector<1x78xf32>
    %284 = arith.addf %279, %283 : vector<1x78xf32>
    %c0_315 = arith.constant 0 : index
    %c0_316 = arith.constant 0 : index
    %285 = vector.load %arg9[%c0_315, %c0_316] : memref<78x2xf32, #tpu.memory_space<vmem>>, vector<78x2xf32>
    %cst_317 = arith.constant dense<0.000000e+00> : vector<1x2xf32>
    %286 = tpu.matmul %284, %285, %cst_317 {dimension_numbers = #tpu.dot_dimension_numbers<[1], [0], [0], [1], [0, 0, 1, 1], [], []>} : vector<1x78xf32>, vector<78x2xf32>, vector<1x2xf32> -> vector<1x2xf32>
    %cst_318 = arith.constant dense<0xFF800000> : vector<1xf32>
    %287 = vector.multi_reduction <maximumf>, %286, %cst_318 [1] : vector<1x2xf32> to vector<1xf32>
    %288 = vector.shape_cast %287 : vector<1xf32> to vector<1x1xf32>
    %289 = vector.broadcast %288 : vector<1x1xf32> to vector<1x2xf32>
    %290 = arith.subf %286, %289 : vector<1x2xf32>
    %291 = math.exp %290 : vector<1x2xf32>
    %cst_319 = arith.constant dense<0.000000e+00> : vector<1xf32>
    %292 = vector.multi_reduction <add>, %291, %cst_319 [1] : vector<1x2xf32> to vector<1xf32>
    %293 = vector.shape_cast %292 : vector<1xf32> to vector<1x1xf32>
    %294 = tpu.reciprocal %293 {approx = true} : vector<1x1xf32> -> vector<1x1xf32>
    %295 = vector.broadcast %294 : vector<1x1xf32> to vector<1x2xf32>
    %296 = arith.mulf %291, %295 : vector<1x2xf32>
    %c1_320 = arith.constant 1 : index
    %c0_321 = arith.constant 0 : index
    %297 = vector.load %arg10[%c1_320, %c0_321] : memref<2x78xf32, #tpu.memory_space<vmem>>, vector<1x78xf32>
    tpu.vector_store %arg10[%c1_320, %c0_321], %284 {strides = array<i32>} : memref<2x78xf32, #tpu.memory_space<vmem>>, vector<1x78xf32>,
    %c1_322 = arith.constant 1 : index
    %c0_323 = arith.constant 0 : index
    %298 = vector.load %arg11[%c1_322, %c0_323] : memref<2x2xf32, #tpu.memory_space<vmem>>, vector<1x2xf32>
    tpu.vector_store %arg11[%c1_322, %c0_323], %296 {strides = array<i32>} : memref<2x2xf32, #tpu.memory_space<vmem>>, vector<1x2xf32>,
    return
  }
}

</mosaic_0001>

<bundles_post_ra>
// kernel: forward.1
= control target key start
LH: loop header
LB: loop body
LE: loop exit
PB: predicated region body
PF: predicated region fallthrough
CT: control target
= control target key end

     0   :  { %17 = vsyncpa [#allocation6], 0  ;;  %s12909_s0 = inlined_call_operand.hbm [shape: s32[2,16], index: 0, kind: input, shape index: {}]   ;;  %s12910_s1 = inlined_call_operand.hbm [shape: f32[24,16], index: 1, kind: input, shape index: {}]   ;;  %s12911_s2 = inlined_call_operand.hbm [shape: f32[9,24,440], index: 2, kind: input, shape index: {}]   ;;  %s12912_s3 = inlined_call_operand.hbm [shape: f32[11,22], index: 3, kind: input, shape index: {}]   ;;  %s12913_s4 = inlined_call_operand.hbm [shape: f32[440,220], index: 4, kind: input, shape index: {}]   ;;  %s12914_s5 = inlined_call_operand.hbm [shape: f32[9,220,135], index: 5, kind: input, shape index: {}]   ;;  %s12915_s6 = inlined_call_operand.hbm [shape: f32[4,9], index: 6, kind: input, shape index: {}]   ;;  %s12916_s7 = inlined_call_operand.hbm [shape: f32[135,60], index: 7, kind: input, shape index: {}]   ;;  %s12917_s8 = inlined_call_operand.hbm [shape: f32[4,60,78], index: 8, kind: input, shape index: {}]   ;;  %s12918_s9 = inlined_call_operand.hbm [shape: f32[78,2], index: 9, kind: input, shape index: {}]   ;;  %s12919_s10 = inlined_call_operand.hbm [shape: f32[2,78], index: 10, kind: output, shape index: {0}]   ;;  %s12920_s11 = inlined_call_operand.hbm [shape: f32[2,2], index: 11, kind: output, shape index: {1}]  }
   0x1   :  { %18 = vsyncpa [#allocation9], 0 }
   0x2   :  { %19 = vsyncpa [#allocation12], 0 }
   0x3   :  { %20 = vsyncpa [#allocation15], 0 }
   0x4   :  { %21 = vsyncpa [#allocation18], 0 }
   0x5   :  { %22 = vsyncpa [#allocation21], 0 }
   0x6   :  { %23 = vsyncpa [#allocation7], 0 }
   0x7   :  { %24 = vsyncpa [#allocation24], 0  ;;  %s11723_s17 = smov [#allocation8]   ;;  %s11443_s21 = scalar_lea.hbm %s12910_s1, 384 }
   0x8   :  { %s40_s18 = sshll.u32 %s11723_s17, 4  ;;  %p11444_p0 = scmp.ne.s32.totalorder %s12910_s1, %s11443_s21  ;;  %s41_s18 = int_to_ptr.vmem [resolvable:$true] %s40_s18 }
   0x9   :  { %p11447_p1 = scmp.lt.u32.totalorder %s11443_s21, %s12910_s1 }
   0xb   :  { %p11449_p2 = pnand %p11447_p1, %p11444_p0 }
   0xd   :  { %11452 = shalt.err (!%p11449_p2)
}
   0xe   :  { %s11453_s26 = scalar_lea.vmem %s41_s18, 384  ;;  %p11458_p4 = scmp.lt.s32.totalorder %s41_s18, %s41_s18 }
   0xf   :  { %p11454_p3 = scmp.ne.s32.totalorder %s41_s18, %s11453_s26  ;;  %p11459_p5 = scmp.lt.s32.totalorder %s11453_s26, %s11453_s26 }
  0x11   :  { %p11460_p6 = por %p11459_p5, %p11458_p4 }
  0x13   :  { %p11461_p7 = pnand %p11460_p6, %p11454_p3 }
  0x15   :  { %11464 = shalt.err (!%p11461_p7)
}
  0x16   :  { %s11724_s27 = smov 128   ;;  %s11725_s28 = smov 8  }
  0x17   :  { %46 = dma.hbm_to_vmem [thread:$0]  %s12910_s1, 384, %s41_s18, [#allocation9], %s11724_s27, %s11724_s27, %s11725_s28  }
  0x18   :  { %s11726_s12 = smov [#allocation11]   ;;  %s11465_s16 = scalar_lea.hbm %s12912_s3, 256 }
  0x19   :  { %s64_s13 = sshll.u32 %s11726_s12, 4  ;;  %p11466_p8 = scmp.ne.s32.totalorder %s12912_s3, %s11465_s16  ;;  %s65_s13 = int_to_ptr.vmem [resolvable:$true] %s64_s13 }
  0x1a   :  { %p11469_p9 = scmp.lt.u32.totalorder %s11465_s16, %s12912_s3 }
  0x1c   :  { %p11471_p10 = pnand %p11469_p9, %p11466_p8 }
  0x1e   :  { %11474 = shalt.err (!%p11471_p10)
}
  0x1f   :  { %s11475_s22 = scalar_lea.vmem %s65_s13, 256  ;;  %p11480_p12 = scmp.lt.s32.totalorder %s65_s13, %s65_s13 }
  0x20   :  { %p11476_p11 = scmp.ne.s32.totalorder %s65_s13, %s11475_s22  ;;  %p11481_p13 = scmp.lt.s32.totalorder %s11475_s22, %s11475_s22 }
  0x22   :  { %p11482_p0 = por %p11481_p13, %p11480_p12 }
  0x24   :  { %p11483_p1 = pnand %p11482_p0, %p11476_p11 }
  0x26   :  { %11486 = shalt.err (!%p11483_p1)
}
  0x27   :  { %70 = dma.hbm_to_vmem [thread:$0]  %s12912_s3, 256, %s65_s13, [#allocation12], %s11724_s27, %s11724_s27, %s11725_s28  }
  0x28   :  { %s11727_s23 = smov [#allocation14]   ;;  %s11728_s25 = smov [#allocation17]  }
  0x29   :  { %s88_s24 = sshll.u32 %s11727_s23, 4  ;;  %s110_s26 = sshll.u32 %s11728_s25, 4  ;;  %s89_s24 = int_to_ptr.vmem [resolvable:$true] %s88_s24  ;;  %s11835_s26 = int_to_ptr.vmem [resolvable:$true] %s110_s26 }
  0x2a   :  { %s11487_s12 = scalar_lea.hbm %s12914_s5, 64512 }
  0x2b   :  { %p11488_p2 = scmp.ne.s32.totalorder %s12914_s5, %s11487_s12  ;;  %p11491_p3 = scmp.lt.u32.totalorder %s11487_s12, %s12914_s5 }
  0x2d   :  { %p11493_p4 = pnand %p11491_p3, %p11488_p2 }
  0x2f   :  { %11496 = shalt.err (!%p11493_p4)
}
  0x30   :  { %s11497_s3 = scalar_lea.vmem %s89_s24, 64512  ;;  %p11502_p6 = scmp.lt.s32.totalorder %s89_s24, %s89_s24 }
  0x31   :  { %p11498_p5 = scmp.ne.s32.totalorder %s89_s24, %s11497_s3  ;;  %p11503_p7 = scmp.lt.s32.totalorder %s11497_s3, %s11497_s3 }
  0x33   :  { %p11504_p8 = por %p11503_p7, %p11502_p6 }
  0x35   :  { %p11505_p9 = pnand %p11504_p8, %p11498_p5 }
  0x37   :  { %11508 = shalt.err (!%p11505_p9)
}
  0x38   :  { %s11729_s13 = smov 256   ;;  %s11730_s19 = smov 16  }
  0x39   :  { %94 = dma.hbm_to_vmem [thread:$0]  %s12914_s5, 64512, %s89_s24, [#allocation15], %s11729_s13, %s11729_s13, %s11730_s19  }
  0x3a   :  { %s11509_s18 = scalar_lea.hbm %s12916_s7, 2176 }
  0x3b   :  { %p11510_p10 = scmp.ne.s32.totalorder %s12916_s7, %s11509_s18  ;;  %p11513_p11 = scmp.lt.u32.totalorder %s11509_s18, %s12916_s7 }
  0x3d   :  { %p11515_p12 = pnand %p11513_p11, %p11510_p10 }
  0x3f   :  { %11518 = shalt.err (!%p11515_p12)
}
  0x40   :  { %s11519_s12 = scalar_lea.vmem %s11835_s26, 2176  ;;  %p11524_p0 = scmp.lt.s32.totalorder %s11835_s26, %s11835_s26 }
  0x41   :  { %p11520_p13 = scmp.ne.s32.totalorder %s11835_s26, %s11519_s12  ;;  %p11525_p1 = scmp.lt.s32.totalorder %s11519_s12, %s11519_s12 }
  0x43   :  { %p11526_p2 = por %p11525_p1, %p11524_p0 }
  0x45   :  { %p11527_p3 = pnand %p11526_p2, %p11520_p13 }
  0x47   :  { %11530 = shalt.err (!%p11527_p3)
}
  0x48   :  { %116 = dma.hbm_to_vmem [thread:$0]  %s12916_s7, 2176, %s11835_s26, [#allocation18], %s11724_s27, %s11724_s27, %s11725_s28  }
  0x49   :  { %s11731_s14 = smov [#allocation5]   ;;  %s11732_s16 = smov [#allocation10]  }
  0x4a   :  { %s31_s15 = sshll.u32 %s11731_s14, 4  ;;  %s52_s17 = sshll.u32 %s11732_s16, 4  ;;  %s32_s15 = int_to_ptr.vmem [resolvable:$true] %s31_s15  ;;  %s11872_s17 = int_to_ptr.vmem [resolvable:$true] %s52_s17 }
  0x4b   :  { %s11531_s21 = scalar_lea.hbm %s12909_s0, 32 }
  0x4c   :  { %p11532_p4 = scmp.ne.s32.totalorder %s12909_s0, %s11531_s21  ;;  %p11535_p5 = scmp.lt.u32.totalorder %s11531_s21, %s12909_s0 }
  0x4e   :  { %p11537_p6 = pnand %p11535_p5, %p11532_p4 }
  0x50   :  { %11540 = shalt.err (!%p11537_p6)
}
  0x51   :  { %s11541_s7 = scalar_lea.vmem %s32_s15, 32  ;;  %p11546_p8 = scmp.lt.s32.totalorder %s32_s15, %s32_s15 }
  0x52   :  { %p11542_p7 = scmp.ne.s32.totalorder %s32_s15, %s11541_s7  ;;  %p11547_p9 = scmp.lt.s32.totalorder %s11541_s7, %s11541_s7 }
  0x54   :  { %p11548_p10 = por %p11547_p9, %p11546_p8 }
  0x56   :  { %p11549_p11 = pnand %p11548_p10, %p11542_p7 }
  0x58   :  { %11552 = shalt.err (!%p11549_p11)
}
  0x59   :  { %34 = dma.hbm_to_vmem [thread:$0]  %s12909_s0, 32, %s32_s15, [#allocation6]  }
  0x5a   :  { %s11553_s12 = scalar_lea.hbm %s12911_s2, 13824 }
  0x5b   :  { %p11554_p12 = scmp.ne.s32.totalorder %s12911_s2, %s11553_s12  ;;  %p11557_p13 = scmp.lt.u32.totalorder %s11553_s12, %s12911_s2 }
  0x5d   :  { %p11559_p0 = pnand %p11557_p13, %p11554_p12 }
  0x5f   :  { %11562 = shalt.err (!%p11559_p0)
}
  0x60   :  { %s11563_s3 = scalar_lea.vmem %s11872_s17, 13824  ;;  %p11568_p2 = scmp.lt.s32.totalorder %s11872_s17, %s11872_s17 }
  0x61   :  { %p11564_p1 = scmp.ne.s32.totalorder %s11872_s17, %s11563_s3  ;;  %p11569_p3 = scmp.lt.s32.totalorder %s11563_s3, %s11563_s3 }
  0x63   :  { %p11570_p4 = por %p11569_p3, %p11568_p2 }
  0x65   :  { %p11571_p5 = pnand %p11570_p4, %p11564_p1 }
  0x67   :  { %11574 = shalt.err (!%p11571_p5)
}
  0x68   :  { %s11733_s0 = smov 512   ;;  %s11734_s15 = smov 32  }
  0x69   :  { %58 = dma.hbm_to_vmem [thread:$0]  %s12911_s2, 13824, %s11872_s17, [#allocation9], %s11733_s0, %s11733_s0, %s11734_s15  }
  0x6a   :  { %s11735_s22 = smov [#allocation13]   ;;  %s11736_s18 = smov [#allocation16]  }
  0x6b   :  { %s76_s1 = sshll.u32 %s11735_s22, 4  ;;  %s101_s23 = sshll.u32 %s11736_s18, 4  ;;  %s77_s1 = int_to_ptr.vmem [resolvable:$true] %s76_s1  ;;  %s102_s23 = int_to_ptr.vmem [resolvable:$true] %s101_s23 }
  0x6c   :  { %s11575_s25 = scalar_lea.hbm %s12913_s4, 14080 }
  0x6d   :  { %p11576_p6 = scmp.ne.s32.totalorder %s12913_s4, %s11575_s25  ;;  %p11579_p7 = scmp.lt.u32.totalorder %s11575_s25, %s12913_s4 }
  0x6f   :  { %p11581_p8 = pnand %p11579_p7, %p11576_p6 }
  0x71   :  { %11584 = shalt.err (!%p11581_p8)
}
  0x72   :  { %s11585_s2 = scalar_lea.vmem %s77_s1, 14080  ;;  %p11590_p10 = scmp.lt.s32.totalorder %s77_s1, %s77_s1 }
  0x73   :  { %p11586_p9 = scmp.ne.s32.totalorder %s77_s1, %s11585_s2  ;;  %p11591_p11 = scmp.lt.s32.totalorder %s11585_s2, %s11585_s2 }
  0x75   :  { %p11592_p12 = por %p11591_p11, %p11590_p10 }
  0x77   :  { %p11593_p13 = pnand %p11592_p12, %p11586_p9 }
  0x79   :  { %11596 = shalt.err (!%p11593_p13)
}
  0x7a   :  { %82 = dma.hbm_to_vmem [thread:$0]  %s12913_s4, 14080, %s77_s1, [#allocation12], %s11729_s13, %s11729_s13, %s11730_s19  }
  0x7b   :  { %s11597_s3 = scalar_lea.hbm %s12915_s6, 64 }
  0x7c   :  { %p11598_p0 = scmp.ne.s32.totalorder %s12915_s6, %s11597_s3  ;;  %p11601_p1 = scmp.lt.u32.totalorder %s11597_s3, %s12915_s6 }
  0x7e   :  { %p11603_p2 = pnand %p11601_p1, %p11598_p0 }
  0x80   :  { %11606 = shalt.err (!%p11603_p2)
}
  0x81   :  { %s11607_s22 = scalar_lea.vmem %s102_s23, 64  ;;  %p11612_p4 = scmp.lt.s32.totalorder %s102_s23, %s102_s23 }
  0x82   :  { %p11608_p3 = scmp.ne.s32.totalorder %s102_s23, %s11607_s22  ;;  %p11613_p5 = scmp.lt.s32.totalorder %s11607_s22, %s11607_s22 }
  0x84   :  { %p11614_p6 = por %p11613_p5, %p11612_p4 }
  0x86   :  { %p11615_p7 = pnand %p11614_p6, %p11608_p3 }
  0x88   :  { %11618 = shalt.err (!%p11615_p7)
}
  0x89   :  { %104 = dma.hbm_to_vmem [thread:$0]  %s12915_s6, 64, %s102_s23, [#allocation15]  }
  0x8a   :  { %s11737_s19 = smov [#allocation19]   ;;  %s11738_s18 = smov [#allocation20]  }
  0x8b   :  { %s122_s1 = sshll.u32 %s11737_s19, 4  ;;  %s134_s7 = sshll.u32 %s11738_s18, 4  ;;  %s123_s1 = int_to_ptr.vmem [resolvable:$true] %s122_s1  ;;  %s11930_s7 = int_to_ptr.vmem [resolvable:$true] %s134_s7 }
  0x8c   :  { %s11619_s29 = scalar_lea.hbm %s12917_s8, 4096 }
  0x8d   :  { %p11620_p8 = scmp.ne.s32.totalorder %s12917_s8, %s11619_s29  ;;  %p11623_p9 = scmp.lt.u32.totalorder %s11619_s29, %s12917_s8 }
  0x8f   :  { %p11625_p10 = pnand %p11623_p9, %p11620_p8 }
  0x91   :  { %11628 = shalt.err (!%p11625_p10)
}
  0x92   :  { %s11629_s6 = scalar_lea.vmem %s123_s1, 4096  ;;  %p11634_p12 = scmp.lt.s32.totalorder %s123_s1, %s123_s1 }
  0x93   :  { %p11630_p11 = scmp.ne.s32.totalorder %s123_s1, %s11629_s6  ;;  %p11635_p13 = scmp.lt.s32.totalorder %s11629_s6, %s11629_s6 }
  0x95   :  { %p11636_p0 = por %p11635_p13, %p11634_p12 }
  0x97   :  { %p11637_p1 = pnand %p11636_p0, %p11630_p11 }
  0x99   :  { %11640 = shalt.err (!%p11637_p1)
}
  0x9a   :  { %128 = dma.hbm_to_vmem [thread:$0]  %s12917_s8, 4096, %s123_s1, [#allocation18], %s11724_s27, %s11724_s27, %s11725_s28  }
  0x9b   :  { %s11641_s16 = scalar_lea.hbm %s12918_s9, 1280 }
  0x9c   :  { %p11642_p2 = scmp.ne.s32.totalorder %s12918_s9, %s11641_s16  ;;  %p11645_p3 = scmp.lt.u32.totalorder %s11641_s16, %s12918_s9 }
  0x9e   :  { %p11647_p4 = pnand %p11645_p3, %p11642_p2 }
  0xa0   :  { %11650 = shalt.err (!%p11647_p4)
}
  0xa1   :  { %s11651_s21 = scalar_lea.vmem %s11930_s7, 1280  ;;  %p11656_p6 = scmp.lt.s32.totalorder %s11930_s7, %s11930_s7 }
  0xa2   :  { %p11652_p5 = scmp.ne.s32.totalorder %s11930_s7, %s11651_s21  ;;  %p11657_p7 = scmp.lt.s32.totalorder %s11651_s21, %s11651_s21 }
  0xa4   :  { %p11658_p8 = por %p11657_p7, %p11656_p6 }
  0xa6   :  { %p11659_p9 = pnand %p11658_p8, %p11652_p5 }
  0xa8   :  { %11662 = shalt.err (!%p11659_p9)
}
  0xa9   :  { %140 = dma.hbm_to_vmem [thread:$0]  %s12918_s9, 1280, %s11930_s7, [#allocation21], %s11724_s27, %s11724_s27, %s11725_s28  }
  0xaa   :  { %11707 = dma.done.wait [#allocation6], 32  }
  0xab   :  { %11708 = vsyncadd [#allocation6], 4294967264 }
  0xac   :  { %11709 = dma.done.wait [#allocation9], 14208  }
  0xad   :  { %11710 = vsyncadd [#allocation9], 4294953088 }
  0xae   :  { %11711 = dma.done.wait [#allocation12], 14336  }
  0xaf   :  { %11712 = vsyncadd [#allocation12], 4294952960 }
  0xb0   :  { %11713 = dma.done.wait [#allocation15], 64576  }
  0xb1   :  { %11714 = vsyncadd [#allocation15], 4294902720 }
  0xb2   :  { %11715 = dma.done.wait [#allocation18], 6272  }
  0xb3   :  { %11716 = vsyncadd [#allocation18], 4294961024 }
  0xb4   :  { %11717 = dma.done.wait [#allocation21], 1280  }
  0xb5   :  { %11718 = vsyncadd [#allocation21], 4294966016  ;;  %v179_v0 = vlaneseq  ;;  %v11739_v1 = vmov 0.0|0.0   ;;  %v11740_v2 = vmov 0.0   ;;  %vm11741_vm0 = vmmov 0   ;;  %v171_v18 = vld [vmem:[#allocation8] sm:$0xff] }
  0xb6   :  { %9498 = vmatprep.subr.bf16.mxu0 %v11739_v1  ;;  %737 = vmatprep.mubr.f32.mxu1 %v11740_v2  ;;  %v174_v4 = vld [vmem:[#allocation5] sm:$0x1]  ;;  %v4530_v5 = vld [vmem:[#allocation5 + $0x1] sm:$0x1]  ;;  %vm192_vm5 = vcmask 130048   ;;  %v172_v19 = vld [vmem:[#allocation8 + $0x8] sm:$0xff] }
  0xb7   :  { %9248 = vmatprep.mubr.msk.f32.mxu0 %vm11741_vm0, %v11740_v2  ;;  %v11971_v3 = vshrl.u32 %v179_v0, 7  ;;  %vm175_vm1 = vcmp.gt.s32.totalorder %v174_v4, 0  ;;  %vm4531_vm2 = vcmp.gt.s32.totalorder %v4530_v5, 0  ;;  %vm11987_vm9 = vmpackc.low %vm192_vm5, %vm192_vm5  ;;  %v11994_v20 = vpack.c.bf16 %v172_v19, %v171_v18  ;;  %v173_v21 = vld [vmem:[#allocation8 + $0x10] sm:$0xff]  ;;  %v398_v28 = vld [vmem:[#allocation10 + $0x68] sm:$0xff]  ;;  %s11743_s9 = smov [#allocation22]  }
  0xb8   :  { %v176_v7 = vsel %vm175_vm1, %v174_v4, 0  ;;  %v4532_v8 = vsel %vm4531_vm2, %v4530_v5, 0  ;;  %v402_v29 = vld [vmem:[#allocation10 + $0x88] sm:$0xff]  ;;  %v397_v31 = vld [vmem:[#allocation10 + $0x60] sm:$0xff]  ;;  %v387_v34 = vld [vmem:[#allocation10 + $0x18] sm:$0xff]  ;;  %vm377_vm10 = vcmask 195584  }
  0xb9   :  { %v181_v6 = vsub.s32 0, %v11971_v3  ;;  %vm177_vm3 = vcmp.lt.s32.totalorder %v176_v7, 12  ;;  %v11975_v9 = vadd.s32 8, %v11971_v3  ;;  %vm4533_vm4 = vcmp.lt.s32.totalorder %v4532_v8, 12  ;;  %v401_v32 = vld [vmem:[#allocation10 + $0x80] sm:$0xff]  ;;  %v391_v35 = vld [vmem:[#allocation10 + $0x38] sm:$0xff] }
  0xba   :  { %v178_v10 = vsel %vm177_vm3, %v176_v7, 12  ;;  %v4534_v11 = vsel %vm4533_vm4, %v4532_v8, 12  ;;  %v9506_v30 = vpack.c.bf16 %v402_v29, %v398_v28  ;;  %v9508_v33 = vpack.c.bf16 %v401_v32, %v397_v31  ;;  %v406_v36 = vld [vmem:[#allocation10 + $0xa8] sm:$0xff]  ;;  %v386_v38 = vld [vmem:[#allocation10 + $0x10] sm:$0xff]  ;;  %v405_v41 = vld [vmem:[#allocation10 + $0xa0] sm:$0xff]  ;;  %s8844_s27 = sshll.u32 %s11743_s9, 4  ;;  %s8845_s27 = int_to_ptr.vmem [resolvable:$true] %s8844_s27 }
  0xbb   :  { %v182_v12 = vrot.slane %v178_v10, %v181_v6  ;;  %v11977_v13 = vrot.slane %v4534_v11, %v181_v6  ;;  %v12018_v37 = vpack.c.bf16 %v391_v35, %v387_v34  ;;  %v390_v39 = vld [vmem:[#allocation10 + $0x30] sm:$0xff]  ;;  %v12024_v42 = vld [vmem:[#allocation10 + $0x58] sm:$0xff]  ;;  %v385_v63 = vld [vmem:[#allocation10 + $0x8] sm:$0xff]  ;;  %vm2120_vm11 = vcmask 1045504   ;;  %s11663_s28 = scalar_lea.vmem %s8845_s27, 32  ;;  %p11668_p11 = scmp.lt.s32.totalorder %s8845_s27, %s8845_s27 }
  0xbc   :  { %v12020_v40 = vpack.c.bf16 %v390_v39, %v386_v38  ;;  %v12027_v43 = vld [vmem:[#allocation10 + $0x50] sm:$0xff]  ;;  %v400_v44 = vld [vmem:[#allocation10 + $0x78] sm:$0xff]  ;;  %v389_v0 = vld [vmem:[#allocation10 + $0x28] sm:$0xff]  ;;  %vm2113_vm12 = vcmask 179200   ;;  %vm2397_vm13 = vcmask 457728   ;;  %vm2687_vm14 = vcmask 1043456   ;;  %p11664_p10 = scmp.ne.s32.totalorder %s8845_s27, %s11663_s28  ;;  %p11669_p12 = scmp.lt.s32.totalorder %s11663_s28, %s11663_s28 }
  0xbd   :  { %vm186_vm6 = vcmp.eq.s32.totalorder %v11971_v3, %v182_v12  ;;  %vm187_vm7 = vcmp.eq.s32.totalorder %v11975_v9, %v182_v12  ;;  %vm4540_vm8 = vcmp.eq.s32.totalorder %v11975_v9, %v11977_v13  ;;  %11130 = vmatprep.subr.bf16.mxu1 %v12018_v37  ;;  %v404_v45 = vld [vmem:[#allocation10 + $0x98] sm:$0xff]  ;;  %v399_v52 = vld [vmem:[#allocation10 + $0x70] sm:$0xff]  ;;  %v9514_v7 = vpack.c.bf16 %v389_v0, %v385_v63  ;;  %v392_v28 = vld [vmem:[#allocation10 + $0x40] sm:$0xff] }
  0xbe   :  { %v8872_v14 = vsel %vm186_vm6, 1.0, %v11740_v2  ;;  %v8873_v15 = vsel %vm187_vm7, 1.0, %v11740_v2  ;;  %11132 = vmatpush1.bf16.msra.mxu1 %v12020_v40  ;;  %v754_v46 = vld [vmem:[#allocation10 + $0xd8] sm:$0xff]  ;;  %v9510_v47 = vpack.c.bf16 %v404_v45, %v400_v44  ;;  %v403_v53 = vld [vmem:[#allocation10 + $0x90] sm:$0xff]  ;;  %v954_v0 = vld [vmem:[#allocation10 + $0x168] sm:$0xff]  ;;  %vm11742_vm15 = vmmov 1   ;;  %p11670_p13 = por %p11669_p12, %p11668_p11 }
  0xbf   :  { %v9499_v17 = vpack.c.bf16 %v8873_v15, %v8872_v14  ;;  %11131 = vmatprep.subr.mxu1 %v12024_v42  ;;  %v758_v48 = vld [vmem:[#allocation10 + $0xf8] sm:$0xff]  ;;  %v9512_v56 = vpack.c.bf16 %v403_v53, %v399_v52  ;;  %v753_v57 = vld [vmem:[#allocation10 + $0xd0] sm:$0xff]  ;;  %v384_v14 = vld [vmem:[#allocation10] sm:$0xff]  ;;  %vm2559_vm2 = vcmask 752640   ;;  %vm2562_vm3 = vcmask 747520  }
  0xc0   :  { %v9526_v49 = vpack.c.bf16 %v758_v48, %v754_v46  ;;  %v757_v60 = vld [vmem:[#allocation10 + $0xf0] sm:$0xff]  ;;  %v408_v61 = vld [vmem:[#allocation10 + $0xb8] sm:$0xff]  ;;  %v388_v15 = vld [vmem:[#allocation10 + $0x20] sm:$0xff]  ;;  %vm12925_vm4 = vcmask 1046528   ;;  %vm3908_vm6 = vcmask 1040384   ;;  %p11671_p0 = pnand %p11670_p13, %p11664_p10 }
  0xc1   :  { %9501 = vmatpush3.bf16.xpose.msk.msra.mxu0 %vm11987_vm9, %v9499_v17  ;;  %v9528_v4 = vpack.c.bf16 %v757_v60, %v753_v57  ;;  %v407_v6 = vld [vmem:[#allocation10 + $0xb0] sm:$0xff]  ;;  %v762_v8 = vld [vmem:[#allocation10 + $0x118] sm:$0xff]  ;;  %v946_v52 = vld [vmem:[#allocation10 + $0x128] sm:$0xff] }
  0xc2   :  { %9502 = vmatprep.subr.bf16.mxu0 %v11739_v1  ;;  %11133 = vmatpush1.msra.mxu1 %v12027_v43  ;;  %v948_v10 = vld [vmem:[#allocation10 + $0x138] sm:$0xff]  ;;  %v761_v12 = vld [vmem:[#allocation10 + $0x110] sm:$0xff]  ;;  %v950_v53 = vld [vmem:[#allocation10 + $0x148] sm:$0xff] }
  0xc3   :  { %9527 = vmatprep.subr.bf16.mxu1 %v9526_v49  ;;  %v952_v11 = vld [vmem:[#allocation10 + $0x158] sm:$0xff]  ;;  %v955_v29 = vld [vmem:[#allocation10 + $0x170] sm:$0xff]  ;;  %v759_v57 = vld [vmem:[#allocation10 + $0x100] sm:$0xff] }
  0xc4   :  { %v1147_v31 = vld [vmem:[#allocation10 + $0x190] sm:$0xff]  ;;  %v1156_v35 = vld [vmem:[#allocation10 + $0x1d8] sm:$0xff]  ;;  %vm12239_vm1 = vmpackc.low %vm2687_vm14, %vm11742_vm15  ;;  %vm12922_vm14 = vcmask 72704  }
  0xc5   :  { %v1151_v32 = vld [vmem:[#allocation10 + $0x1b0] sm:$0xff]  ;;  %v1339_v38 = vld [vmem:[#allocation10 + $0x1f8] sm:$0xff]  ;;  %vm12377_vm7 = vmpackc.low %vm3908_vm6, %vm11742_vm15  ;;  %vm12921_vm6 = vcmask 56320  }
  0xc6   :  { %v1343_v39 = vld [vmem:[#allocation10 + $0x218] sm:$0xff]  ;;  %v1155_v45 = vld [vmem:[#allocation10 + $0x1d0] sm:$0xff] }
  0xc7   :  { %v9550_v46 = vpack.c.bf16 %v1343_v39, %v1339_v38  ;;  %v1338_v48 = vld [vmem:[#allocation10 + $0x1f0] sm:$0xff]  ;;  %v1533_v60 = vld [vmem:[#allocation10 + $0x258] sm:$0xff] }
  0xc8   :  { %9249 = vmatmul.mubr.msk.f32.vlgmr.msra.gmra.mrb[0].mxu0 %vm192_vm5, %v171_v18  ;;  %v9534_v18 = vpack.c.bf16 %v952_v11, %v948_v10  ;;  %v1342_v49 = vld [vmem:[#allocation10 + $0x210] sm:$0xff]  ;;  %v1150_v10 = vld [vmem:[#allocation10 + $0x1a8] sm:$0xff]  ;;  %v953_v11 = vld [vmem:[#allocation10 + $0x160] sm:$0xff] }
  0xc9   :  { %9251 = vmatprep.mubr.msk.f32.mxu0 %vm11741_vm0, %v11740_v2  ;;  %9505 = vmatpush3.bf16.xpose.msk.msra.mxu0 %vm11987_vm9, %v11994_v20  ;;  %v1740_v38 = vld [vmem:[#allocation10 + $0x2f0] sm:$0xff] }
  0xca   :  { %9261 = vmatprep.subr.mxu0 %v11740_v2  ;;  %v11441_v9 = vld [vmem:[#allocation8 + $0x8] sm:$0xff] }
  0xcc   :  { %9252 = vmatmul.mubr.msk.f32.gmra.mrb[2].mxu0 %vm192_vm5, %v172_v19  ;;  %v947_v19 = vld [vmem:[#allocation10 + $0x130] sm:$0xff] }
  0xcd   :  { %9254 = vmatprep.mubr.msk.f32.mxu0 %vm11741_vm0, %v11740_v2 }
  0xd0   :  { %9255 = vmatmul.mubr.msk.f32.gmra.mrb[4].mxu0 %vm192_vm5, %v173_v21 }
  0xd1   :  { %9262 = vmatpush3.xpose.msk.msra.mxu0 %vm192_vm5, %v173_v21  ;;  %9263 = vmatprep.mubr.msk.f32.mxu0 %vm11741_vm0, %v11740_v2  ;;  %v951_v21 = vld [vmem:[#allocation10 + $0x150] sm:$0xff] }
  0xd2   :  { %9507 = vmatprep.subr.bf16.mxu0 %v9506_v30 }
 0x19b   :  { %v274_v22 = vpop.f32.mrb[0].mxu0 }
 0x19c   :  { %v9250_v23 = vpop.f32.mrb[1].mxu0  ;;  %9264 = vmatmul.mubr.msk.f32.vlgmr.msra.gmra.mrb[6].mxu0 %vm192_vm5, %v274_v22  ;;  %v9516_v22 = vpack.c.bf16 %v388_v15, %v384_v14  ;;  %v1733_v15 = vld [vmem:[#allocation10 + $0x2b8] sm:$0xff] }
 0x19d   :  { %9266 = vmatprep.mubr.msk.f32.mxu0 %vm11741_vm0, %v11740_v2  ;;  %9509 = vmatpush1.bf16.msra.mxu0 %v9508_v33  ;;  %v9536_v23 = vpack.c.bf16 %v951_v21, %v947_v19  ;;  %v9544_v33 = vpack.c.bf16 %v1151_v32, %v1147_v31  ;;  %v1145_v19 = vld [vmem:[#allocation10 + $0x180] sm:$0xff]  ;;  %v1741_v31 = vld [vmem:[#allocation10 + $0x2f8] sm:$0xff] }
 0x19e   :  { %422 = vmatprep.subr.mxu0 %v406_v36  ;;  %v752_v36 = vld [vmem:[#allocation10 + $0xc8] sm:$0xff]  ;;  %v1149_v21 = vld [vmem:[#allocation10 + $0x1a0] sm:$0xff] }
 0x19f   :  { %v279_v24 = vpop.f32.mrb[2].mxu0 }
 0x1a0   :  { %v9253_v25 = vpop.f32.mrb[3].mxu0  ;;  %9267 = vmatmul.mubr.msk.f32.gmra.mrb[8].mxu0 %vm192_vm5, %v279_v24  ;;  %v393_v24 = vld [vmem:[#allocation10 + $0x48] sm:$0xff] }
 0x1a1   :  { %9269 = vmatprep.mubr.msk.f32.mxu0 %vm11741_vm0, %v11740_v2  ;;  %423 = vmatpush1.msra.mxu0 %v405_v41  ;;  %v956_v25 = vld [vmem:[#allocation10 + $0x178] sm:$0xff] }
 0x1a2   :  { %9511 = vmatprep.subr.bf16.mxu0 %v9510_v47  ;;  %v755_v47 = vld [vmem:[#allocation10 + $0xe0] sm:$0xff] }
 0x1a3   :  { %v284_v26 = vpop.f32.mrb[4].mxu0 }
 0x1a4   :  { %v9256_v27 = vpop.f32.mrb[5].mxu0  ;;  %9270 = vmatmul.mubr.msk.f32.gmra.mrb[10].mxu0 %vm192_vm5, %v284_v26  ;;  %v1148_v26 = vld [vmem:[#allocation10 + $0x198] sm:$0xff] }
 0x1a5   :  { %482 = vmatprep.mubr.f32.mxu0 %v11740_v2  ;;  %v1152_v27 = vld [vmem:[#allocation10 + $0x1b8] sm:$0xff] }
 0x1a6   :  { %v9542_v30 = vpack.c.bf16 %v1152_v27, %v1148_v26  ;;  %v1341_v26 = vld [vmem:[#allocation10 + $0x208] sm:$0xff]  ;;  %v1736_v27 = vld [vmem:[#allocation10 + $0x2d0] sm:$0xff] }
 0x26f   :  { %v363_v50 = vpop.f32.mrb[6].mxu0 }
 0x270   :  { %378 = vst.msk [vmem:[#allocation2] sm:$0xff] %vm377_vm10, %v363_v50  ;;  %v9265_v51 = vpop.f32.mrb[7].mxu0  ;;  %v760_v50 = vld [vmem:[#allocation10 + $0x108] sm:$0xff] }
 0x271   :  { %v9552_v51 = vpack.c.bf16 %v1342_v49, %v1338_v48  ;;  %v1923_v48 = vld [vmem:[#allocation10 + $0x310] sm:$0xff] }
 0x272   :  { %v1927_v49 = vld [vmem:[#allocation10 + $0x330] sm:$0xff] }
 0x273   :  { %v368_v54 = vpop.f32.mrb[8].mxu0 }
 0x274   :  { %379 = vst.msk [vmem:[#allocation2 + $0x8] sm:$0xff] %vm377_vm10, %v368_v54  ;;  %v9268_v55 = vpop.f32.mrb[9].mxu0  ;;  %v1347_v54 = vld [vmem:[#allocation10 + $0x238] sm:$0xff] }
 0x275   :  { %v945_v55 = vld [vmem:[#allocation10 + $0x120] sm:$0xff] }
 0x277   :  { %v373_v58 = vpop.f32.mrb[10].mxu0  ;;  %v12032_v59 = vld [vmem:[#allocation2] sm:$0xff] }
 0x278   :  { %380 = vst.msk [vmem:[#allocation2 + $0x10] sm:$0xff] %vm377_vm10, %v373_v58  ;;  %v9271_v62 = vpop.f32.mrb[11].mxu0  ;;  %8885 = vmatmul.mubr.msk.f32.vlgmr.msra.gmra.mrb[12].mxu0 %vm377_vm10, %v12032_v59  ;;  %v9530_v58 = vpack.c.bf16 %v950_v53, %v946_v52  ;;  %v9576_v52 = vpack.c.bf16 %v1927_v49, %v1923_v48  ;;  %v1932_v53 = vld [vmem:[#allocation10 + $0x358] sm:$0xff]  ;;  %v2290_v49 = vld [vmem:[#allocation13 + $0x18] sm:$0xff] }
 0x279   :  { %488 = vmatprep.mubr.f32.mxu0 %v11740_v2  ;;  %9513 = vmatpush1.bf16.msra.mxu0 %v9512_v56  ;;  %v949_v56 = vld [vmem:[#allocation10 + $0x140] sm:$0xff]  ;;  %v1346_v62 = vld [vmem:[#allocation10 + $0x230] sm:$0xff]  ;;  %v2288_v48 = vld [vmem:[#allocation13 + $0x8] sm:$0xff] }
 0x27a   :  { %505 = vmatprep.subr.mxu0 %v408_v61  ;;  %v1537_v61 = vld [vmem:[#allocation10 + $0x278] sm:$0xff]  ;;  %v9532_v63 = vpack.c.bf16 %v949_v56, %v945_v55  ;;  %v1534_v55 = vld [vmem:[#allocation10 + $0x260] sm:$0xff]  ;;  %v1931_v56 = vld [vmem:[#allocation10 + $0x350] sm:$0xff] }
 0x27b   :  { %v12038_v5 = vld [vmem:[#allocation2 + $0x8] sm:$0xff] }
 0x27c   :  { %8886 = vmatmul.mubr.msk.f32.gmra.mrb[14].mxu0 %vm377_vm10, %v12038_v5  ;;  %8895 = vmatmul.mubr.msk.f32.vlgmr.msra.gmra.mrb[0].mxu1 %vm377_vm10, %v12038_v5  ;;  %v12073_v34 = vld [vmem:[#allocation2 + $0x1] sm:$0xff] }
 0x27d   :  { %494 = vmatprep.mubr.f32.mxu0 %v11740_v2  ;;  %743 = vmatprep.mubr.f32.mxu1 %v11740_v2  ;;  %v12136_v32 = vld [vmem:[#allocation2 + $0x2] sm:$0xff] }
 0x27e   :  { %9529 = vmatpush1.bf16.msra.mxu1 %v9528_v4  ;;  %506 = vmatpush1.msra.mxu0 %v407_v6  ;;  %v9558_v4 = vpack.c.bf16 %v1537_v61, %v1533_v60  ;;  %v1532_v6 = vld [vmem:[#allocation10 + $0x250] sm:$0xff]  ;;  %v1731_v60 = vld [vmem:[#allocation10 + $0x2a8] sm:$0xff] }
 0x27f   :  { %v12046_v17 = vld [vmem:[#allocation2 + $0x10] sm:$0x3f]  ;;  %850 = vmatprep.subr.mxu1 %v762_v8  ;;  %9515 = vmatprep.subr.bf16.mxu0 %v9514_v7  ;;  %v1536_v7 = vld [vmem:[#allocation10 + $0x270] sm:$0xff]  ;;  %v1146_v8 = vld [vmem:[#allocation10 + $0x188] sm:$0xff] }
 0x280   :  { %8887 = vmatmul.mubr.msk.f32.gmra.mrb[16].mxu0 %vm377_vm10, %v12046_v17  ;;  %8896 = vmatmul.mubr.msk.f32.gmra.mrb[2].mxu1 %vm377_vm10, %v12046_v17  ;;  %v12082_v41 = vld [vmem:[#allocation2 + $0x9] sm:$0xff]  ;;  %v9538_v14 = vpack.c.bf16 %v1150_v10, %v1146_v8  ;;  %v1735_v61 = vld [vmem:[#allocation10 + $0x2c8] sm:$0xff]  ;;  %v1921_v10 = vld [vmem:[#allocation10 + $0x300] sm:$0xff] }
 0x281   :  { %565 = vmatprep.mubr.f32.mxu0 %v11740_v2  ;;  %910 = vmatprep.mubr.f32.mxu1 %v11740_v2 }
 0x282   :  { %851 = vmatpush1.msra.mxu1 %v761_v12  ;;  %v9560_v12 = vpack.c.bf16 %v1536_v7, %v1532_v6  ;;  %v1922_v6 = vld [vmem:[#allocation10 + $0x308] sm:$0xff] }
 0x283   :  { %9535 = vmatprep.subr.bf16.mxu1 %v9534_v18  ;;  %v1737_v18 = vld [vmem:[#allocation10 + $0x2d8] sm:$0xff]  ;;  %v1926_v7 = vld [vmem:[#allocation10 + $0x328] sm:$0xff] }
 0x284   :  { %8888 = vmatmul.mubr.msk.f32.vlgmr.msra.gmra.mrb[18].mxu0 %vm377_vm10, %v12032_v59  ;;  %8900 = vmatmul.mubr.msk.f32.vlgmr.msra.gmra.mrb[4].mxu1 %vm377_vm10, %v12032_v59  ;;  %v9570_v8 = vpack.c.bf16 %v1926_v7, %v1922_v6  ;;  %v2302_v6 = vld [vmem:[#allocation13 + $0x78] sm:$0xff] }
 0x285   :  { %571 = vmatprep.mubr.f32.mxu0 %v11740_v2  ;;  %916 = vmatprep.mubr.f32.mxu1 %v11740_v2 }
 0x286   :  { %9517 = vmatpush1.bf16.msra.mxu0 %v9516_v22  ;;  %9537 = vmatpush1.bf16.msra.mxu1 %v9536_v23  ;;  %v9566_v22 = vpack.c.bf16 %v1737_v18, %v1733_v15  ;;  %v9540_v23 = vpack.c.bf16 %v1149_v21, %v1145_v19 }
 0x287   :  { %588 = vmatprep.subr.mxu0 %v393_v24  ;;  %1053 = vmatprep.subr.mxu1 %v956_v25  ;;  %v1154_v24 = vld [vmem:[#allocation10 + $0x1c8] sm:$0xff] }
 0x288   :  { %8889 = vmatmul.mubr.msk.f32.gmra.mrb[20].mxu0 %vm377_vm10, %v12038_v5  ;;  %8901 = vmatmul.mubr.msk.f32.gmra.mrb[0].mxu1 %vm377_vm10, %v12038_v5  ;;  %v1337_v25 = vld [vmem:[#allocation10 + $0x1e8] sm:$0xff] }
 0x289   :  { %577 = vmatprep.mubr.f32.mxu0 %v11740_v2  ;;  %922 = vmatprep.mubr.f32.mxu1 %v11740_v2 }
 0x28a   :  { %589 = vmatpush1.msra.mxu0 %v392_v28  ;;  %1054 = vmatpush1.msra.mxu1 %v955_v29  ;;  %v1153_v28 = vld [vmem:[#allocation10 + $0x1c0] sm:$0xff]  ;;  %v9546_v29 = vpack.c.bf16 %v1341_v26, %v1337_v25 }
 0x28b   :  { %9519 = vmatprep.subr.bf16.mxu0 %v12018_v37  ;;  %9543 = vmatprep.subr.bf16.mxu1 %v9542_v30  ;;  %v756_v37 = vld [vmem:[#allocation10 + $0xe8] sm:$0xff] }
 0x28c   :  { %8890 = vmatmul.mubr.msk.f32.gmra.mrb[22].mxu0 %vm377_vm10, %v12046_v17  ;;  %8902 = vmatmul.mubr.msk.f32.gmra.mrb[2].mxu1 %vm377_vm10, %v12046_v17  ;;  %v9522_v44 = vpack.c.bf16 %v756_v37, %v752_v36  ;;  %v1336_v36 = vld [vmem:[#allocation10 + $0x1e0] sm:$0xff] }
 0x28d   :  { %648 = vmatprep.mubr.f32.mxu0 %v11740_v2  ;;  %1113 = vmatprep.mubr.f32.mxu1 %v11740_v2  ;;  %v1340_v37 = vld [vmem:[#allocation10 + $0x200] sm:$0xff] }
 0x290   :  { %8891 = vmatmul.mubr.msk.f32.vlgmr.msra.gmra.mrb[12].mxu0 %vm377_vm10, %v12032_v59  ;;  %8906 = vmatmul.mubr.msk.f32.vlgmr.msra.gmra.mrb[4].mxu1 %vm377_vm10, %v12073_v34 }
 0x291   :  { %654 = vmatprep.mubr.f32.mxu0 %v11740_v2  ;;  %1119 = vmatprep.mubr.f32.mxu1 %v11740_v2 }
 0x292   :  { %9521 = vmatpush1.bf16.msra.mxu0 %v12020_v40  ;;  %9545 = vmatpush1.bf16.msra.mxu1 %v9544_v33  ;;  %v751_v40 = vld [vmem:[#allocation10 + $0xc0] sm:$0xff]  ;;  %v1924_v33 = vld [vmem:[#allocation10 + $0x318] sm:$0xff] }
 0x293   :  { %671 = vmatprep.subr.mxu0 %v12024_v42  ;;  %1244 = vmatprep.subr.mxu1 %v1156_v35  ;;  %v12092_v42 = vld [vmem:[#allocation2 + $0x11] sm:$0x3f] }
 0x294   :  { %8892 = vmatmul.mubr.msk.f32.gmra.mrb[14].mxu0 %vm377_vm10, %v12038_v5  ;;  %8907 = vmatmul.mubr.msk.f32.gmra.mrb[0].mxu1 %vm377_vm10, %v12082_v41  ;;  %v1928_v35 = vld [vmem:[#allocation10 + $0x338] sm:$0xff] }
 0x295   :  { %660 = vmatprep.mubr.f32.mxu0 %v11740_v2  ;;  %1125 = vmatprep.mubr.f32.mxu1 %v11740_v2  ;;  %v9574_v39 = vpack.c.bf16 %v1928_v35, %v1924_v33 }
 0x296   :  { %672 = vmatpush1.msra.mxu0 %v12027_v43  ;;  %1245 = vmatpush1.msra.mxu1 %v1155_v45  ;;  %v9524_v43 = vpack.c.bf16 %v755_v47, %v751_v40  ;;  %v9548_v45 = vpack.c.bf16 %v1340_v37, %v1336_v36  ;;  %v1531_v40 = vld [vmem:[#allocation10 + $0x248] sm:$0xff]  ;;  %v2111_v37 = vld [vmem:[#allocation11] sm:$0xff] }
 0x297   :  { %9523 = vmatprep.subr.bf16.mxu0 %v9522_v44  ;;  %9551 = vmatprep.subr.bf16.mxu1 %v9550_v46  ;;  %v12144_v44 = vld [vmem:[#allocation2 + $0xa] sm:$0xff]  ;;  %v1345_v46 = vld [vmem:[#allocation10 + $0x228] sm:$0xff] }
 0x298   :  { %8893 = vmatmul.mubr.msk.f32.gmra.mrb[16].mxu0 %vm377_vm10, %v12046_v17  ;;  %8908 = vmatmul.mubr.msk.f32.gmra.mrb[2].mxu1 %vm377_vm10, %v12092_v42  ;;  %v1535_v47 = vld [vmem:[#allocation10 + $0x268] sm:$0xff] }
 0x299   :  { %731 = vmatprep.mubr.f32.mxu0 %v11740_v2  ;;  %1304 = vmatprep.mubr.f32.mxu1 %v11740_v2 }
 0x29c   :  { %8894 = vmatmul.mubr.msk.f32.vlgmr.msra.gmra.mrb[18].mxu0 %vm377_vm10, %v12032_v59  ;;  %8912 = vmatmul.mubr.msk.f32.vlgmr.msra.gmra.mrb[4].mxu1 %vm377_vm10, %v12073_v34 }
 0x29d   :  { %9525 = vmatpush1.bf16.msra.mxu0 %v9524_v43  ;;  %1310 = vmatprep.mubr.f32.mxu1 %v11740_v2  ;;  %v12152_v43 = vld [vmem:[#allocation2 + $0x12] sm:$0x3f] }
 0x29e   :  { %767 = vmatprep.subr.mxu0 %v760_v50  ;;  %827 = vmatprep.mubr.f32.mxu0 %v11740_v2  ;;  %v1344_v50 = vld [vmem:[#allocation10 + $0x220] sm:$0xff] }
 0x29f   :  { %9553 = vmatpush1.bf16.msra.mxu1 %v9552_v51  ;;  %v9554_v51 = vpack.c.bf16 %v1535_v47, %v1531_v40 }
 0x2a0   :  { %8913 = vmatmul.mubr.msk.f32.gmra.mrb[0].mxu1 %vm377_vm10, %v12082_v41  ;;  %1435 = vmatprep.subr.mxu1 %v1347_v54  ;;  %v1530_v54 = vld [vmem:[#allocation10 + $0x240] sm:$0xff] }
 0x2a1   :  { %768 = vmatpush1.msra.mxu0 %v759_v57  ;;  %1316 = vmatprep.mubr.f32.mxu1 %v11740_v2  ;;  %v9556_v57 = vpack.c.bf16 %v1534_v55, %v1530_v54  ;;  %v2294_v54 = vld [vmem:[#allocation13 + $0x38] sm:$0xff]  ;;  %v9586_v55 = vpack.c.bf16 %v2290_v49, %v2288_v48 }
 0x2a2   :  { %8897 = vmatmul.mubr.msk.f32.vlgmr.msra.gmra.mrb[12].mxu0 %vm377_vm10, %v12032_v59  ;;  %9531 = vmatprep.subr.bf16.mxu0 %v9530_v58  ;;  %v1541_v59 = vld [vmem:[#allocation10 + $0x298] sm:$0xff]  ;;  %v1539_v58 = vld [vmem:[#allocation10 + $0x288] sm:$0xff] }
 0x2a3   :  { %833 = vmatprep.mubr.f32.mxu0 %v11740_v2  ;;  %1436 = vmatpush1.msra.mxu1 %v1346_v62  ;;  %v1538_v62 = vld [vmem:[#allocation10 + $0x280] sm:$0xff] }
 0x2a4   :  { %8914 = vmatmul.mubr.msk.f32.gmra.mrb[2].mxu1 %vm377_vm10, %v12092_v42  ;;  %9533 = vmatpush1.bf16.msra.mxu0 %v9532_v63  ;;  %v9562_v63 = vpack.c.bf16 %v1735_v61, %v1731_v60  ;;  %v2293_v60 = vld [vmem:[#allocation13 + $0x30] sm:$0xff]  ;;  %v2296_v61 = vld [vmem:[#allocation13 + $0x48] sm:$0xff] }
 0x2a5   :  { %1495 = vmatprep.mubr.f32.mxu1 %v11740_v2  ;;  %970 = vmatprep.subr.mxu0 %v954_v0  ;;  %v1734_v0 = vld [vmem:[#allocation10 + $0x2c0] sm:$0xff] }
 0x2a6   :  { %8898 = vmatmul.mubr.msk.f32.gmra.mrb[14].mxu0 %vm377_vm10, %v12038_v5  ;;  %9559 = vmatprep.subr.bf16.mxu1 %v9558_v4  ;;  %v1540_v5 = vld [vmem:[#allocation10 + $0x290] sm:$0xff] }
 0x2a7   :  { %839 = vmatprep.mubr.f32.mxu0 %v11740_v2 }
 0x2a8   :  { %8918 = vmatmul.mubr.msk.f32.vlgmr.msra.gmra.mrb[4].mxu1 %vm377_vm10, %v12073_v34  ;;  %971 = vmatpush1.msra.mxu0 %v953_v11  ;;  %v1925_v11 = vld [vmem:[#allocation10 + $0x320] sm:$0xff] }
 0x2a9   :  { %1501 = vmatprep.mubr.f32.mxu1 %v11740_v2  ;;  %9561 = vmatpush1.bf16.msra.mxu1 %v9560_v12  ;;  %v9572_v12 = vpack.c.bf16 %v1925_v11, %v1921_v10  ;;  %v2301_v10 = vld [vmem:[#allocation13 + $0x70] sm:$0xff]  ;;  %v2304_v11 = vld [vmem:[#allocation13 + $0x88] sm:$0xff] }
 0x2aa   :  { %8899 = vmatmul.mubr.msk.f32.gmra.mrb[16].mxu0 %vm377_vm10, %v12046_v17  ;;  %1638 = vmatprep.subr.mxu1 %v1541_v59  ;;  %v1732_v17 = vld [vmem:[#allocation10 + $0x2b0] sm:$0xff]  ;;  %v1930_v59 = vld [vmem:[#allocation10 + $0x348] sm:$0xff] }
 0x2ab   :  { %1030 = vmatprep.mubr.f32.mxu0 %v11740_v2  ;;  %9539 = vmatprep.subr.bf16.mxu0 %v9538_v14  ;;  %v9568_v30 = vpack.c.bf16 %v1736_v27, %v1732_v17  ;;  %v1929_v14 = vld [vmem:[#allocation10 + $0x340] sm:$0xff] }
 0x2ac   :  { %8919 = vmatmul.mubr.msk.f32.gmra.mrb[0].mxu1 %vm377_vm10, %v12082_v41 }
 0x2ad   :  { %1507 = vmatprep.mubr.f32.mxu1 %v11740_v2  ;;  %1639 = vmatpush1.msra.mxu1 %v1540_v5 }
 0x2ae   :  { %8903 = vmatmul.mubr.msk.f32.vlgmr.msra.gmra.mrb[12].mxu0 %vm377_vm10, %v12073_v34  ;;  %9567 = vmatprep.subr.bf16.mxu1 %v9566_v22 }
 0x2af   :  { %1036 = vmatprep.mubr.f32.mxu0 %v11740_v2  ;;  %9541 = vmatpush1.bf16.msra.mxu0 %v9540_v23 }
 0x2b0   :  { %8920 = vmatmul.mubr.msk.f32.gmra.mrb[2].mxu1 %vm377_vm10, %v12092_v42  ;;  %1161 = vmatprep.subr.mxu0 %v1154_v24 }
 0x2b1   :  { %1698 = vmatprep.mubr.f32.mxu1 %v11740_v2 }
 0x2b2   :  { %8904 = vmatmul.mubr.msk.f32.gmra.mrb[14].mxu0 %vm377_vm10, %v12082_v41 }
 0x2b3   :  { %1042 = vmatprep.mubr.f32.mxu0 %v11740_v2  ;;  %1162 = vmatpush1.msra.mxu0 %v1153_v28 }
 0x2b4   :  { %8924 = vmatmul.mubr.msk.f32.vlgmr.msra.gmra.mrb[4].mxu1 %vm377_vm10, %v12136_v32  ;;  %9547 = vmatprep.subr.bf16.mxu0 %v9546_v29 }
 0x2b5   :  { %1704 = vmatprep.mubr.f32.mxu1 %v11740_v2  ;;  %9569 = vmatpush1.bf16.msra.mxu1 %v9568_v30 }
 0x2b6   :  { %8905 = vmatmul.mubr.msk.f32.gmra.mrb[16].mxu0 %vm377_vm10, %v12092_v42  ;;  %1829 = vmatprep.subr.mxu1 %v1741_v31 }
 0x2b7   :  { %1221 = vmatprep.mubr.f32.mxu0 %v11740_v2 }
 0x2b8   :  { %8925 = vmatmul.mubr.msk.f32.gmra.mrb[0].mxu1 %vm377_vm10, %v12144_v44 }
 0x2b9   :  { %1710 = vmatprep.mubr.f32.mxu1 %v11740_v2  ;;  %1830 = vmatpush1.msra.mxu1 %v1740_v38  ;;  %v2112_v38 = vld [vmem:[#allocation11 + $0x8] sm:$0x7] }
 0x2ba   :  { %8909 = vmatmul.mubr.msk.f32.vlgmr.msra.gmra.mrb[12].mxu0 %vm377_vm10, %v12073_v34  ;;  %9575 = vmatprep.subr.bf16.mxu1 %v9574_v39 }
 0x2bb   :  { %1227 = vmatprep.mubr.f32.mxu0 %v11740_v2  ;;  %9549 = vmatpush1.bf16.msra.mxu0 %v9548_v45 }
 0x2bc   :  { %8926 = vmatmul.mubr.msk.f32.gmra.mrb[2].mxu1 %vm377_vm10, %v12152_v43  ;;  %1352 = vmatprep.subr.mxu0 %v1345_v46 }
 0x2bd   :  { %1889 = vmatprep.mubr.f32.mxu1 %v11740_v2 }
 0x2be   :  { %8910 = vmatmul.mubr.msk.f32.gmra.mrb[14].mxu0 %vm377_vm10, %v12082_v41 }
 0x2bf   :  { %1233 = vmatprep.mubr.f32.mxu0 %v11740_v2  ;;  %1353 = vmatpush1.msra.mxu0 %v1344_v50  ;;  %v2287_v50 = vld [vmem:[#allocation13] sm:$0xff] }
 0x2c0   :  { %8930 = vmatmul.mubr.msk.f32.vlgmr.msra.gmra.mrb[4].mxu1 %vm377_vm10, %v12136_v32  ;;  %9555 = vmatprep.subr.bf16.mxu0 %v9554_v51  ;;  %v2289_v51 = vld [vmem:[#allocation13 + $0x10] sm:$0xff] }
 0x2c1   :  { %1895 = vmatprep.mubr.f32.mxu1 %v11740_v2  ;;  %9577 = vmatpush1.bf16.msra.mxu1 %v9576_v52 }
 0x2c2   :  { %8911 = vmatmul.mubr.msk.f32.gmra.mrb[16].mxu0 %vm377_vm10, %v12092_v42  ;;  %2020 = vmatprep.subr.mxu1 %v1932_v53  ;;  %v2292_v53 = vld [vmem:[#allocation13 + $0x28] sm:$0xff] }
 0x2c3   :  { %1412 = vmatprep.mubr.f32.mxu0 %v11740_v2 }
 0x2c4   :  { %8931 = vmatmul.mubr.msk.f32.gmra.mrb[0].mxu1 %vm377_vm10, %v12144_v44 }
 0x2c5   :  { %1901 = vmatprep.mubr.f32.mxu1 %v11740_v2  ;;  %2021 = vmatpush1.msra.mxu1 %v1931_v56  ;;  %v9588_v56 = vpack.c.bf16 %v2289_v51, %v2287_v50  ;;  %v2325_v50 = vld [vmem:[#allocation13 + $0x130] sm:$0xff]  ;;  %v2328_v51 = vld [vmem:[#allocation13 + $0x148] sm:$0xff] }
 0x2c6   :  { %8915 = vmatmul.mubr.msk.f32.vlgmr.msra.gmra.mrb[12].mxu0 %vm377_vm10, %v12073_v34  ;;  %v1730_v34 = vld [vmem:[#allocation10 + $0x2a0] sm:$0xff] }
 0x2c7   :  { %1418 = vmatprep.mubr.f32.mxu0 %v11740_v2  ;;  %9557 = vmatpush1.bf16.msra.mxu0 %v9556_v57  ;;  %v9564_v4 = vpack.c.bf16 %v1734_v0, %v1730_v34  ;;  %v9590_v57 = vpack.c.bf16 %v2294_v54, %v2292_v53  ;;  %v2295_v0 = vld [vmem:[#allocation13 + $0x40] sm:$0xff] }
 0x2c8   :  { %8932 = vmatmul.mubr.msk.f32.gmra.mrb[2].mxu1 %vm377_vm10, %v12152_v43  ;;  %1555 = vmatprep.subr.mxu0 %v1539_v58  ;;  %v2291_v58 = vld [vmem:[#allocation13 + $0x20] sm:$0xff] }
 0x2c9   :  { %2080 = vmatprep.mubr.f32.mxu1 %v11740_v2 }
 0x2ca   :  { %8916 = vmatmul.mubr.msk.f32.gmra.mrb[14].mxu0 %vm377_vm10, %v12082_v41  ;;  %v1739_v41 = vld [vmem:[#allocation10 + $0x2e8] sm:$0xff] }
 0x2cb   :  { %1424 = vmatprep.mubr.f32.mxu0 %v11740_v2  ;;  %1556 = vmatpush1.msra.mxu0 %v1538_v62  ;;  %v2298_v62 = vld [vmem:[#allocation13 + $0x58] sm:$0xff] }
 0x2cc   :  { %8936 = vmatmul.mubr.msk.f32.vlgmr.msra.gmra.mrb[4].mxu1 %vm377_vm10, %v12136_v32  ;;  %9563 = vmatprep.subr.bf16.mxu0 %v9562_v63  ;;  %v9592_v63 = vpack.c.bf16 %v2293_v60, %v2291_v58  ;;  %v9594_v34 = vpack.c.bf16 %v2298_v62, %v2296_v61  ;;  %v2334_v58 = vld [vmem:[#allocation13 + $0x178] sm:$0xff]  ;;  %v2331_v62 = vld [vmem:[#allocation13 + $0x160] sm:$0xff] }
 0x2cd   :  { %2086 = vmatprep.mubr.f32.mxu1 %v11740_v2 }
 0x2ce   :  { %8917 = vmatmul.mubr.msk.f32.gmra.mrb[16].mxu0 %vm377_vm10, %v12092_v42  ;;  %v1738_v42 = vld [vmem:[#allocation10 + $0x2e0] sm:$0xff] }
 0x2cf   :  { %1615 = vmatprep.mubr.f32.mxu0 %v11740_v2 }
 0x2d0   :  { %8937 = vmatmul.mubr.msk.f32.gmra.mrb[0].mxu1 %vm377_vm10, %v12144_v44 }
 0x2d1   :  { %2092 = vmatprep.mubr.f32.mxu1 %v11740_v2 }
 0x2d2   :  { %8921 = vmatmul.mubr.msk.f32.vlgmr.msra.gmra.mrb[12].mxu0 %vm377_vm10, %v12136_v32 }
 0x2d3   :  { %1621 = vmatprep.mubr.f32.mxu0 %v11740_v2  ;;  %9565 = vmatpush1.bf16.msra.mxu0 %v9564_v4  ;;  %v2297_v4 = vld [vmem:[#allocation13 + $0x50] sm:$0xff] }
 0x2d4   :  { %8938 = vmatmul.mubr.msk.f32.gmra.mrb[2].mxu1 %vm377_vm10, %v12152_v43  ;;  %1746 = vmatprep.subr.mxu0 %v1739_v41  ;;  %v2300_v41 = vld [vmem:[#allocation13 + $0x68] sm:$0xff]  ;;  %v9596_v7 = vpack.c.bf16 %v2297_v4, %v2295_v0  ;;  %v2338_v0 = vld [vmem:[#allocation13 + $0x198] sm:$0xff] }
 0x2d5   :  { %2274 = vmatprep.mubr.f32.mxu1 %v11740_v2 }
 0x2d6   :  { %8922 = vmatmul.mubr.msk.f32.gmra.mrb[14].mxu0 %vm377_vm10, %v12144_v44 }
 0x2d7   :  { %1627 = vmatprep.mubr.f32.mxu0 %v11740_v2  ;;  %1747 = vmatpush1.msra.mxu0 %v1738_v42  ;;  %v9598_v42 = vpack.c.bf16 %v2302_v6, %v2300_v41  ;;  %v2335_v6 = vld [vmem:[#allocation13 + $0x180] sm:$0xff] }
 0x2d8   :  { %9571 = vmatprep.subr.bf16.mxu0 %v9570_v8  ;;  %v2299_v8 = vld [vmem:[#allocation13 + $0x60] sm:$0xff] }
 0x2da   :  { %8923 = vmatmul.mubr.msk.f32.gmra.mrb[16].mxu0 %vm377_vm10, %v12152_v43 }
 0x2db   :  { %1806 = vmatprep.mubr.f32.mxu0 %v11740_v2 }
 0x2de   :  { %8927 = vmatmul.mubr.msk.f32.vlgmr.msra.gmra.mrb[12].mxu0 %vm377_vm10, %v12136_v32 }
 0x2df   :  { %1812 = vmatprep.mubr.f32.mxu0 %v11740_v2  ;;  %9573 = vmatpush1.bf16.msra.mxu0 %v9572_v12  ;;  %v2306_v12 = vld [vmem:[#allocation13 + $0x98] sm:$0xff] }
 0x2e0   :  { %1937 = vmatprep.subr.mxu0 %v1930_v59  ;;  %v9600_v59 = vpack.c.bf16 %v2301_v10, %v2299_v8  ;;  %v2342_v8 = vld [vmem:[#allocation13 + $0x1b8] sm:$0xff] }
 0x2e2   :  { %8928 = vmatmul.mubr.msk.f32.gmra.mrb[14].mxu0 %vm377_vm10, %v12144_v44 }
 0x2e3   :  { %1818 = vmatprep.mubr.f32.mxu0 %v11740_v2  ;;  %1938 = vmatpush1.msra.mxu0 %v1929_v14  ;;  %v9602_v14 = vpack.c.bf16 %v2306_v12, %v2304_v11  ;;  %v2339_v12 = vld [vmem:[#allocation13 + $0x1a0] sm:$0xff] }
 0x2e6   :  { %8929 = vmatmul.mubr.msk.f32.gmra.mrb[16].mxu0 %vm377_vm10, %v12152_v43 }
 0x2e7   :  { %1997 = vmatprep.mubr.f32.mxu0 %v11740_v2 }
 0x2ea   :  { %8933 = vmatmul.mubr.msk.f32.vlgmr.msra.gmra.mrb[12].mxu0 %vm377_vm10, %v12136_v32 }
 0x2eb   :  { %2003 = vmatprep.mubr.f32.mxu0 %v11740_v2 }
 0x2ee   :  { %8934 = vmatmul.mubr.msk.f32.gmra.mrb[14].mxu0 %vm377_vm10, %v12144_v44 }
 0x2ef   :  { %2009 = vmatprep.mubr.f32.mxu0 %v11740_v2 }
 0x2f2   :  { %8935 = vmatmul.mubr.msk.f32.gmra.mrb[16].mxu0 %vm377_vm10, %v12152_v43 }
 0x2f3   :  { %2197 = vmatprep.mubr.f32.mxu0 %v11740_v2 }
 0x35b   :  { %v573_v15 = vpop.f32.mrb[20].mxu0 }
 0x35c   :  { %v575_v18 = vpop.f32.mrb[21].mxu0 }
 0x35f   :  { %v579_v19 = vpop.f32.mrb[22].mxu0 }
 0x360   :  { %v581_v21 = vpop.f32.mrb[23].mxu0 }
 0x36f   :  { %v733_v5 = vpop.f32.mrb[18].mxu0 }
 0x370   :  { %v735_v22 = vpop.f32.mrb[19].mxu0 }
 0x39f   :  { %v2082_v23 = vpop.f32.mrb[4].mxu1 }
 0x3a0   :  { %v11134_v24 = vadd.f32 %v2082_v23, %v733_v5  ;;  %v2084_v25 = vpop.f32.mrb[5].mxu1  ;;  %v2307_v23 = vld [vmem:[#allocation13 + $0xa0] sm:$0xff] }
 0x3a1   :  { %v11135_v26 = vadd.f32 %v2084_v25, %v735_v22  ;;  %v2312_v25 = vld [vmem:[#allocation13 + $0xc8] sm:$0xff] }
 0x3a3   :  { %v2088_v17 = vpop.f32.mrb[0].mxu1 }
 0x3a4   :  { %v11136_v27 = vadd.f32 %v2088_v17, %v573_v15  ;;  %v2090_v28 = vpop.f32.mrb[1].mxu1  ;;  %v2303_v15 = vld [vmem:[#allocation13 + $0x80] sm:$0xff] }
 0x3a5   :  { %v11137_v29 = vadd.f32 %v2090_v28, %v575_v18  ;;  %v2305_v18 = vld [vmem:[#allocation13 + $0x90] sm:$0xff]  ;;  %v2311_v28 = vld [vmem:[#allocation13 + $0xc0] sm:$0xff] }
 0x3a6   :  { %v9584_v30 = vpack.c.bf16 %v11136_v27, %v11134_v24  ;;  %v9604_v5 = vpack.c.bf16 %v2305_v18, %v2303_v15  ;;  %v2309_v24 = vld [vmem:[#allocation13 + $0xb0] sm:$0xff]  ;;  %v2346_v15 = vld [vmem:[#allocation13 + $0x1d8] sm:$0xff] }
 0x3a7   :  { %v9582_v31 = vpack.c.bf16 %v11137_v29, %v11135_v26  ;;  %v2094_v32 = vpop.f32.mrb[2].mxu1  ;;  %v2314_v26 = vld [vmem:[#allocation13 + $0xd8] sm:$0xff]  ;;  %v9608_v17 = vpack.c.bf16 %v2309_v24, %v2307_v23  ;;  %v2313_v29 = vld [vmem:[#allocation13 + $0xd0] sm:$0xff] }
 0x3a8   :  { %v11138_v33 = vadd.f32 %v2094_v32, %v579_v19  ;;  %v2096_v35 = vpop.f32.mrb[3].mxu1  ;;  %v2308_v19 = vld [vmem:[#allocation13 + $0xa8] sm:$0xff]  ;;  %v9610_v27 = vpack.c.bf16 %v2314_v26, %v2312_v25  ;;  %v9612_v32 = vpack.c.bf16 %v2313_v29, %v2311_v28  ;;  %v2350_v23 = vld [vmem:[#allocation13 + $0x1f8] sm:$0xff]  ;;  %v2347_v26 = vld [vmem:[#allocation13 + $0x1e0] sm:$0xff] }
 0x3a9   :  { %v11139_v36 = vadd.f32 %v2096_v35, %v581_v21  ;;  %9583 = vmatprep.subr.bf16.mxu1 %v9582_v31  ;;  %v2310_v21 = vld [vmem:[#allocation13 + $0xb8] sm:$0xff]  ;;  %v2315_v35 = vld [vmem:[#allocation13 + $0xe0] sm:$0xff]  ;;  %v2352_v28 = vld [vmem:[#allocation13 + $0x208] sm:$0xff] }
 0x3aa   :  { %9585 = vmatpush1.bf16.msra.mxu1 %v9584_v30  ;;  %v9606_v22 = vpack.c.bf16 %v2310_v21, %v2308_v19  ;;  %v2316_v30 = vld [vmem:[#allocation13 + $0xe8] sm:$0xff]  ;;  %v2318_v31 = vld [vmem:[#allocation13 + $0xf8] sm:$0xff]  ;;  %v2343_v21 = vld [vmem:[#allocation13 + $0x1c0] sm:$0xff] }
 0x3ab   :  { %8943 = vmatprep.subr.msk.mxu1 %vm2120_vm11, %v11139_v36  ;;  %v2317_v36 = vld [vmem:[#allocation13 + $0xf0] sm:$0xff]  ;;  %v2354_v29 = vld [vmem:[#allocation13 + $0x218] sm:$0xff] }
 0x3ae   :  { %8944 = vmatpush1.msk.msra.mxu1 %vm2120_vm11, %v11138_v33  ;;  %v9614_v33 = vpack.c.bf16 %v2318_v31, %v2316_v30  ;;  %v9650_v30 = vpack.c.bf16 %v2354_v29, %v2352_v28  ;;  %v2856_v31 = vld [vmem:[#allocation14 + $0x388] sm:$0xff]  ;;  %v2894_v28 = vld [vmem:[#allocation14 + $0x4b8] sm:$0xff] }
 0x3af   :  { %8945 = vmatmul.mubr.msk.f32.vlgmr.msra.gmra.mrb[6].mxu1 %vm2113_vm12, %v2111_v37 }
 0x3b0   :  { %2280 = vmatprep.mubr.f32.mxu1 %v11740_v2 }
 0x3b3   :  { %8946 = vmatmul.mubr.msk.f32.gmra.mrb[8].mxu1 %vm2113_vm12, %v2112_v38 }
 0x3bd   :  { %v1999_v39 = vpop.f32.mrb[12].mxu0 }
 0x3be   :  { %v2001_v44 = vpop.f32.mrb[13].mxu0 }
 0x3c1   :  { %v2005_v45 = vpop.f32.mrb[14].mxu0 }
 0x3c2   :  { %v9580_v46 = vpack.c.bf16 %v2005_v45, %v1999_v39  ;;  %v2007_v40 = vpop.f32.mrb[15].mxu0  ;;  %v9616_v39 = vpack.c.bf16 %v2317_v36, %v2315_v35  ;;  %v2319_v45 = vld [vmem:[#allocation13 + $0x100] sm:$0xff]  ;;  %v2855_v35 = vld [vmem:[#allocation14 + $0x380] sm:$0xff] }
 0x3c3   :  { %v9578_v47 = vpack.c.bf16 %v2007_v40, %v2001_v44  ;;  %v2324_v40 = vld [vmem:[#allocation13 + $0x128] sm:$0xff]  ;;  %v2857_v36 = vld [vmem:[#allocation14 + $0x390] sm:$0xff] }
 0x3c5   :  { %v2011_v43 = vpop.f32.mrb[16].mxu0  ;;  %9579 = vmatprep.subr.bf16.mxu0 %v9578_v47  ;;  %v2326_v47 = vld [vmem:[#allocation13 + $0x138] sm:$0xff] }
 0x3c6   :  { %v2013_v52 = vpop.f32.mrb[17].mxu0  ;;  %9581 = vmatpush1.bf16.msra.mxu0 %v9580_v46  ;;  %v2321_v46 = vld [vmem:[#allocation13 + $0x110] sm:$0xff]  ;;  %v9622_v49 = vpack.c.bf16 %v2326_v47, %v2324_v40  ;;  %v2864_v47 = vld [vmem:[#allocation14 + $0x3c8] sm:$0xff] }
 0x3c7   :  { %8939 = vmatprep.subr.msk.mxu0 %vm2120_vm11, %v2013_v52  ;;  %v9620_v48 = vpack.c.bf16 %v2321_v46, %v2319_v45  ;;  %v2330_v52 = vld [vmem:[#allocation13 + $0x158] sm:$0xff]  ;;  %v2859_v45 = vld [vmem:[#allocation14 + $0x3a0] sm:$0xff]  ;;  %v2861_v46 = vld [vmem:[#allocation14 + $0x3b0] sm:$0xff] }
 0x3c8   :  { %v9626_v54 = vpack.c.bf16 %v2330_v52, %v2328_v51  ;;  %v9816_v40 = vpack.c.bf16 %v2861_v46, %v2859_v45  ;;  %v2868_v51 = vld [vmem:[#allocation14 + $0x3e8] sm:$0xff]  ;;  %v2902_v45 = vld [vmem:[#allocation14 + $0x4f8] sm:$0xff] }
 0x3ca   :  { %8940 = vmatpush1.msk.msra.mxu0 %vm2120_vm11, %v2011_v43  ;;  %v2323_v43 = vld [vmem:[#allocation13 + $0x120] sm:$0xff] }
 0x3cb   :  { %8941 = vmatmul.mubr.msk.f32.vlgmr.msra.gmra.mrb[24].mxu0 %vm2113_vm12, %v2111_v37  ;;  %9587 = vmatprep.subr.bf16.mxu0 %v9586_v55  ;;  %v2320_v37 = vld [vmem:[#allocation13 + $0x108] sm:$0xff]  ;;  %v9624_v53 = vpack.c.bf16 %v2325_v50, %v2323_v43  ;;  %v2327_v55 = vld [vmem:[#allocation13 + $0x140] sm:$0xff]  ;;  %v2863_v43 = vld [vmem:[#allocation14 + $0x3c0] sm:$0xff] }
 0x3cc   :  { %2203 = vmatprep.mubr.f32.mxu0 %v11740_v2  ;;  %9589 = vmatpush1.bf16.msra.mxu0 %v9588_v56  ;;  %v2329_v56 = vld [vmem:[#allocation13 + $0x150] sm:$0xff]  ;;  %v2865_v50 = vld [vmem:[#allocation14 + $0x3d0] sm:$0xff] }
 0x3cd   :  { %9591 = vmatprep.subr.bf16.mxu0 %v9590_v57  ;;  %v2332_v57 = vld [vmem:[#allocation13 + $0x168] sm:$0xff]  ;;  %v9628_v60 = vpack.c.bf16 %v2329_v56, %v2327_v55  ;;  %v9820_v52 = vpack.c.bf16 %v2865_v50, %v2863_v43  ;;  %v2867_v55 = vld [vmem:[#allocation14 + $0x3e0] sm:$0xff]  ;;  %v2869_v56 = vld [vmem:[#allocation14 + $0x3f0] sm:$0xff] }
 0x3ce   :  { %v9630_v61 = vpack.c.bf16 %v2334_v58, %v2332_v57  ;;  %v2872_v57 = vld [vmem:[#allocation14 + $0x408] sm:$0xff]  ;;  %v2874_v58 = vld [vmem:[#allocation14 + $0x418] sm:$0xff] }
 0x3cf   :  { %8942 = vmatmul.mubr.msk.f32.gmra.mrb[26].mxu0 %vm2113_vm12, %v2112_v38  ;;  %v2322_v38 = vld [vmem:[#allocation13 + $0x118] sm:$0xff] }
 0x3d0   :  { %9593 = vmatpush1.bf16.msra.mxu0 %v9592_v63  ;;  %v9618_v44 = vpack.c.bf16 %v2322_v38, %v2320_v37  ;;  %v2333_v63 = vld [vmem:[#allocation13 + $0x170] sm:$0xff]  ;;  %v9812_v37 = vpack.c.bf16 %v2857_v36, %v2855_v35  ;;  %v2860_v38 = vld [vmem:[#allocation14 + $0x3a8] sm:$0xff]  ;;  %v2898_v35 = vld [vmem:[#allocation14 + $0x4d8] sm:$0xff] }
 0x3d1   :  { %9595 = vmatprep.subr.bf16.mxu0 %v9594_v34  ;;  %v2336_v34 = vld [vmem:[#allocation13 + $0x188] sm:$0xff]  ;;  %v9632_v4 = vpack.c.bf16 %v2333_v63, %v2331_v62  ;;  %v2871_v62 = vld [vmem:[#allocation14 + $0x400] sm:$0xff]  ;;  %v2873_v63 = vld [vmem:[#allocation14 + $0x410] sm:$0xff] }
 0x3d2   :  { %v9634_v41 = vpack.c.bf16 %v2338_v0, %v2336_v34  ;;  %v2876_v34 = vld [vmem:[#allocation14 + $0x428] sm:$0xff]  ;;  %v2878_v0 = vld [vmem:[#allocation14 + $0x438] sm:$0xff] }
 0x3d4   :  { %9597 = vmatpush1.bf16.msra.mxu0 %v9596_v7  ;;  %v2337_v7 = vld [vmem:[#allocation13 + $0x190] sm:$0xff] }
 0x3d5   :  { %9599 = vmatprep.subr.bf16.mxu0 %v9598_v42  ;;  %v2340_v42 = vld [vmem:[#allocation13 + $0x1a8] sm:$0xff]  ;;  %v9636_v10 = vpack.c.bf16 %v2337_v7, %v2335_v6  ;;  %v2875_v6 = vld [vmem:[#allocation14 + $0x420] sm:$0xff]  ;;  %v2877_v7 = vld [vmem:[#allocation14 + $0x430] sm:$0xff] }
 0x3d6   :  { %v9638_v11 = vpack.c.bf16 %v2342_v8, %v2340_v42  ;;  %v2880_v42 = vld [vmem:[#allocation14 + $0x448] sm:$0xff]  ;;  %v2882_v8 = vld [vmem:[#allocation14 + $0x458] sm:$0xff] }
 0x3d8   :  { %9601 = vmatpush1.bf16.msra.mxu0 %v9600_v59  ;;  %v2341_v59 = vld [vmem:[#allocation13 + $0x1b0] sm:$0xff] }
 0x3d9   :  { %9603 = vmatprep.subr.bf16.mxu0 %v9602_v14  ;;  %v2344_v14 = vld [vmem:[#allocation13 + $0x1c8] sm:$0xff]  ;;  %v9640_v18 = vpack.c.bf16 %v2341_v59, %v2339_v12  ;;  %v2879_v12 = vld [vmem:[#allocation14 + $0x440] sm:$0xff]  ;;  %v2881_v59 = vld [vmem:[#allocation14 + $0x450] sm:$0xff] }
 0x3da   :  { %v9642_v19 = vpack.c.bf16 %v2346_v15, %v2344_v14  ;;  %v2884_v14 = vld [vmem:[#allocation14 + $0x468] sm:$0xff]  ;;  %v2886_v15 = vld [vmem:[#allocation14 + $0x478] sm:$0xff] }
 0x3dc   :  { %9605 = vmatpush1.bf16.msra.mxu0 %v9604_v5  ;;  %v2345_v5 = vld [vmem:[#allocation13 + $0x1d0] sm:$0xff] }
 0x3dd   :  { %9607 = vmatprep.subr.bf16.mxu0 %v9606_v22  ;;  %v2348_v22 = vld [vmem:[#allocation13 + $0x1e8] sm:$0xff]  ;;  %v9644_v24 = vpack.c.bf16 %v2345_v5, %v2343_v21  ;;  %v2883_v21 = vld [vmem:[#allocation14 + $0x460] sm:$0xff]  ;;  %v2885_v5 = vld [vmem:[#allocation14 + $0x470] sm:$0xff] }
 0x3de   :  { %v9646_v25 = vpack.c.bf16 %v2350_v23, %v2348_v22  ;;  %v2888_v22 = vld [vmem:[#allocation14 + $0x488] sm:$0xff]  ;;  %v2890_v23 = vld [vmem:[#allocation14 + $0x498] sm:$0xff] }
 0x3e0   :  { %9609 = vmatpush1.bf16.msra.mxu0 %v9608_v17  ;;  %v2349_v17 = vld [vmem:[#allocation13 + $0x1f0] sm:$0xff] }
 0x3e1   :  { %9611 = vmatprep.subr.bf16.mxu0 %v9610_v27  ;;  %v9648_v27 = vpack.c.bf16 %v2349_v17, %v2347_v26  ;;  %v2887_v26 = vld [vmem:[#allocation14 + $0x480] sm:$0xff]  ;;  %v2889_v17 = vld [vmem:[#allocation14 + $0x490] sm:$0xff] }
 0x3e2   :  { %v9844_v29 = vpack.c.bf16 %v2889_v17, %v2887_v26 }
 0x3e4   :  { %9613 = vmatpush1.bf16.msra.mxu0 %v9612_v32  ;;  %v2858_v32 = vld [vmem:[#allocation14 + $0x398] sm:$0xff] }
 0x3e5   :  { %9615 = vmatprep.subr.bf16.mxu0 %v9614_v33  ;;  %v9810_v33 = vpack.c.bf16 %v2858_v32, %v2856_v31  ;;  %v2891_v31 = vld [vmem:[#allocation14 + $0x4a0] sm:$0xff]  ;;  %v2893_v32 = vld [vmem:[#allocation14 + $0x4b0] sm:$0xff] }
 0x3e6   :  { %v9848_v36 = vpack.c.bf16 %v2893_v32, %v2891_v31 }
 0x3e7   :  { %9811 = vmatprep.subr.bf16.mxu1 %v9810_v33  ;;  %v2896_v33 = vld [vmem:[#allocation14 + $0x4c8] sm:$0xff] }
 0x3e8   :  { %9617 = vmatpush1.bf16.msra.mxu0 %v9616_v39  ;;  %v2862_v39 = vld [vmem:[#allocation14 + $0x3b8] sm:$0xff]  ;;  %9813 = vmatpush1.bf16.msra.mxu1 %v9812_v37  ;;  %v9850_v37 = vpack.c.bf16 %v2898_v35, %v2896_v33  ;;  %v2375_v33 = vld [vmem:[#allocation13 + $0x2c0] sm:$0xff]  ;;  %v2377_v35 = vld [vmem:[#allocation13 + $0x2d0] sm:$0xff] }
 0x3e9   :  { %9619 = vmatprep.subr.bf16.mxu0 %v9618_v44  ;;  %v9814_v44 = vpack.c.bf16 %v2862_v39, %v2860_v38  ;;  %v2895_v38 = vld [vmem:[#allocation14 + $0x4c0] sm:$0xff]  ;;  %v2897_v39 = vld [vmem:[#allocation14 + $0x4d0] sm:$0xff] }
 0x3ea   :  { %v9852_v46 = vpack.c.bf16 %v2897_v39, %v2895_v38  ;;  %v9676_v38 = vpack.c.bf16 %v2377_v35, %v2375_v33  ;;  %v2641_v33 = vld [vmem:[#allocation14 + $0x240] sm:$0xff]  ;;  %v2643_v35 = vld [vmem:[#allocation14 + $0x250] sm:$0xff] }
 0x3eb   :  { %9815 = vmatprep.subr.bf16.mxu1 %v9814_v44  ;;  %v2900_v44 = vld [vmem:[#allocation14 + $0x4e8] sm:$0xff] }
 0x3ec   :  { %9621 = vmatpush1.bf16.msra.mxu0 %v9620_v48  ;;  %v2866_v48 = vld [vmem:[#allocation14 + $0x3d8] sm:$0xff]  ;;  %9817 = vmatpush1.bf16.msra.mxu1 %v9816_v40  ;;  %v9854_v40 = vpack.c.bf16 %v2902_v45, %v2900_v44  ;;  %v2379_v44 = vld [vmem:[#allocation13 + $0x2e0] sm:$0xff]  ;;  %v2381_v45 = vld [vmem:[#allocation13 + $0x2f0] sm:$0xff] }
 0x3ed   :  { %9623 = vmatprep.subr.bf16.mxu0 %v9622_v49  ;;  %v9818_v49 = vpack.c.bf16 %v2866_v48, %v2864_v47  ;;  %v2899_v47 = vld [vmem:[#allocation14 + $0x4e0] sm:$0xff]  ;;  %v2901_v48 = vld [vmem:[#allocation14 + $0x4f0] sm:$0xff] }
 0x3ef   :  { %9819 = vmatprep.subr.bf16.mxu1 %v9818_v49  ;;  %v9856_v49 = vpack.c.bf16 %v2901_v48, %v2899_v47  ;;  %v9680_v47 = vpack.c.bf16 %v2381_v45, %v2379_v44  ;;  %v2647_v44 = vld [vmem:[#allocation14 + $0x270] sm:$0xff]  ;;  %v2650_v45 = vld [vmem:[#allocation14 + $0x288] sm:$0xff] }
 0x3f0   :  { %9625 = vmatpush1.bf16.msra.mxu0 %v9624_v53  ;;  %v2870_v53 = vld [vmem:[#allocation14 + $0x3f8] sm:$0xff]  ;;  %9821 = vmatpush1.bf16.msra.mxu1 %v9820_v52 }
 0x3f1   :  { %9627 = vmatprep.subr.bf16.mxu0 %v9626_v54  ;;  %v9822_v54 = vpack.c.bf16 %v2870_v53, %v2868_v51  ;;  %v2351_v53 = vld [vmem:[#allocation13 + $0x200] sm:$0xff] }
 0x3f3   :  { %9823 = vmatprep.subr.bf16.mxu1 %v9822_v54  ;;  %v2353_v54 = vld [vmem:[#allocation13 + $0x210] sm:$0xff] }
 0x3f4   :  { %9629 = vmatpush1.bf16.msra.mxu0 %v9628_v60  ;;  %v9824_v60 = vpack.c.bf16 %v2869_v56, %v2867_v55  ;;  %v2356_v55 = vld [vmem:[#allocation13 + $0x228] sm:$0xff]  ;;  %v2358_v56 = vld [vmem:[#allocation13 + $0x238] sm:$0xff] }
 0x3f5   :  { %9631 = vmatprep.subr.bf16.mxu0 %v9630_v61  ;;  %v9826_v61 = vpack.c.bf16 %v2874_v58, %v2872_v57  ;;  %v9652_v58 = vpack.c.bf16 %v2353_v54, %v2351_v53  ;;  %v2388_v53 = vld [vmem:[#allocation13 + $0x328] sm:$0xff]  ;;  %v2390_v54 = vld [vmem:[#allocation13 + $0x338] sm:$0xff] }
 0x3f6   :  { %9825 = vmatpush1.bf16.msra.mxu1 %v9824_v60 }
 0x3f7   :  { %9827 = vmatprep.subr.bf16.mxu1 %v9826_v61  ;;  %v9654_v61 = vpack.c.bf16 %v2358_v56, %v2356_v55  ;;  %v9686_v56 = vpack.c.bf16 %v2390_v54, %v2388_v53  ;;  %v2656_v53 = vld [vmem:[#allocation14 + $0x2b8] sm:$0xff] }
 0x3f8   :  { %9633 = vmatpush1.bf16.msra.mxu0 %v9632_v4  ;;  %v9828_v4 = vpack.c.bf16 %v2873_v63, %v2871_v62  ;;  %v2355_v62 = vld [vmem:[#allocation13 + $0x220] sm:$0xff]  ;;  %v2357_v63 = vld [vmem:[#allocation13 + $0x230] sm:$0xff] }
 0x3f9   :  { %9635 = vmatprep.subr.bf16.mxu0 %v9634_v41  ;;  %v9830_v41 = vpack.c.bf16 %v2878_v0, %v2876_v34  ;;  %v2360_v34 = vld [vmem:[#allocation13 + $0x248] sm:$0xff]  ;;  %v2362_v0 = vld [vmem:[#allocation13 + $0x258] sm:$0xff] }
 0x3fa   :  { %9829 = vmatpush1.bf16.msra.mxu1 %v9828_v4  ;;  %v9656_v4 = vpack.c.bf16 %v2357_v63, %v2355_v62 }
 0x3fb   :  { %9831 = vmatprep.subr.bf16.mxu1 %v9830_v41 }
 0x3fc   :  { %9637 = vmatpush1.bf16.msra.mxu0 %v9636_v10  ;;  %v9832_v10 = vpack.c.bf16 %v2877_v7, %v2875_v6  ;;  %v9658_v6 = vpack.c.bf16 %v2362_v0, %v2360_v34  ;;  %v2359_v7 = vld [vmem:[#allocation13 + $0x240] sm:$0xff]  ;;  %v2393_v0 = vld [vmem:[#allocation13 + $0x350] sm:$0xff] }
 0x3fd   :  { %9639 = vmatprep.subr.bf16.mxu0 %v9638_v11  ;;  %v9834_v11 = vpack.c.bf16 %v2882_v8, %v2880_v42  ;;  %v2361_v42 = vld [vmem:[#allocation13 + $0x250] sm:$0xff]  ;;  %v2391_v34 = vld [vmem:[#allocation13 + $0x340] sm:$0xff] }
 0x3fe   :  { %9833 = vmatpush1.bf16.msra.mxu1 %v9832_v10  ;;  %v2364_v10 = vld [vmem:[#allocation13 + $0x268] sm:$0xff] }
 0x3ff   :  { %9835 = vmatprep.subr.bf16.mxu1 %v9834_v11  ;;  %v2366_v11 = vld [vmem:[#allocation13 + $0x278] sm:$0xff] }
 0x400   :  { %9641 = vmatpush1.bf16.msra.mxu0 %v9640_v18  ;;  %v9836_v18 = vpack.c.bf16 %v2881_v59, %v2879_v12  ;;  %v9660_v12 = vpack.c.bf16 %v2361_v42, %v2359_v7  ;;  %v9662_v59 = vpack.c.bf16 %v2366_v11, %v2364_v10  ;;  %v2628_v7 = vld [vmem:[#allocation14 + $0x1d8] sm:$0xff]  ;;  %v2625_v42 = vld [vmem:[#allocation14 + $0x1c0] sm:$0xff]  ;;  %v2630_v10 = vld [vmem:[#allocation14 + $0x1e8] sm:$0xff] }
 0x401   :  { %9643 = vmatprep.subr.bf16.mxu0 %v9642_v19  ;;  %v9838_v19 = vpack.c.bf16 %v2886_v15, %v2884_v14  ;;  %v2363_v14 = vld [vmem:[#allocation13 + $0x260] sm:$0xff]  ;;  %v2365_v15 = vld [vmem:[#allocation13 + $0x270] sm:$0xff]  ;;  %v2632_v11 = vld [vmem:[#allocation14 + $0x1f8] sm:$0xff] }
 0x402   :  { %9837 = vmatpush1.bf16.msra.mxu1 %v9836_v18  ;;  %v2368_v18 = vld [vmem:[#allocation13 + $0x288] sm:$0xff] }
 0x403   :  { %9839 = vmatprep.subr.bf16.mxu1 %v9838_v19  ;;  %v2370_v19 = vld [vmem:[#allocation13 + $0x298] sm:$0xff] }
 0x404   :  { %9645 = vmatpush1.bf16.msra.mxu0 %v9644_v24  ;;  %v9840_v24 = vpack.c.bf16 %v2885_v5, %v2883_v21  ;;  %v9664_v21 = vpack.c.bf16 %v2365_v15, %v2363_v14  ;;  %v9666_v5 = vpack.c.bf16 %v2370_v19, %v2368_v18  ;;  %v9698_v15 = vpack.c.bf16 %v2632_v11, %v2630_v10  ;;  %v2629_v18 = vld [vmem:[#allocation14 + $0x1e0] sm:$0xff]  ;;  %v2631_v19 = vld [vmem:[#allocation14 + $0x1f0] sm:$0xff]  ;;  %v2668_v10 = vld [vmem:[#allocation14 + $0x318] sm:$0xff] }
 0x405   :  { %9647 = vmatprep.subr.bf16.mxu0 %v9646_v25  ;;  %v9842_v25 = vpack.c.bf16 %v2890_v23, %v2888_v22  ;;  %v2367_v22 = vld [vmem:[#allocation13 + $0x280] sm:$0xff]  ;;  %v2369_v23 = vld [vmem:[#allocation13 + $0x290] sm:$0xff] }
 0x406   :  { %9841 = vmatpush1.bf16.msra.mxu1 %v9840_v24  ;;  %v2372_v24 = vld [vmem:[#allocation13 + $0x2a8] sm:$0xff]  ;;  %v9668_v26 = vpack.c.bf16 %v2369_v23, %v2367_v22  ;;  %v9700_v22 = vpack.c.bf16 %v2631_v19, %v2629_v18 }
 0x407   :  { %9843 = vmatprep.subr.bf16.mxu1 %v9842_v25  ;;  %v2374_v25 = vld [vmem:[#allocation13 + $0x2b8] sm:$0xff]  ;;  %v2672_v18 = vld [vmem:[#allocation14 + $0x338] sm:$0xff] }
 0x408   :  { %9649 = vmatpush1.bf16.msra.mxu0 %v9648_v27  ;;  %v2892_v27 = vld [vmem:[#allocation14 + $0x4a8] sm:$0xff]  ;;  %v9670_v17 = vpack.c.bf16 %v2374_v25, %v2372_v24  ;;  %v2633_v24 = vld [vmem:[#allocation14 + $0x200] sm:$0xff]  ;;  %v2635_v25 = vld [vmem:[#allocation14 + $0x210] sm:$0xff] }
 0x409   :  { %9651 = vmatprep.subr.bf16.mxu0 %v9650_v30  ;;  %v9846_v30 = vpack.c.bf16 %v2894_v28, %v2892_v27  ;;  %v2371_v27 = vld [vmem:[#allocation13 + $0x2a0] sm:$0xff]  ;;  %v2373_v28 = vld [vmem:[#allocation13 + $0x2b0] sm:$0xff] }
 0x40a   :  { %9845 = vmatpush1.bf16.msra.mxu1 %v9844_v29  ;;  %v2376_v29 = vld [vmem:[#allocation13 + $0x2c8] sm:$0xff]  ;;  %v9672_v31 = vpack.c.bf16 %v2373_v28, %v2371_v27  ;;  %v9704_v27 = vpack.c.bf16 %v2635_v25, %v2633_v24  ;;  %v2674_v24 = vld [vmem:[#allocation14 + $0x348] sm:$0xff] }
 0x40b   :  { %9847 = vmatprep.subr.bf16.mxu1 %v9846_v30  ;;  %v2378_v30 = vld [vmem:[#allocation13 + $0x2d8] sm:$0xff]  ;;  %v2676_v25 = vld [vmem:[#allocation14 + $0x358] sm:$0xff] }
 0x40c   :  { %v9674_v32 = vpack.c.bf16 %v2378_v30, %v2376_v29  ;;  %v2637_v29 = vld [vmem:[#allocation14 + $0x220] sm:$0xff]  ;;  %v2642_v30 = vld [vmem:[#allocation14 + $0x248] sm:$0xff] }
 0x40e   :  { %9849 = vmatpush1.bf16.msra.mxu1 %v9848_v36  ;;  %v2380_v36 = vld [vmem:[#allocation13 + $0x2e8] sm:$0xff] }
 0x40f   :  { %9851 = vmatprep.subr.bf16.mxu1 %v9850_v37  ;;  %v2382_v37 = vld [vmem:[#allocation13 + $0x2f8] sm:$0xff] }
 0x410   :  { %v9678_v39 = vpack.c.bf16 %v2382_v37, %v2380_v36  ;;  %v2646_v36 = vld [vmem:[#allocation14 + $0x268] sm:$0xff]  ;;  %v2648_v37 = vld [vmem:[#allocation14 + $0x278] sm:$0xff] }
 0x412   :  { %9853 = vmatpush1.bf16.msra.mxu1 %v9852_v46  ;;  %v2384_v46 = vld [vmem:[#allocation13 + $0x308] sm:$0xff] }
 0x413   :  { %9855 = vmatprep.subr.bf16.mxu1 %v9854_v40  ;;  %v2386_v40 = vld [vmem:[#allocation13 + $0x318] sm:$0xff] }
 0x414   :  { %v9682_v48 = vpack.c.bf16 %v2386_v40, %v2384_v46  ;;  %v2652_v46 = vld [vmem:[#allocation14 + $0x298] sm:$0xff] }
 0x416   :  { %9857 = vmatpush1.bf16.msra.mxu1 %v9856_v49  ;;  %v2383_v49 = vld [vmem:[#allocation13 + $0x300] sm:$0xff] }
 0x482   :  { %v12227_v43 = vpop.f32.mrb[6].mxu1 }
 0x483   :  { %v2278_v50 = vpop.f32.mrb[7].mxu1 }
 0x486   :  { %v12229_v51 = vpop.f32.mrb[8].mxu1 }
 0x487   :  { %v12231_v52 = vpop.f32.mrb[9].mxu1 }
 0x49e   :  { %v2199_v57 = vpop.f32.mrb[24].mxu0 }
 0x49f   :  { %v2201_v60 = vpop.f32.mrb[25].mxu0 }
 0x4a0   :  { %2468 = vmatprep.mubr.f32.mxu0 %v2201_v60  ;;  %v2392_v60 = vld [vmem:[#allocation13 + $0x348] sm:$0xff] }
 0x4a1   :  { %2469 = vmatmul.mubr.f32.vlgmr.msra.gmra.mrb[28].mxu0 %v2199_v57  ;;  %v2387_v57 = vld [vmem:[#allocation13 + $0x320] sm:$0xff] }
 0x4a2   :  { %9653 = vmatpush1.bf16.msra.mxu0 %v9652_v58  ;;  %v2205_v41 = vpop.f32.mrb[26].mxu0  ;;  %v2389_v58 = vld [vmem:[#allocation13 + $0x330] sm:$0xff] }
 0x4a3   :  { %9655 = vmatprep.subr.bf16.mxu0 %v9654_v61  ;;  %v2207_v8 = vpop.f32.mrb[27].mxu0  ;;  %v2394_v61 = vld [vmem:[#allocation13 + $0x358] sm:$0xff]  ;;  %v9688_v62 = vpack.c.bf16 %v2389_v58, %v2387_v57  ;;  %v2655_v57 = vld [vmem:[#allocation14 + $0x2b0] sm:$0xff] }
 0x4a4   :  { %2474 = vmatprep.mubr.f32.mxu0 %v2207_v8  ;;  %v9690_v63 = vpack.c.bf16 %v2394_v61, %v2392_v60  ;;  %v2627_v8 = vld [vmem:[#allocation14 + $0x1d0] sm:$0xff]  ;;  %v2658_v58 = vld [vmem:[#allocation14 + $0x2c8] sm:$0xff]  ;;  %v2660_v60 = vld [vmem:[#allocation14 + $0x2d8] sm:$0xff] }
 0x4a5   :  { %2475 = vmatmul.mubr.f32.gmra.mrb[30].mxu0 %v2205_v41  ;;  %v2396_v41 = vld [vmem:[#allocation13 + $0x368] sm:$0xff]  ;;  %v9696_v14 = vpack.c.bf16 %v2627_v8, %v2625_v42  ;;  %v2663_v42 = vld [vmem:[#allocation14 + $0x2f0] sm:$0xff]  ;;  %v2666_v8 = vld [vmem:[#allocation14 + $0x308] sm:$0xff] }
 0x4a6   :  { %9657 = vmatpush1.bf16.msra.mxu0 %v9656_v4  ;;  %8947 = vmatprep.mubr.msk.f32.mxu0 %vm2397_vm13, %v2278_v50  ;;  %v2385_v50 = vld [vmem:[#allocation13 + $0x310] sm:$0xff]  ;;  %v9692_v4 = vpack.c.bf16 %v2393_v0, %v2391_v34  ;;  %v2659_v34 = vld [vmem:[#allocation14 + $0x2d0] sm:$0xff]  ;;  %v2662_v0 = vld [vmem:[#allocation14 + $0x2e8] sm:$0xff] }
 0x4a7   :  { %9659 = vmatprep.subr.bf16.mxu0 %v9658_v6  ;;  %v9684_v55 = vpack.c.bf16 %v2385_v50, %v2383_v49  ;;  %v2626_v6 = vld [vmem:[#allocation14 + $0x1c8] sm:$0xff]  ;;  %v2651_v49 = vld [vmem:[#allocation14 + $0x290] sm:$0xff] }
 0x4a8   :  { %v2654_v50 = vld [vmem:[#allocation14 + $0x2a8] sm:$0xff] }
 0x4aa   :  { %9661 = vmatpush1.bf16.msra.mxu0 %v9660_v12  ;;  %v2395_v12 = vld [vmem:[#allocation13 + $0x360] sm:$0xff] }
 0x4ab   :  { %9663 = vmatprep.subr.bf16.mxu0 %v9662_v59  ;;  %v9694_v59 = vpack.c.bf16 %v2628_v7, %v2626_v6  ;;  %v2661_v7 = vld [vmem:[#allocation14 + $0x2e0] sm:$0xff] }
 0x4ac   :  { %v9732_v11 = vpack.c.bf16 %v2663_v42, %v2661_v7  ;;  %v3010_v7 = vld [vmem:[#allocation14 + $0x578] sm:$0xff] }
 0x4ae   :  { %9665 = vmatpush1.bf16.msra.mxu0 %v9664_v21  ;;  %v2634_v21 = vld [vmem:[#allocation14 + $0x208] sm:$0xff] }
 0x4af   :  { %9667 = vmatprep.subr.bf16.mxu0 %v9666_v5  ;;  %v2636_v5 = vld [vmem:[#allocation14 + $0x218] sm:$0xff] }
 0x4b0   :  { %v9702_v23 = vpack.c.bf16 %v2636_v5, %v2634_v21  ;;  %v2669_v5 = vld [vmem:[#allocation14 + $0x320] sm:$0xff] }
 0x4b2   :  { %9669 = vmatpush1.bf16.msra.mxu0 %v9668_v26  ;;  %v2638_v26 = vld [vmem:[#allocation14 + $0x228] sm:$0xff] }
 0x4b3   :  { %9671 = vmatprep.subr.bf16.mxu0 %v9670_v17  ;;  %v2640_v17 = vld [vmem:[#allocation14 + $0x238] sm:$0xff] }
 0x4b4   :  { %v9706_v28 = vpack.c.bf16 %v2640_v17, %v2638_v26  ;;  %v2904_v26 = vld [vmem:[#allocation14 + $0x508] sm:$0xff]  ;;  %v9742_v17 = vpack.c.bf16 %v2676_v25, %v2674_v24  ;;  %v2576_v24 = vld [vmem:[#allocation14 + $0x40] sm:$0xff]  ;;  %v2578_v25 = vld [vmem:[#allocation14 + $0x50] sm:$0xff] }
 0x4b6   :  { %9673 = vmatpush1.bf16.msra.mxu0 %v9672_v31  ;;  %v2644_v31 = vld [vmem:[#allocation14 + $0x258] sm:$0xff] }
 0x4b7   :  { %9675 = vmatprep.subr.bf16.mxu0 %v9674_v32  ;;  %v9710_v32 = vpack.c.bf16 %v2644_v31, %v2642_v30  ;;  %v2903_v31 = vld [vmem:[#allocation14 + $0x500] sm:$0xff] }
 0x4ba   :  { %9677 = vmatpush1.bf16.msra.mxu0 %v9676_v38  ;;  %v9712_v38 = vpack.c.bf16 %v2643_v35, %v2641_v33  ;;  %v2678_v33 = vld [vmem:[#allocation14 + $0x368] sm:$0xff]  ;;  %v2680_v35 = vld [vmem:[#allocation14 + $0x378] sm:$0xf] }
 0x4bb   :  { %9679 = vmatprep.subr.bf16.mxu0 %v9678_v39  ;;  %v2645_v39 = vld [vmem:[#allocation14 + $0x260] sm:$0xff] }
 0x4bc   :  { %v9716_v40 = vpack.c.bf16 %v2647_v44, %v2645_v39  ;;  %v2907_v39 = vld [vmem:[#allocation14 + $0x520] sm:$0xff] }
 0x4be   :  { %9681 = vmatpush1.bf16.msra.mxu0 %v9680_v47  ;;  %v9718_v47 = vpack.c.bf16 %v2652_v46, %v2650_v45  ;;  %v2679_v46 = vld [vmem:[#allocation14 + $0x370] sm:$0xf] }
 0x4bf   :  { %9683 = vmatprep.subr.bf16.mxu0 %v9682_v48  ;;  %v2649_v48 = vld [vmem:[#allocation14 + $0x280] sm:$0xff] }
 0x4c0   :  { %v9720_v54 = vpack.c.bf16 %v2651_v49, %v2649_v48  ;;  %v2569_v49 = vld [vmem:[#allocation14 + $0x8] sm:$0xff] }
 0x4c2   :  { %9685 = vmatpush1.bf16.msra.mxu0 %v9684_v55  ;;  %v9722_v55 = vpack.c.bf16 %v2656_v53, %v2654_v50  ;;  %v2571_v50 = vld [vmem:[#allocation14 + $0x18] sm:$0xff]  ;;  %v3004_v53 = vld [vmem:[#allocation14 + $0x548] sm:$0xff] }
 0x4c3   :  { %9687 = vmatprep.subr.bf16.mxu0 %v9686_v56  ;;  %v2653_v56 = vld [vmem:[#allocation14 + $0x2a0] sm:$0xff] }
 0x4c4   :  { %v9724_v61 = vpack.c.bf16 %v2655_v57, %v2653_v56 }
 0x4c6   :  { %9689 = vmatpush1.bf16.msra.mxu0 %v9688_v62  ;;  %v9726_v62 = vpack.c.bf16 %v2660_v60, %v2658_v58 }
 0x4c7   :  { %9691 = vmatprep.subr.bf16.mxu0 %v9690_v63  ;;  %v2657_v63 = vld [vmem:[#allocation14 + $0x2c0] sm:$0xff] }
 0x4ca   :  { %9693 = vmatpush1.bf16.msra.mxu0 %v9692_v4  ;;  %v2664_v4 = vld [vmem:[#allocation14 + $0x2f8] sm:$0xff] }
 0x4cb   :  { %2525 = vmatprep.subr.mxu0 %v2396_v41  ;;  %v9728_v41 = vpack.c.bf16 %v2659_v34, %v2657_v63  ;;  %v9730_v6 = vpack.c.bf16 %v2664_v4, %v2662_v0  ;;  %v3003_v34 = vld [vmem:[#allocation14 + $0x540] sm:$0xff]  ;;  %v3005_v0 = vld [vmem:[#allocation14 + $0x550] sm:$0xff]  ;;  %v2573_v4 = vld [vmem:[#allocation14 + $0x28] sm:$0xff] }
 0x4ce   :  { %2526 = vmatpush1.msra.mxu0 %v2395_v12  ;;  %v9734_v12 = vpack.c.bf16 %v2668_v10, %v2666_v8  ;;  %v9870_v8 = vpack.c.bf16 %v3005_v0, %v3003_v34  ;;  %v2572_v10 = vld [vmem:[#allocation14 + $0x20] sm:$0xff] }
 0x4cf   :  { %2546 = vmatmul.mubr.f32.vlgmr.msra.gmra.mrb[28].mxu0 %v12227_v43  ;;  %9695 = vmatprep.subr.bf16.mxu0 %v9694_v59  ;;  %v2639_v43 = vld [vmem:[#allocation14 + $0x230] sm:$0xff]  ;;  %v2665_v59 = vld [vmem:[#allocation14 + $0x300] sm:$0xff] }
 0x4d0   :  { %8948 = vmatprep.mubr.msk.f32.mxu0 %vm2397_vm13, %v12231_v52  ;;  %9697 = vmatpush1.bf16.msra.mxu0 %v9696_v14  ;;  %v9708_v52 = vpack.c.bf16 %v2639_v43, %v2637_v29  ;;  %v2667_v14 = vld [vmem:[#allocation14 + $0x310] sm:$0xff]  ;;  %v3019_v0 = vld [vmem:[#allocation14 + $0x5c0] sm:$0xff] }
 0x4d1   :  { %9699 = vmatprep.subr.bf16.mxu0 %v9698_v15  ;;  %v2670_v15 = vld [vmem:[#allocation14 + $0x328] sm:$0xff]  ;;  %v9736_v19 = vpack.c.bf16 %v2667_v14, %v2665_v59  ;;  %v2675_v29 = vld [vmem:[#allocation14 + $0x350] sm:$0xff] }
 0x4d2   :  { %v9738_v21 = vpack.c.bf16 %v2672_v18, %v2670_v15  ;;  %v3009_v18 = vld [vmem:[#allocation14 + $0x570] sm:$0xff] }
 0x4d3   :  { %2552 = vmatmul.mubr.f32.gmra.mrb[30].mxu0 %v12229_v51  ;;  %v9714_v51 = vpack.c.bf16 %v2648_v37, %v2646_v36  ;;  %v2908_v36 = vld [vmem:[#allocation14 + $0x528] sm:$0xff]  ;;  %v9746_v37 = vpack.c.bf16 %v2680_v35, %v2678_v33 }
 0x4d4   :  { %9701 = vmatpush1.bf16.msra.mxu0 %v9700_v22  ;;  %v2671_v22 = vld [vmem:[#allocation14 + $0x330] sm:$0xff] }
 0x4d5   :  { %9703 = vmatprep.subr.bf16.mxu0 %v9702_v23  ;;  %v9740_v23 = vpack.c.bf16 %v2671_v22, %v2669_v5  ;;  %v3012_v5 = vld [vmem:[#allocation14 + $0x588] sm:$0xff]  ;;  %v3014_v22 = vld [vmem:[#allocation14 + $0x598] sm:$0xff] }
 0x4d8   :  { %9705 = vmatpush1.bf16.msra.mxu0 %v9704_v27  ;;  %v2906_v27 = vld [vmem:[#allocation14 + $0x518] sm:$0xff] }
 0x4d9   :  { %9707 = vmatprep.subr.bf16.mxu0 %v9706_v28  ;;  %v2673_v28 = vld [vmem:[#allocation14 + $0x340] sm:$0xff]  ;;  %v9858_v43 = vpack.c.bf16 %v2906_v27, %v2904_v26 }
 0x4da   :  { %v9744_v30 = vpack.c.bf16 %v2675_v29, %v2673_v28  ;;  %v3011_v27 = vld [vmem:[#allocation14 + $0x580] sm:$0xff]  ;;  %v3013_v28 = vld [vmem:[#allocation14 + $0x590] sm:$0xff]  ;;  %v2581_v29 = vld [vmem:[#allocation14 + $0x68] sm:$0xff] }
 0x4db   :  { %9859 = vmatprep.subr.bf16.mxu1 %v9858_v43 }
 0x4dc   :  { %9709 = vmatpush1.bf16.msra.mxu0 %v9708_v52  ;;  %v2905_v52 = vld [vmem:[#allocation14 + $0x510] sm:$0xff] }
 0x4dd   :  { %9711 = vmatprep.subr.bf16.mxu0 %v9710_v32  ;;  %v9860_v32 = vpack.c.bf16 %v2905_v52, %v2903_v31  ;;  %v2583_v31 = vld [vmem:[#allocation14 + $0x78] sm:$0xff] }
 0x4df   :  { %9861 = vmatpush1.bf16.msra.mxu1 %v9860_v32 }
 0x4e0   :  { %9713 = vmatpush1.bf16.msra.mxu0 %v9712_v38  ;;  %v2910_v38 = vld [vmem:[#allocation14 + $0x538] sm:$0xf] }
 0x4e1   :  { %9715 = vmatprep.subr.bf16.mxu0 %v9714_v51  ;;  %v2677_v51 = vld [vmem:[#allocation14 + $0x360] sm:$0xff]  ;;  %v9862_v45 = vpack.c.bf16 %v2910_v38, %v2908_v36  ;;  %v9876_v36 = vpack.c.bf16 %v3014_v22, %v3012_v5  ;;  %v3018_v38 = vld [vmem:[#allocation14 + $0x5b8] sm:$0xff]  ;;  %v3028_v5 = vld [vmem:[#allocation14 + $0x608] sm:$0xff] }
 0x4e2   :  { %v3030_v22 = vld [vmem:[#allocation14 + $0x618] sm:$0xff] }
 0x4e3   :  { %9864 = vmatprep.subr.msk.bf16.mxu1 %vm12239_vm1, %v9862_v45  ;;  %v9878_v45 = vpack.c.bf16 %v3013_v28, %v3011_v27  ;;  %v9892_v27 = vpack.c.bf16 %v3030_v22, %v3028_v5  ;;  %v3027_v28 = vld [vmem:[#allocation14 + $0x600] sm:$0xff] }
 0x4e4   :  { %9717 = vmatpush1.bf16.msra.mxu0 %v9716_v40  ;;  %v2909_v40 = vld [vmem:[#allocation14 + $0x530] sm:$0xf]  ;;  %v2608_v22 = vld [vmem:[#allocation14 + $0x140] sm:$0xff] }
 0x4e5   :  { %9719 = vmatprep.subr.bf16.mxu0 %v9718_v47  ;;  %v9749_v47 = vpack.c.bf16 %v2679_v46, %v2677_v51  ;;  %v9865_v48 = vpack.c.bf16 %v2909_v40, %v2907_v39  ;;  %v9762_v39 = vpack.c.bf16 %v2578_v25, %v2576_v24  ;;  %v2580_v46 = vld [vmem:[#allocation14 + $0x60] sm:$0xff]  ;;  %v2582_v40 = vld [vmem:[#allocation14 + $0x70] sm:$0xff] }
 0x4e6   :  { %v2592_v25 = vld [vmem:[#allocation14 + $0xc0] sm:$0xff] }
 0x4e7   :  { %9867 = vmatpush1.bf16.msk.msra.mxu1 %vm12239_vm1, %v9865_v48 }
 0x4e8   :  { %9721 = vmatpush1.bf16.msra.mxu0 %v9720_v54  ;;  %v9752_v54 = vpack.c.bf16 %v2571_v50, %v2569_v49  ;;  %v3015_v49 = vld [vmem:[#allocation14 + $0x5a0] sm:$0xff]  ;;  %v3017_v50 = vld [vmem:[#allocation14 + $0x5b0] sm:$0xff] }
 0x4e9   :  { %9723 = vmatprep.subr.bf16.mxu0 %v9722_v55  ;;  %v3006_v55 = vld [vmem:[#allocation14 + $0x558] sm:$0xff] }
 0x4ea   :  { %v9868_v56 = vpack.c.bf16 %v3006_v55, %v3004_v53  ;;  %v2585_v53 = vld [vmem:[#allocation14 + $0x88] sm:$0xff] }
 0x4eb   :  { %v3020_v55 = vld [vmem:[#allocation14 + $0x5c8] sm:$0xff] }
 0x4ec   :  { %9725 = vmatpush1.bf16.msra.mxu0 %v9724_v61  ;;  %9869 = vmatprep.subr.bf16.mxu1 %v9868_v56  ;;  %v2568_v61 = vld [vmem:[#allocation14] sm:$0xff]  ;;  %v3022_v56 = vld [vmem:[#allocation14 + $0x5d8] sm:$0xff] }
 0x4ed   :  { %9727 = vmatprep.subr.bf16.mxu0 %v9726_v62  ;;  %v2570_v62 = vld [vmem:[#allocation14 + $0x10] sm:$0xff]  ;;  %v9884_v34 = vpack.c.bf16 %v3022_v56, %v3020_v55  ;;  %v2600_v56 = vld [vmem:[#allocation14 + $0x100] sm:$0xff] }
 0x4ee   :  { %v9754_v42 = vpack.c.bf16 %v2570_v62, %v2568_v61  ;;  %v2584_v61 = vld [vmem:[#allocation14 + $0x80] sm:$0xff]  ;;  %v2586_v62 = vld [vmem:[#allocation14 + $0x90] sm:$0xff] }
 0x4f0   :  { %9729 = vmatpush1.bf16.msra.mxu0 %v9728_v41  ;;  %v2575_v41 = vld [vmem:[#allocation14 + $0x38] sm:$0xff] }
 0x4f1   :  { %9731 = vmatprep.subr.bf16.mxu0 %v9730_v6  ;;  %v3008_v6 = vld [vmem:[#allocation14 + $0x568] sm:$0xff]  ;;  %v9756_v14 = vpack.c.bf16 %v2575_v41, %v2573_v4  ;;  %v3021_v4 = vld [vmem:[#allocation14 + $0x5d0] sm:$0xff] }
 0x4f2   :  { %v9872_v15 = vpack.c.bf16 %v3010_v7, %v3008_v6  ;;  %v2589_v41 = vld [vmem:[#allocation14 + $0xa8] sm:$0xff]  ;;  %v2591_v6 = vld [vmem:[#allocation14 + $0xb8] sm:$0xff] }
 0x4f3   :  { %v3024_v7 = vld [vmem:[#allocation14 + $0x5e8] sm:$0xff] }
 0x4f4   :  { %9733 = vmatpush1.bf16.msra.mxu0 %v9732_v11  ;;  %v2574_v11 = vld [vmem:[#allocation14 + $0x30] sm:$0xff] }
 0x4f5   :  { %9735 = vmatprep.subr.bf16.mxu0 %v9734_v12  ;;  %v3007_v12 = vld [vmem:[#allocation14 + $0x560] sm:$0xff]  ;;  %v9758_v26 = vpack.c.bf16 %v2574_v11, %v2572_v10  ;;  %v9886_v10 = vpack.c.bf16 %v3021_v4, %v3019_v0  ;;  %v2607_v0 = vld [vmem:[#allocation14 + $0x138] sm:$0xff]  ;;  %v3040_v4 = vld [vmem:[#allocation14 + $0x668] sm:$0xff] }
 0x4f6   :  { %v2588_v11 = vld [vmem:[#allocation14 + $0xa0] sm:$0xff] }
 0x4f8   :  { %9737 = vmatpush1.bf16.msra.mxu0 %v9736_v19  ;;  %v2577_v19 = vld [vmem:[#allocation14 + $0x48] sm:$0xff] }
 0x4f9   :  { %9739 = vmatprep.subr.bf16.mxu0 %v9738_v21  ;;  %v2579_v21 = vld [vmem:[#allocation14 + $0x58] sm:$0xff] }
 0x4fa   :  { %v9760_v35 = vpack.c.bf16 %v2579_v21, %v2577_v19  ;;  %v2593_v19 = vld [vmem:[#allocation14 + $0xc8] sm:$0xff]  ;;  %v2595_v21 = vld [vmem:[#allocation14 + $0xd8] sm:$0xff] }
 0x4fc   :  { %9741 = vmatpush1.bf16.msra.mxu0 %v9740_v23 }
 0x4fd   :  { %9743 = vmatprep.subr.bf16.mxu0 %v9742_v17  ;;  %v9874_v17 = vpack.c.bf16 %v3009_v18, %v3007_v12  ;;  %v2590_v12 = vld [vmem:[#allocation14 + $0xb0] sm:$0xff] }
 0x4fe   :  { %v3025_v18 = vld [vmem:[#allocation14 + $0x5f0] sm:$0xff] }
 0x500   :  { %9745 = vmatpush1.bf16.msra.mxu0 %v9744_v30 }
 0x501   :  { %9748 = vmatprep.subr.msk.bf16.mxu0 %vm12239_vm1, %v9746_v37  ;;  %v3016_v37 = vld [vmem:[#allocation14 + $0x5a8] sm:$0xff] }
 0x502   :  { %v9880_v48 = vpack.c.bf16 %v3018_v38, %v3016_v37  ;;  %v2596_v38 = vld [vmem:[#allocation14 + $0xe0] sm:$0xff] }
 0x504   :  { %9751 = vmatpush1.bf16.msk.msra.mxu0 %vm12239_vm1, %v9749_v47  ;;  %v9764_v47 = vpack.c.bf16 %v2583_v31, %v2581_v29  ;;  %v3029_v29 = vld [vmem:[#allocation14 + $0x610] sm:$0xff]  ;;  %v2599_v31 = vld [vmem:[#allocation14 + $0xf8] sm:$0xff] }
 0x505   :  { %9753 = vmatprep.subr.bf16.mxu0 %v9752_v54  ;;  %v2587_v54 = vld [vmem:[#allocation14 + $0x98] sm:$0xff]  ;;  %v9894_v37 = vpack.c.bf16 %v3029_v29, %v3027_v28  ;;  %v3048_v29 = vld [vmem:[#allocation14 + $0x6a8] sm:$0xff] }
 0x506   :  { %v2615_v28 = vld [vmem:[#allocation14 + $0x178] sm:$0xff] }
 0x5a2   :  { %v12251_v57 = vpop.f32.mrb[28].mxu0 }
 0x5a3   :  { %2558 = vst [vmem:[#allocation3] sm:$0xff] %v12251_v57  ;;  %v2549_v58 = vpop.f32.mrb[29].mxu0 }
 0x5a4   :  { %2560 = vst.msk [vmem:[#allocation3 + $0x8] sm:$0xff] %vm2559_vm2, %v2549_v58  ;;  %v9766_v58 = vpack.c.bf16 %v2582_v40, %v2580_v46  ;;  %v3031_v40 = vld [vmem:[#allocation14 + $0x620] sm:$0xff] }
 0x5a6   :  { %v2553_v60 = vpop.f32.mrb[30].mxu0 }
 0x5a7   :  { %2561 = vst [vmem:[#allocation3 + $0x10] sm:$0x7] %v2553_v60  ;;  %v2555_v63 = vpop.f32.mrb[31].mxu0  ;;  %v9882_v60 = vpack.c.bf16 %v3017_v50, %v3015_v49  ;;  %v2603_v49 = vld [vmem:[#allocation14 + $0x118] sm:$0xff]  ;;  %v3036_v50 = vld [vmem:[#allocation14 + $0x648] sm:$0xff] }
 0x5a8   :  { %2563 = vst.msk [vmem:[#allocation3 + $0x18] sm:$0x7] %vm2562_vm3, %v2555_v63  ;;  %v9768_v63 = vpack.c.bf16 %v2587_v54, %v2585_v53  ;;  %v3038_v53 = vld [vmem:[#allocation14 + $0x658] sm:$0xff] }
 0x5ab   :  { %v2565_v59 = vld [vmem:[#allocation3 + $0x8] sm:$0xff] }
 0x5ac   :  { %8951 = vmatprep.mubr.msk.f32.mxu0 %vm2559_vm2, %v2565_v59  ;;  %8959 = vmatprep.mubr.msk.f32.mxu1 %vm2559_vm2, %v2565_v59  ;;  %v2999_v23 = vld [vmem:[#allocation3 + $0x8] sm:$0xfe] }
 0x5ad   :  { %2759 = vmatmul.mubr.f32.vlgmr.msra.gmra.mrb[32].mxu0 %v12251_v57  ;;  %2982 = vmatmul.mubr.f32.vlgmr.msra.gmra.mrb[10].mxu1 %v12251_v57  ;;  %v3067_v32 = vrot.slane %v2999_v23, 1  ;;  %v9774_v23 = vpack.c.bf16 %v2590_v12, %v2588_v11  ;;  %v3039_v12 = vld [vmem:[#allocation14 + $0x660] sm:$0xff] }
 0x5ae   :  { %9755 = vmatpush1.bf16.msra.mxu0 %v9754_v42  ;;  %9871 = vmatpush1.bf16.msra.mxu1 %v9870_v8  ;;  %v12266_v52 = vld [vmem:[#allocation3 + $0x10] sm:$0x1]  ;;  %v3026_v42 = vld [vmem:[#allocation14 + $0x5f8] sm:$0xff]  ;;  %v9770_v8 = vpack.c.bf16 %v2586_v62, %v2584_v61  ;;  %v9900_v61 = vpack.c.bf16 %v3038_v53, %v3036_v50  ;;  %v3035_v62 = vld [vmem:[#allocation14 + $0x640] sm:$0xff] }
 0x5af   :  { %v12260_v43 = vld [vmem:[#allocation3 + $0x18] sm:$0x1]  ;;  %9757 = vmatprep.subr.bf16.mxu0 %v9756_v14  ;;  %9873 = vmatprep.subr.bf16.mxu1 %v9872_v15  ;;  %v9888_v14 = vpack.c.bf16 %v3026_v42, %v3024_v7  ;;  %v3023_v15 = vld [vmem:[#allocation14 + $0x5e0] sm:$0xff] }
 0x5b0   :  { %v3001_v30 = vld [vmem:[#allocation3 + $0x18] sm:$0x3]  ;;  %8952 = vmatprep.mubr.msk.f32.mxu0 %vm2559_vm2, %v12260_v43  ;;  %8960 = vmatprep.mubr.msk.f32.mxu1 %vm2559_vm2, %v12260_v43  ;;  %v9890_v24 = vpack.c.bf16 %v3025_v18, %v3023_v15  ;;  %v2604_v42 = vld [vmem:[#allocation14 + $0x120] sm:$0xff]  ;;  %v3044_v18 = vld [vmem:[#allocation14 + $0x688] sm:$0xff] }
 0x5b1   :  { %v12268_v33 = vrot.slane %v3001_v30, 1  ;;  %2765 = vmatmul.mubr.f32.gmra.mrb[34].mxu0 %v12266_v52  ;;  %2988 = vmatmul.mubr.f32.gmra.mrb[12].mxu1 %v12266_v52  ;;  %v2597_v30 = vld [vmem:[#allocation14 + $0xe8] sm:$0xff]  ;;  %v2611_v15 = vld [vmem:[#allocation14 + $0x158] sm:$0xff]  ;;  %v2616_v53 = vld [vmem:[#allocation14 + $0x180] sm:$0xff] }
 0x5b2   :  { %9759 = vmatpush1.bf16.msra.mxu0 %v9758_v26  ;;  %9875 = vmatpush1.bf16.msra.mxu1 %v9874_v17  ;;  %v2594_v26 = vld [vmem:[#allocation14 + $0xd0] sm:$0xff]  ;;  %v9776_v17 = vpack.c.bf16 %v2595_v21, %v2593_v19  ;;  %v3046_v19 = vld [vmem:[#allocation14 + $0x698] sm:$0xff] }
 0x5b3   :  { %v12274_v51 = vsel %vm12925_vm4, %v3067_v32, %v12268_v33  ;;  %8955 = vmatprep.mubr.msk.f32.mxu0 %vm2559_vm2, %v2565_v59  ;;  %9761 = vmatprep.subr.bf16.mxu0 %v9760_v35  ;;  %v9772_v59 = vpack.c.bf16 %v2591_v6, %v2589_v41  ;;  %v3032_v32 = vld [vmem:[#allocation14 + $0x628] sm:$0xff]  ;;  %v3034_v35 = vld [vmem:[#allocation14 + $0x638] sm:$0xff] }
 0x5b4   :  { %8963 = vmatprep.mubr.msk.f32.mxu1 %vm2559_vm2, %v12274_v51  ;;  %9877 = vmatprep.subr.bf16.mxu1 %v9876_v36  ;;  %v9778_v36 = vpack.c.bf16 %v2594_v26, %v2592_v25  ;;  %v9896_v46 = vpack.c.bf16 %v3034_v35, %v3032_v32  ;;  %v3042_v41 = vld [vmem:[#allocation14 + $0x678] sm:$0xff]  ;;  %v9908_v25 = vpack.c.bf16 %v3046_v19, %v3044_v18  ;;  %v3043_v26 = vld [vmem:[#allocation14 + $0x680] sm:$0xff] }
 0x5b5   :  { %v9904_v11 = vpack.c.bf16 %v3042_v41, %v3040_v4  ;;  %v2612_v35 = vld [vmem:[#allocation14 + $0x160] sm:$0xff] }
 0x5b6   :  { %9763 = vmatpush1.bf16.msra.mxu0 %v9762_v39  ;;  %9879 = vmatpush1.bf16.msra.mxu1 %v9878_v45  ;;  %v2598_v39 = vld [vmem:[#allocation14 + $0xf0] sm:$0xff]  ;;  %v9780_v45 = vpack.c.bf16 %v2599_v31, %v2597_v30  ;;  %v3050_v30 = vld [vmem:[#allocation14 + $0x6b8] sm:$0xff]  ;;  %v2620_v41 = vld [vmem:[#allocation14 + $0x1a0] sm:$0xff] }
 0x5b7   :  { %9765 = vmatprep.subr.bf16.mxu0 %v9764_v47  ;;  %9881 = vmatprep.subr.bf16.mxu1 %v9880_v48  ;;  %v3033_v47 = vld [vmem:[#allocation14 + $0x630] sm:$0xff]  ;;  %v2601_v48 = vld [vmem:[#allocation14 + $0x108] sm:$0xff]  ;;  %v9782_v54 = vpack.c.bf16 %v2598_v39, %v2596_v38  ;;  %v9912_v38 = vpack.c.bf16 %v3050_v30, %v3048_v29  ;;  %v3047_v39 = vld [vmem:[#allocation14 + $0x6a0] sm:$0xff] }
 0x5b8   :  { %v9898_v55 = vpack.c.bf16 %v3033_v47, %v3031_v40  ;;  %v2619_v40 = vld [vmem:[#allocation14 + $0x198] sm:$0xff]  ;;  %v3052_v47 = vld [vmem:[#allocation14 + $0x6c8] sm:$0xff]  ;;  %v3170_v29 = vld [vmem:[#allocation14 + $0x730] sm:$0xff] }
 0x5b9   :  { %v2998_v18 = vld [vmem:[#allocation3] sm:$0xfe] }
 0x5ba   :  { %9767 = vmatpush1.bf16.msra.mxu0 %v9766_v58  ;;  %9883 = vmatpush1.bf16.msra.mxu1 %v9882_v60  ;;  %v2602_v58 = vld [vmem:[#allocation14 + $0x110] sm:$0xff]  ;;  %v9784_v60 = vpack.c.bf16 %v2603_v49, %v2601_v48  ;;  %v3054_v48 = vld [vmem:[#allocation14 + $0x6d8] sm:$0xff]  ;;  %v3173_v30 = vld [vmem:[#allocation14 + $0x748] sm:$0xff] }
 0x5bb   :  { %9769 = vmatprep.subr.bf16.mxu0 %v9768_v63  ;;  %9885 = vmatprep.subr.bf16.mxu1 %v9884_v34  ;;  %v3037_v63 = vld [vmem:[#allocation14 + $0x650] sm:$0xff]  ;;  %v2605_v34 = vld [vmem:[#allocation14 + $0x128] sm:$0xff]  ;;  %v9786_v6 = vpack.c.bf16 %v2602_v58, %v2600_v56  ;;  %v9916_v56 = vpack.c.bf16 %v3054_v48, %v3052_v47  ;;  %v3051_v58 = vld [vmem:[#allocation14 + $0x6c0] sm:$0xff] }
 0x5bc   :  { %v9902_v7 = vpack.c.bf16 %v3037_v63, %v3035_v62  ;;  %v2623_v62 = vld [vmem:[#allocation14 + $0x1b8] sm:$0xf]  ;;  %v3056_v63 = vld [vmem:[#allocation14 + $0x6e8] sm:$0xff] }
 0x5bd   :  { %v3183_v47 = vld [vmem:[#allocation14 + $0x798] sm:$0xff] }
 0x5be   :  { %9771 = vmatpush1.bf16.msra.mxu0 %v9770_v8  ;;  %9887 = vmatpush1.bf16.msra.mxu1 %v9886_v10  ;;  %v2606_v8 = vld [vmem:[#allocation14 + $0x130] sm:$0xff]  ;;  %v9788_v10 = vpack.c.bf16 %v2607_v0, %v2605_v34  ;;  %v3058_v34 = vld [vmem:[#allocation14 + $0x6f8] sm:$0xf] }
 0x5bf   :  { %9773 = vmatprep.subr.bf16.mxu0 %v9772_v59  ;;  %9889 = vmatprep.subr.bf16.mxu1 %v9888_v14  ;;  %v3041_v59 = vld [vmem:[#allocation14 + $0x670] sm:$0xff]  ;;  %v2609_v14 = vld [vmem:[#allocation14 + $0x148] sm:$0xff]  ;;  %v9790_v21 = vpack.c.bf16 %v2606_v8, %v2604_v42  ;;  %v3055_v8 = vld [vmem:[#allocation14 + $0x6e0] sm:$0xff] }
 0x5c0   :  { %v9906_v5 = vpack.c.bf16 %v3041_v59, %v3039_v12  ;;  %v2622_v42 = vld [vmem:[#allocation14 + $0x1b0] sm:$0xf]  ;;  %v3167_v12 = vld [vmem:[#allocation14 + $0x718] sm:$0xff] }
 0x5c1   :  { %v3000_v59 = vld [vmem:[#allocation3 + $0x10] sm:$0x3] }
 0x5c2   :  { %9775 = vmatpush1.bf16.msra.mxu0 %v9774_v23  ;;  %9891 = vmatpush1.bf16.msra.mxu1 %v9890_v24  ;;  %v2610_v23 = vld [vmem:[#allocation14 + $0x150] sm:$0xff]  ;;  %v9792_v24 = vpack.c.bf16 %v2611_v15, %v2609_v14  ;;  %v9807_v14 = vpack.c.bf16 %v2622_v42, %v2620_v41  ;;  %v3193_v41 = vld [vmem:[#allocation14 + $0x7e8] sm:$0xff] }
 0x5c3   :  { %9777 = vmatprep.subr.bf16.mxu0 %v9776_v17  ;;  %9893 = vmatprep.subr.bf16.mxu1 %v9892_v27  ;;  %v3045_v17 = vld [vmem:[#allocation14 + $0x690] sm:$0xff]  ;;  %v2613_v27 = vld [vmem:[#allocation14 + $0x168] sm:$0xff]  ;;  %v9794_v31 = vpack.c.bf16 %v2610_v23, %v2608_v22 }
 0x5c4   :  { %v9910_v32 = vpack.c.bf16 %v3045_v17, %v3043_v26  ;;  %v3166_v22 = vld [vmem:[#allocation14 + $0x710] sm:$0xff]  ;;  %v3169_v23 = vld [vmem:[#allocation14 + $0x728] sm:$0xff] }
 0x5c6   :  { %9779 = vmatpush1.bf16.msra.mxu0 %v9778_v36  ;;  %9895 = vmatpush1.bf16.msra.mxu1 %v9894_v37  ;;  %v2614_v36 = vld [vmem:[#allocation14 + $0x170] sm:$0xff]  ;;  %v9796_v37 = vpack.c.bf16 %v2615_v28, %v2613_v27  ;;  %v3168_v28 = vld [vmem:[#allocation14 + $0x720] sm:$0xff] }
 0x5c7   :  { %9781 = vmatprep.subr.bf16.mxu0 %v9780_v45  ;;  %9897 = vmatprep.subr.bf16.mxu1 %v9896_v46  ;;  %v3049_v45 = vld [vmem:[#allocation14 + $0x6b0] sm:$0xff]  ;;  %v2617_v46 = vld [vmem:[#allocation14 + $0x188] sm:$0xff]  ;;  %v9798_v49 = vpack.c.bf16 %v2614_v36, %v2612_v35  ;;  %v3172_v36 = vld [vmem:[#allocation14 + $0x740] sm:$0xff] }
 0x5c8   :  { %v9914_v50 = vpack.c.bf16 %v3049_v45, %v3047_v39  ;;  %v3176_v45 = vld [vmem:[#allocation14 + $0x760] sm:$0xff] }
 0x5ca   :  { %9783 = vmatpush1.bf16.msra.mxu0 %v9782_v54  ;;  %9899 = vmatpush1.bf16.msra.mxu1 %v9898_v55  ;;  %v2618_v54 = vld [vmem:[#allocation14 + $0x190] sm:$0xff]  ;;  %v9800_v55 = vpack.c.bf16 %v2619_v40, %v2617_v46  ;;  %v3181_v40 = vld [vmem:[#allocation14 + $0x788] sm:$0xff] }
 0x5cb   :  { %9785 = vmatprep.subr.bf16.mxu0 %v9784_v60  ;;  %9901 = vmatprep.subr.bf16.mxu1 %v9900_v61  ;;  %v3053_v60 = vld [vmem:[#allocation14 + $0x6d0] sm:$0xff]  ;;  %v2621_v61 = vld [vmem:[#allocation14 + $0x1a8] sm:$0xff]  ;;  %v9802_v0 = vpack.c.bf16 %v2618_v54, %v2616_v53  ;;  %v3187_v54 = vld [vmem:[#allocation14 + $0x7b8] sm:$0xff] }
 0x5cc   :  { %v9918_v4 = vpack.c.bf16 %v3053_v60, %v3051_v58  ;;  %v3178_v46 = vld [vmem:[#allocation14 + $0x770] sm:$0xff]  ;;  %v3185_v53 = vld [vmem:[#allocation14 + $0x7a8] sm:$0xff]  ;;  %v3184_v58 = vld [vmem:[#allocation14 + $0x7a0] sm:$0xff] }
 0x5cd   :  { %v9940_v48 = vpack.c.bf16 %v3178_v46, %v3176_v45  ;;  %v3186_v60 = vld [vmem:[#allocation14 + $0x7b0] sm:$0xff] }
 0x5ce   :  { %9787 = vmatpush1.bf16.msra.mxu0 %v9786_v6  ;;  %9903 = vmatpush1.bf16.msra.mxu1 %v9902_v7  ;;  %v9804_v6 = vpack.c.bf16 %v2623_v62, %v2621_v61  ;;  %v9920_v7 = vpack.c.bf16 %v3058_v34, %v3056_v63  ;;  %v3189_v61 = vld [vmem:[#allocation14 + $0x7c8] sm:$0xff]  ;;  %v3191_v62 = vld [vmem:[#allocation14 + $0x7d8] sm:$0xff]  ;;  %v9948_v63 = vpack.c.bf16 %v3186_v60, %v3184_v58 }
 0x5cf   :  { %9789 = vmatprep.subr.bf16.mxu0 %v9788_v10  ;;  %9905 = vmatprep.subr.bf16.mxu1 %v9904_v11  ;;  %v3057_v10 = vld [vmem:[#allocation14 + $0x6f0] sm:$0xf]  ;;  %v3165_v11 = vld [vmem:[#allocation14 + $0x708] sm:$0xff]  ;;  %v9950_v34 = vpack.c.bf16 %v3191_v62, %v3189_v61  ;;  %v3308_v61 = vld [vmem:[#allocation14 + $0x8c0] sm:$0xff] }
 0x5d0   :  { %v9923_v15 = vpack.c.bf16 %v3057_v10, %v3055_v8  ;;  %v9926_v19 = vpack.c.bf16 %v3167_v12, %v3165_v11  ;;  %v3192_v8 = vld [vmem:[#allocation14 + $0x7e0] sm:$0xff]  ;;  %v3194_v10 = vld [vmem:[#allocation14 + $0x7f0] sm:$0xff]  ;;  %v3197_v11 = vld [vmem:[#allocation14 + $0x808] sm:$0xff] }
 0x5d1   :  { %v3199_v12 = vld [vmem:[#allocation14 + $0x818] sm:$0xff]  ;;  %v3310_v62 = vld [vmem:[#allocation14 + $0x8d0] sm:$0xff] }
 0x5d2   :  { %9791 = vmatpush1.bf16.msra.mxu0 %v9790_v21  ;;  %9907 = vmatpush1.bf16.msra.mxu1 %v9906_v5  ;;  %v12283_v21 = vrot.slane %v3000_v59, 1  ;;  %v3164_v5 = vld [vmem:[#allocation14 + $0x700] sm:$0xff]  ;;  %v9956_v59 = vpack.c.bf16 %v3194_v10, %v3192_v8 }
 0x5d3   :  { %9793 = vmatprep.subr.bf16.mxu0 %v9792_v24  ;;  %9909 = vmatprep.subr.bf16.mxu1 %v9908_v25  ;;  %v3171_v24 = vld [vmem:[#allocation14 + $0x738] sm:$0xff]  ;;  %v3064_v25 = vrot.slane %v2998_v18, 1  ;;  %v9928_v26 = vpack.c.bf16 %v3166_v22, %v3164_v5  ;;  %v3198_v18 = vld [vmem:[#allocation14 + $0x810] sm:$0xff] }
 0x5d4   :  { %v9930_v27 = vpack.c.bf16 %v3171_v24, %v3169_v23  ;;  %v3203_v5 = vld [vmem:[#allocation14 + $0x838] sm:$0xff]  ;;  %v3200_v24 = vld [vmem:[#allocation14 + $0x820] sm:$0xff] }
 0x5d5   :  { %v12291_v17 = vsel %vm12925_vm4, %v3064_v25, %v12283_v21  ;;  %v3202_v25 = vld [vmem:[#allocation14 + $0x830] sm:$0xff] }
 0x5d6   :  { %9795 = vmatpush1.bf16.msra.mxu0 %v9794_v31  ;;  %9911 = vmatpush1.bf16.msra.mxu1 %v9910_v32  ;;  %v3175_v31 = vld [vmem:[#allocation14 + $0x758] sm:$0xff]  ;;  %v9932_v32 = vpack.c.bf16 %v3170_v29, %v3168_v28  ;;  %v9964_v28 = vpack.c.bf16 %v3202_v25, %v3200_v24 }
 0x5d7   :  { %9797 = vmatprep.subr.bf16.mxu0 %v9796_v37  ;;  %9913 = vmatprep.subr.bf16.mxu1 %v9912_v38  ;;  %v9934_v35 = vpack.c.bf16 %v3175_v31, %v3173_v30  ;;  %v3174_v37 = vld [vmem:[#allocation14 + $0x750] sm:$0xff]  ;;  %v3179_v38 = vld [vmem:[#allocation14 + $0x778] sm:$0xff]  ;;  %v3204_v30 = vld [vmem:[#allocation14 + $0x840] sm:$0xff] }
 0x5d8   :  { %v3206_v31 = vld [vmem:[#allocation14 + $0x850] sm:$0xff] }
 0x5da   :  { %9799 = vmatpush1.bf16.msra.mxu0 %v9798_v49  ;;  %9915 = vmatpush1.bf16.msra.mxu1 %v9914_v50  ;;  %v3180_v49 = vld [vmem:[#allocation14 + $0x780] sm:$0xff]  ;;  %v3182_v50 = vld [vmem:[#allocation14 + $0x790] sm:$0xff] }
 0x5db   :  { %9801 = vmatprep.subr.bf16.mxu0 %v9800_v55  ;;  %9917 = vmatprep.subr.bf16.mxu1 %v9916_v56  ;;  %v9944_v55 = vpack.c.bf16 %v3182_v50, %v3180_v49  ;;  %v9946_v56 = vpack.c.bf16 %v3187_v54, %v3185_v53  ;;  %v3216_v53 = vld [vmem:[#allocation14 + $0x8a0] sm:$0xff]  ;;  %v3218_v54 = vld [vmem:[#allocation14 + $0x8b0] sm:$0xf] }
 0x5dc   :  { %v9981_v58 = vpack.c.bf16 %v3218_v54, %v3216_v53  ;;  %v3340_v54 = vld [vmem:[#allocation14 + $0x9c0] sm:$0xff] }
 0x5de   :  { %9803 = vmatpush1.bf16.msra.mxu0 %v9802_v0  ;;  %9919 = vmatpush1.bf16.msra.mxu1 %v9918_v4  ;;  %v3188_v0 = vld [vmem:[#allocation14 + $0x7c0] sm:$0xff]  ;;  %v3190_v4 = vld [vmem:[#allocation14 + $0x7d0] sm:$0xff] }
 0x5df   :  { %9806 = vmatprep.subr.msk.bf16.mxu0 %vm12239_vm1, %v9804_v6  ;;  %9922 = vmatprep.subr.msk.bf16.mxu1 %vm12239_vm1, %v9920_v7  ;;  %v3195_v6 = vld [vmem:[#allocation14 + $0x7f8] sm:$0xff]  ;;  %v9952_v7 = vpack.c.bf16 %v3190_v4, %v3188_v0  ;;  %v9986_v0 = vpack.c.bf16 %v3310_v62, %v3308_v61  ;;  %v3344_v62 = vld [vmem:[#allocation14 + $0x9e0] sm:$0xff] }
 0x5e0   :  { %v9954_v42 = vpack.c.bf16 %v3195_v6, %v3193_v41  ;;  %v3312_v41 = vld [vmem:[#allocation14 + $0x8e0] sm:$0xff]  ;;  %v3314_v6 = vld [vmem:[#allocation14 + $0x8f0] sm:$0xff] }
 0x5e1   :  { %v9990_v8 = vpack.c.bf16 %v3314_v6, %v3312_v41  ;;  %v3348_v6 = vld [vmem:[#allocation14 + $0xa00] sm:$0xff] }
 0x5e2   :  { %9809 = vmatpush1.bf16.msk.msra.mxu0 %vm12239_vm1, %v9807_v14  ;;  %9925 = vmatpush1.bf16.msk.msra.mxu1 %vm12239_vm1, %v9923_v15  ;;  %v9958_v14 = vpack.c.bf16 %v3199_v12, %v3197_v11  ;;  %v3196_v15 = vld [vmem:[#allocation14 + $0x800] sm:$0xff]  ;;  %v3318_v12 = vld [vmem:[#allocation14 + $0x910] sm:$0xff] }
 0x5e3   :  { %9927 = vmatprep.subr.bf16.mxu1 %v9926_v19  ;;  %v3201_v19 = vld [vmem:[#allocation14 + $0x828] sm:$0xff]  ;;  %v9960_v22 = vpack.c.bf16 %v3198_v18, %v3196_v15  ;;  %v3316_v11 = vld [vmem:[#allocation14 + $0x900] sm:$0xff] }
 0x5e4   :  { %v9962_v23 = vpack.c.bf16 %v3203_v5, %v3201_v19  ;;  %v9994_v15 = vpack.c.bf16 %v3318_v12, %v3316_v11  ;;  %v3320_v19 = vld [vmem:[#allocation14 + $0x920] sm:$0xff]  ;;  %v3322_v5 = vld [vmem:[#allocation14 + $0x930] sm:$0xff] }
 0x5e5   :  { %2842 = vmatmul.mubr.f32.vlgmr.msra.gmra.mrb[32].mxu0 %v12251_v57  ;;  %3147 = vmatmul.mubr.f32.vlgmr.msra.gmra.mrb[10].mxu1 %v12291_v17  ;;  %v3177_v57 = vld [vmem:[#allocation14 + $0x768] sm:$0xff]  ;;  %v9998_v24 = vpack.c.bf16 %v3322_v5, %v3320_v19  ;;  %v3352_v12 = vld [vmem:[#allocation14 + $0xa20] sm:$0xff] }
 0x5e6   :  { %8956 = vmatprep.mubr.msk.f32.mxu0 %vm2559_vm2, %v12260_v43  ;;  %8964 = vmatprep.mubr.msk.f32.mxu1 %vm2559_vm2, %v12268_v33  ;;  %v9936_v43 = vpack.c.bf16 %v3174_v37, %v3172_v36  ;;  %v9938_v39 = vpack.c.bf16 %v3179_v38, %v3177_v57  ;;  %v9968_v36 = vpack.c.bf16 %v3206_v31, %v3204_v30  ;;  %v3208_v57 = vld [vmem:[#allocation14 + $0x860] sm:$0xff]  ;;  %v3210_v38 = vld [vmem:[#allocation14 + $0x870] sm:$0xff] }
 0x5e7   :  { %9929 = vmatpush1.bf16.msra.mxu1 %v9928_v26  ;;  %v3205_v26 = vld [vmem:[#allocation14 + $0x848] sm:$0xff]  ;;  %v9972_v45 = vpack.c.bf16 %v3210_v38, %v3208_v57  ;;  %v3332_v38 = vld [vmem:[#allocation14 + $0x980] sm:$0xff] }
 0x5e8   :  { %9931 = vmatprep.subr.bf16.mxu1 %v9930_v27  ;;  %v3207_v27 = vld [vmem:[#allocation14 + $0x858] sm:$0xff]  ;;  %v3356_v5 = vld [vmem:[#allocation14 + $0xa40] sm:$0xff] }
 0x5e9   :  { %2848 = vmatmul.mubr.f32.gmra.mrb[34].mxu0 %v12266_v52  ;;  %3153 = vmatmul.mubr.f32.gmra.mrb[12].mxu1 %v12283_v21  ;;  %v9942_v52 = vpack.c.bf16 %v3183_v47, %v3181_v40  ;;  %v9966_v29 = vpack.c.bf16 %v3207_v27, %v3205_v26  ;;  %v3212_v40 = vld [vmem:[#allocation14 + $0x880] sm:$0xff]  ;;  %v3214_v47 = vld [vmem:[#allocation14 + $0x890] sm:$0xff] }
 0x5ea   :  { %8967 = vmatprep.mubr.msk.f32.mxu1 %vm2559_vm2, %v12274_v51  ;;  %3979 = vmatprep.mubr.f32.mxu0 %v11740_v2  ;;  %v9976_v49 = vpack.c.bf16 %v3214_v47, %v3212_v40  ;;  %v3324_v26 = vld [vmem:[#allocation14 + $0x940] sm:$0xff]  ;;  %v3326_v27 = vld [vmem:[#allocation14 + $0x950] sm:$0xff] }
 0x5eb   :  { %9933 = vmatpush1.bf16.msra.mxu1 %v9932_v32  ;;  %v3209_v32 = vld [vmem:[#allocation14 + $0x868] sm:$0xff]  ;;  %v10002_v30 = vpack.c.bf16 %v3326_v27, %v3324_v26  ;;  %v3336_v47 = vld [vmem:[#allocation14 + $0x9a0] sm:$0xff] }
 0x5ec   :  { %9935 = vmatprep.subr.bf16.mxu1 %v9934_v35  ;;  %v3211_v35 = vld [vmem:[#allocation14 + $0x878] sm:$0xff]  ;;  %v3360_v27 = vld [vmem:[#allocation14 + $0xa60] sm:$0xff] }
 0x5ed   :  { %v9970_v37 = vpack.c.bf16 %v3211_v35, %v3209_v32  ;;  %v3330_v32 = vld [vmem:[#allocation14 + $0x970] sm:$0xff]  ;;  %v3333_v35 = vld [vmem:[#allocation14 + $0x988] sm:$0xff] }
 0x5ef   :  { %9937 = vmatpush1.bf16.msra.mxu1 %v9936_v43  ;;  %v3213_v43 = vld [vmem:[#allocation14 + $0x888] sm:$0xff] }
 0x5f0   :  { %9939 = vmatprep.subr.bf16.mxu1 %v9938_v39  ;;  %v3215_v39 = vld [vmem:[#allocation14 + $0x898] sm:$0xff] }
 0x5f1   :  { %v9974_v46 = vpack.c.bf16 %v3215_v39, %v3213_v43  ;;  %v3334_v43 = vld [vmem:[#allocation14 + $0x990] sm:$0xff]  ;;  %v3337_v39 = vld [vmem:[#allocation14 + $0x9a8] sm:$0xff] }
 0x5f3   :  { %9941 = vmatpush1.bf16.msra.mxu1 %v9940_v48  ;;  %v3217_v48 = vld [vmem:[#allocation14 + $0x8a8] sm:$0xff] }
 0x5f4   :  { %9943 = vmatprep.subr.bf16.mxu1 %v9942_v52  ;;  %v3219_v52 = vld [vmem:[#allocation14 + $0x8b8] sm:$0xf] }
 0x5f5   :  { %v9978_v50 = vpack.c.bf16 %v3219_v52, %v3217_v48  ;;  %v3338_v48 = vld [vmem:[#allocation14 + $0x9b0] sm:$0xff]  ;;  %v3341_v52 = vld [vmem:[#allocation14 + $0x9c8] sm:$0xff] }
 0x5f7   :  { %9945 = vmatpush1.bf16.msra.mxu1 %v9944_v55  ;;  %v3309_v55 = vld [vmem:[#allocation14 + $0x8c8] sm:$0xff] }
 0x5f8   :  { %9947 = vmatprep.subr.bf16.mxu1 %v9946_v56  ;;  %v3311_v56 = vld [vmem:[#allocation14 + $0x8d8] sm:$0xff] }
 0x5f9   :  { %v9984_v60 = vpack.c.bf16 %v3311_v56, %v3309_v55  ;;  %v3342_v55 = vld [vmem:[#allocation14 + $0x9d0] sm:$0xff]  ;;  %v3345_v56 = vld [vmem:[#allocation14 + $0x9e8] sm:$0xff] }
 0x5fb   :  { %9949 = vmatpush1.bf16.msra.mxu1 %v9948_v63  ;;  %v3313_v63 = vld [vmem:[#allocation14 + $0x8e8] sm:$0xff] }
 0x5fc   :  { %9951 = vmatprep.subr.bf16.mxu1 %v9950_v34  ;;  %v3315_v34 = vld [vmem:[#allocation14 + $0x8f8] sm:$0xff] }
 0x5fd   :  { %v9988_v4 = vpack.c.bf16 %v3315_v34, %v3313_v63  ;;  %v3346_v63 = vld [vmem:[#allocation14 + $0x9f0] sm:$0xff]  ;;  %v3349_v34 = vld [vmem:[#allocation14 + $0xa08] sm:$0xff] }
 0x5ff   :  { %9953 = vmatpush1.bf16.msra.mxu1 %v9952_v7  ;;  %v3317_v7 = vld [vmem:[#allocation14 + $0x908] sm:$0xff] }
 0x600   :  { %9955 = vmatprep.subr.bf16.mxu1 %v9954_v42  ;;  %v3319_v42 = vld [vmem:[#allocation14 + $0x918] sm:$0xff] }
 0x601   :  { %v9992_v10 = vpack.c.bf16 %v3319_v42, %v3317_v7  ;;  %v3350_v7 = vld [vmem:[#allocation14 + $0xa10] sm:$0xff]  ;;  %v3353_v42 = vld [vmem:[#allocation14 + $0xa28] sm:$0xff] }
 0x603   :  { %9957 = vmatpush1.bf16.msra.mxu1 %v9956_v59  ;;  %v3321_v59 = vld [vmem:[#allocation14 + $0x928] sm:$0xff] }
 0x604   :  { %9959 = vmatprep.subr.bf16.mxu1 %v9958_v14  ;;  %v3323_v14 = vld [vmem:[#allocation14 + $0x938] sm:$0xff] }
 0x605   :  { %v9996_v18 = vpack.c.bf16 %v3323_v14, %v3321_v59  ;;  %v3354_v59 = vld [vmem:[#allocation14 + $0xa30] sm:$0xff]  ;;  %v3357_v14 = vld [vmem:[#allocation14 + $0xa48] sm:$0xff] }
 0x607   :  { %9961 = vmatpush1.bf16.msra.mxu1 %v9960_v22  ;;  %v3325_v22 = vld [vmem:[#allocation14 + $0x948] sm:$0xff] }
 0x608   :  { %9963 = vmatprep.subr.bf16.mxu1 %v9962_v23  ;;  %v3327_v23 = vld [vmem:[#allocation14 + $0x958] sm:$0xff] }
 0x609   :  { %v10000_v25 = vpack.c.bf16 %v3327_v23, %v3325_v22  ;;  %v3358_v22 = vld [vmem:[#allocation14 + $0xa50] sm:$0xff]  ;;  %v3361_v23 = vld [vmem:[#allocation14 + $0xa68] sm:$0xff] }
 0x60b   :  { %9965 = vmatpush1.bf16.msra.mxu1 %v9964_v28  ;;  %v3329_v28 = vld [vmem:[#allocation14 + $0x968] sm:$0xff] }
 0x60c   :  { %9967 = vmatprep.subr.bf16.mxu1 %v9966_v29  ;;  %v3331_v29 = vld [vmem:[#allocation14 + $0x978] sm:$0xff] }
 0x60d   :  { %v10004_v31 = vpack.c.bf16 %v3331_v29, %v3329_v28  ;;  %v3362_v28 = vld [vmem:[#allocation14 + $0xa70] sm:$0xf]  ;;  %v3457_v29 = vld [vmem:[#allocation14 + $0xa88] sm:$0xff] }
 0x60f   :  { %9969 = vmatpush1.bf16.msra.mxu1 %v9968_v36  ;;  %v3335_v36 = vld [vmem:[#allocation14 + $0x998] sm:$0xff] }
 0x610   :  { %9971 = vmatprep.subr.bf16.mxu1 %v9970_v37  ;;  %v10008_v57 = vpack.c.bf16 %v3335_v36, %v3333_v35  ;;  %v3458_v35 = vld [vmem:[#allocation14 + $0xa90] sm:$0xff]  ;;  %v3461_v36 = vld [vmem:[#allocation14 + $0xaa8] sm:$0xff] }
 0x613   :  { %9973 = vmatpush1.bf16.msra.mxu1 %v9972_v45  ;;  %v3339_v45 = vld [vmem:[#allocation14 + $0x9b8] sm:$0xff] }
 0x614   :  { %9975 = vmatprep.subr.bf16.mxu1 %v9974_v46  ;;  %v10010_v46 = vpack.c.bf16 %v3334_v43, %v3332_v38  ;;  %v10012_v40 = vpack.c.bf16 %v3339_v45, %v3337_v39  ;;  %v3454_v38 = vld [vmem:[#allocation3 + $0x18] sm:$0x7]  ;;  %v3460_v39 = vld [vmem:[#allocation14 + $0xaa0] sm:$0xff]  ;;  %v3462_v45 = vld [vmem:[#allocation14 + $0xab0] sm:$0xff] }
 0x617   :  { %9977 = vmatpush1.bf16.msra.mxu1 %v9976_v49  ;;  %v3343_v49 = vld [vmem:[#allocation14 + $0x9d8] sm:$0xff] }
 0x618   :  { %9980 = vmatprep.subr.msk.bf16.mxu1 %vm12239_vm1, %v9978_v50  ;;  %v10014_v50 = vpack.c.bf16 %v3338_v48, %v3336_v47  ;;  %v10016_v53 = vpack.c.bf16 %v3343_v49, %v3341_v52  ;;  %v3467_v47 = vld [vmem:[#allocation14 + $0xad8] sm:$0xff]  ;;  %v12319_v48 = vrot.slane %v3454_v38, 2  ;;  %v10048_v52 = vpack.c.bf16 %v3462_v45, %v3460_v39  ;;  %v3497_v38 = vld [vmem:[#allocation14 + $0xbc8] sm:$0xff] }
 0x61b   :  { %9983 = vmatpush1.bf16.msk.msra.mxu1 %vm12239_vm1, %v9981_v58  ;;  %v3347_v58 = vld [vmem:[#allocation14 + $0x9f8] sm:$0xff] }
 0x61c   :  { %9985 = vmatprep.subr.bf16.mxu1 %v9984_v60  ;;  %v10018_v60 = vpack.c.bf16 %v3342_v55, %v3340_v54  ;;  %v10020_v61 = vpack.c.bf16 %v3347_v58, %v3345_v56  ;;  %v3466_v54 = vld [vmem:[#allocation14 + $0xad0] sm:$0xff]  ;;  %v3469_v55 = vld [vmem:[#allocation14 + $0xae8] sm:$0xff]  ;;  %v3471_v56 = vld [vmem:[#allocation14 + $0xaf8] sm:$0xff] }
 0x61e   :  { %3291 = vmatmul.mubr.f32.vlgmr.msra.gmra.mrb[10].mxu1 %v12291_v17 }
 0x61f   :  { %8968 = vmatprep.mubr.msk.f32.mxu1 %vm2559_vm2, %v12268_v33  ;;  %9987 = vmatpush1.bf16.msra.mxu1 %v9986_v0  ;;  %v3351_v0 = vld [vmem:[#allocation14 + $0xa18] sm:$0xff] }
 0x620   :  { %9989 = vmatprep.subr.bf16.mxu1 %v9988_v4  ;;  %v10022_v4 = vpack.c.bf16 %v3346_v63, %v3344_v62  ;;  %v10024_v41 = vpack.c.bf16 %v3351_v0, %v3349_v34  ;;  %v3473_v62 = vld [vmem:[#allocation14 + $0xb08] sm:$0xff]  ;;  %v3475_v63 = vld [vmem:[#allocation14 + $0xb18] sm:$0xff] }
 0x621   :  { %v10058_v0 = vpack.c.bf16 %v3475_v63, %v3473_v62  ;;  %v3509_v62 = vld [vmem:[#allocation14 + $0xc28] sm:$0xff]  ;;  %v3511_v63 = vld [vmem:[#allocation14 + $0xc38] sm:$0xf] }
 0x622   :  { %3297 = vmatmul.mubr.f32.gmra.mrb[12].mxu1 %v12283_v21 }
 0x623   :  { %9991 = vmatpush1.bf16.msra.mxu1 %v9990_v8  ;;  %8971 = vmatprep.mubr.msk.f32.mxu1 %vm2559_vm2, %v12274_v51  ;;  %v3328_v51 = vld [vmem:[#allocation14 + $0x960] sm:$0xff]  ;;  %v3355_v8 = vld [vmem:[#allocation14 + $0xa38] sm:$0xff] }
 0x624   :  { %9993 = vmatprep.subr.bf16.mxu1 %v9992_v10  ;;  %v10006_v37 = vpack.c.bf16 %v3330_v32, %v3328_v51  ;;  %v10026_v10 = vpack.c.bf16 %v3350_v7, %v3348_v6  ;;  %v10028_v11 = vpack.c.bf16 %v3355_v8, %v3353_v42  ;;  %v3456_v32 = vld [vmem:[#allocation14 + $0xa80] sm:$0xff]  ;;  %v3479_v6 = vld [vmem:[#allocation14 + $0xb38] sm:$0xff] }
 0x625   :  { %v3476_v8 = vld [vmem:[#allocation14 + $0xb20] sm:$0xff] }
 0x627   :  { %9995 = vmatpush1.bf16.msra.mxu1 %v9994_v15  ;;  %v3359_v15 = vld [vmem:[#allocation14 + $0xa58] sm:$0xff] }
 0x628   :  { %9997 = vmatprep.subr.bf16.mxu1 %v9996_v18  ;;  %v10030_v18 = vpack.c.bf16 %v3354_v59, %v3352_v12  ;;  %v10032_v19 = vpack.c.bf16 %v3359_v15, %v3357_v14  ;;  %v3483_v12 = vld [vmem:[#allocation14 + $0xb58] sm:$0xff]  ;;  %v3480_v15 = vld [vmem:[#allocation14 + $0xb40] sm:$0xff] }
 0x62b   :  { %9999 = vmatpush1.bf16.msra.mxu1 %v9998_v24  ;;  %v3363_v24 = vld [vmem:[#allocation14 + $0xa78] sm:$0xf] }
 0x62c   :  { %10001 = vmatprep.subr.bf16.mxu1 %v10000_v25  ;;  %v10034_v25 = vpack.c.bf16 %v3358_v22, %v3356_v5  ;;  %v10036_v26 = vpack.c.bf16 %v3363_v24, %v3361_v23  ;;  %v3487_v5 = vld [vmem:[#allocation14 + $0xb78] sm:$0xff]  ;;  %v3484_v24 = vld [vmem:[#allocation14 + $0xb60] sm:$0xff] }
 0x62f   :  { %10003 = vmatpush1.bf16.msra.mxu1 %v10002_v30  ;;  %v3459_v30 = vld [vmem:[#allocation14 + $0xa98] sm:$0xff] }
 0x630   :  { %10005 = vmatprep.subr.bf16.mxu1 %v10004_v31  ;;  %v10039_v31 = vpack.c.bf16 %v3362_v28, %v3360_v27  ;;  %v10042_v51 = vpack.c.bf16 %v3459_v30, %v3457_v29  ;;  %v3491_v27 = vld [vmem:[#allocation14 + $0xb98] sm:$0xff]  ;;  %v3488_v30 = vld [vmem:[#allocation14 + $0xb80] sm:$0xff] }
 0x633   :  { %10007 = vmatpush1.bf16.msra.mxu1 %v10006_v37  ;;  %v3463_v37 = vld [vmem:[#allocation14 + $0xab8] sm:$0xff] }
 0x634   :  { %10009 = vmatprep.subr.bf16.mxu1 %v10008_v57  ;;  %v10044_v57 = vpack.c.bf16 %v3458_v35, %v3456_v32  ;;  %v10046_v43 = vpack.c.bf16 %v3463_v37, %v3461_v36  ;;  %v3495_v32 = vld [vmem:[#allocation14 + $0xbb8] sm:$0xff]  ;;  %v3492_v37 = vld [vmem:[#allocation14 + $0xba0] sm:$0xff] }
 0x637   :  { %10011 = vmatpush1.bf16.msra.mxu1 %v10010_v46  ;;  %v3452_v46 = vld [vmem:[#allocation3 + $0x8] sm:$0xfc] }
 0x638   :  { %10013 = vmatprep.subr.bf16.mxu1 %v10012_v40  ;;  %v3465_v40 = vld [vmem:[#allocation14 + $0xac8] sm:$0xff]  ;;  %v3519_v49 = vrot.slane %v3452_v46, 2  ;;  %v3496_v46 = vld [vmem:[#allocation14 + $0xbc0] sm:$0xff] }
 0x63a   :  { %v12326_v58 = vsel %vm2120_vm11, %v3519_v49, %v12319_v48 }
 0x63b   :  { %10015 = vmatpush1.bf16.msra.mxu1 %v10014_v50  ;;  %v10050_v50 = vpack.c.bf16 %v3467_v47, %v3465_v40  ;;  %v3498_v40 = vld [vmem:[#allocation14 + $0xbd0] sm:$0xff]  ;;  %v3501_v47 = vld [vmem:[#allocation14 + $0xbe8] sm:$0xff] }
 0x63c   :  { %10017 = vmatprep.subr.bf16.mxu1 %v10016_v53  ;;  %v3464_v53 = vld [vmem:[#allocation14 + $0xac0] sm:$0xff]  ;;  %v10084_v49 = vpack.c.bf16 %v3498_v40, %v3496_v46  ;;  %v3634_v46 = vld [vmem:[#allocation14 + $0xcd0] sm:$0xff]  ;;  %v3637_v40 = vld [vmem:[#allocation14 + $0xce8] sm:$0xff] }
 0x63f   :  { %10019 = vmatpush1.bf16.msra.mxu1 %v10018_v60  ;;  %v3468_v60 = vld [vmem:[#allocation14 + $0xae0] sm:$0xff] }
 0x640   :  { %10021 = vmatprep.subr.bf16.mxu1 %v10020_v61  ;;  %v3470_v61 = vld [vmem:[#allocation14 + $0xaf0] sm:$0xff] }
 0x641   :  { %v10056_v34 = vpack.c.bf16 %v3470_v61, %v3468_v60  ;;  %v3504_v60 = vld [vmem:[#allocation14 + $0xc00] sm:$0xff]  ;;  %v3506_v61 = vld [vmem:[#allocation14 + $0xc10] sm:$0xff] }
 0x643   :  { %10023 = vmatpush1.bf16.msra.mxu1 %v10022_v4  ;;  %v3474_v4 = vld [vmem:[#allocation14 + $0xb10] sm:$0xff] }
 0x644   :  { %10025 = vmatprep.subr.bf16.mxu1 %v10024_v41  ;;  %v3477_v41 = vld [vmem:[#allocation14 + $0xb28] sm:$0xff] }
 0x645   :  { %v10062_v42 = vpack.c.bf16 %v3479_v6, %v3477_v41  ;;  %v3617_v41 = vld [vmem:[#allocation14 + $0xc48] sm:$0xff]  ;;  %v3619_v6 = vld [vmem:[#allocation14 + $0xc58] sm:$0xff] }
 0x647   :  { %10027 = vmatpush1.bf16.msra.mxu1 %v10026_v10  ;;  %v3478_v10 = vld [vmem:[#allocation14 + $0xb30] sm:$0xff] }
 0x648   :  { %10029 = vmatprep.subr.bf16.mxu1 %v10028_v11  ;;  %v3481_v11 = vld [vmem:[#allocation14 + $0xb48] sm:$0xff]  ;;  %v10064_v59 = vpack.c.bf16 %v3478_v10, %v3476_v8  ;;  %v10100_v10 = vpack.c.bf16 %v3619_v6, %v3617_v41  ;;  %v3651_v41 = vld [vmem:[#allocation14 + $0xd58] sm:$0xff] }
 0x649   :  { %v10066_v14 = vpack.c.bf16 %v3483_v12, %v3481_v11  ;;  %v3451_v8 = vld [vmem:[#allocation3] sm:$0xfc]  ;;  %v3618_v12 = vld [vmem:[#allocation14 + $0xc50] sm:$0xff] }
 0x64a   :  { %v3616_v11 = vld [vmem:[#allocation14 + $0xc40] sm:$0xff] }
 0x64b   :  { %10031 = vmatpush1.bf16.msra.mxu1 %v10030_v18  ;;  %v3482_v18 = vld [vmem:[#allocation14 + $0xb50] sm:$0xff] }
 0x64c   :  { %10033 = vmatprep.subr.bf16.mxu1 %v10032_v19  ;;  %v3485_v19 = vld [vmem:[#allocation14 + $0xb68] sm:$0xff]  ;;  %v10068_v22 = vpack.c.bf16 %v3482_v18, %v3480_v15  ;;  %v3623_v15 = vld [vmem:[#allocation14 + $0xc78] sm:$0xff]  ;;  %v3516_v18 = vrot.slane %v3451_v8, 2  ;;  %v3650_v8 = vld [vmem:[#allocation14 + $0xd50] sm:$0xff] }
 0x64d   :  { %v10070_v23 = vpack.c.bf16 %v3487_v5, %v3485_v19  ;;  %v10102_v19 = vpack.c.bf16 %v3618_v12, %v3616_v11  ;;  %v3655_v11 = vld [vmem:[#allocation14 + $0xd78] sm:$0xff] }
 0x64f   :  { %10035 = vmatpush1.bf16.msra.mxu1 %v10034_v25  ;;  %v3486_v25 = vld [vmem:[#allocation14 + $0xb70] sm:$0xff] }
 0x650   :  { %10038 = vmatprep.subr.msk.bf16.mxu1 %vm12239_vm1, %v10036_v26  ;;  %v3489_v26 = vld [vmem:[#allocation14 + $0xb88] sm:$0xff]  ;;  %v10072_v28 = vpack.c.bf16 %v3486_v25, %v3484_v24 }
 0x651   :  { %v10074_v29 = vpack.c.bf16 %v3491_v27, %v3489_v26  ;;  %v3625_v25 = vld [vmem:[#allocation14 + $0xc88] sm:$0xff]  ;;  %v3627_v26 = vld [vmem:[#allocation14 + $0xc98] sm:$0xff] }
 0x653   :  { %10041 = vmatpush1.bf16.msk.msra.mxu1 %vm12239_vm1, %v10039_v31  ;;  %v3490_v31 = vld [vmem:[#allocation14 + $0xb90] sm:$0xff] }
 0x654   :  { %10043 = vmatprep.subr.bf16.mxu1 %v10042_v51  ;;  %v3493_v51 = vld [vmem:[#allocation14 + $0xba8] sm:$0xff]  ;;  %v10076_v35 = vpack.c.bf16 %v3490_v31, %v3488_v30  ;;  %v3626_v30 = vld [vmem:[#allocation14 + $0xc90] sm:$0xff] }
 0x655   :  { %v10078_v36 = vpack.c.bf16 %v3495_v32, %v3493_v51  ;;  %v3629_v31 = vld [vmem:[#allocation14 + $0xca8] sm:$0xff]  ;;  %v3631_v51 = vld [vmem:[#allocation14 + $0xcb8] sm:$0xff] }
 0x656   :  { %3435 = vmatmul.mubr.f32.vlgmr.msra.gmra.mrb[10].mxu1 %v12291_v17  ;;  %v10054_v17 = vpack.c.bf16 %v3471_v56, %v3469_v55  ;;  %v3505_v55 = vld [vmem:[#allocation14 + $0xc08] sm:$0xff]  ;;  %v3507_v56 = vld [vmem:[#allocation14 + $0xc18] sm:$0xff] }
 0x657   :  { %8972 = vmatprep.mubr.msk.f32.mxu1 %vm2559_vm2, %v12268_v33  ;;  %10045 = vmatpush1.bf16.msra.mxu1 %v10044_v57  ;;  %v10052_v33 = vpack.c.bf16 %v3466_v54, %v3464_v53  ;;  %v3494_v57 = vld [vmem:[#allocation14 + $0xbb0] sm:$0xff]  ;;  %v3500_v53 = vld [vmem:[#allocation14 + $0xbe0] sm:$0xff] }
 0x658   :  { %10047 = vmatprep.subr.bf16.mxu1 %v10046_v43  ;;  %v3499_v43 = vld [vmem:[#allocation14 + $0xbd8] sm:$0xff]  ;;  %v10080_v39 = vpack.c.bf16 %v3494_v57, %v3492_v37  ;;  %v3502_v54 = vld [vmem:[#allocation14 + $0xbf0] sm:$0xff]  ;;  %v3633_v57 = vld [vmem:[#allocation14 + $0xcc8] sm:$0xff] }
 0x659   :  { %v10082_v45 = vpack.c.bf16 %v3499_v43, %v3497_v38  ;;  %v3630_v37 = vld [vmem:[#allocation14 + $0xcb0] sm:$0xff]  ;;  %v3635_v38 = vld [vmem:[#allocation14 + $0xcd8] sm:$0xff] }
 0x65a   :  { %3441 = vmatmul.mubr.f32.gmra.mrb[12].mxu1 %v12283_v21  ;;  %v3472_v21 = vld [vmem:[#allocation14 + $0xb00] sm:$0xff] }
 0x65b   :  { %10049 = vmatpush1.bf16.msra.mxu1 %v10048_v52  ;;  %8975 = vmatprep.mubr.msk.f32.mxu1 %vm2559_vm2, %v12326_v58  ;;  %v10060_v7 = vpack.c.bf16 %v3474_v4, %v3472_v21  ;;  %v3503_v52 = vld [vmem:[#allocation14 + $0xbf8] sm:$0xff]  ;;  %v3508_v21 = vld [vmem:[#allocation14 + $0xc20] sm:$0xff]  ;;  %v3510_v4 = vld [vmem:[#allocation14 + $0xc30] sm:$0xf] }
 0x65c   :  { %10051 = vmatprep.subr.bf16.mxu1 %v10050_v50  ;;  %v10086_v50 = vpack.c.bf16 %v3503_v52, %v3501_v47  ;;  %v3639_v47 = vld [vmem:[#allocation14 + $0xcf8] sm:$0xff] }
 0x65f   :  { %10053 = vmatpush1.bf16.msra.mxu1 %v10052_v33  ;;  %v10088_v33 = vpack.c.bf16 %v3502_v54, %v3500_v53  ;;  %v3638_v53 = vld [vmem:[#allocation14 + $0xcf0] sm:$0xff]  ;;  %v3641_v54 = vld [vmem:[#allocation14 + $0xd08] sm:$0xff] }
 0x660   :  { %10055 = vmatprep.subr.bf16.mxu1 %v10054_v17  ;;  %v10090_v17 = vpack.c.bf16 %v3507_v56, %v3505_v55  ;;  %v3643_v55 = vld [vmem:[#allocation14 + $0xd18] sm:$0xff] }
 0x663   :  { %10057 = vmatpush1.bf16.msra.mxu1 %v10056_v34  ;;  %v10092_v34 = vpack.c.bf16 %v3506_v61, %v3504_v60  ;;  %v3642_v60 = vld [vmem:[#allocation14 + $0xd10] sm:$0xff]  ;;  %v3645_v61 = vld [vmem:[#allocation14 + $0xd28] sm:$0xff] }
 0x664   :  { %10059 = vmatprep.subr.bf16.mxu1 %v10058_v0  ;;  %v10094_v0 = vpack.c.bf16 %v3511_v63, %v3509_v62  ;;  %v3647_v62 = vld [vmem:[#allocation14 + $0xd38] sm:$0xff] }
 0x667   :  { %10061 = vmatpush1.bf16.msra.mxu1 %v10060_v7  ;;  %v3453_v7 = vld [vmem:[#allocation3 + $0x10] sm:$0x7] }
 0x668   :  { %10063 = vmatprep.subr.bf16.mxu1 %v10062_v42  ;;  %v10097_v42 = vpack.c.bf16 %v3510_v4, %v3508_v21  ;;  %v3646_v21 = vld [vmem:[#allocation14 + $0xd30] sm:$0xff]  ;;  %v3649_v4 = vld [vmem:[#allocation14 + $0xd48] sm:$0xff] }
 0x66b   :  { %10065 = vmatpush1.bf16.msra.mxu1 %v10064_v59  ;;  %v12332_v59 = vrot.slane %v3453_v7, 2  ;;  %v10132_v7 = vpack.c.bf16 %v3651_v41, %v3649_v4  ;;  %v3769_v4 = vld [vmem:[#allocation14 + $0xe48] sm:$0xff]  ;;  %v3771_v41 = vld [vmem:[#allocation14 + $0xe58] sm:$0xff] }
 0x66c   :  { %10067 = vmatprep.subr.bf16.mxu1 %v10066_v14  ;;  %v3621_v14 = vld [vmem:[#allocation14 + $0xc68] sm:$0xff] }
 0x66d   :  { %v10104_v5 = vpack.c.bf16 %v3623_v15, %v3621_v14  ;;  %v12338_v24 = vsel %vm2120_vm11, %v3516_v18, %v12332_v59  ;;  %v3652_v15 = vld [vmem:[#allocation14 + $0xd60] sm:$0xff]  ;;  %v3654_v18 = vld [vmem:[#allocation14 + $0xd70] sm:$0xff] }
 0x66f   :  { %10069 = vmatpush1.bf16.msra.mxu1 %v10068_v22  ;;  %v3620_v22 = vld [vmem:[#allocation14 + $0xc60] sm:$0xff] }
 0x670   :  { %10071 = vmatprep.subr.bf16.mxu1 %v10070_v23  ;;  %v3622_v23 = vld [vmem:[#allocation14 + $0xc70] sm:$0xff] }
 0x671   :  { %v10106_v27 = vpack.c.bf16 %v3622_v23, %v3620_v22  ;;  %v10138_v22 = vpack.c.bf16 %v3654_v18, %v3652_v15  ;;  %v3772_v15 = vld [vmem:[#allocation14 + $0xe60] sm:$0xff]  ;;  %v3774_v18 = vld [vmem:[#allocation14 + $0xe70] sm:$0xff] }
 0x673   :  { %10073 = vmatpush1.bf16.msra.mxu1 %v10072_v28  ;;  %v10108_v28 = vpack.c.bf16 %v3627_v26, %v3625_v25  ;;  %v3656_v25 = vld [vmem:[#allocation14 + $0xd80] sm:$0xff]  ;;  %v3658_v26 = vld [vmem:[#allocation14 + $0xd90] sm:$0xff] }
 0x674   :  { %10075 = vmatprep.subr.bf16.mxu1 %v10074_v29  ;;  %v3624_v29 = vld [vmem:[#allocation14 + $0xc80] sm:$0xff] }
 0x675   :  { %v10110_v32 = vpack.c.bf16 %v3626_v30, %v3624_v29  ;;  %v10142_v29 = vpack.c.bf16 %v3658_v26, %v3656_v25  ;;  %v3776_v25 = vld [vmem:[#allocation14 + $0xe80] sm:$0xff]  ;;  %v3778_v26 = vld [vmem:[#allocation14 + $0xe90] sm:$0xff] }
 0x677   :  { %10077 = vmatpush1.bf16.msra.mxu1 %v10076_v35  ;;  %v10112_v35 = vpack.c.bf16 %v3631_v51, %v3629_v31  ;;  %v3660_v31 = vld [vmem:[#allocation14 + $0xda0] sm:$0xff]  ;;  %v3662_v51 = vld [vmem:[#allocation14 + $0xdb0] sm:$0xff] }
 0x678   :  { %10079 = vmatprep.subr.bf16.mxu1 %v10078_v36  ;;  %v3628_v36 = vld [vmem:[#allocation14 + $0xca0] sm:$0xff] }
 0x679   :  { %v10114_v43 = vpack.c.bf16 %v3630_v37, %v3628_v36  ;;  %v10146_v36 = vpack.c.bf16 %v3662_v51, %v3660_v31  ;;  %v3782_v31 = vld [vmem:[#allocation14 + $0xeb0] sm:$0xff]  ;;  %v3785_v51 = vld [vmem:[#allocation14 + $0xec8] sm:$0xff] }
 0x67b   :  { %10081 = vmatpush1.bf16.msra.mxu1 %v10080_v39  ;;  %v10116_v39 = vpack.c.bf16 %v3635_v38, %v3633_v57  ;;  %v3664_v38 = vld [vmem:[#allocation14 + $0xdc0] sm:$0xff] }
 0x67c   :  { %10083 = vmatprep.subr.bf16.mxu1 %v10082_v45  ;;  %v3632_v45 = vld [vmem:[#allocation14 + $0xcc0] sm:$0xff] }
 0x67d   :  { %v10118_v52 = vpack.c.bf16 %v3634_v46, %v3632_v45  ;;  %v3669_v45 = vld [vmem:[#allocation14 + $0xde8] sm:$0xff]  ;;  %v3671_v46 = vld [vmem:[#allocation14 + $0xdf8] sm:$0xf] }
 0x67f   :  { %10085 = vmatpush1.bf16.msra.mxu1 %v10084_v49  ;;  %v10120_v49 = vpack.c.bf16 %v3639_v47, %v3637_v40 }
 0x680   :  { %10087 = vmatprep.subr.bf16.mxu1 %v10086_v50  ;;  %v3636_v50 = vld [vmem:[#allocation14 + $0xce0] sm:$0xff] }
 0x681   :  { %v10122_v56 = vpack.c.bf16 %v3638_v53, %v3636_v50  ;;  %v3670_v50 = vld [vmem:[#allocation14 + $0xdf0] sm:$0xf] }
 0x683   :  { %10089 = vmatpush1.bf16.msra.mxu1 %v10088_v33  ;;  %v10124_v33 = vpack.c.bf16 %v3643_v55, %v3641_v54  ;;  %v3761_v54 = vld [vmem:[#allocation14 + $0xe08] sm:$0xff]  ;;  %v3763_v55 = vld [vmem:[#allocation14 + $0xe18] sm:$0xff] }
 0x684   :  { %10091 = vmatprep.subr.bf16.mxu1 %v10090_v17  ;;  %v3640_v17 = vld [vmem:[#allocation14 + $0xd00] sm:$0xff] }
 0x685   :  { %v10126_v63 = vpack.c.bf16 %v3642_v60, %v3640_v17  ;;  %v3760_v17 = vld [vmem:[#allocation14 + $0xe00] sm:$0xff]  ;;  %v3762_v60 = vld [vmem:[#allocation14 + $0xe10] sm:$0xff] }
 0x687   :  { %10093 = vmatpush1.bf16.msra.mxu1 %v10092_v34  ;;  %v10128_v34 = vpack.c.bf16 %v3647_v62, %v3645_v61  ;;  %v3765_v61 = vld [vmem:[#allocation14 + $0xe28] sm:$0xff]  ;;  %v3767_v62 = vld [vmem:[#allocation14 + $0xe38] sm:$0xff] }
 0x688   :  { %10096 = vmatprep.subr.msk.bf16.mxu1 %vm12239_vm1, %v10094_v0  ;;  %v3644_v0 = vld [vmem:[#allocation14 + $0xd20] sm:$0xff] }
 0x689   :  { %v10130_v6 = vpack.c.bf16 %v3646_v21, %v3644_v0  ;;  %v3764_v0 = vld [vmem:[#allocation14 + $0xe20] sm:$0xff]  ;;  %v3766_v21 = vld [vmem:[#allocation14 + $0xe30] sm:$0xff] }
 0x68b   :  { %10099 = vmatpush1.bf16.msk.msra.mxu1 %vm12239_vm1, %v10097_v42  ;;  %v3648_v42 = vld [vmem:[#allocation14 + $0xd40] sm:$0xff] }
 0x68c   :  { %10101 = vmatprep.subr.bf16.mxu1 %v10100_v10  ;;  %v3653_v10 = vld [vmem:[#allocation14 + $0xd68] sm:$0xff]  ;;  %v10134_v12 = vpack.c.bf16 %v3650_v8, %v3648_v42  ;;  %v3768_v42 = vld [vmem:[#allocation14 + $0xe40] sm:$0xff]  ;;  %v3770_v8 = vld [vmem:[#allocation14 + $0xe50] sm:$0xff] }
 0x68d   :  { %v10136_v14 = vpack.c.bf16 %v3655_v11, %v3653_v10  ;;  %v3773_v10 = vld [vmem:[#allocation14 + $0xe68] sm:$0xff]  ;;  %v3775_v11 = vld [vmem:[#allocation14 + $0xe78] sm:$0xff] }
 0x68e   :  { %3599 = vmatmul.mubr.f32.vlgmr.msra.gmra.mrb[10].mxu1 %v12338_v24 }
 0x68f   :  { %8976 = vmatprep.mubr.msk.f32.mxu1 %vm2559_vm2, %v12319_v48  ;;  %10103 = vmatpush1.bf16.msra.mxu1 %v10102_v19  ;;  %v3657_v19 = vld [vmem:[#allocation14 + $0xd88] sm:$0xff] }
 0x690   :  { %10105 = vmatprep.subr.bf16.mxu1 %v10104_v5  ;;  %v3659_v5 = vld [vmem:[#allocation14 + $0xd98] sm:$0xff] }
 0x691   :  { %v10140_v23 = vpack.c.bf16 %v3659_v5, %v3657_v19  ;;  %v3777_v19 = vld [vmem:[#allocation14 + $0xe88] sm:$0xff]  ;;  %v3779_v5 = vld [vmem:[#allocation14 + $0xe98] sm:$0xff] }
 0x692   :  { %3605 = vmatmul.mubr.f32.gmra.mrb[12].mxu1 %v12332_v59 }
 0x693   :  { %10107 = vmatpush1.bf16.msra.mxu1 %v10106_v27  ;;  %8979 = vmatprep.mubr.msk.f32.mxu1 %vm2559_vm2, %v12326_v58  ;;  %v3661_v27 = vld [vmem:[#allocation14 + $0xda8] sm:$0xff] }
 0x694   :  { %10109 = vmatprep.subr.bf16.mxu1 %v10108_v28  ;;  %v3663_v28 = vld [vmem:[#allocation14 + $0xdb8] sm:$0xff] }
 0x695   :  { %v10144_v30 = vpack.c.bf16 %v3663_v28, %v3661_v27  ;;  %v3781_v27 = vld [vmem:[#allocation14 + $0xea8] sm:$0xff]  ;;  %v3783_v28 = vld [vmem:[#allocation14 + $0xeb8] sm:$0xff] }
 0x697   :  { %10111 = vmatpush1.bf16.msra.mxu1 %v10110_v32  ;;  %v3665_v32 = vld [vmem:[#allocation14 + $0xdc8] sm:$0xff] }
 0x698   :  { %10113 = vmatprep.subr.bf16.mxu1 %v10112_v35  ;;  %v3667_v35 = vld [vmem:[#allocation14 + $0xdd8] sm:$0xff] }
 0x699   :  { %v10148_v57 = vpack.c.bf16 %v3667_v35, %v3665_v32  ;;  %v3787_v32 = vld [vmem:[#allocation14 + $0xed8] sm:$0xff] }
 0x69b   :  { %10115 = vmatpush1.bf16.msra.mxu1 %v10114_v43  ;;  %v3666_v43 = vld [vmem:[#allocation14 + $0xdd0] sm:$0xff] }
 0x69c   :  { %10117 = vmatprep.subr.bf16.mxu1 %v10116_v39  ;;  %v10150_v40 = vpack.c.bf16 %v3666_v43, %v3664_v38  ;;  %v3786_v38 = vld [vmem:[#allocation14 + $0xed0] sm:$0xff]  ;;  %v3789_v43 = vld [vmem:[#allocation14 + $0xee8] sm:$0xff] }
 0x69f   :  { %10119 = vmatpush1.bf16.msra.mxu1 %v10118_v52  ;;  %v10152_v52 = vpack.c.bf16 %v3671_v46, %v3669_v45  ;;  %v3791_v45 = vld [vmem:[#allocation14 + $0xef8] sm:$0xff] }
 0x6a0   :  { %10121 = vmatprep.subr.bf16.mxu1 %v10120_v49  ;;  %v3668_v49 = vld [vmem:[#allocation14 + $0xde0] sm:$0xff] }
 0x6a3   :  { %10123 = vmatpush1.bf16.msra.mxu1 %v10122_v56  ;;  %v10155_v56 = vpack.c.bf16 %v3670_v50, %v3668_v49  ;;  %v3790_v49 = vld [vmem:[#allocation14 + $0xef0] sm:$0xff]  ;;  %v3793_v50 = vld [vmem:[#allocation14 + $0xf08] sm:$0xff] }
 0x6a4   :  { %10125 = vmatprep.subr.bf16.mxu1 %v10124_v33  ;;  %v10158_v33 = vpack.c.bf16 %v3763_v55, %v3761_v54  ;;  %v3795_v54 = vld [vmem:[#allocation14 + $0xf18] sm:$0xff] }
 0x6a7   :  { %10127 = vmatpush1.bf16.msra.mxu1 %v10126_v63  ;;  %v10160_v63 = vpack.c.bf16 %v3762_v60, %v3760_v17  ;;  %v3794_v17 = vld [vmem:[#allocation14 + $0xf10] sm:$0xff]  ;;  %v3797_v60 = vld [vmem:[#allocation14 + $0xf28] sm:$0xff] }
 0x6a8   :  { %10129 = vmatprep.subr.bf16.mxu1 %v10128_v34  ;;  %v10162_v34 = vpack.c.bf16 %v3767_v62, %v3765_v61  ;;  %v3799_v61 = vld [vmem:[#allocation14 + $0xf38] sm:$0xff] }
 0x6ab   :  { %10131 = vmatpush1.bf16.msra.mxu1 %v10130_v6  ;;  %v10164_v6 = vpack.c.bf16 %v3766_v21, %v3764_v0  ;;  %v3798_v0 = vld [vmem:[#allocation14 + $0xf30] sm:$0xff]  ;;  %v3801_v21 = vld [vmem:[#allocation14 + $0xf48] sm:$0xff] }
 0x6ac   :  { %10133 = vmatprep.subr.bf16.mxu1 %v10132_v7  ;;  %v10166_v7 = vpack.c.bf16 %v3771_v41, %v3769_v4  ;;  %v3803_v4 = vld [vmem:[#allocation14 + $0xf58] sm:$0xff] }
 0x6af   :  { %10135 = vmatpush1.bf16.msra.mxu1 %v10134_v12  ;;  %v10168_v12 = vpack.c.bf16 %v3770_v8, %v3768_v42  ;;  %v3802_v42 = vld [vmem:[#allocation14 + $0xf50] sm:$0xff]  ;;  %v3805_v8 = vld [vmem:[#allocation14 + $0xf68] sm:$0xff] }
 0x6b0   :  { %10137 = vmatprep.subr.bf16.mxu1 %v10136_v14  ;;  %v10170_v14 = vpack.c.bf16 %v3775_v11, %v3773_v10  ;;  %v3807_v10 = vld [vmem:[#allocation14 + $0xf78] sm:$0xff] }
 0x6b3   :  { %10139 = vmatpush1.bf16.msra.mxu1 %v10138_v22  ;;  %v10172_v22 = vpack.c.bf16 %v3774_v18, %v3772_v15  ;;  %v3806_v15 = vld [vmem:[#allocation14 + $0xf70] sm:$0xff]  ;;  %v3809_v18 = vld [vmem:[#allocation14 + $0xf88] sm:$0xff] }
 0x6b4   :  { %10141 = vmatprep.subr.bf16.mxu1 %v10140_v23  ;;  %v10174_v23 = vpack.c.bf16 %v3779_v5, %v3777_v19  ;;  %v3811_v19 = vld [vmem:[#allocation14 + $0xf98] sm:$0xff] }
 0x6b7   :  { %10143 = vmatpush1.bf16.msra.mxu1 %v10142_v29  ;;  %v10176_v29 = vpack.c.bf16 %v3778_v26, %v3776_v25  ;;  %v3810_v25 = vld [vmem:[#allocation14 + $0xf90] sm:$0xff]  ;;  %v3813_v26 = vld [vmem:[#allocation14 + $0xfa8] sm:$0xff] }
 0x6b8   :  { %v12346_v37 = vpop.f32.mrb[32].mxu0  ;;  %10145 = vmatprep.subr.bf16.mxu1 %v10144_v30  ;;  %v10178_v30 = vpack.c.bf16 %v3783_v28, %v3781_v27  ;;  %v3815_v27 = vld [vmem:[#allocation14 + $0xfb8] sm:$0xf] }
 0x6b9   :  { %v12348_v39 = vpop.f32.mrb[33].mxu0 }
 0x6bb   :  { %10147 = vmatpush1.bf16.msra.mxu1 %v10146_v36  ;;  %v10182_v36 = vpack.c.bf16 %v3787_v32, %v3785_v51 }
 0x6bc   :  { %v12350_v47 = vpop.f32.mrb[34].mxu0  ;;  %10149 = vmatprep.subr.bf16.mxu1 %v10148_v57  ;;  %v3784_v57 = vld [vmem:[#allocation14 + $0xec0] sm:$0xff] }
 0x6bd   :  { %v12352_v53 = vpop.f32.mrb[35].mxu0  ;;  %v10184_v46 = vpack.c.bf16 %v3786_v38, %v3784_v57 }
 0x6bf   :  { %10151 = vmatpush1.bf16.msra.mxu1 %v10150_v40  ;;  %v10186_v40 = vpack.c.bf16 %v3791_v45, %v3789_v43 }
 0x6c0   :  { %10154 = vmatprep.subr.msk.bf16.mxu1 %vm12239_vm1, %v10152_v52  ;;  %v3788_v52 = vld [vmem:[#allocation14 + $0xee0] sm:$0xff] }
 0x6c1   :  { %v10188_v55 = vpack.c.bf16 %v3790_v49, %v3788_v52  ;;  %v3990_v49 = vld [vmem:[#allocation17 + $0x20] sm:$0xff] }
 0x6c3   :  { %10157 = vmatpush1.bf16.msk.msra.mxu1 %vm12239_vm1, %v10155_v56  ;;  %v10190_v56 = vpack.c.bf16 %v3795_v54, %v3793_v50  ;;  %v3991_v50 = vld [vmem:[#allocation17 + $0x28] sm:$0xff] }
 0x6c4   :  { %10159 = vmatprep.subr.bf16.mxu1 %v10158_v33  ;;  %v3792_v33 = vld [vmem:[#allocation14 + $0xf00] sm:$0xff]  ;;  %v10229_v54 = vpack.c.bf16 %v3991_v50, %v3990_v49  ;;  %v4260_v49 = vld [vmem:[#allocation19 + $0xa0] sm:$0xff]  ;;  %v4261_v50 = vld [vmem:[#allocation19 + $0xa8] sm:$0xff] }
 0x6c5   :  { %v10192_v62 = vpack.c.bf16 %v3794_v17, %v3792_v33  ;;  %v3994_v17 = vld [vmem:[#allocation17 + $0x40] sm:$0xff] }
 0x6c6   :  { %3743 = vmatmul.mubr.f32.vlgmr.msra.gmra.mrb[10].mxu1 %v12338_v24 }
 0x6c7   :  { %8980 = vmatprep.mubr.msk.f32.mxu1 %vm2559_vm2, %v12319_v48  ;;  %10161 = vmatpush1.bf16.msra.mxu1 %v10160_v63  ;;  %v10194_v63 = vpack.c.bf16 %v3799_v61, %v3797_v60  ;;  %v3995_v60 = vld [vmem:[#allocation17 + $0x48] sm:$0xff] }
 0x6c8   :  { %10163 = vmatprep.subr.bf16.mxu1 %v10162_v34  ;;  %v3796_v34 = vld [vmem:[#allocation14 + $0xf20] sm:$0xff]  ;;  %v10235_v61 = vpack.c.bf16 %v3995_v60, %v3994_v17  ;;  %v4343_v17 = vld [vmem:[#allocation19 + $0xc0] sm:$0xff]  ;;  %v4344_v60 = vld [vmem:[#allocation19 + $0xc8] sm:$0xff] }
 0x6c9   :  { %v10196_v41 = vpack.c.bf16 %v3798_v0, %v3796_v34  ;;  %v3998_v0 = vld [vmem:[#allocation17 + $0x60] sm:$0xff] }
 0x6ca   :  { %3749 = vmatmul.mubr.f32.gmra.mrb[12].mxu1 %v12332_v59 }
 0x6cb   :  { %10165 = vmatpush1.bf16.msra.mxu1 %v10164_v6  ;;  %8983 = vmatprep.mubr.msk.f32.mxu1 %vm2559_vm2, %v12326_v58  ;;  %v3780_v58 = vld [vmem:[#allocation14 + $0xea0] sm:$0xff]  ;;  %v10198_v6 = vpack.c.bf16 %v3803_v4, %v3801_v21  ;;  %v3999_v21 = vld [vmem:[#allocation17 + $0x68] sm:$0xff] }
 0x6cc   :  { %10167 = vmatprep.subr.bf16.mxu1 %v10166_v7  ;;  %v10180_v35 = vpack.c.bf16 %v3782_v31, %v3780_v58  ;;  %v3800_v7 = vld [vmem:[#allocation14 + $0xf40] sm:$0xff]  ;;  %v3814_v58 = vld [vmem:[#allocation14 + $0xfb0] sm:$0xf]  ;;  %v10241_v4 = vpack.c.bf16 %v3999_v21, %v3998_v0 }
 0x6cd   :  { %v10200_v11 = vpack.c.bf16 %v3802_v42, %v3800_v7  ;;  %v4002_v42 = vld [vmem:[#allocation17 + $0x80] sm:$0x7f]  ;;  %v4347_v21 = vld [vmem:[#allocation19 + $0xe0] sm:$0xff] }
 0x6cf   :  { %10169 = vmatpush1.bf16.msra.mxu1 %v10168_v12  ;;  %v10202_v12 = vpack.c.bf16 %v3807_v10, %v3805_v8  ;;  %v4093_v8 = vld [vmem:[#allocation19 + $0x40] sm:$0xff]  ;;  %v4094_v10 = vld [vmem:[#allocation19 + $0x48] sm:$0xff] }
 0x6d0   :  { %10171 = vmatprep.subr.bf16.mxu1 %v10170_v14  ;;  %v3804_v14 = vld [vmem:[#allocation14 + $0xf60] sm:$0xff] }
 0x6d1   :  { %v10204_v5 = vpack.c.bf16 %v3806_v15, %v3804_v14  ;;  %v4095_v15 = vld [vmem:[#allocation19 + $0x50] sm:$0xff] }
 0x6d3   :  { %10173 = vmatpush1.bf16.msra.mxu1 %v10172_v22  ;;  %v10206_v22 = vpack.c.bf16 %v3811_v19, %v3809_v18  ;;  %v4096_v18 = vld [vmem:[#allocation19 + $0x58] sm:$0xff] }
 0x6d4   :  { %10175 = vmatprep.subr.bf16.mxu1 %v10174_v23  ;;  %v3808_v23 = vld [vmem:[#allocation14 + $0xf80] sm:$0xff]  ;;  %v10250_v19 = vpack.c.bf16 %v4096_v18, %v4095_v15 }
 0x6d5   :  { %v10208_v28 = vpack.c.bf16 %v3810_v25, %v3808_v23  ;;  %v4099_v25 = vld [vmem:[#allocation19 + $0x70] sm:$0xff] }
 0x6d7   :  { %10177 = vmatpush1.bf16.msra.mxu1 %v10176_v29  ;;  %v10210_v29 = vpack.c.bf16 %v3815_v27, %v3813_v26  ;;  %v4100_v26 = vld [vmem:[#allocation19 + $0x78] sm:$0xf] }
 0x6d8   :  { %10179 = vmatprep.subr.bf16.mxu1 %v10178_v30  ;;  %v3812_v30 = vld [vmem:[#allocation14 + $0xfa0] sm:$0xff]  ;;  %v10256_v27 = vpack.c.bf16 %v4100_v26, %v4099_v25 }
 0x6d9   :  { %v10213_v31 = vpack.c.bf16 %v3814_v58, %v3812_v30  ;;  %v4083_v30 = vld [vmem:[#allocation19] sm:$0xff]  ;;  %v4084_v58 = vld [vmem:[#allocation19 + $0x8] sm:$0xff]  ;;  %v4435_v25 = vld [vmem:[#allocation20 + $0x38] sm:$0xff] }
 0x6db   :  { %10181 = vmatpush1.bf16.msra.mxu1 %v10180_v35 }
 0x6dc   :  { %10183 = vmatprep.subr.bf16.mxu1 %v10182_v36 }
 0x6df   :  { %10185 = vmatpush1.bf16.msra.mxu1 %v10184_v46 }
 0x6e0   :  { %10187 = vmatprep.subr.bf16.mxu1 %v10186_v40  ;;  %v3987_v40 = vld [vmem:[#allocation17 + $0x8] sm:$0xff] }
 0x6e3   :  { %10189 = vmatpush1.bf16.msra.mxu1 %v10188_v55  ;;  %v3992_v55 = vld [vmem:[#allocation17 + $0x30] sm:$0xff] }
 0x6e4   :  { %10191 = vmatprep.subr.bf16.mxu1 %v10190_v56  ;;  %v3993_v56 = vld [vmem:[#allocation17 + $0x38] sm:$0xff] }
 0x6e5   :  { %v10232_v33 = vpack.c.bf16 %v3993_v56, %v3992_v55  ;;  %v4262_v55 = vld [vmem:[#allocation19 + $0xb0] sm:$0xff]  ;;  %v4263_v56 = vld [vmem:[#allocation19 + $0xb8] sm:$0xf] }
 0x6e7   :  { %10193 = vmatpush1.bf16.msra.mxu1 %v10192_v62  ;;  %v3996_v62 = vld [vmem:[#allocation17 + $0x50] sm:$0xff] }
 0x6e8   :  { %10195 = vmatprep.subr.bf16.mxu1 %v10194_v63  ;;  %v3997_v63 = vld [vmem:[#allocation17 + $0x58] sm:$0xff] }
 0x6e9   :  { %v10238_v34 = vpack.c.bf16 %v3997_v63, %v3996_v62  ;;  %v4345_v62 = vld [vmem:[#allocation19 + $0xd0] sm:$0xff]  ;;  %v4346_v63 = vld [vmem:[#allocation19 + $0xd8] sm:$0xff] }
 0x6ea   :  { %v10289_v0 = vpack.c.bf16 %v4346_v63, %v4345_v62 }
 0x6eb   :  { %10197 = vmatpush1.bf16.msra.mxu1 %v10196_v41  ;;  %v4000_v41 = vld [vmem:[#allocation17 + $0x70] sm:$0xff] }
 0x6ec   :  { %10199 = vmatprep.subr.bf16.mxu1 %v10198_v6  ;;  %v4001_v6 = vld [vmem:[#allocation17 + $0x78] sm:$0xff] }
 0x6ed   :  { %v10244_v7 = vpack.c.bf16 %v4001_v6, %v4000_v41  ;;  %v4349_v6 = vld [vmem:[#allocation19 + $0xf0] sm:$0xff] }
 0x6ef   :  { %10201 = vmatpush1.bf16.msra.mxu1 %v10200_v11 }
 0x6f0   :  { %10203 = vmatprep.subr.bf16.mxu1 %v10202_v12  ;;  %v10247_v12 = vpack.c.bf16 %v4094_v10, %v4093_v8  ;;  %v4428_v8 = vld [vmem:[#allocation20] sm:$0xff]  ;;  %v4429_v10 = vld [vmem:[#allocation20 + $0x8] sm:$0xff] }
 0x6f3   :  { %10205 = vmatpush1.bf16.msra.mxu1 %v10204_v5  ;;  %v4097_v5 = vld [vmem:[#allocation19 + $0x60] sm:$0xff] }
 0x6f4   :  { %10207 = vmatprep.subr.bf16.mxu1 %v10206_v22  ;;  %v4098_v22 = vld [vmem:[#allocation19 + $0x68] sm:$0xff] }
 0x6f5   :  { %v10253_v23 = vpack.c.bf16 %v4098_v22, %v4097_v5  ;;  %v4433_v5 = vld [vmem:[#allocation20 + $0x28] sm:$0xff] }
 0x6f7   :  { %10209 = vmatpush1.bf16.msra.mxu1 %v10208_v28 }
 0x6f8   :  { %10212 = vmatprep.subr.msk.bf16.mxu1 %vm12239_vm1, %v10210_v29 }
 0x6fb   :  { %10215 = vmatpush1.bf16.msk.msra.mxu1 %vm12239_vm1, %v10213_v31  ;;  %v10260_v31 = vpack.c.bf16 %v4084_v58, %v4083_v30  ;;  %v9001_v58 = vsel %vm4540_vm8, 1.0, %v11740_v2  ;;  %vm4515_vm8 = vcmask 8192  }
 0x6fe   :  { %3887 = vmatmul.mubr.f32.vlgmr.msra.gmra.mrb[10].mxu1 %v12338_v24  ;;  %v8309_v24 = vld [vmem:[#allocation17 + $0x30] sm:$0xff] }
 0x6ff   :  { %8984 = vmatprep.mubr.msk.f32.mxu1 %vm2559_vm2, %v12319_v48 }
 0x702   :  { %3893 = vmatmul.mubr.f32.gmra.mrb[12].mxu1 %v12332_v59  ;;  %v3986_v59 = vld [vmem:[#allocation17] sm:$0xff] }
 0x7d1   :  { %v3888_v51 = vpop.f32.mrb[10].mxu1 }
 0x7d2   :  { %v11140_v32 = vadd.f32 %v3888_v51, %v12346_v37  ;;  %v3890_v35 = vpop.f32.mrb[11].mxu1  ;;  %v3903_v37 = vld [vmem:[#allocation16] sm:$0xf] }
 0x7d3   :  { %v11141_v36 = vadd.f32 %v3890_v35, %v12348_v39  ;;  %v10223_v39 = vpack.c.bf16 %v3987_v40, %v3986_v59  ;;  %v4085_v51 = vld [vmem:[#allocation19 + $0x10] sm:$0xff]  ;;  %v4256_v59 = vld [vmem:[#allocation19 + $0x80] sm:$0xff]  ;;  %v4257_v40 = vld [vmem:[#allocation19 + $0x88] sm:$0xff] }
 0x7d5   :  { %v3894_v57 = vpop.f32.mrb[12].mxu1 }
 0x7d6   :  { %v11142_v38 = vadd.f32 %v3894_v57, %v12350_v47  ;;  %v3896_v43 = vpop.f32.mrb[13].mxu1  ;;  %v3988_v47 = vld [vmem:[#allocation17 + $0x10] sm:$0xff]  ;;  %v4087_v57 = vld [vmem:[#allocation19 + $0x20] sm:$0xff] }
 0x7d7   :  { %v11143_v45 = vadd.f32 %v3896_v43, %v12352_v53  ;;  %v3989_v53 = vld [vmem:[#allocation17 + $0x18] sm:$0xff] }
 0x7d8   :  { %v10219_v46 = vpack.c.bf16 %v11142_v38, %v11140_v32  ;;  %v10226_v52 = vpack.c.bf16 %v3989_v53, %v3988_v47  ;;  %v4086_v32 = vld [vmem:[#allocation19 + $0x18] sm:$0xff]  ;;  %v4088_v38 = vld [vmem:[#allocation19 + $0x28] sm:$0xff] }
 0x7d9   :  { %v10216_v48 = vpack.c.bf16 %v11143_v45, %v11141_v36  ;;  %v10263_v36 = vpack.c.bf16 %v4086_v32, %v4085_v51  ;;  %v10266_v43 = vpack.c.bf16 %v4088_v38, %v4087_v57  ;;  %v4089_v45 = vld [vmem:[#allocation19 + $0x30] sm:$0xff]  ;;  %v4259_v47 = vld [vmem:[#allocation19 + $0x98] sm:$0xff] }
 0x7db   :  { %10218 = vmatprep.subr.msk.bf16.mxu0 %vm12377_vm7, %v10216_v48 }
 0x7dc   :  { %10221 = vmatpush1.bf16.msk.msra.mxu0 %vm12377_vm7, %v10219_v46  ;;  %v4090_v46 = vld [vmem:[#allocation19 + $0x38] sm:$0xf] }
 0x7dd   :  { %10222 = vmatprep.subr.bf16.mxu0 %v11739_v1  ;;  %v10269_v48 = vpack.c.bf16 %v4090_v46, %v4089_v45 }
 0x7df   :  { %8987 = vmatmul.mubr.msk.f32.vlgmr.msra.gmra.mrb[36].mxu0 %vm12922_vm14, %v3903_v37  ;;  %vm12923_vm14 = vcmask 490496   ;;  %v10273_v37 = vpack.c.bf16 %v4257_v40, %v4256_v59  ;;  %v4739_v59 = vld [vmem:[#allocation10 + $0x68] sm:$0xff] }
 0x7e0   :  { %10224 = vmatpush1.bf16.msra.mxu0 %v10223_v39  ;;  %v4258_v39 = vld [vmem:[#allocation19 + $0x90] sm:$0xff]  ;;  %v4743_v40 = vld [vmem:[#allocation10 + $0x88] sm:$0xff] }
 0x7e1   :  { %10225 = vmatprep.subr.bf16.mxu0 %v11739_v1 }
 0x7e4   :  { %10227 = vmatpush1.bf16.msra.mxu0 %v10226_v52  ;;  %v10276_v52 = vpack.c.bf16 %v4259_v47, %v4258_v39  ;;  %v4738_v39 = vld [vmem:[#allocation10 + $0x60] sm:$0xff] }
 0x7e5   :  { %10228 = vmatprep.subr.bf16.mxu0 %v11739_v1  ;;  %v4742_v47 = vld [vmem:[#allocation10 + $0x80] sm:$0xff] }
 0x7e8   :  { %10230 = vmatpush1.bf16.msra.mxu0 %v10229_v54  ;;  %v10279_v54 = vpack.c.bf16 %v4261_v50, %v4260_v49  ;;  %v4746_v49 = vld [vmem:[#allocation10 + $0xa0] sm:$0xff]  ;;  %v4741_v50 = vld [vmem:[#allocation10 + $0x78] sm:$0xff] }
 0x7e9   :  { %10231 = vmatprep.subr.bf16.mxu0 %v11739_v1 }
 0x7ec   :  { %10233 = vmatpush1.bf16.msra.mxu0 %v10232_v33  ;;  %v10282_v33 = vpack.c.bf16 %v4263_v56, %v4262_v55 }
 0x7ed   :  { %10234 = vmatprep.subr.bf16.mxu0 %v11739_v1 }
 0x7f0   :  { %10236 = vmatpush1.bf16.msra.mxu0 %v10235_v61  ;;  %v10286_v61 = vpack.c.bf16 %v4344_v60, %v4343_v17 }
 0x7f1   :  { %10237 = vmatprep.subr.bf16.mxu0 %v11739_v1 }
 0x7f4   :  { %10239 = vmatpush1.bf16.msra.mxu0 %v10238_v34 }
 0x7f5   :  { %10240 = vmatprep.subr.bf16.mxu0 %v11739_v1 }
 0x7f8   :  { %10242 = vmatpush1.bf16.msra.mxu0 %v10241_v4  ;;  %v4348_v4 = vld [vmem:[#allocation19 + $0xe8] sm:$0xff] }
 0x7f9   :  { %10243 = vmatprep.subr.bf16.mxu0 %v11739_v1  ;;  %v10292_v41 = vpack.c.bf16 %v4348_v4, %v4347_v21 }
 0x7fc   :  { %10245 = vmatpush1.bf16.msra.mxu0 %v10244_v7  ;;  %v4350_v7 = vld [vmem:[#allocation19 + $0xf8] sm:$0xf] }
 0x7fd   :  { %4042 = vmatprep.subr.mxu0 %v11740_v2 }
 0x800   :  { %8988 = vmatpush1.msk.msra.mxu0 %vm12925_vm4, %v4002_v42  ;;  %v10295_v42 = vpack.c.bf16 %v4350_v7, %v4349_v6  ;;  %vm4438_vm4 = vcmask 637952   ;;  %v4749_v6 = vld [vmem:[#allocation10 + $0xb8] sm:$0xff] }
 0x801   :  { %10246 = vmatprep.subr.bf16.mxu0 %v11739_v1 }
 0x8b2   :  { %v3981_v11 = vpop.f32.mrb[36].mxu0 }
 0x8b3   :  { %v3983_v14 = vpop.f32.mrb[37].mxu0 }
 0x8b4   :  { %8989 = vmatprep.mubr.msk.f32.mxu0 %vm12921_vm6, %v3983_v14  ;;  %vm12924_vm6 = vcmask 486400   ;;  %v4431_v14 = vld [vmem:[#allocation20 + $0x18] sm:$0xff] }
 0x8b5   :  { %4075 = vmatmul.mubr.f32.vlgmr.msra.gmra.mrb[38].mxu0 %v3981_v11  ;;  %v10299_v11 = vpack.c.bf16 %v4429_v10, %v4428_v8  ;;  %v4727_v8 = vld [vmem:[#allocation10 + $0x8] sm:$0xff] }
 0x8b6   :  { %10248 = vmatpush3.bf16.msra.mxu0 %v10247_v12  ;;  %9288 = vmatprep.mubr.msk.f32.mxu0 %vm11741_vm0, %v11740_v2  ;;  %v4430_v12 = vld [vmem:[#allocation20 + $0x10] sm:$0xff]  ;;  %v4731_v10 = vld [vmem:[#allocation10 + $0x28] sm:$0xff] }
 0x8b7   :  { %10249 = vmatprep.subr.bf16.mxu0 %v11739_v1  ;;  %v10302_v18 = vpack.c.bf16 %v4431_v14, %v4430_v12  ;;  %v4748_v12 = vld [vmem:[#allocation10 + $0xb0] sm:$0xff]  ;;  %v10330_v14 = vpack.c.bf16 %v4731_v10, %v4727_v8  ;;  %v5483_v8 = vld [vmem:[#allocation10 + $0x180] sm:$0xff] }
 0x8b8   :  { %v5487_v10 = vld [vmem:[#allocation10 + $0x1a0] sm:$0xff] }
 0x8ba   :  { %10251 = vmatpush3.bf16.msra.mxu0 %v10250_v19  ;;  %v4432_v19 = vld [vmem:[#allocation20 + $0x20] sm:$0xff] }
 0x8bb   :  { %10252 = vmatprep.subr.bf16.mxu0 %v11739_v1  ;;  %v10305_v22 = vpack.c.bf16 %v4433_v5, %v4432_v19  ;;  %v4730_v19 = vld [vmem:[#allocation10 + $0x20] sm:$0xff] }
 0x8be   :  { %10254 = vmatpush3.bf16.msra.mxu0 %v10253_v23  ;;  %v4434_v23 = vld [vmem:[#allocation20 + $0x30] sm:$0xff] }
 0x8bf   :  { %10255 = vmatprep.subr.bf16.mxu0 %v11739_v1  ;;  %v10308_v26 = vpack.c.bf16 %v4435_v25, %v4434_v23  ;;  %v4735_v23 = vld [vmem:[#allocation10 + $0x48] sm:$0xff]  ;;  %v4729_v25 = vld [vmem:[#allocation10 + $0x18] sm:$0xff] }
 0x8c2   :  { %10258 = vmatpush3.bf16.msk.msra.mxu0 %vm12239_vm1, %v10256_v27  ;;  %v4436_v27 = vld [vmem:[#allocation20 + $0x40] sm:$0xff] }
 0x8c3   :  { %10259 = vmatprep.subr.bf16.mxu0 %v11739_v1 }
 0x988   :  { %v4076_v28 = vpop.f32.mrb[38].mxu0 }
 0x989   :  { %4081 = vst.msk [vmem:[#allocation4] sm:$0xf] %vm12924_vm6, %v4076_v28  ;;  %v4078_v29 = vpop.f32.mrb[39].mxu0  ;;  %v4437_v28 = vld [vmem:[#allocation20 + $0x48] sm:$0x3f]  ;;  %vm4539_vm6 = vcmp.eq.s32.totalorder %v11971_v3, %v11977_v13  ;;  %v11440_v3 = vld [vmem:[#allocation8] sm:$0xff] }
 0x98a   :  { %v10311_v29 = vpack.c.bf16 %v4437_v28, %v4436_v27  ;;  %v11442_v13 = vld [vmem:[#allocation8 + $0x10] sm:$0xff]  ;;  %v4734_v27 = vld [vmem:[#allocation10 + $0x40] sm:$0xff] }
 0x990   :  { %v4091_v35 = vld [vmem:[#allocation4 + $0x1] sm:$0x1]  ;;  %v4082_v53 = vld [vmem:[#allocation4] sm:$0x1]  ;;  %v4254_v34 = vld [vmem:[#allocation4 + $0x2] sm:$0x1] }
 0x991   :  { %9289 = vmatmul.mubr.msk.f32.vlgmr.msra.gmra.mrb[40].mxu0 %vm12923_vm14, %v4091_v35  ;;  %v4341_v15 = vld [vmem:[#allocation4 + $0x3] sm:$0x1] }
 0x992   :  { %10261 = vmatpush3.bf16.msra.mxu0 %v10260_v31  ;;  %9307 = vmatprep.mubr.msk.f32.mxu0 %vm11741_vm0, %v11740_v2  ;;  %v9000_v31 = vsel %vm4539_vm6, 1.0, %v11740_v2 }
 0x993   :  { %10262 = vmatprep.subr.bf16.mxu0 %v11739_v1  ;;  %v10315_v51 = vpack.c.bf16 %v9001_v58, %v9000_v31  ;;  %v4732_v58 = vld [vmem:[#allocation10 + $0x30] sm:$0xff] }
 0x996   :  { %10264 = vmatpush3.bf16.msra.mxu0 %v10263_v36 }
 0x997   :  { %10265 = vmatprep.subr.bf16.mxu0 %v11739_v1 }
 0x99a   :  { %10267 = vmatpush3.bf16.msra.mxu0 %v10266_v43 }
 0x99b   :  { %10268 = vmatprep.subr.bf16.mxu0 %v11739_v1 }
 0x99e   :  { %10271 = vmatpush3.bf16.msk.msra.mxu0 %vm12239_vm1, %v10269_v48 }
 0x99f   :  { %10272 = vmatprep.subr.bf16.mxu0 %v11739_v1 }
 0x9a1   :  { %9308 = vmatmul.mubr.msk.f32.vlgmr.msra.gmra.mrb[40].mxu0 %vm12923_vm14, %v4082_v53  ;;  %v10324_v53 = vpack.c.bf16 %v4742_v47, %v4738_v39  ;;  %v5289_v39 = vld [vmem:[#allocation10 + $0x148] sm:$0xff]  ;;  %v5101_v47 = vld [vmem:[#allocation10 + $0x110] sm:$0xff] }
 0x9a2   :  { %10274 = vmatpush3.bf16.msra.mxu0 %v10273_v37  ;;  %9326 = vmatprep.mubr.msk.f32.mxu0 %vm11741_vm0, %v11740_v2  ;;  %v10322_v37 = vpack.c.bf16 %v4743_v40, %v4739_v59  ;;  %v5102_v40 = vld [vmem:[#allocation10 + $0x118] sm:$0xff] }
 0x9a3   :  { %10275 = vmatprep.subr.bf16.mxu0 %v11739_v1 }
 0x9a6   :  { %10277 = vmatpush3.bf16.msra.mxu0 %v10276_v52  ;;  %v4747_v52 = vld [vmem:[#allocation10 + $0xa8] sm:$0xff] }
 0x9a7   :  { %10278 = vmatprep.subr.bf16.mxu0 %v11739_v1 }
 0x9aa   :  { %10280 = vmatpush3.bf16.msra.mxu0 %v10279_v54  ;;  %v4745_v54 = vld [vmem:[#allocation10 + $0x98] sm:$0xff] }
 0x9ab   :  { %10281 = vmatprep.subr.bf16.mxu0 %v11739_v1  ;;  %v10326_v55 = vpack.c.bf16 %v4745_v54, %v4741_v50  ;;  %v5293_v54 = vld [vmem:[#allocation10 + $0x168] sm:$0xff] }
 0x9ae   :  { %10284 = vmatpush3.bf16.msk.msra.mxu0 %vm12239_vm1, %v10282_v33 }
 0x9af   :  { %10285 = vmatprep.subr.bf16.mxu0 %v11739_v1 }
 0x9b1   :  { %9327 = vmatmul.mubr.msk.f32.vlgmr.msra.gmra.mrb[40].mxu0 %vm12923_vm14, %v4254_v34  ;;  %v4740_v34 = vld [vmem:[#allocation10 + $0x70] sm:$0xff] }
 0x9b2   :  { %10287 = vmatpush3.bf16.msra.mxu0 %v10286_v61  ;;  %9345 = vmatprep.mubr.msk.f32.mxu0 %vm11741_vm0, %v11740_v2 }
 0x9b3   :  { %10288 = vmatprep.subr.bf16.mxu0 %v11739_v1 }
 0x9b6   :  { %10290 = vmatpush3.bf16.msra.mxu0 %v10289_v0  ;;  %v4744_v0 = vld [vmem:[#allocation10 + $0x90] sm:$0xff] }
 0x9b7   :  { %10291 = vmatprep.subr.bf16.mxu0 %v11739_v1 }
 0x9ba   :  { %10293 = vmatpush3.bf16.msra.mxu0 %v10292_v41  ;;  %v10328_v41 = vpack.c.bf16 %v4744_v0, %v4740_v34  ;;  %v5295_v34 = vld [vmem:[#allocation10 + $0x178] sm:$0xff] }
 0x9bb   :  { %10294 = vmatprep.subr.bf16.mxu0 %v11739_v1 }
 0x9be   :  { %10297 = vmatpush3.bf16.msk.msra.mxu0 %vm12239_vm1, %v10295_v42 }
 0x9bf   :  { %10298 = vmatprep.subr.bf16.mxu0 %v11739_v1 }
 0x9c1   :  { %9346 = vmatmul.mubr.msk.f32.vlgmr.msra.gmra.mrb[40].mxu0 %vm12923_vm14, %v4341_v15  ;;  %vm12443_vm14 = vmpackc.low %vm2120_vm11, %vm11742_vm15  ;;  %vm4527_vm15 = vcmask 630784  }
 0x9c2   :  { %10300 = vmatpush3.bf16.msra.mxu0 %v10299_v11  ;;  %9368 = vmatprep.mubr.msk.f32.mxu0 %vm11741_vm0, %v11740_v2 }
 0x9c3   :  { %10301 = vmatprep.subr.bf16.mxu0 %v11739_v1 }
 0x9c6   :  { %10303 = vmatpush3.bf16.msra.mxu0 %v10302_v18  ;;  %v4726_v18 = vld [vmem:[#allocation10] sm:$0xff] }
 0x9c7   :  { %10304 = vmatprep.subr.bf16.mxu0 %v11739_v1 }
 0x9ca   :  { %10306 = vmatpush3.bf16.msra.mxu0 %v10305_v22  ;;  %v10332_v22 = vpack.c.bf16 %v4730_v19, %v4726_v18  ;;  %v5486_v18 = vld [vmem:[#allocation10 + $0x198] sm:$0xff] }
 0x9cb   :  { %10307 = vmatprep.subr.bf16.mxu0 %v11739_v1  ;;  %v5490_v19 = vld [vmem:[#allocation10 + $0x1b8] sm:$0xff] }
 0x9ce   :  { %10309 = vmatpush3.bf16.msra.mxu0 %v10308_v26  ;;  %v4733_v26 = vld [vmem:[#allocation10 + $0x38] sm:$0xff] }
 0x9cf   :  { %10310 = vmatprep.subr.bf16.mxu0 %v11739_v1  ;;  %v10334_v28 = vpack.c.bf16 %v4733_v26, %v4729_v25  ;;  %v5485_v25 = vld [vmem:[#allocation10 + $0x190] sm:$0xff] }
 0x9d0   :  { %v5489_v26 = vld [vmem:[#allocation10 + $0x1b0] sm:$0xff] }
 0x9d2   :  { %10313 = vmatpush3.bf16.msk.msra.mxu0 %vm12443_vm14, %v10311_v29  ;;  %v4728_v29 = vld [vmem:[#allocation10 + $0x10] sm:$0xff] }
 0x9d3   :  { %10314 = vmatprep.subr.bf16.mxu0 %v11739_v1  ;;  %v10336_v31 = vpack.c.bf16 %v4732_v58, %v4728_v29  ;;  %v5678_v29 = vld [vmem:[#allocation10 + $0x208] sm:$0xff]  ;;  %v5493_v58 = vld [vmem:[#allocation10 + $0x1d0] sm:$0xff] }
 0xa94   :  { %v4423_v32 = vpop.f32.mrb[40].mxu0 }
 0xa95   :  { %4528 = vst.msk [vmem:[#allocation22] sm:$0x1] %vm4527_vm15, %v4423_v32  ;;  %v9347_v35 = vpop.f32.mrb[41].mxu0  ;;  %9369 = vmatmul.mubr.msk.f32.vlgmr.msra.gmra.mrb[42].mxu0 %vm4438_vm4, %v4423_v32  ;;  %v5092_v32 = vld [vmem:[#allocation10 + $0xc8] sm:$0xff] }
 0xa96   :  { %10317 = vmatpush3.bf16.xpose.msk.msra.mxu0 %vm11987_vm9, %v10315_v51  ;;  %9375 = vmatprep.mubr.msk.f32.mxu0 %vm11741_vm0, %v11740_v2  ;;  %v4737_v51 = vld [vmem:[#allocation10 + $0x58] sm:$0xff]  ;;  %v5096_v35 = vld [vmem:[#allocation10 + $0xe8] sm:$0xff] }
 0xa97   :  { %10318 = vmatprep.subr.bf16.mxu0 %v11739_v1 }
 0xa9d   :  { %9376 = vmatmul.mubr.msk.f32.vlgmr.msra.gmra.mrb[44].mxu0 %vm192_vm5, %v11440_v3  ;;  %v4736_v3 = vld [vmem:[#allocation10 + $0x50] sm:$0xff] }
 0xa9e   :  { %9378 = vmatprep.mubr.msk.f32.mxu0 %vm11741_vm0, %v11740_v2  ;;  %10321 = vmatpush3.bf16.xpose.msk.msra.mxu0 %vm11987_vm9, %v11994_v20 }
 0xa9f   :  { %9388 = vmatprep.subr.mxu0 %v11740_v2 }
 0xaa1   :  { %9379 = vmatmul.mubr.msk.f32.gmra.mrb[46].mxu0 %vm192_vm5, %v11441_v9  ;;  %v10338_v9 = vpack.c.bf16 %v5096_v35, %v5092_v32  ;;  %v5677_v32 = vld [vmem:[#allocation10 + $0x200] sm:$0xff] }
 0xaa2   :  { %9381 = vmatprep.mubr.msk.f32.mxu0 %vm11741_vm0, %v11740_v2 }
 0xaa5   :  { %9382 = vmatmul.mubr.msk.f32.gmra.mrb[48].mxu0 %vm192_vm5, %v11442_v13 }
 0xaa6   :  { %9389 = vmatpush3.xpose.msk.msra.mxu0 %vm192_vm5, %v11442_v13  ;;  %9390 = vmatprep.mubr.msk.f32.mxu0 %vm11741_vm0, %v11740_v2  ;;  %v5091_v13 = vld [vmem:[#allocation10 + $0xc0] sm:$0xff] }
 0xaa7   :  { %10323 = vmatprep.subr.bf16.mxu0 %v10322_v37  ;;  %v5285_v37 = vld [vmem:[#allocation10 + $0x128] sm:$0xff] }
 0xb68   :  { %v4511_v36 = vpop.f32.mrb[42].mxu0 }
 0xb69   :  { %v9370_v16 = vpop.f32.mrb[43].mxu0  ;;  %v4516_v20 = vsel %vm4515_vm8, %v4511_v36, -inf }
 0xb6a   :  { %4517 = vmax.xlane.f32.xlu0 %v4516_v20  ;;  %v5100_v20 = vld [vmem:[#allocation10 + $0x108] sm:$0xff] }
 0xb70   :  { %v4617_v57 = vpop.f32.mrb[44].mxu0 }
 0xb71   :  { %v9377_v38 = vpop.f32.mrb[45].mxu0  ;;  %9391 = vmatmul.mubr.msk.f32.vlgmr.msra.gmra.mrb[50].mxu0 %vm192_vm5, %v4617_v57  ;;  %v5094_v57 = vld [vmem:[#allocation10 + $0xd8] sm:$0xff] }
 0xb72   :  { %9393 = vmatprep.mubr.msk.f32.mxu0 %vm11741_vm0, %v11740_v2  ;;  %10325 = vmatpush1.bf16.msra.mxu0 %v10324_v53  ;;  %v5098_v38 = vld [vmem:[#allocation10 + $0xf8] sm:$0xff]  ;;  %v10346_v53 = vpack.c.bf16 %v5289_v39, %v5285_v37  ;;  %v5870_v37 = vld [vmem:[#allocation10 + $0x260] sm:$0xff] }
 0xb73   :  { %4763 = vmatprep.subr.mxu0 %v4747_v52  ;;  %v5284_v52 = vld [vmem:[#allocation10 + $0x120] sm:$0xff] }
 0xb74   :  { %v4622_v43 = vpop.f32.mrb[46].mxu0 }
 0xb75   :  { %v9380_v45 = vpop.f32.mrb[47].mxu0  ;;  %9394 = vmatmul.mubr.msk.f32.gmra.mrb[52].mxu0 %vm192_vm5, %v4622_v43  ;;  %v5099_v43 = vld [vmem:[#allocation10 + $0x100] sm:$0xff] }
 0xb76   :  { %9396 = vmatprep.mubr.msk.f32.mxu0 %vm11741_vm0, %v11740_v2  ;;  %4764 = vmatpush1.msra.mxu0 %v4746_v49  ;;  %v10342_v45 = vpack.c.bf16 %v5098_v38, %v5094_v57  ;;  %v5288_v49 = vld [vmem:[#allocation10 + $0x140] sm:$0xff]  ;;  %v5679_v57 = vld [vmem:[#allocation10 + $0x210] sm:$0xff] }
 0xb77   :  { %10327 = vmatprep.subr.bf16.mxu0 %v10326_v55  ;;  %v10348_v50 = vpack.c.bf16 %v5288_v49, %v5284_v52  ;;  %v5287_v55 = vld [vmem:[#allocation10 + $0x138] sm:$0xff]  ;;  %v5874_v49 = vld [vmem:[#allocation10 + $0x280] sm:$0xff] }
 0xb78   :  { %v4627_v46 = vpop.f32.mrb[48].mxu0  ;;  %v5873_v52 = vld [vmem:[#allocation10 + $0x278] sm:$0xff] }
 0xb79   :  { %v9383_v48 = vpop.f32.mrb[49].mxu0  ;;  %9397 = vmatmul.mubr.msk.f32.gmra.mrb[54].mxu0 %vm192_vm5, %v4627_v46  ;;  %v5093_v46 = vld [vmem:[#allocation10 + $0xd0] sm:$0xff]  ;;  %vm12934_vm5 = vcmask 1046528  }
 0xb7a   :  { %4823 = vmatprep.mubr.f32.mxu0 %v11740_v2  ;;  %v5097_v48 = vld [vmem:[#allocation10 + $0xf0] sm:$0xff]  ;;  %vm12935_vm9 = vmmov %vm12934_vm5 }
 0xb7b   :  { %v10344_v59 = vpack.c.bf16 %v5097_v48, %v5093_v46  ;;  %v5871_v46 = vld [vmem:[#allocation10 + $0x268] sm:$0xff]  ;;  %v5683_v48 = vld [vmem:[#allocation10 + $0x230] sm:$0xff] }
 0xbf7   :  { %v4518_v56 = vpop.xlane.xlu0 %4517 }
 0xbf8   :  { %v4519_v33 = vsub.f32 %v4511_v36, %v4518_v56  ;;  %v5095_v36 = vld [vmem:[#allocation10 + $0xe0] sm:$0xff]  ;;  %v5291_v56 = vld [vmem:[#allocation10 + $0x158] sm:$0xff] }
 0xbf9   :  { %v10340_v16 = vpack.c.bf16 %v5095_v36, %v5091_v13  ;;  %v5680_v13 = vld [vmem:[#allocation10 + $0x218] sm:$0xff]  ;;  %v5681_v36 = vld [vmem:[#allocation10 + $0x220] sm:$0xff] }
 0xbfa   :  { %v4520_v17 = vmul.f32 1.442695, %v4519_v33  ;;  %v5292_v33 = vld [vmem:[#allocation10 + $0x160] sm:$0xff] }
 0xbfc   :  { %11432 = vpow2.f32 %v4520_v17  ;;  %v10350_v17 = vpack.c.bf16 %v5291_v56, %v5287_v55  ;;  %v5872_v55 = vld [vmem:[#allocation10 + $0x270] sm:$0xff] }
 0xc06   :  { %v12487_v60 = vpop.eup %11432 }
 0xc07   :  { %v4522_v61 = vsel %vm4515_vm8, %v12487_v60, 0.0 }
 0xc08   :  { %4523 = vadd.xlane.f32.xlu1 %v4522_v61  ;;  %v5286_v61 = vld [vmem:[#allocation10 + $0x130] sm:$0xff] }
 0xc44   :  { %v4706_v62 = vpop.f32.mrb[50].mxu0 }
 0xc45   :  { %4720 = vst.msk [vmem:[#allocation2] sm:$0xff] %vm377_vm10, %v4706_v62  ;;  %v9392_v63 = vpop.f32.mrb[51].mxu0  ;;  %v5290_v62 = vld [vmem:[#allocation10 + $0x150] sm:$0xff] }
 0xc46   :  { %v10352_v63 = vpack.c.bf16 %v5290_v62, %v5286_v61  ;;  %v6066_v61 = vld [vmem:[#allocation10 + $0x2a8] sm:$0xff] }
 0xc47   :  { %v6070_v62 = vld [vmem:[#allocation10 + $0x2c8] sm:$0xff] }
 0xc48   :  { %v4711_v21 = vpop.f32.mrb[52].mxu0 }
 0xc49   :  { %4721 = vst.msk [vmem:[#allocation2 + $0x8] sm:$0xff] %vm377_vm10, %v4711_v21  ;;  %v9395_v4 = vpop.f32.mrb[53].mxu0  ;;  %v5484_v21 = vld [vmem:[#allocation10 + $0x188] sm:$0xff] }
 0xc4a   :  { %v5488_v4 = vld [vmem:[#allocation10 + $0x1a8] sm:$0xff] }
 0xc4c   :  { %v4716_v7 = vpop.f32.mrb[54].mxu0  ;;  %v12493_v42 = vld [vmem:[#allocation2] sm:$0xff] }
 0xc4d   :  { %4722 = vst.msk [vmem:[#allocation2 + $0x10] sm:$0xff] %vm377_vm10, %v4716_v7  ;;  %v9398_v11 = vpop.f32.mrb[55].mxu0  ;;  %9013 = vmatmul.mubr.msk.f32.vlgmr.msra.gmra.mrb[56].mxu0 %vm377_vm10, %v12493_v42  ;;  %v10354_v7 = vpack.c.bf16 %v5488_v4, %v5484_v21  ;;  %v6065_v21 = vld [vmem:[#allocation10 + $0x2a0] sm:$0xff] }
 0xc4e   :  { %4829 = vmatprep.mubr.f32.mxu0 %v11740_v2  ;;  %10329 = vmatpush1.bf16.msra.mxu0 %v10328_v41  ;;  %v6069_v4 = vld [vmem:[#allocation10 + $0x2c0] sm:$0xff] }
 0xc4f   :  { %4846 = vmatprep.subr.mxu0 %v4749_v6  ;;  %v5294_v6 = vld [vmem:[#allocation10 + $0x170] sm:$0xff] }
 0xc50   :  { %v12499_v15 = vld [vmem:[#allocation2 + $0x8] sm:$0xff] }
 0xc51   :  { %9014 = vmatmul.mubr.msk.f32.gmra.mrb[58].mxu0 %vm377_vm10, %v12499_v15  ;;  %v12554_v0 = vld [vmem:[#allocation2 + $0x1] sm:$0xff] }
 0xc52   :  { %4835 = vmatprep.mubr.f32.mxu0 %v11740_v2  ;;  %4847 = vmatpush1.msra.mxu0 %v4748_v12  ;;  %v10356_v12 = vpack.c.bf16 %v5487_v10, %v5483_v8  ;;  %v6072_v8 = vld [vmem:[#allocation10 + $0x2d8] sm:$0xff]  ;;  %v6073_v10 = vld [vmem:[#allocation10 + $0x2e0] sm:$0xff] }
 0xc53   :  { %10331 = vmatprep.subr.bf16.mxu0 %v10330_v14 }
 0xc54   :  { %v12504_v5 = vld [vmem:[#allocation2 + $0x10] sm:$0x3f] }
 0xc55   :  { %9015 = vmatmul.mubr.msk.f32.gmra.mrb[60].mxu0 %vm377_vm10, %v12504_v5  ;;  %v12564_v11 = vld [vmem:[#allocation2 + $0x11] sm:$0x3f] }
 0xc56   :  { %4906 = vmatprep.mubr.f32.mxu0 %v11740_v2 }
 0xc59   :  { %9016 = vmatmul.mubr.msk.f32.vlgmr.msra.gmra.mrb[62].mxu0 %vm377_vm10, %v12493_v42 }
 0xc5a   :  { %4912 = vmatprep.mubr.f32.mxu0 %v11740_v2  ;;  %10333 = vmatpush1.bf16.msra.mxu0 %v10332_v22  ;;  %v5491_v22 = vld [vmem:[#allocation10 + $0x1c0] sm:$0xff] }
 0xc5b   :  { %4929 = vmatprep.subr.mxu0 %v4735_v23  ;;  %v10358_v23 = vpack.c.bf16 %v5490_v19, %v5486_v18  ;;  %v6076_v18 = vld [vmem:[#allocation10 + $0x2f8] sm:$0xff]  ;;  %v6256_v19 = vld [vmem:[#allocation10 + $0x308] sm:$0xff] }
 0xc5d   :  { %9017 = vmatmul.mubr.msk.f32.gmra.mrb[64].mxu0 %vm377_vm10, %v12499_v15 }
 0xc5e   :  { %4918 = vmatprep.mubr.f32.mxu0 %v11740_v2  ;;  %4930 = vmatpush1.msra.mxu0 %v4734_v27  ;;  %v5494_v27 = vld [vmem:[#allocation10 + $0x1d8] sm:$0xff] }
 0xc5f   :  { %10335 = vmatprep.subr.bf16.mxu0 %v10334_v28  ;;  %v5674_v28 = vld [vmem:[#allocation10 + $0x1e8] sm:$0xff] }
 0xc61   :  { %9018 = vmatmul.mubr.msk.f32.gmra.mrb[66].mxu0 %vm377_vm10, %v12504_v5 }
 0xc62   :  { %4989 = vmatprep.mubr.f32.mxu0 %v11740_v2 }
 0xc65   :  { %9019 = vmatmul.mubr.msk.f32.vlgmr.msra.gmra.mrb[56].mxu0 %vm377_vm10, %v12493_v42 }
 0xc66   :  { %4995 = vmatprep.mubr.f32.mxu0 %v11740_v2  ;;  %10337 = vmatpush1.bf16.msra.mxu0 %v10336_v31  ;;  %v10362_v31 = vpack.c.bf16 %v5678_v29, %v5674_v28  ;;  %v6258_v28 = vld [vmem:[#allocation10 + $0x318] sm:$0xff] }
 0xc67   :  { %5012 = vmatprep.subr.mxu0 %v4737_v51  ;;  %v5673_v51 = vld [vmem:[#allocation10 + $0x1e0] sm:$0xff]  ;;  %v6262_v29 = vld [vmem:[#allocation10 + $0x338] sm:$0xff] }
 0xc68   :  { %v10364_v35 = vpack.c.bf16 %v5677_v32, %v5673_v51  ;;  %v6257_v51 = vld [vmem:[#allocation10 + $0x310] sm:$0xff] }
 0xc69   :  { %9020 = vmatmul.mubr.msk.f32.gmra.mrb[58].mxu0 %vm377_vm10, %v12499_v15  ;;  %v6261_v32 = vld [vmem:[#allocation10 + $0x330] sm:$0xff] }
 0xc6a   :  { %5001 = vmatprep.mubr.f32.mxu0 %v11740_v2  ;;  %5013 = vmatpush1.msra.mxu0 %v4736_v3  ;;  %v5682_v3 = vld [vmem:[#allocation10 + $0x228] sm:$0xff] }
 0xc6b   :  { %10339 = vmatprep.subr.bf16.mxu0 %v10338_v9  ;;  %v5676_v9 = vld [vmem:[#allocation10 + $0x1f8] sm:$0xff] }
 0xc6d   :  { %9021 = vmatmul.mubr.msk.f32.gmra.mrb[60].mxu0 %vm377_vm10, %v12504_v5 }
 0xc6e   :  { %5072 = vmatprep.mubr.f32.mxu0 %v11740_v2 }
 0xc71   :  { %9022 = vmatmul.mubr.msk.f32.vlgmr.msra.gmra.mrb[62].mxu0 %vm377_vm10, %v12493_v42 }
 0xc72   :  { %5078 = vmatprep.mubr.f32.mxu0 %v11740_v2  ;;  %10341 = vmatpush1.bf16.msra.mxu0 %v10340_v16  ;;  %v10366_v16 = vpack.c.bf16 %v5680_v13, %v5676_v9  ;;  %v6265_v9 = vld [vmem:[#allocation10 + $0x350] sm:$0xff] }
 0xc73   :  { %5107 = vmatprep.subr.mxu0 %v5100_v20  ;;  %v5675_v20 = vld [vmem:[#allocation10 + $0x1f0] sm:$0xff] }
 0xc74   :  { %v10368_v38 = vpack.c.bf16 %v5679_v57, %v5675_v20 }
 0xc75   :  { %9023 = vmatmul.mubr.msk.f32.gmra.mrb[64].mxu0 %vm377_vm10, %v12499_v15 }
 0xc76   :  { %5084 = vmatprep.mubr.f32.mxu0 %v11740_v2  ;;  %5108 = vmatpush1.msra.mxu0 %v5099_v43  ;;  %v5684_v43 = vld [vmem:[#allocation10 + $0x238] sm:$0xff] }
 0xc77   :  { %10343 = vmatprep.subr.bf16.mxu0 %v10342_v45  ;;  %v5867_v45 = vld [vmem:[#allocation10 + $0x248] sm:$0xff] }
 0xc79   :  { %9024 = vmatmul.mubr.msk.f32.gmra.mrb[66].mxu0 %vm377_vm10, %v12504_v5 }
 0xc7a   :  { %5167 = vmatprep.mubr.f32.mxu0 %v11740_v2 }
 0xc7d   :  { %9025 = vmatmul.mubr.msk.f32.vlgmr.msra.gmra.mrb[56].mxu0 %vm377_vm10, %v12493_v42 }
 0xc7e   :  { %5173 = vmatprep.mubr.f32.mxu0 %v11740_v2  ;;  %10345 = vmatpush1.bf16.msra.mxu0 %v10344_v59  ;;  %v10370_v59 = vpack.c.bf16 %v5871_v46, %v5867_v45  ;;  %v6445_v46 = vld [vmem:[#allocation11] sm:$0xff] }
 0xc7f   :  { %5190 = vmatprep.subr.mxu0 %v5102_v40  ;;  %v5866_v40 = vld [vmem:[#allocation10 + $0x240] sm:$0xff] }
 0xc80   :  { %v10372_v39 = vpack.c.bf16 %v5870_v37, %v5866_v40  ;;  %v6446_v40 = vld [vmem:[#allocation11 + $0x8] sm:$0x7] }
 0xc81   :  { %9026 = vmatmul.mubr.msk.f32.gmra.mrb[58].mxu0 %vm377_vm10, %v12499_v15 }
 0xc82   :  { %5179 = vmatprep.mubr.f32.mxu0 %v11740_v2  ;;  %5191 = vmatpush1.msra.mxu0 %v5101_v47  ;;  %v5875_v47 = vld [vmem:[#allocation10 + $0x288] sm:$0xff] }
 0xc83   :  { %10347 = vmatprep.subr.bf16.mxu0 %v10346_v53  ;;  %v5869_v53 = vld [vmem:[#allocation10 + $0x258] sm:$0xff] }
 0xc85   :  { %9027 = vmatmul.mubr.msk.f32.gmra.mrb[60].mxu0 %vm377_vm10, %v12504_v5 }
 0xc86   :  { %5250 = vmatprep.mubr.f32.mxu0 %v11740_v2 }
 0xc89   :  { %9028 = vmatmul.mubr.msk.f32.vlgmr.msra.gmra.mrb[62].mxu0 %vm377_vm10, %v12493_v42  ;;  %v12559_v42 = vld [vmem:[#allocation2 + $0x9] sm:$0xff] }
 0xc8a   :  { %5256 = vmatprep.mubr.f32.mxu0 %v11740_v2  ;;  %10349 = vmatpush1.bf16.msra.mxu0 %v10348_v50  ;;  %v10374_v50 = vpack.c.bf16 %v5873_v52, %v5869_v53  ;;  %v6620_v52 = vld [vmem:[#allocation13 + $0x8] sm:$0xff] }
 0xc8b   :  { %5309 = vmatprep.subr.mxu0 %v5293_v54  ;;  %v5868_v54 = vld [vmem:[#allocation10 + $0x250] sm:$0xff] }
 0xc8c   :  { %v10376_v56 = vpack.c.bf16 %v5872_v55, %v5868_v54  ;;  %v6619_v54 = vld [vmem:[#allocation13] sm:$0xff]  ;;  %v6621_v55 = vld [vmem:[#allocation13 + $0x10] sm:$0xff] }
 0xc8d   :  { %9029 = vmatmul.mubr.msk.f32.gmra.mrb[64].mxu0 %vm377_vm10, %v12499_v15  ;;  %v5492_v15 = vld [vmem:[#allocation10 + $0x1c8] sm:$0xff] }
 0xc8e   :  { %5262 = vmatprep.mubr.f32.mxu0 %v11740_v2  ;;  %5310 = vmatpush1.msra.mxu0 %v5292_v33  ;;  %v12616_v33 = vld [vmem:[#allocation2 + $0x2] sm:$0xff] }
 0xc8f   :  { %10351 = vmatprep.subr.bf16.mxu0 %v10350_v17  ;;  %v5877_v17 = vld [vmem:[#allocation10 + $0x298] sm:$0xff] }
 0xc91   :  { %9030 = vmatmul.mubr.msk.f32.gmra.mrb[66].mxu0 %vm377_vm10, %v12504_v5 }
 0xc92   :  { %5369 = vmatprep.mubr.f32.mxu0 %v11740_v2 }
 0xc95   :  { %9031 = vmatmul.mubr.msk.f32.vlgmr.msra.gmra.mrb[56].mxu0 %vm377_vm10, %v12554_v0  ;;  %v4524_v41 = vpop.xlane.xlu1 %4523 }
 0xc96   :  { %11434 = vrcp.f32 %v4524_v41  ;;  %5375 = vmatprep.mubr.f32.mxu0 %v11740_v2  ;;  %10353 = vmatpush1.bf16.msra.mxu0 %v10352_v63  ;;  %v5876_v63 = vld [vmem:[#allocation10 + $0x290] sm:$0xff]  ;;  %v12626_v41 = vld [vmem:[#allocation2 + $0x12] sm:$0x3f] }
 0xc97   :  { %5392 = vmatprep.subr.mxu0 %v5295_v34  ;;  %v10378_v34 = vpack.c.bf16 %v6070_v62, %v6066_v61  ;;  %v10404_v62 = vpack.c.bf16 %v6621_v55, %v6619_v54  ;;  %v6662_v54 = vld [vmem:[#allocation13 + $0x158] sm:$0xff] }
 0xc99   :  { %9032 = vmatmul.mubr.msk.f32.gmra.mrb[58].mxu0 %vm377_vm10, %v12559_v42 }
 0xc9a   :  { %5381 = vmatprep.mubr.f32.mxu0 %v11740_v2  ;;  %5393 = vmatpush1.msra.mxu0 %v5294_v6  ;;  %v10380_v6 = vpack.c.bf16 %v6069_v4, %v6065_v21  ;;  %v6628_v21 = vld [vmem:[#allocation13 + $0x48] sm:$0xff]  ;;  %v6630_v4 = vld [vmem:[#allocation13 + $0x58] sm:$0xff] }
 0xc9b   :  { %10355 = vmatprep.subr.bf16.mxu0 %v10354_v7  ;;  %v6074_v7 = vld [vmem:[#allocation10 + $0x2e8] sm:$0xff] }
 0xc9d   :  { %9033 = vmatmul.mubr.msk.f32.gmra.mrb[60].mxu0 %vm377_vm10, %v12564_v11 }
 0xc9e   :  { %5452 = vmatprep.mubr.f32.mxu0 %v11740_v2 }
 0xca0   :  { %v11435_v14 = vpop.eup %11434 }
 0xca1   :  { %9034 = vmatmul.mubr.msk.f32.vlgmr.msra.gmra.mrb[62].mxu0 %vm377_vm10, %v12554_v0  ;;  %v4526_v5 = vmul.f32 %v11435_v14, %v12487_v60  ;;  %v10360_v60 = vpack.c.bf16 %v5489_v26, %v5485_v25  ;;  %v6071_v14 = vld [vmem:[#allocation10 + $0x2d0] sm:$0xff]  ;;  %v6255_v25 = vld [vmem:[#allocation10 + $0x300] sm:$0xff] }
 0xca2   :  { %5458 = vmatprep.mubr.f32.mxu0 %v11740_v2  ;;  %10357 = vmatpush1.bf16.msra.mxu0 %v10356_v12  ;;  %v6067_v12 = vld [vmem:[#allocation10 + $0x2b0] sm:$0xff]  ;;  %v6259_v26 = vld [vmem:[#allocation10 + $0x320] sm:$0xff] }
 0xca3   :  { %5499 = vmatprep.subr.mxu0 %v5492_v15  ;;  %4529 = vst.msk [vmem:[#allocation23] sm:$0x1] %vm4515_vm8, %v4526_v5  ;;  %v10384_v15 = vpack.c.bf16 %v6071_v14, %v6067_v12  ;;  %v6260_v5 = vld [vmem:[#allocation10 + $0x328] sm:$0xff]  ;;  %v6631_v14 = vld [vmem:[#allocation13 + $0x60] sm:$0xff] }
 0xca5   :  { %9035 = vmatmul.mubr.msk.f32.gmra.mrb[64].mxu0 %vm377_vm10, %v12559_v42 }
 0xca6   :  { %5464 = vmatprep.mubr.f32.mxu0 %v11740_v2  ;;  %5500 = vmatpush1.msra.mxu0 %v5491_v22  ;;  %v6075_v22 = vld [vmem:[#allocation10 + $0x2f0] sm:$0xff] }
 0xca7   :  { %10359 = vmatprep.subr.bf16.mxu0 %v10358_v23  ;;  %v10386_v23 = vpack.c.bf16 %v6260_v5, %v6256_v19  ;;  %v6638_v19 = vld [vmem:[#allocation13 + $0x98] sm:$0xff] }
 0xca9   :  { %9036 = vmatmul.mubr.msk.f32.gmra.mrb[66].mxu0 %vm377_vm10, %v12564_v11 }
 0xcaa   :  { %5559 = vmatprep.mubr.f32.mxu0 %v11740_v2 }
 0xcad   :  { %9037 = vmatmul.mubr.msk.f32.vlgmr.msra.gmra.mrb[56].mxu0 %vm377_vm10, %v12554_v0 }
 0xcae   :  { %5565 = vmatprep.mubr.f32.mxu0 %v11740_v2  ;;  %10361 = vmatpush1.bf16.msra.mxu0 %v10360_v60  ;;  %v10388_v60 = vpack.c.bf16 %v6259_v26, %v6255_v25  ;;  %v6637_v25 = vld [vmem:[#allocation13 + $0x90] sm:$0xff]  ;;  %v6640_v26 = vld [vmem:[#allocation13 + $0xa8] sm:$0xff] }
 0xcaf   :  { %5582 = vmatprep.subr.mxu0 %v5494_v27  ;;  %v6264_v27 = vld [vmem:[#allocation10 + $0x348] sm:$0xff] }
 0xcb1   :  { %9038 = vmatmul.mubr.msk.f32.gmra.mrb[58].mxu0 %vm377_vm10, %v12559_v42 }
 0xcb2   :  { %5571 = vmatprep.mubr.f32.mxu0 %v11740_v2  ;;  %5583 = vmatpush1.msra.mxu0 %v5493_v58  ;;  %v6263_v58 = vld [vmem:[#allocation10 + $0x340] sm:$0xff] }
 0xcb3   :  { %10363 = vmatprep.subr.bf16.mxu0 %v10362_v31  ;;  %v10390_v31 = vpack.c.bf16 %v6262_v29, %v6258_v28  ;;  %v6639_v29 = vld [vmem:[#allocation13 + $0xa0] sm:$0xff] }
 0xcb5   :  { %9039 = vmatmul.mubr.msk.f32.gmra.mrb[60].mxu0 %vm377_vm10, %v12564_v11 }
 0xcb6   :  { %5642 = vmatprep.mubr.f32.mxu0 %v11740_v2 }
 0xcb9   :  { %9040 = vmatmul.mubr.msk.f32.vlgmr.msra.gmra.mrb[62].mxu0 %vm377_vm10, %v12554_v0 }
 0xcba   :  { %5648 = vmatprep.mubr.f32.mxu0 %v11740_v2  ;;  %10365 = vmatpush1.bf16.msra.mxu0 %v10364_v35  ;;  %v10392_v35 = vpack.c.bf16 %v6261_v32, %v6257_v51  ;;  %v6646_v51 = vld [vmem:[#allocation13 + $0xd8] sm:$0xff] }
 0xcbb   :  { %5689 = vmatprep.subr.mxu0 %v5682_v3  ;;  %v6266_v3 = vld [vmem:[#allocation10 + $0x358] sm:$0xff] }
 0xcbd   :  { %9041 = vmatmul.mubr.msk.f32.gmra.mrb[64].mxu0 %vm377_vm10, %v12559_v42 }
 0xcbe   :  { %5654 = vmatprep.mubr.f32.mxu0 %v11740_v2  ;;  %5690 = vmatpush1.msra.mxu0 %v5681_v36 }
 0xcbf   :  { %10367 = vmatprep.subr.bf16.mxu0 %v10366_v16 }
 0xcc1   :  { %9042 = vmatmul.mubr.msk.f32.gmra.mrb[66].mxu0 %vm377_vm10, %v12564_v11 }
 0xcc2   :  { %5749 = vmatprep.mubr.f32.mxu0 %v11740_v2 }
 0xcc5   :  { %9043 = vmatmul.mubr.msk.f32.vlgmr.msra.gmra.mrb[56].mxu0 %vm377_vm10, %v12554_v0 }
 0xcc6   :  { %5755 = vmatprep.mubr.f32.mxu0 %v11740_v2  ;;  %10369 = vmatpush1.bf16.msra.mxu0 %v10368_v38 }
 0xcc7   :  { %5772 = vmatprep.subr.mxu0 %v5684_v43 }
 0xcc9   :  { %9044 = vmatmul.mubr.msk.f32.gmra.mrb[58].mxu0 %vm377_vm10, %v12559_v42 }
 0xcca   :  { %5761 = vmatprep.mubr.f32.mxu0 %v11740_v2  ;;  %5773 = vmatpush1.msra.mxu0 %v5683_v48 }
 0xccb   :  { %10371 = vmatprep.subr.bf16.mxu0 %v10370_v59 }
 0xccd   :  { %9045 = vmatmul.mubr.msk.f32.gmra.mrb[60].mxu0 %vm377_vm10, %v12564_v11 }
 0xcce   :  { %5832 = vmatprep.mubr.f32.mxu0 %v11740_v2 }
 0xcd1   :  { %9046 = vmatmul.mubr.msk.f32.vlgmr.msra.gmra.mrb[62].mxu0 %vm377_vm10, %v12554_v0  ;;  %v12621_v0 = vld [vmem:[#allocation2 + $0xa] sm:$0xff] }
 0xcd2   :  { %5838 = vmatprep.mubr.f32.mxu0 %v11740_v2  ;;  %10373 = vmatpush1.bf16.msra.mxu0 %v10372_v39 }
 0xcd3   :  { %5891 = vmatprep.subr.mxu0 %v5875_v47 }
 0xcd5   :  { %9047 = vmatmul.mubr.msk.f32.gmra.mrb[64].mxu0 %vm377_vm10, %v12559_v42  ;;  %v6068_v42 = vld [vmem:[#allocation10 + $0x2b8] sm:$0xff] }
 0xcd6   :  { %5844 = vmatprep.mubr.f32.mxu0 %v11740_v2  ;;  %5892 = vmatpush1.msra.mxu0 %v5874_v49  ;;  %v6622_v49 = vld [vmem:[#allocation13 + $0x18] sm:$0xff] }
 0xcd7   :  { %10375 = vmatprep.subr.bf16.mxu0 %v10374_v50  ;;  %v10402_v61 = vpack.c.bf16 %v6622_v49, %v6620_v52  ;;  %v6655_v52 = vld [vmem:[#allocation13 + $0x120] sm:$0xff]  ;;  %v6657_v49 = vld [vmem:[#allocation13 + $0x130] sm:$0xff] }
 0xcd8   :  { %v10440_v55 = vpack.c.bf16 %v6657_v49, %v6655_v52  ;;  %v6966_v52 = vld [vmem:[#allocation14 + $0x228] sm:$0xff]  ;;  %v6968_v49 = vld [vmem:[#allocation14 + $0x238] sm:$0xff] }
 0xcd9   :  { %9048 = vmatmul.mubr.msk.f32.gmra.mrb[66].mxu0 %vm377_vm10, %v12564_v11  ;;  %v10382_v11 = vpack.c.bf16 %v6072_v8, %v6068_v42  ;;  %v6629_v42 = vld [vmem:[#allocation13 + $0x50] sm:$0xff]  ;;  %v6632_v8 = vld [vmem:[#allocation13 + $0x68] sm:$0xff] }
 0xcda   :  { %5951 = vmatprep.mubr.f32.mxu0 %v11740_v2 }
 0xcdd   :  { %9049 = vmatmul.mubr.msk.f32.vlgmr.msra.gmra.mrb[56].mxu0 %vm377_vm10, %v12616_v33 }
 0xcde   :  { %5957 = vmatprep.mubr.f32.mxu0 %v11740_v2  ;;  %10377 = vmatpush1.bf16.msra.mxu0 %v10376_v56 }
 0xcdf   :  { %5974 = vmatprep.subr.mxu0 %v5877_v17  ;;  %v6626_v17 = vld [vmem:[#allocation13 + $0x38] sm:$0xff] }
 0xce1   :  { %9050 = vmatmul.mubr.msk.f32.gmra.mrb[58].mxu0 %vm377_vm10, %v12621_v0 }
 0xce2   :  { %5963 = vmatprep.mubr.f32.mxu0 %v11740_v2  ;;  %5975 = vmatpush1.msra.mxu0 %v5876_v63 }
 0xce3   :  { %10379 = vmatprep.subr.bf16.mxu0 %v10378_v34  ;;  %v6623_v34 = vld [vmem:[#allocation13 + $0x20] sm:$0xff] }
 0xce5   :  { %9051 = vmatmul.mubr.msk.f32.gmra.mrb[60].mxu0 %vm377_vm10, %v12626_v41 }
 0xce6   :  { %6034 = vmatprep.mubr.f32.mxu0 %v11740_v2 }
 0xce9   :  { %9052 = vmatmul.mubr.msk.f32.vlgmr.msra.gmra.mrb[62].mxu0 %vm377_vm10, %v12616_v33 }
 0xcea   :  { %6040 = vmatprep.mubr.f32.mxu0 %v11740_v2  ;;  %10381 = vmatpush1.bf16.msra.mxu0 %v10380_v6  ;;  %v10410_v6 = vpack.c.bf16 %v6630_v4, %v6628_v21  ;;  %v6665_v21 = vld [vmem:[#allocation13 + $0x170] sm:$0xff]  ;;  %v6668_v4 = vld [vmem:[#allocation13 + $0x188] sm:$0xff] }
 0xceb   :  { %6081 = vmatprep.subr.mxu0 %v6074_v7  ;;  %v6627_v7 = vld [vmem:[#allocation13 + $0x40] sm:$0xff] }
 0xced   :  { %9053 = vmatmul.mubr.msk.f32.gmra.mrb[64].mxu0 %vm377_vm10, %v12621_v0 }
 0xcee   :  { %6046 = vmatprep.mubr.f32.mxu0 %v11740_v2  ;;  %6082 = vmatpush1.msra.mxu0 %v6073_v10  ;;  %v6634_v10 = vld [vmem:[#allocation13 + $0x78] sm:$0xff] }
 0xcef   :  { %10383 = vmatprep.subr.bf16.mxu0 %v10382_v11  ;;  %v10412_v11 = vpack.c.bf16 %v6629_v42, %v6627_v7  ;;  %v10414_v12 = vpack.c.bf16 %v6634_v10, %v6632_v8  ;;  %v6667_v42 = vld [vmem:[#allocation13 + $0x180] sm:$0xff]  ;;  %v6669_v8 = vld [vmem:[#allocation13 + $0x190] sm:$0xff]  ;;  %v6672_v10 = vld [vmem:[#allocation13 + $0x1a8] sm:$0xff] }
 0xcf1   :  { %9054 = vmatmul.mubr.msk.f32.gmra.mrb[66].mxu0 %vm377_vm10, %v12626_v41 }
 0xcf2   :  { %6141 = vmatprep.mubr.f32.mxu0 %v11740_v2 }
 0xcf5   :  { %9055 = vmatmul.mubr.msk.f32.vlgmr.msra.gmra.mrb[56].mxu0 %vm377_vm10, %v12616_v33 }
 0xcf6   :  { %6147 = vmatprep.mubr.f32.mxu0 %v11740_v2  ;;  %10385 = vmatpush1.bf16.msra.mxu0 %v10384_v15  ;;  %v6633_v15 = vld [vmem:[#allocation13 + $0x70] sm:$0xff] }
 0xcf7   :  { %6164 = vmatprep.subr.mxu0 %v6076_v18  ;;  %v6636_v18 = vld [vmem:[#allocation13 + $0x88] sm:$0xff]  ;;  %v10416_v5 = vpack.c.bf16 %v6633_v15, %v6631_v14  ;;  %v6671_v15 = vld [vmem:[#allocation13 + $0x1a0] sm:$0xff] }
 0xcf9   :  { %9056 = vmatmul.mubr.msk.f32.gmra.mrb[58].mxu0 %vm377_vm10, %v12621_v0 }
 0xcfa   :  { %6153 = vmatprep.mubr.f32.mxu0 %v11740_v2  ;;  %6165 = vmatpush1.msra.mxu0 %v6075_v22  ;;  %v10418_v22 = vpack.c.bf16 %v6638_v19, %v6636_v18  ;;  %v6673_v18 = vld [vmem:[#allocation13 + $0x1b0] sm:$0xff]  ;;  %v6676_v19 = vld [vmem:[#allocation13 + $0x1c8] sm:$0xff] }
 0xcfb   :  { %10387 = vmatprep.subr.bf16.mxu0 %v10386_v23  ;;  %v6635_v23 = vld [vmem:[#allocation13 + $0x80] sm:$0xff] }
 0xcfd   :  { %9057 = vmatmul.mubr.msk.f32.gmra.mrb[60].mxu0 %vm377_vm10, %v12626_v41 }
 0xcfe   :  { %6224 = vmatprep.mubr.f32.mxu0 %v11740_v2 }
 0xd01   :  { %9058 = vmatmul.mubr.msk.f32.vlgmr.msra.gmra.mrb[62].mxu0 %vm377_vm10, %v12616_v33 }
 0xd02   :  { %6230 = vmatprep.mubr.f32.mxu0 %v11740_v2  ;;  %10389 = vmatpush1.bf16.msra.mxu0 %v10388_v60  ;;  %v6642_v60 = vld [vmem:[#allocation13 + $0xb8] sm:$0xff] }
 0xd03   :  { %6271 = vmatprep.subr.mxu0 %v6264_v27  ;;  %v10420_v27 = vpack.c.bf16 %v6637_v25, %v6635_v23  ;;  %v10422_v28 = vpack.c.bf16 %v6642_v60, %v6640_v26  ;;  %v6675_v25 = vld [vmem:[#allocation13 + $0x1c0] sm:$0xff]  ;;  %v6677_v26 = vld [vmem:[#allocation13 + $0x1d0] sm:$0xff]  ;;  %v6680_v60 = vld [vmem:[#allocation13 + $0x1e8] sm:$0xff] }
 0xd05   :  { %9059 = vmatmul.mubr.msk.f32.gmra.mrb[64].mxu0 %vm377_vm10, %v12621_v0 }
 0xd06   :  { %6236 = vmatprep.mubr.f32.mxu0 %v11740_v2  ;;  %6272 = vmatpush1.msra.mxu0 %v6263_v58  ;;  %v6641_v58 = vld [vmem:[#allocation13 + $0xb0] sm:$0xff] }
 0xd07   :  { %10391 = vmatprep.subr.bf16.mxu0 %v10390_v31  ;;  %v6644_v31 = vld [vmem:[#allocation13 + $0xc8] sm:$0xff]  ;;  %v10424_v32 = vpack.c.bf16 %v6641_v58, %v6639_v29  ;;  %v6679_v58 = vld [vmem:[#allocation13 + $0x1e0] sm:$0xff] }
 0xd09   :  { %9060 = vmatmul.mubr.msk.f32.gmra.mrb[66].mxu0 %vm377_vm10, %v12626_v41 }
 0xd0a   :  { %6331 = vmatprep.mubr.f32.mxu0 %v11740_v2 }
 0xd0d   :  { %9061 = vmatmul.mubr.msk.f32.vlgmr.msra.gmra.mrb[56].mxu0 %vm377_vm10, %v12616_v33 }
 0xd0e   :  { %6337 = vmatprep.mubr.f32.mxu0 %v11740_v2  ;;  %10393 = vmatpush1.bf16.msra.mxu0 %v10392_v35  ;;  %v10426_v35 = vpack.c.bf16 %v6646_v51, %v6644_v31  ;;  %v6681_v31 = vld [vmem:[#allocation13 + $0x1f0] sm:$0xff] }
 0xd0f   :  { %6354 = vmatprep.subr.mxu0 %v6266_v3  ;;  %v6643_v3 = vld [vmem:[#allocation13 + $0xc0] sm:$0xff]  ;;  %v10464_v51 = vpack.c.bf16 %v6681_v31, %v6679_v58  ;;  %v6990_v58 = vld [vmem:[#allocation14 + $0x2e8] sm:$0xff]  ;;  %v6992_v31 = vld [vmem:[#allocation14 + $0x2f8] sm:$0xff] }
 0xd11   :  { %9062 = vmatmul.mubr.msk.f32.gmra.mrb[58].mxu0 %vm377_vm10, %v12621_v0 }
 0xd12   :  { %6343 = vmatprep.mubr.f32.mxu0 %v11740_v2  ;;  %6355 = vmatpush1.msra.mxu0 %v6265_v9  ;;  %v6645_v9 = vld [vmem:[#allocation13 + $0xd0] sm:$0xff] }
 0xd15   :  { %9063 = vmatmul.mubr.msk.f32.gmra.mrb[60].mxu0 %vm377_vm10, %v12626_v41 }
 0xd16   :  { %6414 = vmatprep.mubr.f32.mxu0 %v11740_v2 }
 0xd19   :  { %9064 = vmatmul.mubr.msk.f32.vlgmr.msra.gmra.mrb[62].mxu0 %vm377_vm10, %v12616_v33  ;;  %v6624_v33 = vld [vmem:[#allocation13 + $0x28] sm:$0xff] }
 0xd1a   :  { %6420 = vmatprep.mubr.f32.mxu0 %v11740_v2  ;;  %v10406_v63 = vpack.c.bf16 %v6626_v17, %v6624_v33  ;;  %v6659_v33 = vld [vmem:[#allocation13 + $0x140] sm:$0xff]  ;;  %v6661_v17 = vld [vmem:[#allocation13 + $0x150] sm:$0xff] }
 0xd1d   :  { %9065 = vmatmul.mubr.msk.f32.gmra.mrb[64].mxu0 %vm377_vm10, %v12621_v0  ;;  %v6625_v0 = vld [vmem:[#allocation13 + $0x30] sm:$0xff] }
 0xd1e   :  { %6426 = vmatprep.mubr.f32.mxu0 %v11740_v2 }
 0xd21   :  { %9066 = vmatmul.mubr.msk.f32.gmra.mrb[66].mxu0 %vm377_vm10, %v12626_v41  ;;  %v10408_v41 = vpack.c.bf16 %v6625_v0, %v6623_v34  ;;  %v6663_v0 = vld [vmem:[#allocation13 + $0x160] sm:$0xff]  ;;  %vm12936_vm10 = vcmask 72704  }
 0xd22   :  { %6529 = vmatprep.mubr.f32.mxu0 %v11740_v2 }
 0xde0   :  { %v6333_v13 = vpop.f32.mrb[56].mxu0 }
 0xde1   :  { %v6335_v36 = vpop.f32.mrb[57].mxu0 }
 0xde4   :  { %v6339_v16 = vpop.f32.mrb[58].mxu0 }
 0xde5   :  { %v10396_v20 = vpack.c.bf16 %v6339_v16, %v6333_v13  ;;  %v6341_v57 = vpop.f32.mrb[59].mxu0  ;;  %v6648_v13 = vld [vmem:[#allocation13 + $0xe8] sm:$0xff]  ;;  %v10428_v16 = vpack.c.bf16 %v6645_v9, %v6643_v3  ;;  %v6954_v9 = vld [vmem:[#allocation14 + $0x1c8] sm:$0xff] }
 0xde6   :  { %v10394_v38 = vpack.c.bf16 %v6341_v57, %v6335_v36  ;;  %v6650_v36 = vld [vmem:[#allocation13 + $0xf8] sm:$0xff]  ;;  %v6647_v57 = vld [vmem:[#allocation13 + $0xe0] sm:$0xff] }
 0xde8   :  { %v6345_v43 = vpop.f32.mrb[60].mxu0  ;;  %10395 = vmatprep.subr.bf16.mxu0 %v10394_v38  ;;  %v6649_v38 = vld [vmem:[#allocation13 + $0xf0] sm:$0xff] }
 0xde9   :  { %v6347_v45 = vpop.f32.mrb[61].mxu0  ;;  %10397 = vmatpush1.bf16.msra.mxu0 %v10396_v20  ;;  %v10430_v20 = vpack.c.bf16 %v6650_v36, %v6648_v13  ;;  %v6956_v13 = vld [vmem:[#allocation14 + $0x1d8] sm:$0xff]  ;;  %v6953_v36 = vld [vmem:[#allocation14 + $0x1c0] sm:$0xff] }
 0xdea   :  { %9067 = vmatprep.subr.msk.mxu0 %vm2120_vm11, %v6347_v45  ;;  %v6654_v45 = vld [vmem:[#allocation13 + $0x118] sm:$0xff] }
 0xdec   :  { %v6416_v48 = vpop.f32.mrb[62].mxu0 }
 0xded   :  { %v6418_v59 = vpop.f32.mrb[63].mxu0  ;;  %9068 = vmatpush1.msk.msra.mxu0 %vm2120_vm11, %v6345_v43  ;;  %v6652_v43 = vld [vmem:[#allocation13 + $0x108] sm:$0xff] }
 0xdee   :  { %9069 = vmatmul.mubr.msk.f32.vlgmr.msra.gmra.mrb[68].mxu0 %vm2113_vm12, %v6445_v46 }
 0xdef   :  { %6535 = vmatprep.mubr.f32.mxu0 %v11740_v2 }
 0xdf0   :  { %v6422_v37 = vpop.f32.mrb[64].mxu0 }
 0xdf1   :  { %v10400_v39 = vpack.c.bf16 %v6422_v37, %v6416_v48  ;;  %v6424_v47 = vpop.f32.mrb[65].mxu0  ;;  %v10434_v48 = vpack.c.bf16 %v6654_v45, %v6652_v43  ;;  %v6656_v37 = vld [vmem:[#allocation13 + $0x128] sm:$0xff] }
 0xdf2   :  { %v10398_v53 = vpack.c.bf16 %v6424_v47, %v6418_v59  ;;  %9070 = vmatmul.mubr.msk.f32.gmra.mrb[70].mxu0 %vm2113_vm12, %v6446_v40  ;;  %v6651_v59 = vld [vmem:[#allocation13 + $0x100] sm:$0xff] }
 0xdf3   :  { %6606 = vmatprep.mubr.f32.mxu0 %v11740_v2 }
 0xdf4   :  { %v6428_v50 = vpop.f32.mrb[66].mxu0  ;;  %10399 = vmatprep.subr.bf16.mxu0 %v10398_v53 }
 0xdf5   :  { %v6430_v56 = vpop.f32.mrb[67].mxu0  ;;  %10401 = vmatpush1.bf16.msra.mxu0 %v10400_v39  ;;  %v6658_v39 = vld [vmem:[#allocation13 + $0x138] sm:$0xff] }
 0xdf6   :  { %9071 = vmatprep.subr.msk.mxu0 %vm2120_vm11, %v6430_v56  ;;  %v10438_v53 = vpack.c.bf16 %v6658_v39, %v6656_v37 }
 0xdf9   :  { %9072 = vmatpush1.msk.msra.mxu0 %vm2120_vm11, %v6428_v50  ;;  %v6660_v50 = vld [vmem:[#allocation13 + $0x148] sm:$0xff] }
 0xdfa   :  { %9073 = vmatmul.mubr.msk.f32.vlgmr.msra.gmra.mrb[72].mxu0 %vm2113_vm12, %v6445_v46  ;;  %10403 = vmatprep.subr.bf16.mxu0 %v10402_v61  ;;  %v10432_v46 = vpack.c.bf16 %v6649_v38, %v6647_v57  ;;  %v10442_v56 = vpack.c.bf16 %v6662_v54, %v6660_v50  ;;  %v6664_v61 = vld [vmem:[#allocation13 + $0x168] sm:$0xff]  ;;  %v6958_v57 = vld [vmem:[#allocation14 + $0x1e8] sm:$0xff]  ;;  %v10522_v54 = vpack.c.bf16 %v6968_v49, %v6966_v52 }
 0xdfb   :  { %6612 = vmatprep.mubr.f32.mxu0 %v11740_v2  ;;  %10405 = vmatpush1.bf16.msra.mxu0 %v10404_v62  ;;  %v6666_v62 = vld [vmem:[#allocation13 + $0x178] sm:$0xff]  ;;  %v6960_v38 = vld [vmem:[#allocation14 + $0x1f8] sm:$0xff] }
 0xdfc   :  { %10407 = vmatprep.subr.bf16.mxu0 %v10406_v63  ;;  %v10444_v63 = vpack.c.bf16 %v6661_v17, %v6659_v33  ;;  %v10446_v34 = vpack.c.bf16 %v6666_v62, %v6664_v61  ;;  %v10514_v45 = vpack.c.bf16 %v6960_v38, %v6958_v57  ;;  %v6970_v33 = vld [vmem:[#allocation14 + $0x248] sm:$0xff]  ;;  %v6972_v17 = vld [vmem:[#allocation14 + $0x258] sm:$0xff]  ;;  %v6995_v57 = vld [vmem:[#allocation14 + $0x310] sm:$0xff] }
 0xdfd   :  { %v10526_v62 = vpack.c.bf16 %v6972_v17, %v6970_v33  ;;  %v6998_v38 = vld [vmem:[#allocation14 + $0x328] sm:$0xff]  ;;  %v6692_v33 = vld [vmem:[#allocation13 + $0x248] sm:$0xff] }
 0xdfe   :  { %9074 = vmatmul.mubr.msk.f32.gmra.mrb[74].mxu0 %vm2113_vm12, %v6446_v40  ;;  %v6653_v40 = vld [vmem:[#allocation13 + $0x110] sm:$0xff]  ;;  %v6694_v17 = vld [vmem:[#allocation13 + $0x258] sm:$0xff]  ;;  %vm12938_vm12 = vcmask 56320  }
 0xdff   :  { %10409 = vmatpush1.bf16.msra.mxu0 %v10408_v41  ;;  %v10436_v47 = vpack.c.bf16 %v6653_v40, %v6651_v59  ;;  %v6670_v41 = vld [vmem:[#allocation13 + $0x198] sm:$0xff]  ;;  %v6964_v40 = vld [vmem:[#allocation14 + $0x218] sm:$0xff] }
 0xe00   :  { %10411 = vmatprep.subr.bf16.mxu0 %v10410_v6  ;;  %v10448_v6 = vpack.c.bf16 %v6665_v21, %v6663_v0  ;;  %v10450_v7 = vpack.c.bf16 %v6670_v41, %v6668_v4  ;;  %v6962_v59 = vld [vmem:[#allocation14 + $0x208] sm:$0xff]  ;;  %v6976_v21 = vld [vmem:[#allocation14 + $0x278] sm:$0xff] }
 0xe01   :  { %v10518_v39 = vpack.c.bf16 %v6964_v40, %v6962_v59  ;;  %v6974_v0 = vld [vmem:[#allocation14 + $0x268] sm:$0xff]  ;;  %v6999_v59 = vld [vmem:[#allocation14 + $0x330] sm:$0xff] }
 0xe02   :  { %v10530_v41 = vpack.c.bf16 %v6976_v21, %v6974_v0  ;;  %v6693_v0 = vld [vmem:[#allocation13 + $0x250] sm:$0xff] }
 0xe03   :  { %10413 = vmatpush1.bf16.msra.mxu0 %v10412_v11  ;;  %v6674_v11 = vld [vmem:[#allocation13 + $0x1b8] sm:$0xff] }
 0xe04   :  { %10415 = vmatprep.subr.bf16.mxu0 %v10414_v12  ;;  %v10452_v12 = vpack.c.bf16 %v6669_v8, %v6667_v42  ;;  %v10454_v14 = vpack.c.bf16 %v6674_v11, %v6672_v10  ;;  %v6978_v42 = vld [vmem:[#allocation14 + $0x288] sm:$0xff]  ;;  %v6980_v8 = vld [vmem:[#allocation14 + $0x298] sm:$0xff] }
 0xe05   :  { %v10534_v11 = vpack.c.bf16 %v6980_v8, %v6978_v42  ;;  %v6695_v42 = vld [vmem:[#allocation13 + $0x260] sm:$0xff]  ;;  %v6697_v8 = vld [vmem:[#allocation13 + $0x270] sm:$0xff] }
 0xe07   :  { %10417 = vmatpush1.bf16.msra.mxu0 %v10416_v5  ;;  %v6678_v5 = vld [vmem:[#allocation13 + $0x1d8] sm:$0xff] }
 0xe08   :  { %10419 = vmatprep.subr.bf16.mxu0 %v10418_v22  ;;  %v10456_v22 = vpack.c.bf16 %v6673_v18, %v6671_v15  ;;  %v10458_v23 = vpack.c.bf16 %v6678_v5, %v6676_v19  ;;  %v6982_v15 = vld [vmem:[#allocation14 + $0x2a8] sm:$0xff]  ;;  %v6984_v18 = vld [vmem:[#allocation14 + $0x2b8] sm:$0xff] }
 0xe09   :  { %v10538_v5 = vpack.c.bf16 %v6984_v18, %v6982_v15  ;;  %v6699_v18 = vld [vmem:[#allocation13 + $0x280] sm:$0xff] }
 0xe0b   :  { %10421 = vmatpush1.bf16.msra.mxu0 %v10420_v27  ;;  %v6682_v27 = vld [vmem:[#allocation13 + $0x1f8] sm:$0xff] }
 0xe0c   :  { %10423 = vmatprep.subr.bf16.mxu0 %v10422_v28  ;;  %v10460_v28 = vpack.c.bf16 %v6677_v26, %v6675_v25  ;;  %v10462_v29 = vpack.c.bf16 %v6682_v27, %v6680_v60  ;;  %v6986_v25 = vld [vmem:[#allocation14 + $0x2c8] sm:$0xff]  ;;  %v6988_v26 = vld [vmem:[#allocation14 + $0x2d8] sm:$0xff] }
 0xe0d   :  { %v10542_v27 = vpack.c.bf16 %v6988_v26, %v6986_v25 }
 0xe0f   :  { %10425 = vmatpush1.bf16.msra.mxu0 %v10424_v32  ;;  %v6684_v32 = vld [vmem:[#allocation13 + $0x208] sm:$0xff] }
 0xe10   :  { %10427 = vmatprep.subr.bf16.mxu0 %v10426_v35  ;;  %v6686_v35 = vld [vmem:[#allocation13 + $0x218] sm:$0xff] }
 0xe11   :  { %v10466_v3 = vpack.c.bf16 %v6686_v35, %v6684_v32  ;;  %v10546_v32 = vpack.c.bf16 %v6992_v31, %v6990_v58  ;;  %v6989_v35 = vld [vmem:[#allocation14 + $0x2e0] sm:$0xff]  ;;  %v6708_v58 = vld [vmem:[#allocation13 + $0x2c8] sm:$0xff]  ;;  %v6710_v31 = vld [vmem:[#allocation13 + $0x2d8] sm:$0xff] }
 0xe13   :  { %10429 = vmatpush1.bf16.msra.mxu0 %v10428_v16  ;;  %v10510_v16 = vpack.c.bf16 %v6956_v13, %v6954_v9  ;;  %v6994_v9 = vld [vmem:[#allocation14 + $0x308] sm:$0xff]  ;;  %v6996_v13 = vld [vmem:[#allocation14 + $0x318] sm:$0xff] }
 0xe14   :  { %10431 = vmatprep.subr.bf16.mxu0 %v10430_v20  ;;  %v6955_v20 = vld [vmem:[#allocation14 + $0x1d0] sm:$0xff] }
 0xe15   :  { %v10512_v43 = vpack.c.bf16 %v6955_v20, %v6953_v36  ;;  %10511 = vmatprep.subr.bf16.mxu1 %v10510_v16  ;;  %v10550_v16 = vpack.c.bf16 %v6996_v13, %v6994_v9  ;;  %v6993_v20 = vld [vmem:[#allocation14 + $0x300] sm:$0xff]  ;;  %v6712_v9 = vld [vmem:[#allocation13 + $0x2e8] sm:$0xff]  ;;  %v6714_v13 = vld [vmem:[#allocation13 + $0x2f8] sm:$0xff] }
 0xe17   :  { %10433 = vmatpush1.bf16.msra.mxu0 %v10432_v46  ;;  %v6957_v46 = vld [vmem:[#allocation14 + $0x1e0] sm:$0xff]  ;;  %10513 = vmatpush1.bf16.msra.mxu1 %v10512_v43  ;;  %v7000_v43 = vld [vmem:[#allocation14 + $0x338] sm:$0xff] }
 0xe18   :  { %10435 = vmatprep.subr.bf16.mxu0 %v10434_v48  ;;  %v6959_v48 = vld [vmem:[#allocation14 + $0x1f0] sm:$0xff]  ;;  %10515 = vmatprep.subr.bf16.mxu1 %v10514_v45  ;;  %v10552_v45 = vpack.c.bf16 %v6995_v57, %v6993_v20  ;;  %v6713_v57 = vld [vmem:[#allocation13 + $0x2f0] sm:$0xff] }
 0xe19   :  { %v10516_v37 = vpack.c.bf16 %v6959_v48, %v6957_v46  ;;  %v10554_v46 = vpack.c.bf16 %v7000_v43, %v6998_v38  ;;  %v6997_v48 = vld [vmem:[#allocation14 + $0x320] sm:$0xff]  ;;  %v6711_v20 = vld [vmem:[#allocation13 + $0x2e0] sm:$0xff]  ;;  %v6716_v38 = vld [vmem:[#allocation13 + $0x308] sm:$0xff] }
 0xe1a   :  { %v10556_v40 = vpack.c.bf16 %v6999_v59, %v6997_v48  ;;  %v6718_v43 = vld [vmem:[#allocation13 + $0x318] sm:$0xff]  ;;  %v6715_v48 = vld [vmem:[#allocation13 + $0x300] sm:$0xff]  ;;  %v6717_v59 = vld [vmem:[#allocation13 + $0x310] sm:$0xff] }
 0xe1b   :  { %10437 = vmatpush1.bf16.msra.mxu0 %v10436_v47  ;;  %v6961_v47 = vld [vmem:[#allocation14 + $0x200] sm:$0xff]  ;;  %10517 = vmatpush1.bf16.msra.mxu1 %v10516_v37  ;;  %v6683_v37 = vld [vmem:[#allocation13 + $0x200] sm:$0xff] }
 0xe1c   :  { %10439 = vmatprep.subr.bf16.mxu0 %v10438_v53  ;;  %v6963_v53 = vld [vmem:[#allocation14 + $0x210] sm:$0xff]  ;;  %10519 = vmatprep.subr.bf16.mxu1 %v10518_v39  ;;  %v6685_v39 = vld [vmem:[#allocation13 + $0x210] sm:$0xff] }
 0xe1d   :  { %v10520_v50 = vpack.c.bf16 %v6963_v53, %v6961_v47  ;;  %v6688_v47 = vld [vmem:[#allocation13 + $0x228] sm:$0xff]  ;;  %v6690_v53 = vld [vmem:[#allocation13 + $0x238] sm:$0xff]  ;;  %v10468_v49 = vpack.c.bf16 %v6685_v39, %v6683_v37  ;;  %v10500_v39 = vpack.c.bf16 %v6717_v59, %v6715_v48 }
 0xe1e   :  { %v6722_v37 = vld [vmem:[#allocation13 + $0x338] sm:$0xff]  ;;  %v6916_v59 = vld [vmem:[#allocation14 + $0x98] sm:$0xff] }
 0xe1f   :  { %10441 = vmatpush1.bf16.msra.mxu0 %v10440_v55  ;;  %v6965_v55 = vld [vmem:[#allocation14 + $0x220] sm:$0xff]  ;;  %10521 = vmatpush1.bf16.msra.mxu1 %v10520_v50  ;;  %v6914_v48 = vld [vmem:[#allocation14 + $0x88] sm:$0xff] }
 0xe20   :  { %10443 = vmatprep.subr.bf16.mxu0 %v10442_v56  ;;  %v6967_v56 = vld [vmem:[#allocation14 + $0x230] sm:$0xff]  ;;  %10523 = vmatprep.subr.bf16.mxu1 %v10522_v54  ;;  %v10470_v54 = vpack.c.bf16 %v6690_v53, %v6688_v47 }
 0xe21   :  { %v10524_v61 = vpack.c.bf16 %v6967_v56, %v6965_v55  ;;  %v6687_v55 = vld [vmem:[#allocation13 + $0x220] sm:$0xff]  ;;  %v6689_v56 = vld [vmem:[#allocation13 + $0x230] sm:$0xff] }
 0xe22   :  { %v6719_v53 = vld [vmem:[#allocation13 + $0x320] sm:$0xff] }
 0xe23   :  { %10445 = vmatpush1.bf16.msra.mxu0 %v10444_v63  ;;  %v6969_v63 = vld [vmem:[#allocation14 + $0x240] sm:$0xff]  ;;  %10525 = vmatpush1.bf16.msra.mxu1 %v10524_v61  ;;  %v10472_v61 = vpack.c.bf16 %v6689_v56, %v6687_v55  ;;  %v6723_v56 = vld [vmem:[#allocation13 + $0x340] sm:$0xff] }
 0xe24   :  { %10447 = vmatprep.subr.bf16.mxu0 %v10446_v34  ;;  %v6971_v34 = vld [vmem:[#allocation14 + $0x250] sm:$0xff]  ;;  %10527 = vmatprep.subr.bf16.mxu1 %v10526_v62 }
 0xe25   :  { %v10528_v4 = vpack.c.bf16 %v6971_v34, %v6969_v63  ;;  %v10474_v63 = vpack.c.bf16 %v6694_v17, %v6692_v33  ;;  %v6691_v34 = vld [vmem:[#allocation13 + $0x240] sm:$0xff]  ;;  %v6725_v33 = vld [vmem:[#allocation13 + $0x350] sm:$0xff] }
 0xe26   :  { %v10508_v17 = vpack.c.bf16 %v6725_v33, %v6723_v56  ;;  %v6922_v56 = vld [vmem:[#allocation14 + $0xc8] sm:$0xff]  ;;  %v6924_v33 = vld [vmem:[#allocation14 + $0xd8] sm:$0xff] }
 0xe27   :  { %10449 = vmatpush1.bf16.msra.mxu0 %v10448_v6  ;;  %v6973_v6 = vld [vmem:[#allocation14 + $0x260] sm:$0xff]  ;;  %10529 = vmatpush1.bf16.msra.mxu1 %v10528_v4  ;;  %v6696_v4 = vld [vmem:[#allocation13 + $0x268] sm:$0xff] }
 0xe28   :  { %10451 = vmatprep.subr.bf16.mxu0 %v10450_v7  ;;  %v6975_v7 = vld [vmem:[#allocation14 + $0x270] sm:$0xff]  ;;  %10531 = vmatprep.subr.bf16.mxu1 %v10530_v41  ;;  %v6698_v41 = vld [vmem:[#allocation13 + $0x278] sm:$0xff] }
 0xe29   :  { %v10532_v10 = vpack.c.bf16 %v6975_v7, %v6973_v6  ;;  %v10476_v6 = vpack.c.bf16 %v6693_v0, %v6691_v34  ;;  %v10478_v7 = vpack.c.bf16 %v6698_v41, %v6696_v4  ;;  %v7004_v34 = vld [vmem:[#allocation14 + $0x358] sm:$0xff]  ;;  %v7003_v4 = vld [vmem:[#allocation14 + $0x350] sm:$0xff] }
 0xe2b   :  { %10453 = vmatpush1.bf16.msra.mxu0 %v10452_v12  ;;  %v6977_v12 = vld [vmem:[#allocation14 + $0x280] sm:$0xff]  ;;  %10533 = vmatpush1.bf16.msra.mxu1 %v10532_v10  ;;  %v6700_v10 = vld [vmem:[#allocation13 + $0x288] sm:$0xff] }
 0xe2c   :  { %10455 = vmatprep.subr.bf16.mxu0 %v10454_v14  ;;  %v6979_v14 = vld [vmem:[#allocation14 + $0x290] sm:$0xff]  ;;  %10535 = vmatprep.subr.bf16.mxu1 %v10534_v11  ;;  %v6702_v11 = vld [vmem:[#allocation13 + $0x298] sm:$0xff] }
 0xe2d   :  { %v10536_v19 = vpack.c.bf16 %v6979_v14, %v6977_v12  ;;  %v10480_v12 = vpack.c.bf16 %v6697_v8, %v6695_v42  ;;  %v10482_v15 = vpack.c.bf16 %v6702_v11, %v6700_v10  ;;  %v7005_v8 = vld [vmem:[#allocation14 + $0x360] sm:$0xff]  ;;  %v7007_v10 = vld [vmem:[#allocation14 + $0x370] sm:$0xf] }
 0xe2e   :  { %v10565_v11 = vpack.c.bf16 %v7007_v10, %v7005_v8 }
 0xe2f   :  { %10457 = vmatpush1.bf16.msra.mxu0 %v10456_v22  ;;  %v6981_v22 = vld [vmem:[#allocation14 + $0x2a0] sm:$0xff]  ;;  %10537 = vmatpush1.bf16.msra.mxu1 %v10536_v19 }
 0xe30   :  { %10459 = vmatprep.subr.bf16.mxu0 %v10458_v23  ;;  %v6983_v23 = vld [vmem:[#allocation14 + $0x2b0] sm:$0xff]  ;;  %10539 = vmatprep.subr.bf16.mxu1 %v10538_v5  ;;  %v6701_v19 = vld [vmem:[#allocation13 + $0x290] sm:$0xff] }
 0xe31   :  { %v10540_v60 = vpack.c.bf16 %v6983_v23, %v6981_v22  ;;  %v6704_v22 = vld [vmem:[#allocation13 + $0x2a8] sm:$0xff]  ;;  %v6706_v23 = vld [vmem:[#allocation13 + $0x2b8] sm:$0xff]  ;;  %v10484_v25 = vpack.c.bf16 %v6701_v19, %v6699_v18 }
 0xe33   :  { %10461 = vmatpush1.bf16.msra.mxu0 %v10460_v28  ;;  %v6985_v28 = vld [vmem:[#allocation14 + $0x2c0] sm:$0xff]  ;;  %10541 = vmatpush1.bf16.msra.mxu1 %v10540_v60  ;;  %v10486_v60 = vpack.c.bf16 %v6706_v23, %v6704_v22 }
 0xe34   :  { %10463 = vmatprep.subr.bf16.mxu0 %v10462_v29  ;;  %v6987_v29 = vld [vmem:[#allocation14 + $0x2d0] sm:$0xff]  ;;  %10543 = vmatprep.subr.bf16.mxu1 %v10542_v27  ;;  %v6897_v23 = vld [vmem:[#allocation14] sm:$0xff] }
 0xe35   :  { %v6703_v27 = vld [vmem:[#allocation13 + $0x2a0] sm:$0xff] }
 0xe37   :  { %10465 = vmatpush1.bf16.msra.mxu0 %v10464_v51  ;;  %v10544_v51 = vpack.c.bf16 %v6987_v29, %v6985_v28  ;;  %v6705_v28 = vld [vmem:[#allocation13 + $0x2b0] sm:$0xff] }
 0xe38   :  { %10467 = vmatprep.subr.bf16.mxu0 %v10466_v3  ;;  %v6991_v3 = vld [vmem:[#allocation14 + $0x2f0] sm:$0xff] }
 0xe39   :  { %10545 = vmatpush1.bf16.msra.mxu1 %v10544_v51  ;;  %v10548_v36 = vpack.c.bf16 %v6991_v3, %v6989_v35  ;;  %v10488_v51 = vpack.c.bf16 %v6705_v28, %v6703_v27  ;;  %v6707_v35 = vld [vmem:[#allocation13 + $0x2c0] sm:$0xff]  ;;  %v6709_v3 = vld [vmem:[#allocation13 + $0x2d0] sm:$0xff] }
 0xe3a   :  { %10547 = vmatprep.subr.bf16.mxu1 %v10546_v32  ;;  %v10490_v32 = vpack.c.bf16 %v6710_v31, %v6708_v58  ;;  %v6901_v58 = vld [vmem:[#allocation14 + $0x20] sm:$0xff]  ;;  %v6903_v31 = vld [vmem:[#allocation14 + $0x30] sm:$0xff] }
 0xe3d   :  { %10549 = vmatpush1.bf16.msra.mxu1 %v10548_v36  ;;  %v10492_v36 = vpack.c.bf16 %v6709_v3, %v6707_v35  ;;  %v10574_v35 = vpack.c.bf16 %v6903_v31, %v6901_v58  ;;  %v6939_v58 = vld [vmem:[#allocation14 + $0x150] sm:$0xff]  ;;  %v6942_v31 = vld [vmem:[#allocation14 + $0x168] sm:$0xff] }
 0xe3e   :  { %10551 = vmatprep.subr.bf16.mxu1 %v10550_v16  ;;  %v10494_v16 = vpack.c.bf16 %v6714_v13, %v6712_v9  ;;  %v6905_v13 = vld [vmem:[#allocation14 + $0x40] sm:$0xff] }
 0xe41   :  { %10553 = vmatpush1.bf16.msra.mxu1 %v10552_v45  ;;  %v10496_v45 = vpack.c.bf16 %v6713_v57, %v6711_v20  ;;  %v6910_v20 = vld [vmem:[#allocation14 + $0x68] sm:$0xff]  ;;  %v6912_v57 = vld [vmem:[#allocation14 + $0x78] sm:$0xff] }
 0xe42   :  { %10555 = vmatprep.subr.bf16.mxu1 %v10554_v46  ;;  %v10498_v46 = vpack.c.bf16 %v6718_v43, %v6716_v38  ;;  %v10580_v43 = vpack.c.bf16 %v6912_v57, %v6910_v20  ;;  %v6948_v20 = vld [vmem:[#allocation14 + $0x198] sm:$0xff] }
 0xe45   :  { %10557 = vmatpush1.bf16.msra.mxu1 %v10556_v40  ;;  %v6720_v40 = vld [vmem:[#allocation13 + $0x328] sm:$0xff] }
 0xe46   :  { %v10502_v47 = vpack.c.bf16 %v6722_v37, %v6720_v40  ;;  %v10584_v37 = vpack.c.bf16 %v6916_v59, %v6914_v48  ;;  %v6952_v48 = vld [vmem:[#allocation14 + $0x1b8] sm:$0xf] }
 0xec1   :  { %v6531_v52 = vpop.f32.mrb[68].mxu0 }
 0xec2   :  { %v6533_v50 = vpop.f32.mrb[69].mxu0 }
 0xec3   :  { %6799 = vmatprep.mubr.f32.mxu0 %v6533_v50  ;;  %v6726_v50 = vld [vmem:[#allocation13 + $0x358] sm:$0xff] }
 0xec4   :  { %6800 = vmatmul.mubr.f32.vlgmr.msra.gmra.mrb[76].mxu0 %v6531_v52  ;;  %v6721_v52 = vld [vmem:[#allocation13 + $0x330] sm:$0xff] }
 0xec5   :  { %10469 = vmatpush1.bf16.msra.mxu0 %v10468_v49  ;;  %v6537_v62 = vpop.f32.mrb[70].mxu0  ;;  %v6724_v49 = vld [vmem:[#allocation13 + $0x348] sm:$0xff] }
 0xec6   :  { %10471 = vmatprep.subr.bf16.mxu0 %v10470_v54  ;;  %v6539_v21 = vpop.f32.mrb[71].mxu0  ;;  %v10504_v54 = vpack.c.bf16 %v6721_v52, %v6719_v53  ;;  %v10506_v55 = vpack.c.bf16 %v6726_v50, %v6724_v49  ;;  %v6918_v53 = vld [vmem:[#allocation14 + $0xa8] sm:$0xff]  ;;  %v6920_v52 = vld [vmem:[#allocation14 + $0xb8] sm:$0xff] }
 0xec7   :  { %6805 = vmatprep.mubr.f32.mxu0 %v6539_v21  ;;  %v7001_v21 = vld [vmem:[#allocation14 + $0x340] sm:$0xff]  ;;  %v10588_v50 = vpack.c.bf16 %v6920_v52, %v6918_v53  ;;  %v7184_v53 = vld [vmem:[#allocation14 + $0x398] sm:$0xff] }
 0xec8   :  { %6806 = vmatmul.mubr.f32.gmra.mrb[78].mxu0 %v6537_v62  ;;  %v6727_v62 = vld [vmem:[#allocation13 + $0x360] sm:$0xff]  ;;  %v10560_v41 = vpack.c.bf16 %v7003_v4, %v7001_v21 }
 0xec9   :  { %10473 = vmatpush1.bf16.msra.mxu0 %v10472_v61  ;;  %v6728_v61 = vld [vmem:[#allocation13 + $0x368] sm:$0xff] }
 0xeca   :  { %10475 = vmatprep.subr.bf16.mxu0 %v10474_v63  ;;  %v7002_v63 = vld [vmem:[#allocation14 + $0x348] sm:$0xff] }
 0xecb   :  { %v10558_v0 = vpack.c.bf16 %v7004_v34, %v7002_v63  ;;  %v6923_v63 = vld [vmem:[#allocation14 + $0xd0] sm:$0xff]  ;;  %v6926_v34 = vld [vmem:[#allocation14 + $0xe8] sm:$0xff] }
 0xecd   :  { %10477 = vmatpush1.bf16.msra.mxu0 %v10476_v6  ;;  %v12687_v14 = vpop.f32.mrb[72].mxu0  ;;  %10559 = vmatprep.subr.bf16.mxu1 %v10558_v0  ;;  %v7006_v6 = vld [vmem:[#allocation14 + $0x368] sm:$0xff]  ;;  %v6928_v0 = vld [vmem:[#allocation14 + $0xf8] sm:$0xff] }
 0xece   :  { %10479 = vmatprep.subr.bf16.mxu0 %v10478_v7  ;;  %v6610_v5 = vpop.f32.mrb[73].mxu0  ;;  %10561 = vmatpush1.bf16.msra.mxu1 %v10560_v41  ;;  %v7008_v7 = vld [vmem:[#allocation14 + $0x378] sm:$0xf]  ;;  %v10596_v4 = vpack.c.bf16 %v6928_v0, %v6926_v34  ;;  %v6925_v41 = vld [vmem:[#allocation14 + $0xe0] sm:$0xff] }
 0xecf   :  { %9075 = vmatprep.mubr.msk.f32.mxu0 %vm2397_vm13, %v6610_v5  ;;  %v10562_v42 = vpack.c.bf16 %v7008_v7, %v7006_v6  ;;  %v6927_v6 = vld [vmem:[#allocation14 + $0xf0] sm:$0xff]  ;;  %v6930_v7 = vld [vmem:[#allocation14 + $0x108] sm:$0xff]  ;;  %v7192_v34 = vld [vmem:[#allocation14 + $0x3d8] sm:$0xff] }
 0xed0   :  { %v10598_v8 = vpack.c.bf16 %v6927_v6, %v6925_v41  ;;  %v7191_v41 = vld [vmem:[#allocation14 + $0x3d0] sm:$0xff]  ;;  %v7194_v6 = vld [vmem:[#allocation14 + $0x3e8] sm:$0xff] }
 0xed1   :  { %10481 = vmatpush1.bf16.msra.mxu0 %v10480_v12  ;;  %v6614_v26 = vpop.f32.mrb[74].mxu0  ;;  %10564 = vmatprep.subr.msk.bf16.mxu1 %vm12239_vm1, %v10562_v42  ;;  %v6898_v12 = vld [vmem:[#allocation14 + $0x8] sm:$0xff]  ;;  %v6932_v42 = vld [vmem:[#allocation14 + $0x118] sm:$0xff] }
 0xed2   :  { %10483 = vmatprep.subr.bf16.mxu0 %v10482_v15  ;;  %v6616_v29 = vpop.f32.mrb[75].mxu0  ;;  %10567 = vmatpush1.bf16.msk.msra.mxu1 %vm12239_vm1, %v10565_v11  ;;  %v10600_v10 = vpack.c.bf16 %v6932_v42, %v6930_v7  ;;  %v6929_v11 = vld [vmem:[#allocation14 + $0x100] sm:$0xff]  ;;  %v7196_v7 = vld [vmem:[#allocation14 + $0x3f8] sm:$0xff] }
 0xed5   :  { %10485 = vmatpush1.bf16.msra.mxu0 %v10484_v25  ;;  %v6899_v25 = vld [vmem:[#allocation14 + $0x10] sm:$0xff] }
 0xed6   :  { %10487 = vmatprep.subr.bf16.mxu0 %v10486_v60  ;;  %v6904_v60 = vld [vmem:[#allocation14 + $0x38] sm:$0xff]  ;;  %v10570_v27 = vpack.c.bf16 %v6899_v25, %v6897_v23  ;;  %v6935_v23 = vld [vmem:[#allocation14 + $0x130] sm:$0xff]  ;;  %v6938_v25 = vld [vmem:[#allocation14 + $0x148] sm:$0xff] }
 0xed9   :  { %10489 = vmatpush1.bf16.msra.mxu0 %v10488_v51  ;;  %v6906_v51 = vld [vmem:[#allocation14 + $0x48] sm:$0xff] }
 0xeda   :  { %10491 = vmatprep.subr.bf16.mxu0 %v10490_v32  ;;  %v6908_v32 = vld [vmem:[#allocation14 + $0x58] sm:$0xff] }
 0xedb   :  { %v10576_v9 = vpack.c.bf16 %v6908_v32, %v6906_v51  ;;  %v6944_v51 = vld [vmem:[#allocation14 + $0x178] sm:$0xff] }
 0xedd   :  { %10493 = vmatpush1.bf16.msra.mxu0 %v10492_v36  ;;  %v6907_v36 = vld [vmem:[#allocation14 + $0x50] sm:$0xff] }
 0xede   :  { %10495 = vmatprep.subr.bf16.mxu0 %v10494_v16  ;;  %v10578_v38 = vpack.c.bf16 %v6907_v36, %v6905_v13  ;;  %v6943_v13 = vld [vmem:[#allocation14 + $0x170] sm:$0xff]  ;;  %v6946_v36 = vld [vmem:[#allocation14 + $0x188] sm:$0xff] }
 0xee1   :  { %10497 = vmatpush1.bf16.msra.mxu0 %v10496_v45  ;;  %v6909_v45 = vld [vmem:[#allocation14 + $0x60] sm:$0xff] }
 0xee2   :  { %10499 = vmatprep.subr.bf16.mxu0 %v10498_v46  ;;  %v6911_v46 = vld [vmem:[#allocation14 + $0x70] sm:$0xff] }
 0xee3   :  { %v10582_v40 = vpack.c.bf16 %v6911_v46, %v6909_v45  ;;  %v6947_v45 = vld [vmem:[#allocation14 + $0x190] sm:$0xff]  ;;  %v6950_v46 = vld [vmem:[#allocation14 + $0x1a8] sm:$0xff] }
 0xee5   :  { %10501 = vmatpush1.bf16.msra.mxu0 %v10500_v39  ;;  %v6913_v39 = vld [vmem:[#allocation14 + $0x80] sm:$0xff] }
 0xee6   :  { %10503 = vmatprep.subr.bf16.mxu0 %v10502_v47  ;;  %v6915_v47 = vld [vmem:[#allocation14 + $0x90] sm:$0xff] }
 0xee7   :  { %v10586_v49 = vpack.c.bf16 %v6915_v47, %v6913_v39  ;;  %v6951_v39 = vld [vmem:[#allocation14 + $0x1b0] sm:$0xf]  ;;  %v7182_v47 = vld [vmem:[#allocation14 + $0x388] sm:$0xff] }
 0xee9   :  { %10505 = vmatpush1.bf16.msra.mxu0 %v10504_v54  ;;  %v6917_v54 = vld [vmem:[#allocation14 + $0xa0] sm:$0xff] }
 0xeea   :  { %10507 = vmatprep.subr.bf16.mxu0 %v10506_v55  ;;  %v6919_v55 = vld [vmem:[#allocation14 + $0xb0] sm:$0xff] }
 0xeed   :  { %10509 = vmatpush1.bf16.msra.mxu0 %v10508_v17  ;;  %v10590_v17 = vpack.c.bf16 %v6919_v55, %v6917_v54  ;;  %v7183_v54 = vld [vmem:[#allocation14 + $0x390] sm:$0xff]  ;;  %v7186_v55 = vld [vmem:[#allocation14 + $0x3a8] sm:$0xff] }
 0xeee   :  { %6856 = vmatprep.subr.mxu0 %v6728_v61  ;;  %v10592_v61 = vpack.c.bf16 %v6924_v33, %v6922_v56  ;;  %v7188_v56 = vld [vmem:[#allocation14 + $0x3b8] sm:$0xff] }
 0xef1   :  { %6857 = vmatpush1.msra.mxu0 %v6727_v62  ;;  %v6921_v62 = vld [vmem:[#allocation14 + $0xc0] sm:$0xff] }
 0xef2   :  { %6877 = vmatmul.mubr.f32.vlgmr.msra.gmra.mrb[76].mxu0 %v12687_v14  ;;  %v6900_v14 = vld [vmem:[#allocation14 + $0x18] sm:$0xff]  ;;  %v10594_v21 = vpack.c.bf16 %v6923_v63, %v6921_v62  ;;  %v7187_v62 = vld [vmem:[#allocation14 + $0x3b0] sm:$0xff]  ;;  %v7190_v63 = vld [vmem:[#allocation14 + $0x3c8] sm:$0xff] }
 0xef3   :  { %9076 = vmatprep.mubr.msk.f32.mxu0 %vm2397_vm13, %v6616_v29  ;;  %v10568_v15 = vpack.c.bf16 %v6900_v14, %v6898_v12  ;;  %v6931_v12 = vld [vmem:[#allocation14 + $0x110] sm:$0xff]  ;;  %v6934_v14 = vld [vmem:[#allocation14 + $0x128] sm:$0xff]  ;;  %vm12939_vm13 = vcmask 486400  }
 0xef5   :  { %10569 = vmatprep.subr.bf16.mxu1 %v10568_v15  ;;  %v6936_v15 = vld [vmem:[#allocation14 + $0x138] sm:$0xff] }
 0xef6   :  { %6883 = vmatmul.mubr.f32.gmra.mrb[78].mxu0 %v6614_v26  ;;  %v6902_v26 = vld [vmem:[#allocation14 + $0x28] sm:$0xff] }
 0xef7   :  { %8296 = vmatprep.mubr.f32.mxu0 %v11740_v2  ;;  %v10572_v29 = vpack.c.bf16 %v6904_v60, %v6902_v26  ;;  %v6940_v26 = vld [vmem:[#allocation14 + $0x158] sm:$0xff] }
 0xfc5   :  { %v12697_v18 = vpop.f32.mrb[76].mxu0 }
 0xfc6   :  { %6889 = vst [vmem:[#allocation3] sm:$0xff] %v12697_v18  ;;  %v6880_v19 = vpop.f32.mrb[77].mxu0 }
 0xfc7   :  { %6890 = vst.msk [vmem:[#allocation3 + $0x8] sm:$0xff] %vm2559_vm2, %v6880_v19  ;;  %v10602_v19 = vpack.c.bf16 %v6931_v12, %v6929_v11  ;;  %v7195_v11 = vld [vmem:[#allocation14 + $0x3f0] sm:$0xff]  ;;  %v7198_v12 = vld [vmem:[#allocation14 + $0x408] sm:$0xff] }
 0xfc9   :  { %v6884_v5 = vpop.f32.mrb[78].mxu0 }
 0xfca   :  { %6891 = vst [vmem:[#allocation3 + $0x10] sm:$0x7] %v6884_v5  ;;  %v6886_v22 = vpop.f32.mrb[79].mxu0  ;;  %v10604_v5 = vpack.c.bf16 %v6936_v15, %v6934_v14  ;;  %v7200_v14 = vld [vmem:[#allocation14 + $0x418] sm:$0xff] }
 0xfcb   :  { %6892 = vst.msk [vmem:[#allocation3 + $0x18] sm:$0x7] %vm2562_vm3, %v6886_v22  ;;  %v6933_v22 = vld [vmem:[#allocation14 + $0x120] sm:$0xff] }
 0xfcc   :  { %v10606_v60 = vpack.c.bf16 %v6935_v23, %v6933_v22  ;;  %v7199_v22 = vld [vmem:[#allocation14 + $0x410] sm:$0xff]  ;;  %v7202_v23 = vld [vmem:[#allocation14 + $0x428] sm:$0xff] }
 0xfce   :  { %v12702_v28 = vld [vmem:[#allocation3 + $0x8] sm:$0xff] }
 0xfcf   :  { %9079 = vmatprep.mubr.msk.f32.mxu1 %vm2559_vm2, %v12702_v28 }
 0xfd0   :  { %7086 = vmatmul.mubr.f32.vlgmr.msra.gmra.mrb[14].mxu1 %v12697_v18 }
 0xfd1   :  { %10571 = vmatpush1.bf16.msra.mxu1 %v10570_v27  ;;  %v12711_v16 = vld [vmem:[#allocation3 + $0x10] sm:$0x1]  ;;  %v10608_v27 = vpack.c.bf16 %v6940_v26, %v6938_v25  ;;  %v7204_v25 = vld [vmem:[#allocation14 + $0x438] sm:$0xff] }
 0xfd2   :  { %v12707_v3 = vld [vmem:[#allocation3 + $0x18] sm:$0x1]  ;;  %10573 = vmatprep.subr.bf16.mxu1 %v10572_v29  ;;  %v6937_v29 = vld [vmem:[#allocation14 + $0x140] sm:$0xff] }
 0xfd3   :  { %9080 = vmatprep.mubr.msk.f32.mxu1 %vm2559_vm2, %v12707_v3  ;;  %v10610_v32 = vpack.c.bf16 %v6939_v58, %v6937_v29  ;;  %v7206_v29 = vld [vmem:[#allocation14 + $0x448] sm:$0xff]  ;;  %v7208_v58 = vld [vmem:[#allocation14 + $0x458] sm:$0xff] }
 0xfd4   :  { %7092 = vmatmul.mubr.f32.gmra.mrb[16].mxu1 %v12711_v16 }
 0xfd5   :  { %10575 = vmatpush1.bf16.msra.mxu1 %v10574_v35  ;;  %9083 = vmatprep.mubr.msk.f32.mxu1 %vm2559_vm2, %v12702_v28  ;;  %v10612_v35 = vpack.c.bf16 %v6944_v51, %v6942_v31  ;;  %v10650_v51 = vpack.c.bf16 %v7208_v58, %v7206_v29  ;;  %v7327_v58 = vld [vmem:[#allocation3 + $0x18] sm:$0x3] }
 0xfd6   :  { %10577 = vmatprep.subr.bf16.mxu1 %v10576_v9  ;;  %v6941_v9 = vld [vmem:[#allocation14 + $0x160] sm:$0xff] }
 0xfd7   :  { %v10614_v57 = vpack.c.bf16 %v6943_v13, %v6941_v9  ;;  %v7210_v9 = vld [vmem:[#allocation14 + $0x468] sm:$0xff]  ;;  %v7212_v13 = vld [vmem:[#allocation14 + $0x478] sm:$0xff] }
 0xfd9   :  { %10579 = vmatpush1.bf16.msra.mxu1 %v10578_v38  ;;  %v10616_v38 = vpack.c.bf16 %v6948_v20, %v6946_v36  ;;  %v10654_v20 = vpack.c.bf16 %v7212_v13, %v7210_v9  ;;  %v7337_v9 = vld [vmem:[#allocation14 + $0x588] sm:$0xff]  ;;  %v7339_v13 = vld [vmem:[#allocation14 + $0x598] sm:$0xff] }
 0xfda   :  { %10581 = vmatprep.subr.bf16.mxu1 %v10580_v43  ;;  %v6945_v43 = vld [vmem:[#allocation14 + $0x180] sm:$0xff] }
 0xfdb   :  { %v10618_v59 = vpack.c.bf16 %v6947_v45, %v6945_v43  ;;  %v7214_v43 = vld [vmem:[#allocation14 + $0x488] sm:$0xff]  ;;  %v7216_v45 = vld [vmem:[#allocation14 + $0x498] sm:$0xff] }
 0xfdd   :  { %10583 = vmatpush1.bf16.msra.mxu1 %v10582_v40  ;;  %v10620_v40 = vpack.c.bf16 %v6952_v48, %v6950_v46  ;;  %v10658_v48 = vpack.c.bf16 %v7216_v45, %v7214_v43  ;;  %v7336_v43 = vld [vmem:[#allocation14 + $0x580] sm:$0xff]  ;;  %v7338_v45 = vld [vmem:[#allocation14 + $0x590] sm:$0xff] }
 0xfde   :  { %10585 = vmatprep.subr.bf16.mxu1 %v10584_v37  ;;  %v6949_v37 = vld [vmem:[#allocation14 + $0x1a0] sm:$0xff] }
 0xfdf   :  { %v10623_v52 = vpack.c.bf16 %v6951_v39, %v6949_v37  ;;  %v7218_v37 = vld [vmem:[#allocation14 + $0x4a8] sm:$0xff]  ;;  %v7220_v39 = vld [vmem:[#allocation14 + $0x4b8] sm:$0xff] }
 0xfe1   :  { %10587 = vmatpush1.bf16.msra.mxu1 %v10586_v49  ;;  %v10626_v49 = vpack.c.bf16 %v7184_v53, %v7182_v47  ;;  %v10662_v53 = vpack.c.bf16 %v7220_v39, %v7218_v37  ;;  %v7342_v37 = vld [vmem:[#allocation14 + $0x5b0] sm:$0xff]  ;;  %v7345_v39 = vld [vmem:[#allocation14 + $0x5c8] sm:$0xff] }
 0xfe2   :  { %10589 = vmatprep.subr.bf16.mxu1 %v10588_v50  ;;  %v7181_v50 = vld [vmem:[#allocation14 + $0x380] sm:$0xff] }
 0xfe3   :  { %v10628_v33 = vpack.c.bf16 %v7183_v54, %v7181_v50  ;;  %v7222_v50 = vld [vmem:[#allocation14 + $0x4c8] sm:$0xff]  ;;  %v7224_v54 = vld [vmem:[#allocation14 + $0x4d8] sm:$0xff] }
 0xfe5   :  { %10591 = vmatpush1.bf16.msra.mxu1 %v10590_v17  ;;  %v10630_v17 = vpack.c.bf16 %v7188_v56, %v7186_v55  ;;  %v10666_v56 = vpack.c.bf16 %v7224_v54, %v7222_v50  ;;  %v7349_v50 = vld [vmem:[#allocation14 + $0x5e8] sm:$0xff]  ;;  %v7351_v54 = vld [vmem:[#allocation14 + $0x5f8] sm:$0xff] }
 0xfe6   :  { %10593 = vmatprep.subr.bf16.mxu1 %v10592_v61  ;;  %v7185_v61 = vld [vmem:[#allocation14 + $0x3a0] sm:$0xff] }
 0xfe7   :  { %v10632_v0 = vpack.c.bf16 %v7187_v62, %v7185_v61  ;;  %v7226_v61 = vld [vmem:[#allocation14 + $0x4e8] sm:$0xff]  ;;  %v7228_v62 = vld [vmem:[#allocation14 + $0x4f8] sm:$0xff] }
 0xfe9   :  { %10595 = vmatpush1.bf16.msra.mxu1 %v10594_v21  ;;  %v10634_v21 = vpack.c.bf16 %v7192_v34, %v7190_v63  ;;  %v10670_v34 = vpack.c.bf16 %v7228_v62, %v7226_v61  ;;  %v7353_v61 = vld [vmem:[#allocation14 + $0x608] sm:$0xff]  ;;  %v7355_v62 = vld [vmem:[#allocation14 + $0x618] sm:$0xff] }
 0xfea   :  { %10597 = vmatprep.subr.bf16.mxu1 %v10596_v4  ;;  %v7189_v4 = vld [vmem:[#allocation14 + $0x3c0] sm:$0xff] }
 0xfeb   :  { %v10636_v42 = vpack.c.bf16 %v7191_v41, %v7189_v4  ;;  %v7230_v4 = vld [vmem:[#allocation14 + $0x508] sm:$0xff]  ;;  %v7232_v41 = vld [vmem:[#allocation14 + $0x518] sm:$0xff] }
 0xfed   :  { %10599 = vmatpush1.bf16.msra.mxu1 %v10598_v8  ;;  %v10638_v8 = vpack.c.bf16 %v7196_v7, %v7194_v6  ;;  %v10674_v7 = vpack.c.bf16 %v7232_v41, %v7230_v4  ;;  %v7357_v4 = vld [vmem:[#allocation14 + $0x628] sm:$0xff]  ;;  %v7359_v41 = vld [vmem:[#allocation14 + $0x638] sm:$0xff] }
 0xfee   :  { %10601 = vmatprep.subr.bf16.mxu1 %v10600_v10  ;;  %v7193_v10 = vld [vmem:[#allocation14 + $0x3e0] sm:$0xff] }
 0xfef   :  { %v10640_v15 = vpack.c.bf16 %v7195_v11, %v7193_v10  ;;  %v7234_v10 = vld [vmem:[#allocation14 + $0x528] sm:$0xff]  ;;  %v7236_v11 = vld [vmem:[#allocation14 + $0x538] sm:$0xf] }
 0xff1   :  { %10603 = vmatpush1.bf16.msra.mxu1 %v10602_v19  ;;  %v10642_v19 = vpack.c.bf16 %v7200_v14, %v7198_v12  ;;  %v10678_v14 = vpack.c.bf16 %v7236_v11, %v7234_v10  ;;  %v7361_v10 = vld [vmem:[#allocation14 + $0x648] sm:$0xff]  ;;  %v7363_v11 = vld [vmem:[#allocation14 + $0x658] sm:$0xff] }
 0xff2   :  { %10605 = vmatprep.subr.bf16.mxu1 %v10604_v5  ;;  %v7197_v5 = vld [vmem:[#allocation14 + $0x400] sm:$0xff] }
 0xff3   :  { %v10644_v26 = vpack.c.bf16 %v7199_v22, %v7197_v5  ;;  %v7329_v5 = vld [vmem:[#allocation14 + $0x548] sm:$0xff]  ;;  %v7331_v22 = vld [vmem:[#allocation14 + $0x558] sm:$0xff] }
 0xff5   :  { %10607 = vmatpush1.bf16.msra.mxu1 %v10606_v60  ;;  %v10646_v60 = vpack.c.bf16 %v7204_v25, %v7202_v23  ;;  %v10684_v25 = vpack.c.bf16 %v7331_v22, %v7329_v5  ;;  %v7365_v5 = vld [vmem:[#allocation14 + $0x668] sm:$0xff]  ;;  %v7367_v22 = vld [vmem:[#allocation14 + $0x678] sm:$0xff] }
 0xff6   :  { %10609 = vmatprep.subr.bf16.mxu1 %v10608_v27  ;;  %v7203_v27 = vld [vmem:[#allocation14 + $0x430] sm:$0xff] }
 0xff9   :  { %10611 = vmatpush1.bf16.msra.mxu1 %v10610_v32  ;;  %v7205_v32 = vld [vmem:[#allocation14 + $0x440] sm:$0xff] }
 0xffa   :  { %10613 = vmatprep.subr.bf16.mxu1 %v10612_v35  ;;  %v7207_v35 = vld [vmem:[#allocation14 + $0x450] sm:$0xff] }
 0xffb   :  { %v10652_v36 = vpack.c.bf16 %v7207_v35, %v7205_v32  ;;  %v7334_v32 = vld [vmem:[#allocation14 + $0x570] sm:$0xff] }
 0xffc   :  { %v7325_v35 = vld [vmem:[#allocation3 + $0x8] sm:$0xfe] }
 0xffd   :  { %10615 = vmatpush1.bf16.msra.mxu1 %v10614_v57  ;;  %v7209_v57 = vld [vmem:[#allocation14 + $0x460] sm:$0xff] }
 0xffe   :  { %10617 = vmatprep.subr.bf16.mxu1 %v10616_v38  ;;  %v7211_v38 = vld [vmem:[#allocation14 + $0x470] sm:$0xff] }
 0xfff   :  { %v10656_v46 = vpack.c.bf16 %v7211_v38, %v7209_v57  ;;  %v7391_v57 = vrot.slane %v7325_v35, 1  ;;  %v10692_v38 = vpack.c.bf16 %v7339_v13, %v7337_v9  ;;  %v7375_v35 = vld [vmem:[#allocation14 + $0x6b8] sm:$0xff] }
0x1001   :  { %10619 = vmatpush1.bf16.msra.mxu1 %v10618_v59  ;;  %v7213_v59 = vld [vmem:[#allocation14 + $0x480] sm:$0xff] }
0x1002   :  { %10622 = vmatprep.subr.msk.bf16.mxu1 %vm12239_vm1, %v10620_v40  ;;  %v7215_v40 = vld [vmem:[#allocation14 + $0x490] sm:$0xff] }
0x1003   :  { %v10660_v47 = vpack.c.bf16 %v7215_v40, %v7213_v59  ;;  %v7340_v40 = vld [vmem:[#allocation14 + $0x5a0] sm:$0xff] }
0x1005   :  { %10625 = vmatpush1.bf16.msk.msra.mxu1 %vm12239_vm1, %v10623_v52  ;;  %v7217_v52 = vld [vmem:[#allocation14 + $0x4a0] sm:$0xff] }
0x1006   :  { %10627 = vmatprep.subr.bf16.mxu1 %v10626_v49  ;;  %v7219_v49 = vld [vmem:[#allocation14 + $0x4b0] sm:$0xff] }
0x1007   :  { %v10664_v55 = vpack.c.bf16 %v7219_v49, %v7217_v52  ;;  %v7346_v49 = vld [vmem:[#allocation14 + $0x5d0] sm:$0xff] }
0x1008   :  { %7169 = vmatmul.mubr.f32.vlgmr.msra.gmra.mrb[14].mxu1 %v12697_v18 }
0x1009   :  { %9084 = vmatprep.mubr.msk.f32.mxu1 %vm2559_vm2, %v12707_v3  ;;  %10629 = vmatpush1.bf16.msra.mxu1 %v10628_v33  ;;  %v7221_v33 = vld [vmem:[#allocation14 + $0x4c0] sm:$0xff] }
0x100a   :  { %10631 = vmatprep.subr.bf16.mxu1 %v10630_v17  ;;  %v7223_v17 = vld [vmem:[#allocation14 + $0x4d0] sm:$0xff] }
0x100b   :  { %v10668_v63 = vpack.c.bf16 %v7223_v17, %v7221_v33  ;;  %v7348_v33 = vld [vmem:[#allocation14 + $0x5e0] sm:$0xff]  ;;  %v7350_v17 = vld [vmem:[#allocation14 + $0x5f0] sm:$0xff] }
0x100c   :  { %7175 = vmatmul.mubr.f32.gmra.mrb[16].mxu1 %v12711_v16 }
0x100d   :  { %10633 = vmatpush1.bf16.msra.mxu1 %v10632_v0  ;;  %9087 = vmatprep.mubr.msk.f32.mxu1 %vm2559_vm2, %v12702_v28  ;;  %v7201_v28 = vld [vmem:[#allocation14 + $0x420] sm:$0xff] }
0x100e   :  { %10635 = vmatprep.subr.bf16.mxu1 %v10634_v21  ;;  %v10648_v31 = vpack.c.bf16 %v7203_v27, %v7201_v28  ;;  %v7225_v0 = vld [vmem:[#allocation14 + $0x4e0] sm:$0xff]  ;;  %v7227_v21 = vld [vmem:[#allocation14 + $0x4f0] sm:$0xff]  ;;  %v7333_v28 = vld [vmem:[#allocation14 + $0x568] sm:$0xff] }
0x100f   :  { %v10672_v6 = vpack.c.bf16 %v7227_v21, %v7225_v0  ;;  %v7335_v27 = vld [vmem:[#allocation14 + $0x578] sm:$0xff]  ;;  %v7352_v0 = vld [vmem:[#allocation14 + $0x600] sm:$0xff]  ;;  %v7354_v21 = vld [vmem:[#allocation14 + $0x610] sm:$0xff] }
0x1011   :  { %10637 = vmatpush1.bf16.msra.mxu1 %v10636_v42  ;;  %v7229_v42 = vld [vmem:[#allocation14 + $0x500] sm:$0xff] }
0x1012   :  { %10639 = vmatprep.subr.bf16.mxu1 %v10638_v8  ;;  %v7231_v8 = vld [vmem:[#allocation14 + $0x510] sm:$0xff] }
0x1013   :  { %v10676_v12 = vpack.c.bf16 %v7231_v8, %v7229_v42  ;;  %v7356_v42 = vld [vmem:[#allocation14 + $0x620] sm:$0xff]  ;;  %v7358_v8 = vld [vmem:[#allocation14 + $0x630] sm:$0xff] }
0x1015   :  { %10641 = vmatpush1.bf16.msra.mxu1 %v10640_v15  ;;  %v7233_v15 = vld [vmem:[#allocation14 + $0x520] sm:$0xff] }
0x1016   :  { %10643 = vmatprep.subr.bf16.mxu1 %v10642_v19  ;;  %v7235_v19 = vld [vmem:[#allocation14 + $0x530] sm:$0xf] }
0x1017   :  { %v10681_v23 = vpack.c.bf16 %v7235_v19, %v7233_v15  ;;  %v7360_v15 = vld [vmem:[#allocation14 + $0x640] sm:$0xff]  ;;  %v7362_v19 = vld [vmem:[#allocation14 + $0x650] sm:$0xff] }
0x1019   :  { %10645 = vmatpush1.bf16.msra.mxu1 %v10644_v26  ;;  %v7328_v26 = vld [vmem:[#allocation14 + $0x540] sm:$0xff] }
0x101a   :  { %10647 = vmatprep.subr.bf16.mxu1 %v10646_v60  ;;  %v7330_v60 = vld [vmem:[#allocation14 + $0x550] sm:$0xff] }
0x101b   :  { %v10686_v29 = vpack.c.bf16 %v7330_v60, %v7328_v26  ;;  %v7364_v26 = vld [vmem:[#allocation14 + $0x660] sm:$0xff]  ;;  %v7366_v60 = vld [vmem:[#allocation14 + $0x670] sm:$0xff] }
0x101d   :  { %10649 = vmatpush1.bf16.msra.mxu1 %v10648_v31  ;;  %v10688_v31 = vpack.c.bf16 %v7335_v27, %v7333_v28  ;;  %v7369_v28 = vld [vmem:[#allocation14 + $0x688] sm:$0xff]  ;;  %v7371_v27 = vld [vmem:[#allocation14 + $0x698] sm:$0xff] }
0x101e   :  { %10651 = vmatprep.subr.bf16.mxu1 %v10650_v51  ;;  %v7332_v51 = vld [vmem:[#allocation14 + $0x560] sm:$0xff] }
0x1021   :  { %10653 = vmatpush1.bf16.msra.mxu1 %v10652_v36  ;;  %v12731_v36 = vrot.slane %v7327_v58, 1  ;;  %v10724_v58 = vpack.c.bf16 %v7371_v27, %v7369_v28  ;;  %v7503_v28 = vld [vmem:[#allocation14 + $0x780] sm:$0xff]  ;;  %v7505_v27 = vld [vmem:[#allocation14 + $0x790] sm:$0xff] }
0x1022   :  { %10655 = vmatprep.subr.bf16.mxu1 %v10654_v20  ;;  %v10690_v20 = vpack.c.bf16 %v7334_v32, %v7332_v51  ;;  %v7370_v51 = vld [vmem:[#allocation14 + $0x690] sm:$0xff]  ;;  %v7373_v32 = vld [vmem:[#allocation14 + $0x6a8] sm:$0xff] }
0x1023   :  { %v12738_v59 = vsel %vm12934_vm5, %v7391_v57, %v12731_v36  ;;  %v10728_v13 = vpack.c.bf16 %v7375_v35, %v7373_v32  ;;  %v7374_v57 = vld [vmem:[#allocation14 + $0x6b0] sm:$0xff]  ;;  %v7507_v32 = vld [vmem:[#allocation14 + $0x7a0] sm:$0xff] }
0x1024   :  { %v7509_v35 = vld [vmem:[#allocation14 + $0x7b0] sm:$0xff] }
0x1025   :  { %10657 = vmatpush1.bf16.msra.mxu1 %v10656_v46  ;;  %v7341_v46 = vld [vmem:[#allocation14 + $0x5a8] sm:$0xff] }
0x1026   :  { %10659 = vmatprep.subr.bf16.mxu1 %v10658_v48  ;;  %v7343_v48 = vld [vmem:[#allocation14 + $0x5b8] sm:$0xff] }
0x1029   :  { %10661 = vmatpush1.bf16.msra.mxu1 %v10660_v47  ;;  %v7347_v47 = vld [vmem:[#allocation14 + $0x5d8] sm:$0xff] }
0x102a   :  { %10663 = vmatprep.subr.bf16.mxu1 %v10662_v53  ;;  %v10698_v53 = vpack.c.bf16 %v7342_v37, %v7340_v40  ;;  %v10700_v52 = vpack.c.bf16 %v7347_v47, %v7345_v39  ;;  %v7383_v40 = vld [vmem:[#allocation14 + $0x6f8] sm:$0xf]  ;;  %v7380_v47 = vld [vmem:[#allocation14 + $0x6e0] sm:$0xff] }
0x102d   :  { %10665 = vmatpush1.bf16.msra.mxu1 %v10664_v55 }
0x102e   :  { %10667 = vmatprep.subr.bf16.mxu1 %v10666_v56  ;;  %v10704_v56 = vpack.c.bf16 %v7351_v54, %v7349_v50  ;;  %v7324_v54 = vld [vmem:[#allocation3] sm:$0xfe] }
0x1031   :  { %10669 = vmatpush1.bf16.msra.mxu1 %v10668_v63  ;;  %v10706_v63 = vpack.c.bf16 %v7350_v17, %v7348_v33  ;;  %v7489_v33 = vld [vmem:[#allocation14 + $0x710] sm:$0xff] }
0x1032   :  { %10671 = vmatprep.subr.bf16.mxu1 %v10670_v34  ;;  %v10708_v34 = vpack.c.bf16 %v7355_v62, %v7353_v61  ;;  %v7492_v61 = vld [vmem:[#allocation14 + $0x728] sm:$0xff]  ;;  %v7494_v62 = vld [vmem:[#allocation14 + $0x738] sm:$0xff] }
0x1035   :  { %10673 = vmatpush1.bf16.msra.mxu1 %v10672_v6  ;;  %v10710_v6 = vpack.c.bf16 %v7354_v21, %v7352_v0  ;;  %v10746_v0 = vpack.c.bf16 %v7494_v62, %v7492_v61  ;;  %v7491_v21 = vld [vmem:[#allocation14 + $0x720] sm:$0xff]  ;;  %v7528_v61 = vld [vmem:[#allocation14 + $0x848] sm:$0xff]  ;;  %v7530_v62 = vld [vmem:[#allocation14 + $0x858] sm:$0xff] }
0x1036   :  { %10675 = vmatprep.subr.bf16.mxu1 %v10674_v7  ;;  %v10712_v7 = vpack.c.bf16 %v7359_v41, %v7357_v4  ;;  %v7493_v4 = vld [vmem:[#allocation14 + $0x730] sm:$0xff] }
0x1039   :  { %10677 = vmatpush1.bf16.msra.mxu1 %v10676_v12  ;;  %v10714_v12 = vpack.c.bf16 %v7358_v8, %v7356_v42  ;;  %v10748_v42 = vpack.c.bf16 %v7493_v4, %v7491_v21  ;;  %v7529_v21 = vld [vmem:[#allocation14 + $0x850] sm:$0xff]  ;;  %v7532_v4 = vld [vmem:[#allocation14 + $0x868] sm:$0xff] }
0x103a   :  { %10680 = vmatprep.subr.msk.bf16.mxu1 %vm12239_vm1, %v10678_v14  ;;  %v10716_v14 = vpack.c.bf16 %v7363_v11, %v7361_v10  ;;  %v7495_v10 = vld [vmem:[#allocation14 + $0x740] sm:$0xff]  ;;  %v7497_v11 = vld [vmem:[#allocation14 + $0x750] sm:$0xff] }
0x103d   :  { %10683 = vmatpush1.bf16.msk.msra.mxu1 %vm12239_vm1, %v10681_v23  ;;  %v10718_v23 = vpack.c.bf16 %v7362_v19, %v7360_v15  ;;  %v10752_v15 = vpack.c.bf16 %v7497_v11, %v7495_v10  ;;  %v7533_v10 = vld [vmem:[#allocation14 + $0x870] sm:$0xff]  ;;  %v7536_v11 = vld [vmem:[#allocation14 + $0x888] sm:$0xff] }
0x103e   :  { %10685 = vmatprep.subr.bf16.mxu1 %v10684_v25  ;;  %v10720_v25 = vpack.c.bf16 %v7367_v22, %v7365_v5  ;;  %v7499_v5 = vld [vmem:[#allocation14 + $0x760] sm:$0xff]  ;;  %v7501_v22 = vld [vmem:[#allocation14 + $0x770] sm:$0xff] }
0x1040   :  { %7308 = vmatmul.mubr.f32.vlgmr.msra.gmra.mrb[14].mxu1 %v12697_v18  ;;  %v10694_v18 = vpack.c.bf16 %v7338_v45, %v7336_v43  ;;  %v7379_v43 = vld [vmem:[#allocation14 + $0x6d8] sm:$0xff] }
0x1041   :  { %9088 = vmatprep.mubr.msk.f32.mxu1 %vm2559_vm2, %v12707_v3  ;;  %10687 = vmatpush1.bf16.msra.mxu1 %v10686_v29  ;;  %v10696_v3 = vpack.c.bf16 %v7343_v48, %v7341_v46  ;;  %v10722_v29 = vpack.c.bf16 %v7366_v60, %v7364_v26  ;;  %v7376_v48 = vld [vmem:[#allocation14 + $0x6c0] sm:$0xff]  ;;  %v10756_v26 = vpack.c.bf16 %v7501_v22, %v7499_v5  ;;  %v7537_v5 = vld [vmem:[#allocation14 + $0x890] sm:$0xff]  ;;  %v7540_v22 = vld [vmem:[#allocation14 + $0x8a8] sm:$0xff] }
0x1042   :  { %10689 = vmatprep.subr.bf16.mxu1 %v10688_v31  ;;  %v7368_v31 = vld [vmem:[#allocation14 + $0x680] sm:$0xff] }
0x1043   :  { %v10726_v9 = vpack.c.bf16 %v7370_v51, %v7368_v31  ;;  %v10760_v31 = vpack.c.bf16 %v7505_v27, %v7503_v28  ;;  %v7541_v28 = vld [vmem:[#allocation14 + $0x8b0] sm:$0xf]  ;;  %v7631_v27 = vld [vmem:[#allocation14 + $0x8c8] sm:$0xff] }
0x1044   :  { %7314 = vmatmul.mubr.f32.gmra.mrb[16].mxu1 %v12711_v16  ;;  %v7344_v16 = vld [vmem:[#allocation14 + $0x5c0] sm:$0xff] }
0x1045   :  { %10691 = vmatpush1.bf16.msra.mxu1 %v10690_v20  ;;  %9091 = vmatprep.mubr.msk.f32.mxu1 %vm2559_vm2, %v12738_v59  ;;  %v10702_v55 = vpack.c.bf16 %v7346_v49, %v7344_v16  ;;  %v7372_v20 = vld [vmem:[#allocation14 + $0x6a0] sm:$0xff]  ;;  %v7490_v16 = vld [vmem:[#allocation14 + $0x718] sm:$0xff]  ;;  %v7326_v49 = vld [vmem:[#allocation3 + $0x10] sm:$0x3] }
0x1046   :  { %10693 = vmatprep.subr.bf16.mxu1 %v10692_v38  ;;  %v7377_v38 = vld [vmem:[#allocation14 + $0x6c8] sm:$0xff]  ;;  %v10730_v45 = vpack.c.bf16 %v7374_v57, %v7372_v20  ;;  %v12744_v17 = vrot.slane %v7326_v49, 1  ;;  %v10764_v20 = vpack.c.bf16 %v7509_v35, %v7507_v32  ;;  %v7632_v32 = vld [vmem:[#allocation14 + $0x8d0] sm:$0xff] }
0x1047   :  { %v10732_v46 = vpack.c.bf16 %v7379_v43, %v7377_v38  ;;  %v7511_v38 = vld [vmem:[#allocation14 + $0x7c0] sm:$0xff]  ;;  %v7513_v43 = vld [vmem:[#allocation14 + $0x7d0] sm:$0xff]  ;;  %v7524_v49 = vld [vmem:[#allocation14 + $0x828] sm:$0xff] }
0x1048   :  { %v7635_v35 = vld [vmem:[#allocation14 + $0x8e8] sm:$0xff] }
0x1049   :  { %10695 = vmatpush1.bf16.msra.mxu1 %v10694_v18  ;;  %v7378_v18 = vld [vmem:[#allocation14 + $0x6d0] sm:$0xff] }
0x104a   :  { %10697 = vmatprep.subr.bf16.mxu1 %v10696_v3  ;;  %v7381_v3 = vld [vmem:[#allocation14 + $0x6e8] sm:$0xff]  ;;  %v10734_v37 = vpack.c.bf16 %v7378_v18, %v7376_v48  ;;  %v10768_v48 = vpack.c.bf16 %v7513_v43, %v7511_v38  ;;  %v7636_v38 = vld [vmem:[#allocation14 + $0x8f0] sm:$0xff] }
0x104b   :  { %v10736_v39 = vpack.c.bf16 %v7383_v40, %v7381_v3  ;;  %v7515_v3 = vld [vmem:[#allocation14 + $0x7e0] sm:$0xff]  ;;  %v7517_v40 = vld [vmem:[#allocation14 + $0x7f0] sm:$0xff]  ;;  %v7639_v43 = vld [vmem:[#allocation14 + $0x908] sm:$0xff] }
0x104d   :  { %10699 = vmatpush1.bf16.msra.mxu1 %v10698_v53  ;;  %v7382_v53 = vld [vmem:[#allocation14 + $0x6f0] sm:$0xf] }
0x104e   :  { %10701 = vmatprep.subr.bf16.mxu1 %v10700_v52  ;;  %v7488_v52 = vld [vmem:[#allocation14 + $0x708] sm:$0xff]  ;;  %v10739_v50 = vpack.c.bf16 %v7382_v53, %v7380_v47  ;;  %v10772_v47 = vpack.c.bf16 %v7517_v40, %v7515_v3  ;;  %v7640_v3 = vld [vmem:[#allocation14 + $0x910] sm:$0xff] }
0x104f   :  { %v7643_v40 = vld [vmem:[#allocation14 + $0x928] sm:$0xff] }
0x1051   :  { %10703 = vmatpush1.bf16.msra.mxu1 %v10702_v55  ;;  %v10742_v55 = vpack.c.bf16 %v7490_v16, %v7488_v52  ;;  %v7519_v52 = vld [vmem:[#allocation14 + $0x800] sm:$0xff]  ;;  %v7521_v16 = vld [vmem:[#allocation14 + $0x810] sm:$0xff] }
0x1052   :  { %10705 = vmatprep.subr.bf16.mxu1 %v10704_v56  ;;  %v7487_v56 = vld [vmem:[#allocation14 + $0x700] sm:$0xff] }
0x1055   :  { %10707 = vmatpush1.bf16.msra.mxu1 %v10706_v63  ;;  %v7388_v63 = vrot.slane %v7324_v54, 1  ;;  %v10776_v54 = vpack.c.bf16 %v7521_v16, %v7519_v52  ;;  %v7644_v52 = vld [vmem:[#allocation14 + $0x930] sm:$0xff]  ;;  %v7647_v16 = vld [vmem:[#allocation14 + $0x948] sm:$0xff] }
0x1056   :  { %10709 = vmatprep.subr.bf16.mxu1 %v10708_v34  ;;  %v10744_v34 = vpack.c.bf16 %v7489_v33, %v7487_v56  ;;  %v7523_v56 = vld [vmem:[#allocation14 + $0x820] sm:$0xff]  ;;  %v7525_v33 = vld [vmem:[#allocation14 + $0x830] sm:$0xff] }
0x1057   :  { %v12750_v41 = vsel %vm12935_vm9, %v7388_v63, %v12744_v17  ;;  %v10780_v63 = vpack.c.bf16 %v7525_v33, %v7523_v56  ;;  %v7648_v56 = vld [vmem:[#allocation14 + $0x950] sm:$0xff]  ;;  %v7651_v33 = vld [vmem:[#allocation14 + $0x968] sm:$0xff] }
0x1059   :  { %10711 = vmatpush1.bf16.msra.mxu1 %v10710_v6  ;;  %v7496_v6 = vld [vmem:[#allocation14 + $0x748] sm:$0xff] }
0x105a   :  { %10713 = vmatprep.subr.bf16.mxu1 %v10712_v7  ;;  %v7498_v7 = vld [vmem:[#allocation14 + $0x758] sm:$0xff] }
0x105b   :  { %v10750_v8 = vpack.c.bf16 %v7498_v7, %v7496_v6  ;;  %v7534_v6 = vld [vmem:[#allocation14 + $0x878] sm:$0xff] }
0x105d   :  { %10715 = vmatpush1.bf16.msra.mxu1 %v10714_v12  ;;  %v7500_v12 = vld [vmem:[#allocation14 + $0x768] sm:$0xff] }
0x105e   :  { %10717 = vmatprep.subr.bf16.mxu1 %v10716_v14  ;;  %v7502_v14 = vld [vmem:[#allocation14 + $0x778] sm:$0xff] }
0x105f   :  { %v10754_v19 = vpack.c.bf16 %v7502_v14, %v7500_v12  ;;  %v7538_v12 = vld [vmem:[#allocation14 + $0x898] sm:$0xff] }
0x1061   :  { %10719 = vmatpush1.bf16.msra.mxu1 %v10718_v23  ;;  %v7504_v23 = vld [vmem:[#allocation14 + $0x788] sm:$0xff] }
0x1062   :  { %10721 = vmatprep.subr.bf16.mxu1 %v10720_v25  ;;  %v7506_v25 = vld [vmem:[#allocation14 + $0x798] sm:$0xff] }
0x1063   :  { %v10758_v60 = vpack.c.bf16 %v7506_v25, %v7504_v23  ;;  %v7542_v23 = vld [vmem:[#allocation14 + $0x8b8] sm:$0xf] }
0x1065   :  { %10723 = vmatpush1.bf16.msra.mxu1 %v10722_v29  ;;  %v7508_v29 = vld [vmem:[#allocation14 + $0x7a8] sm:$0xff] }
0x1066   :  { %10725 = vmatprep.subr.bf16.mxu1 %v10724_v58  ;;  %v7510_v58 = vld [vmem:[#allocation14 + $0x7b8] sm:$0xff] }
0x1067   :  { %v10762_v51 = vpack.c.bf16 %v7510_v58, %v7508_v29  ;;  %v7633_v29 = vld [vmem:[#allocation14 + $0x8d8] sm:$0xff] }
0x1069   :  { %10727 = vmatpush1.bf16.msra.mxu1 %v10726_v9  ;;  %v7512_v9 = vld [vmem:[#allocation14 + $0x7c8] sm:$0xff] }
0x106a   :  { %10729 = vmatprep.subr.bf16.mxu1 %v10728_v13  ;;  %v7514_v13 = vld [vmem:[#allocation14 + $0x7d8] sm:$0xff] }
0x106b   :  { %v10766_v57 = vpack.c.bf16 %v7514_v13, %v7512_v9  ;;  %v7637_v9 = vld [vmem:[#allocation14 + $0x8f8] sm:$0xff] }
0x106d   :  { %10731 = vmatpush1.bf16.msra.mxu1 %v10730_v45  ;;  %v7516_v45 = vld [vmem:[#allocation14 + $0x7e8] sm:$0xff] }
0x106e   :  { %10733 = vmatprep.subr.bf16.mxu1 %v10732_v46  ;;  %v7518_v46 = vld [vmem:[#allocation14 + $0x7f8] sm:$0xff] }
0x106f   :  { %v10770_v18 = vpack.c.bf16 %v7518_v46, %v7516_v45  ;;  %v7641_v45 = vld [vmem:[#allocation14 + $0x918] sm:$0xff] }
0x1071   :  { %10735 = vmatpush1.bf16.msra.mxu1 %v10734_v37  ;;  %v7520_v37 = vld [vmem:[#allocation14 + $0x808] sm:$0xff] }
0x1072   :  { %10738 = vmatprep.subr.msk.bf16.mxu1 %vm12239_vm1, %v10736_v39  ;;  %v7522_v39 = vld [vmem:[#allocation14 + $0x818] sm:$0xff] }
0x1073   :  { %v10774_v53 = vpack.c.bf16 %v7522_v39, %v7520_v37  ;;  %v7645_v37 = vld [vmem:[#allocation14 + $0x938] sm:$0xff] }
0x1075   :  { %10741 = vmatpush1.bf16.msk.msra.mxu1 %vm12239_vm1, %v10739_v50  ;;  %v7526_v50 = vld [vmem:[#allocation14 + $0x838] sm:$0xff] }
0x1076   :  { %10743 = vmatprep.subr.bf16.mxu1 %v10742_v55  ;;  %v10778_v55 = vpack.c.bf16 %v7526_v50, %v7524_v49  ;;  %v7649_v49 = vld [vmem:[#allocation14 + $0x958] sm:$0xff] }
0x1078   :  { %7471 = vmatmul.mubr.f32.vlgmr.msra.gmra.mrb[14].mxu1 %v12750_v41 }
0x1079   :  { %9092 = vmatprep.mubr.msk.f32.mxu1 %vm2559_vm2, %v12731_v36  ;;  %10745 = vmatpush1.bf16.msra.mxu1 %v10744_v34  ;;  %v10782_v34 = vpack.c.bf16 %v7530_v62, %v7528_v61  ;;  %v7653_v61 = vld [vmem:[#allocation14 + $0x978] sm:$0xff] }
0x107a   :  { %10747 = vmatprep.subr.bf16.mxu1 %v10746_v0  ;;  %v7527_v0 = vld [vmem:[#allocation14 + $0x840] sm:$0xff] }
0x107b   :  { %v10784_v7 = vpack.c.bf16 %v7529_v21, %v7527_v0  ;;  %v7655_v0 = vld [vmem:[#allocation14 + $0x988] sm:$0xff]  ;;  %v7657_v21 = vld [vmem:[#allocation14 + $0x998] sm:$0xff] }
0x107c   :  { %7477 = vmatmul.mubr.f32.gmra.mrb[16].mxu1 %v12744_v17 }
0x107d   :  { %10749 = vmatpush1.bf16.msra.mxu1 %v10748_v42  ;;  %9095 = vmatprep.mubr.msk.f32.mxu1 %vm2559_vm2, %v12738_v59  ;;  %v10786_v42 = vpack.c.bf16 %v7534_v6, %v7532_v4  ;;  %v10824_v6 = vpack.c.bf16 %v7657_v21, %v7655_v0  ;;  %v7776_v21 = vld [vmem:[#allocation3 + $0x18] sm:$0x7] }
0x107e   :  { %10751 = vmatprep.subr.bf16.mxu1 %v10750_v8  ;;  %v7531_v8 = vld [vmem:[#allocation14 + $0x860] sm:$0xff] }
0x107f   :  { %v10788_v14 = vpack.c.bf16 %v7533_v10, %v7531_v8  ;;  %v7659_v8 = vld [vmem:[#allocation14 + $0x9a8] sm:$0xff]  ;;  %v7661_v10 = vld [vmem:[#allocation14 + $0x9b8] sm:$0xff] }
0x1081   :  { %10753 = vmatpush1.bf16.msra.mxu1 %v10752_v15  ;;  %v10790_v15 = vpack.c.bf16 %v7538_v12, %v7536_v11  ;;  %v10828_v12 = vpack.c.bf16 %v7661_v10, %v7659_v8  ;;  %v7786_v8 = vld [vmem:[#allocation14 + $0xac8] sm:$0xff]  ;;  %v7788_v10 = vld [vmem:[#allocation14 + $0xad8] sm:$0xff] }
0x1082   :  { %10755 = vmatprep.subr.bf16.mxu1 %v10754_v19  ;;  %v7535_v19 = vld [vmem:[#allocation14 + $0x880] sm:$0xff] }
0x1083   :  { %v10792_v25 = vpack.c.bf16 %v7537_v5, %v7535_v19  ;;  %v7663_v19 = vld [vmem:[#allocation14 + $0x9c8] sm:$0xff]  ;;  %v7665_v5 = vld [vmem:[#allocation14 + $0x9d8] sm:$0xff] }
0x1085   :  { %10757 = vmatpush1.bf16.msra.mxu1 %v10756_v26  ;;  %v10794_v26 = vpack.c.bf16 %v7542_v23, %v7540_v22  ;;  %v10832_v23 = vpack.c.bf16 %v7665_v5, %v7663_v19  ;;  %v7785_v19 = vld [vmem:[#allocation14 + $0xac0] sm:$0xff]  ;;  %v7787_v5 = vld [vmem:[#allocation14 + $0xad0] sm:$0xff] }
0x1086   :  { %10759 = vmatprep.subr.bf16.mxu1 %v10758_v60  ;;  %v7539_v60 = vld [vmem:[#allocation14 + $0x8a0] sm:$0xff] }
0x1087   :  { %v10797_v58 = vpack.c.bf16 %v7541_v28, %v7539_v60  ;;  %v7667_v60 = vld [vmem:[#allocation14 + $0x9e8] sm:$0xff]  ;;  %v7669_v28 = vld [vmem:[#allocation14 + $0x9f8] sm:$0xff] }
0x1089   :  { %10761 = vmatpush1.bf16.msra.mxu1 %v10760_v31  ;;  %v10800_v31 = vpack.c.bf16 %v7633_v29, %v7631_v27  ;;  %v10836_v29 = vpack.c.bf16 %v7669_v28, %v7667_v60  ;;  %v7791_v60 = vld [vmem:[#allocation14 + $0xaf0] sm:$0xff]  ;;  %v7794_v28 = vld [vmem:[#allocation14 + $0xb08] sm:$0xff] }
0x108a   :  { %10763 = vmatprep.subr.bf16.mxu1 %v10762_v51  ;;  %v7630_v51 = vld [vmem:[#allocation14 + $0x8c0] sm:$0xff] }
0x108b   :  { %v10802_v13 = vpack.c.bf16 %v7632_v32, %v7630_v51  ;;  %v7671_v51 = vld [vmem:[#allocation14 + $0xa08] sm:$0xff]  ;;  %v7673_v32 = vld [vmem:[#allocation14 + $0xa18] sm:$0xff] }
0x108d   :  { %10765 = vmatpush1.bf16.msra.mxu1 %v10764_v20  ;;  %v10804_v20 = vpack.c.bf16 %v7637_v9, %v7635_v35  ;;  %v10840_v9 = vpack.c.bf16 %v7673_v32, %v7671_v51  ;;  %v7798_v51 = vld [vmem:[#allocation14 + $0xb28] sm:$0xff]  ;;  %v7800_v32 = vld [vmem:[#allocation14 + $0xb38] sm:$0xff] }
0x108e   :  { %10767 = vmatprep.subr.bf16.mxu1 %v10766_v57  ;;  %v7634_v57 = vld [vmem:[#allocation14 + $0x8e0] sm:$0xff] }
0x108f   :  { %v10806_v46 = vpack.c.bf16 %v7636_v38, %v7634_v57  ;;  %v7675_v57 = vld [vmem:[#allocation14 + $0xa28] sm:$0xff]  ;;  %v7677_v38 = vld [vmem:[#allocation14 + $0xa38] sm:$0xff] }
0x1091   :  { %10769 = vmatpush1.bf16.msra.mxu1 %v10768_v48  ;;  %v10808_v48 = vpack.c.bf16 %v7641_v45, %v7639_v43  ;;  %v10844_v45 = vpack.c.bf16 %v7677_v38, %v7675_v57  ;;  %v7802_v57 = vld [vmem:[#allocation14 + $0xb48] sm:$0xff]  ;;  %v7804_v38 = vld [vmem:[#allocation14 + $0xb58] sm:$0xff] }
0x1092   :  { %10771 = vmatprep.subr.bf16.mxu1 %v10770_v18  ;;  %v7638_v18 = vld [vmem:[#allocation14 + $0x900] sm:$0xff] }
0x1093   :  { %v10810_v39 = vpack.c.bf16 %v7640_v3, %v7638_v18  ;;  %v7679_v18 = vld [vmem:[#allocation14 + $0xa48] sm:$0xff]  ;;  %v7681_v3 = vld [vmem:[#allocation14 + $0xa58] sm:$0xff] }
0x1095   :  { %10773 = vmatpush1.bf16.msra.mxu1 %v10772_v47  ;;  %v10812_v47 = vpack.c.bf16 %v7645_v37, %v7643_v40  ;;  %v10848_v37 = vpack.c.bf16 %v7681_v3, %v7679_v18  ;;  %v7806_v18 = vld [vmem:[#allocation14 + $0xb68] sm:$0xff]  ;;  %v7808_v3 = vld [vmem:[#allocation14 + $0xb78] sm:$0xff] }
0x1096   :  { %10775 = vmatprep.subr.bf16.mxu1 %v10774_v53  ;;  %v7642_v53 = vld [vmem:[#allocation14 + $0x920] sm:$0xff] }
0x1097   :  { %v10814_v50 = vpack.c.bf16 %v7644_v52, %v7642_v53  ;;  %v7683_v53 = vld [vmem:[#allocation14 + $0xa68] sm:$0xff]  ;;  %v7685_v52 = vld [vmem:[#allocation14 + $0xa78] sm:$0xf] }
0x1099   :  { %10777 = vmatpush1.bf16.msra.mxu1 %v10776_v54  ;;  %v10816_v54 = vpack.c.bf16 %v7649_v49, %v7647_v16  ;;  %v10852_v49 = vpack.c.bf16 %v7685_v52, %v7683_v53  ;;  %v7810_v53 = vld [vmem:[#allocation14 + $0xb88] sm:$0xff]  ;;  %v7812_v52 = vld [vmem:[#allocation14 + $0xb98] sm:$0xff] }
0x109a   :  { %10779 = vmatprep.subr.bf16.mxu1 %v10778_v55  ;;  %v7646_v55 = vld [vmem:[#allocation14 + $0x940] sm:$0xff] }
0x109b   :  { %v10818_v62 = vpack.c.bf16 %v7648_v56, %v7646_v55  ;;  %v7778_v55 = vld [vmem:[#allocation14 + $0xa88] sm:$0xff]  ;;  %v7780_v56 = vld [vmem:[#allocation14 + $0xa98] sm:$0xff] }
0x109d   :  { %10781 = vmatpush1.bf16.msra.mxu1 %v10780_v63  ;;  %v10820_v63 = vpack.c.bf16 %v7653_v61, %v7651_v33  ;;  %v10858_v61 = vpack.c.bf16 %v7780_v56, %v7778_v55  ;;  %v7814_v55 = vld [vmem:[#allocation14 + $0xba8] sm:$0xff]  ;;  %v7816_v56 = vld [vmem:[#allocation14 + $0xbb8] sm:$0xff] }
0x109e   :  { %10783 = vmatprep.subr.bf16.mxu1 %v10782_v34  ;;  %v7652_v34 = vld [vmem:[#allocation14 + $0x970] sm:$0xff] }
0x10a1   :  { %10785 = vmatpush1.bf16.msra.mxu1 %v10784_v7  ;;  %v7654_v7 = vld [vmem:[#allocation14 + $0x980] sm:$0xff] }
0x10a2   :  { %10787 = vmatprep.subr.bf16.mxu1 %v10786_v42  ;;  %v7656_v42 = vld [vmem:[#allocation14 + $0x990] sm:$0xff] }
0x10a3   :  { %v10826_v11 = vpack.c.bf16 %v7656_v42, %v7654_v7  ;;  %v7783_v7 = vld [vmem:[#allocation14 + $0xab0] sm:$0xff] }
0x10a4   :  { %v7774_v42 = vld [vmem:[#allocation3 + $0x8] sm:$0xfc] }
0x10a5   :  { %10789 = vmatpush1.bf16.msra.mxu1 %v10788_v14  ;;  %v7658_v14 = vld [vmem:[#allocation14 + $0x9a0] sm:$0xff] }
0x10a6   :  { %10791 = vmatprep.subr.bf16.mxu1 %v10790_v15  ;;  %v7660_v15 = vld [vmem:[#allocation14 + $0x9b0] sm:$0xff] }
0x10a7   :  { %v10830_v22 = vpack.c.bf16 %v7660_v15, %v7658_v14  ;;  %v7840_v14 = vrot.slane %v7774_v42, 2  ;;  %v10866_v15 = vpack.c.bf16 %v7788_v10, %v7786_v8  ;;  %v7824_v42 = vld [vmem:[#allocation14 + $0xbf8] sm:$0xff] }
0x10a9   :  { %10793 = vmatpush1.bf16.msra.mxu1 %v10792_v25  ;;  %v7662_v25 = vld [vmem:[#allocation14 + $0x9c0] sm:$0xff] }
0x10aa   :  { %10796 = vmatprep.subr.msk.bf16.mxu1 %vm12239_vm1, %v10794_v26  ;;  %v7664_v26 = vld [vmem:[#allocation14 + $0x9d0] sm:$0xff] }
0x10ab   :  { %v10834_v27 = vpack.c.bf16 %v7664_v26, %v7662_v25  ;;  %v7789_v26 = vld [vmem:[#allocation14 + $0xae0] sm:$0xff] }
0x10ad   :  { %10799 = vmatpush1.bf16.msk.msra.mxu1 %vm12239_vm1, %v10797_v58  ;;  %v7666_v58 = vld [vmem:[#allocation14 + $0x9e0] sm:$0xff] }
0x10ae   :  { %10801 = vmatprep.subr.bf16.mxu1 %v10800_v31  ;;  %v7668_v31 = vld [vmem:[#allocation14 + $0x9f0] sm:$0xff] }
0x10af   :  { %v10838_v35 = vpack.c.bf16 %v7668_v31, %v7666_v58  ;;  %v7795_v31 = vld [vmem:[#allocation14 + $0xb10] sm:$0xff] }
0x10b0   :  { %7614 = vmatmul.mubr.f32.vlgmr.msra.gmra.mrb[14].mxu1 %v12750_v41 }
0x10b1   :  { %9096 = vmatprep.mubr.msk.f32.mxu1 %vm2559_vm2, %v12731_v36  ;;  %10803 = vmatpush1.bf16.msra.mxu1 %v10802_v13  ;;  %v7670_v13 = vld [vmem:[#allocation14 + $0xa00] sm:$0xff] }
0x10b2   :  { %10805 = vmatprep.subr.bf16.mxu1 %v10804_v20  ;;  %v7672_v20 = vld [vmem:[#allocation14 + $0xa10] sm:$0xff] }
0x10b3   :  { %v10842_v43 = vpack.c.bf16 %v7672_v20, %v7670_v13  ;;  %v7797_v13 = vld [vmem:[#allocation14 + $0xb20] sm:$0xff]  ;;  %v7799_v20 = vld [vmem:[#allocation14 + $0xb30] sm:$0xff] }
0x10b4   :  { %7620 = vmatmul.mubr.f32.gmra.mrb[16].mxu1 %v12744_v17 }
0x10b5   :  { %10807 = vmatpush1.bf16.msra.mxu1 %v10806_v46  ;;  %9099 = vmatprep.mubr.msk.f32.mxu1 %vm2559_vm2, %v12738_v59  ;;  %v7650_v59 = vld [vmem:[#allocation14 + $0x960] sm:$0xff] }
0x10b6   :  { %10809 = vmatprep.subr.bf16.mxu1 %v10808_v48  ;;  %v10822_v4 = vpack.c.bf16 %v7652_v34, %v7650_v59  ;;  %v7674_v46 = vld [vmem:[#allocation14 + $0xa20] sm:$0xff]  ;;  %v7676_v48 = vld [vmem:[#allocation14 + $0xa30] sm:$0xff]  ;;  %v7782_v59 = vld [vmem:[#allocation14 + $0xaa8] sm:$0xff] }
0x10b7   :  { %v10846_v40 = vpack.c.bf16 %v7676_v48, %v7674_v46  ;;  %v7784_v34 = vld [vmem:[#allocation14 + $0xab8] sm:$0xff]  ;;  %v7801_v46 = vld [vmem:[#allocation14 + $0xb40] sm:$0xff]  ;;  %v7803_v48 = vld [vmem:[#allocation14 + $0xb50] sm:$0xff] }
0x10b9   :  { %10811 = vmatpush1.bf16.msra.mxu1 %v10810_v39  ;;  %v7678_v39 = vld [vmem:[#allocation14 + $0xa40] sm:$0xff] }
0x10ba   :  { %10813 = vmatprep.subr.bf16.mxu1 %v10812_v47  ;;  %v7680_v47 = vld [vmem:[#allocation14 + $0xa50] sm:$0xff] }
0x10bb   :  { %v10850_v16 = vpack.c.bf16 %v7680_v47, %v7678_v39  ;;  %v7805_v39 = vld [vmem:[#allocation14 + $0xb60] sm:$0xff]  ;;  %v7807_v47 = vld [vmem:[#allocation14 + $0xb70] sm:$0xff] }
0x10bd   :  { %10815 = vmatpush1.bf16.msra.mxu1 %v10814_v50  ;;  %v7682_v50 = vld [vmem:[#allocation14 + $0xa60] sm:$0xff] }
0x10be   :  { %10817 = vmatprep.subr.bf16.mxu1 %v10816_v54  ;;  %v7684_v54 = vld [vmem:[#allocation14 + $0xa70] sm:$0xf] }
0x10bf   :  { %v10855_v33 = vpack.c.bf16 %v7684_v54, %v7682_v50  ;;  %v7809_v50 = vld [vmem:[#allocation14 + $0xb80] sm:$0xff]  ;;  %v7811_v54 = vld [vmem:[#allocation14 + $0xb90] sm:$0xff] }
0x10c1   :  { %10819 = vmatpush1.bf16.msra.mxu1 %v10818_v62  ;;  %v7777_v62 = vld [vmem:[#allocation14 + $0xa80] sm:$0xff] }
0x10c2   :  { %10821 = vmatprep.subr.bf16.mxu1 %v10820_v63  ;;  %v7779_v63 = vld [vmem:[#allocation14 + $0xa90] sm:$0xff] }
0x10c3   :  { %v10860_v0 = vpack.c.bf16 %v7779_v63, %v7777_v62  ;;  %v7813_v62 = vld [vmem:[#allocation14 + $0xba0] sm:$0xff]  ;;  %v7815_v63 = vld [vmem:[#allocation14 + $0xbb0] sm:$0xff] }
0x10c5   :  { %10823 = vmatpush1.bf16.msra.mxu1 %v10822_v4  ;;  %v10862_v4 = vpack.c.bf16 %v7784_v34, %v7782_v59  ;;  %v7818_v59 = vld [vmem:[#allocation14 + $0xbc8] sm:$0xff]  ;;  %v7820_v34 = vld [vmem:[#allocation14 + $0xbd8] sm:$0xff] }
0x10c6   :  { %10825 = vmatprep.subr.bf16.mxu1 %v10824_v6  ;;  %v7781_v6 = vld [vmem:[#allocation14 + $0xaa0] sm:$0xff] }
0x10c9   :  { %10827 = vmatpush1.bf16.msra.mxu1 %v10826_v11  ;;  %v12773_v11 = vrot.slane %v7776_v21, 2  ;;  %v10898_v21 = vpack.c.bf16 %v7820_v34, %v7818_v59  ;;  %v7952_v59 = vld [vmem:[#allocation14 + $0xcc0] sm:$0xff]  ;;  %v7954_v34 = vld [vmem:[#allocation14 + $0xcd0] sm:$0xff] }
0x10ca   :  { %10829 = vmatprep.subr.bf16.mxu1 %v10828_v12  ;;  %v10864_v12 = vpack.c.bf16 %v7783_v7, %v7781_v6  ;;  %v7819_v6 = vld [vmem:[#allocation14 + $0xbd0] sm:$0xff]  ;;  %v7822_v7 = vld [vmem:[#allocation14 + $0xbe8] sm:$0xff] }
0x10cb   :  { %v12780_v25 = vsel %vm2120_vm11, %v7840_v14, %v12773_v11  ;;  %v10902_v10 = vpack.c.bf16 %v7824_v42, %v7822_v7  ;;  %v7823_v14 = vld [vmem:[#allocation14 + $0xbf0] sm:$0xff]  ;;  %v7956_v7 = vld [vmem:[#allocation14 + $0xce0] sm:$0xff] }
0x10cc   :  { %v7958_v42 = vld [vmem:[#allocation14 + $0xcf0] sm:$0xff] }
0x10cd   :  { %10831 = vmatpush1.bf16.msra.mxu1 %v10830_v22  ;;  %v7790_v22 = vld [vmem:[#allocation14 + $0xae8] sm:$0xff] }
0x10ce   :  { %10833 = vmatprep.subr.bf16.mxu1 %v10832_v23  ;;  %v7792_v23 = vld [vmem:[#allocation14 + $0xaf8] sm:$0xff] }
0x10d1   :  { %10835 = vmatpush1.bf16.msra.mxu1 %v10834_v27  ;;  %v7796_v27 = vld [vmem:[#allocation14 + $0xb18] sm:$0xff] }
0x10d2   :  { %10837 = vmatprep.subr.bf16.mxu1 %v10836_v29  ;;  %v10872_v29 = vpack.c.bf16 %v7791_v60, %v7789_v26  ;;  %v10874_v58 = vpack.c.bf16 %v7796_v27, %v7794_v28  ;;  %v7832_v26 = vld [vmem:[#allocation14 + $0xc38] sm:$0xf]  ;;  %v7829_v27 = vld [vmem:[#allocation14 + $0xc20] sm:$0xff] }
0x10d5   :  { %10839 = vmatpush1.bf16.msra.mxu1 %v10838_v35 }
0x10d6   :  { %10841 = vmatprep.subr.bf16.mxu1 %v10840_v9  ;;  %v10878_v9 = vpack.c.bf16 %v7800_v32, %v7798_v51  ;;  %v7773_v32 = vld [vmem:[#allocation3] sm:$0xfc] }
0x10d9   :  { %10843 = vmatpush1.bf16.msra.mxu1 %v10842_v43  ;;  %v10880_v43 = vpack.c.bf16 %v7799_v20, %v7797_v13  ;;  %v7938_v13 = vld [vmem:[#allocation14 + $0xc50] sm:$0xff] }
0x10da   :  { %10845 = vmatprep.subr.bf16.mxu1 %v10844_v45  ;;  %v10882_v45 = vpack.c.bf16 %v7804_v38, %v7802_v57  ;;  %v7941_v57 = vld [vmem:[#allocation14 + $0xc68] sm:$0xff]  ;;  %v7943_v38 = vld [vmem:[#allocation14 + $0xc78] sm:$0xff] }
0x10dd   :  { %10847 = vmatpush1.bf16.msra.mxu1 %v10846_v40  ;;  %v10884_v40 = vpack.c.bf16 %v7803_v48, %v7801_v46  ;;  %v10920_v46 = vpack.c.bf16 %v7943_v38, %v7941_v57  ;;  %v7940_v48 = vld [vmem:[#allocation14 + $0xc60] sm:$0xff]  ;;  %v7977_v57 = vld [vmem:[#allocation14 + $0xd88] sm:$0xff]  ;;  %v7979_v38 = vld [vmem:[#allocation14 + $0xd98] sm:$0xff] }
0x10de   :  { %10849 = vmatprep.subr.bf16.mxu1 %v10848_v37  ;;  %v10886_v37 = vpack.c.bf16 %v7808_v3, %v7806_v18  ;;  %v7942_v18 = vld [vmem:[#allocation14 + $0xc70] sm:$0xff] }
0x10e1   :  { %10851 = vmatpush1.bf16.msra.mxu1 %v10850_v16  ;;  %v10888_v16 = vpack.c.bf16 %v7807_v47, %v7805_v39  ;;  %v10922_v39 = vpack.c.bf16 %v7942_v18, %v7940_v48  ;;  %v7978_v48 = vld [vmem:[#allocation14 + $0xd90] sm:$0xff]  ;;  %v7981_v18 = vld [vmem:[#allocation14 + $0xda8] sm:$0xff] }
0x10e2   :  { %10854 = vmatprep.subr.msk.bf16.mxu1 %vm12239_vm1, %v10852_v49  ;;  %v10890_v49 = vpack.c.bf16 %v7812_v52, %v7810_v53  ;;  %v7944_v53 = vld [vmem:[#allocation14 + $0xc80] sm:$0xff]  ;;  %v7946_v52 = vld [vmem:[#allocation14 + $0xc90] sm:$0xff] }
0x10e5   :  { %10857 = vmatpush1.bf16.msk.msra.mxu1 %vm12239_vm1, %v10855_v33  ;;  %v10892_v33 = vpack.c.bf16 %v7811_v54, %v7809_v50  ;;  %v10926_v50 = vpack.c.bf16 %v7946_v52, %v7944_v53  ;;  %v7982_v53 = vld [vmem:[#allocation14 + $0xdb0] sm:$0xff]  ;;  %v7985_v52 = vld [vmem:[#allocation14 + $0xdc8] sm:$0xff] }
0x10e6   :  { %10859 = vmatprep.subr.bf16.mxu1 %v10858_v61  ;;  %v10894_v61 = vpack.c.bf16 %v7816_v56, %v7814_v55  ;;  %v7948_v55 = vld [vmem:[#allocation14 + $0xca0] sm:$0xff]  ;;  %v7950_v56 = vld [vmem:[#allocation14 + $0xcb0] sm:$0xff] }
0x10e8   :  { %7757 = vmatmul.mubr.f32.vlgmr.msra.gmra.mrb[14].mxu1 %v12750_v41  ;;  %v10870_v41 = vpack.c.bf16 %v7792_v23, %v7790_v22  ;;  %v7825_v23 = vld [vmem:[#allocation14 + $0xc00] sm:$0xff] }
0x10e9   :  { %9100 = vmatprep.mubr.msk.f32.mxu1 %vm2559_vm2, %v12731_v36  ;;  %10861 = vmatpush1.bf16.msra.mxu1 %v10860_v0  ;;  %v10868_v36 = vpack.c.bf16 %v7787_v5, %v7785_v19  ;;  %v10896_v0 = vpack.c.bf16 %v7815_v63, %v7813_v62  ;;  %v7828_v19 = vld [vmem:[#allocation14 + $0xc18] sm:$0xff]  ;;  %v10930_v62 = vpack.c.bf16 %v7950_v56, %v7948_v55  ;;  %v7986_v55 = vld [vmem:[#allocation14 + $0xdd0] sm:$0xff]  ;;  %v7989_v56 = vld [vmem:[#allocation14 + $0xde8] sm:$0xff] }
0x10ea   :  { %10863 = vmatprep.subr.bf16.mxu1 %v10862_v4  ;;  %v7817_v4 = vld [vmem:[#allocation14 + $0xbc0] sm:$0xff] }
0x10eb   :  { %v10900_v8 = vpack.c.bf16 %v7819_v6, %v7817_v4  ;;  %v10934_v4 = vpack.c.bf16 %v7954_v34, %v7952_v59  ;;  %v7990_v59 = vld [vmem:[#allocation14 + $0xdf0] sm:$0xf]  ;;  %v8080_v34 = vld [vmem:[#allocation14 + $0xe08] sm:$0xff] }
0x10ec   :  { %7763 = vmatmul.mubr.f32.gmra.mrb[16].mxu1 %v12744_v17  ;;  %v7793_v17 = vld [vmem:[#allocation14 + $0xb00] sm:$0xff] }
0x10ed   :  { %10865 = vmatpush1.bf16.msra.mxu1 %v10864_v12  ;;  %9103 = vmatprep.mubr.msk.f32.mxu1 %vm2559_vm2, %v12780_v25  ;;  %v10876_v35 = vpack.c.bf16 %v7795_v31, %v7793_v17  ;;  %v7821_v12 = vld [vmem:[#allocation14 + $0xbe0] sm:$0xff]  ;;  %v7939_v17 = vld [vmem:[#allocation14 + $0xc58] sm:$0xff]  ;;  %v7775_v31 = vld [vmem:[#allocation3 + $0x10] sm:$0x7] }
0x10ee   :  { %10867 = vmatprep.subr.bf16.mxu1 %v10866_v15  ;;  %v7826_v15 = vld [vmem:[#allocation14 + $0xc08] sm:$0xff]  ;;  %v10904_v5 = vpack.c.bf16 %v7823_v14, %v7821_v12  ;;  %v12786_v20 = vrot.slane %v7775_v31, 2  ;;  %v10938_v12 = vpack.c.bf16 %v7958_v42, %v7956_v7  ;;  %v8081_v7 = vld [vmem:[#allocation14 + $0xe10] sm:$0xff] }
0x10ef   :  { %v10906_v22 = vpack.c.bf16 %v7828_v19, %v7826_v15  ;;  %v7960_v15 = vld [vmem:[#allocation14 + $0xd00] sm:$0xff]  ;;  %v7962_v19 = vld [vmem:[#allocation14 + $0xd10] sm:$0xff]  ;;  %v7973_v31 = vld [vmem:[#allocation14 + $0xd68] sm:$0xff] }
0x10f0   :  { %v8084_v42 = vld [vmem:[#allocation14 + $0xe28] sm:$0xff] }
0x10f1   :  { %10869 = vmatpush1.bf16.msra.mxu1 %v10868_v36  ;;  %v7827_v36 = vld [vmem:[#allocation14 + $0xc10] sm:$0xff] }
0x10f2   :  { %10871 = vmatprep.subr.bf16.mxu1 %v10870_v41  ;;  %v7830_v41 = vld [vmem:[#allocation14 + $0xc28] sm:$0xff]  ;;  %v10908_v60 = vpack.c.bf16 %v7827_v36, %v7825_v23  ;;  %v10942_v23 = vpack.c.bf16 %v7962_v19, %v7960_v15  ;;  %v8085_v15 = vld [vmem:[#allocation14 + $0xe30] sm:$0xff] }
0x10f3   :  { %v10910_v28 = vpack.c.bf16 %v7832_v26, %v7830_v41  ;;  %v7964_v41 = vld [vmem:[#allocation14 + $0xd20] sm:$0xff]  ;;  %v7966_v26 = vld [vmem:[#allocation14 + $0xd30] sm:$0xff]  ;;  %v8088_v19 = vld [vmem:[#allocation14 + $0xe48] sm:$0xff] }
0x10f5   :  { %10873 = vmatpush1.bf16.msra.mxu1 %v10872_v29  ;;  %v7831_v29 = vld [vmem:[#allocation14 + $0xc30] sm:$0xf] }
0x10f6   :  { %10875 = vmatprep.subr.bf16.mxu1 %v10874_v58  ;;  %v7937_v58 = vld [vmem:[#allocation14 + $0xc48] sm:$0xff]  ;;  %v10913_v51 = vpack.c.bf16 %v7831_v29, %v7829_v27  ;;  %v10946_v27 = vpack.c.bf16 %v7966_v26, %v7964_v41  ;;  %v8089_v41 = vld [vmem:[#allocation14 + $0xe50] sm:$0xff] }
0x10f7   :  { %v8092_v26 = vld [vmem:[#allocation14 + $0xe68] sm:$0xff] }
0x10f9   :  { %10877 = vmatpush1.bf16.msra.mxu1 %v10876_v35  ;;  %v10916_v35 = vpack.c.bf16 %v7939_v17, %v7937_v58  ;;  %v7968_v58 = vld [vmem:[#allocation14 + $0xd40] sm:$0xff]  ;;  %v7970_v17 = vld [vmem:[#allocation14 + $0xd50] sm:$0xff] }
0x10fa   :  { %10879 = vmatprep.subr.bf16.mxu1 %v10878_v9  ;;  %v7936_v9 = vld [vmem:[#allocation14 + $0xc40] sm:$0xff] }
0x10fd   :  { %10881 = vmatpush1.bf16.msra.mxu1 %v10880_v43  ;;  %v7837_v43 = vrot.slane %v7773_v32, 2  ;;  %v10950_v32 = vpack.c.bf16 %v7970_v17, %v7968_v58  ;;  %v8093_v58 = vld [vmem:[#allocation14 + $0xe70] sm:$0xff]  ;;  %v8096_v17 = vld [vmem:[#allocation14 + $0xe88] sm:$0xff] }
0x10fe   :  { %10883 = vmatprep.subr.bf16.mxu1 %v10882_v45  ;;  %v10918_v45 = vpack.c.bf16 %v7938_v13, %v7936_v9  ;;  %v7972_v9 = vld [vmem:[#allocation14 + $0xd60] sm:$0xff]  ;;  %v7974_v13 = vld [vmem:[#allocation14 + $0xd70] sm:$0xff] }
0x10ff   :  { %v12792_v3 = vsel %vm2120_vm11, %v7837_v43, %v12786_v20  ;;  %v10954_v43 = vpack.c.bf16 %v7974_v13, %v7972_v9  ;;  %v8097_v9 = vld [vmem:[#allocation14 + $0xe90] sm:$0xff]  ;;  %v8100_v13 = vld [vmem:[#allocation14 + $0xea8] sm:$0xff]  ;;  %vm12937_vm11 = vmmov %vm12934_vm5 }
0x1101   :  { %10885 = vmatpush1.bf16.msra.mxu1 %v10884_v40  ;;  %v7945_v40 = vld [vmem:[#allocation14 + $0xc88] sm:$0xff] }
0x1102   :  { %10887 = vmatprep.subr.bf16.mxu1 %v10886_v37  ;;  %v7947_v37 = vld [vmem:[#allocation14 + $0xc98] sm:$0xff] }
0x1103   :  { %v10924_v47 = vpack.c.bf16 %v7947_v37, %v7945_v40  ;;  %v7983_v40 = vld [vmem:[#allocation14 + $0xdb8] sm:$0xff] }
0x1105   :  { %10889 = vmatpush1.bf16.msra.mxu1 %v10888_v16  ;;  %v7949_v16 = vld [vmem:[#allocation14 + $0xca8] sm:$0xff] }
0x1106   :  { %10891 = vmatprep.subr.bf16.mxu1 %v10890_v49  ;;  %v7951_v49 = vld [vmem:[#allocation14 + $0xcb8] sm:$0xff] }
0x1107   :  { %v10928_v54 = vpack.c.bf16 %v7951_v49, %v7949_v16  ;;  %v7987_v16 = vld [vmem:[#allocation14 + $0xdd8] sm:$0xff] }
0x1109   :  { %10893 = vmatpush1.bf16.msra.mxu1 %v10892_v33  ;;  %v7953_v33 = vld [vmem:[#allocation14 + $0xcc8] sm:$0xff] }
0x110a   :  { %10895 = vmatprep.subr.bf16.mxu1 %v10894_v61  ;;  %v7955_v61 = vld [vmem:[#allocation14 + $0xcd8] sm:$0xff] }
0x110b   :  { %v10932_v63 = vpack.c.bf16 %v7955_v61, %v7953_v33  ;;  %v7991_v33 = vld [vmem:[#allocation14 + $0xdf8] sm:$0xf] }
0x110d   :  { %10897 = vmatpush1.bf16.msra.mxu1 %v10896_v0  ;;  %v7957_v0 = vld [vmem:[#allocation14 + $0xce8] sm:$0xff] }
0x110e   :  { %10899 = vmatprep.subr.bf16.mxu1 %v10898_v21  ;;  %v7959_v21 = vld [vmem:[#allocation14 + $0xcf8] sm:$0xff] }
0x110f   :  { %v10936_v6 = vpack.c.bf16 %v7959_v21, %v7957_v0  ;;  %v8082_v0 = vld [vmem:[#allocation14 + $0xe18] sm:$0xff] }
0x1111   :  { %10901 = vmatpush1.bf16.msra.mxu1 %v10900_v8  ;;  %v7961_v8 = vld [vmem:[#allocation14 + $0xd08] sm:$0xff] }
0x1112   :  { %10903 = vmatprep.subr.bf16.mxu1 %v10902_v10  ;;  %v7963_v10 = vld [vmem:[#allocation14 + $0xd18] sm:$0xff] }
0x1113   :  { %v10940_v14 = vpack.c.bf16 %v7963_v10, %v7961_v8  ;;  %v8086_v8 = vld [vmem:[#allocation14 + $0xe38] sm:$0xff] }
0x1115   :  { %10905 = vmatpush1.bf16.msra.mxu1 %v10904_v5  ;;  %v7965_v5 = vld [vmem:[#allocation14 + $0xd28] sm:$0xff] }
0x1116   :  { %10907 = vmatprep.subr.bf16.mxu1 %v10906_v22  ;;  %v7967_v22 = vld [vmem:[#allocation14 + $0xd38] sm:$0xff] }
0x1117   :  { %v10944_v36 = vpack.c.bf16 %v7967_v22, %v7965_v5  ;;  %v8090_v5 = vld [vmem:[#allocation14 + $0xe58] sm:$0xff] }
0x1119   :  { %10909 = vmatpush1.bf16.msra.mxu1 %v10908_v60  ;;  %v7969_v60 = vld [vmem:[#allocation14 + $0xd48] sm:$0xff] }
0x111a   :  { %10912 = vmatprep.subr.msk.bf16.mxu1 %vm12239_vm1, %v10910_v28  ;;  %v7971_v28 = vld [vmem:[#allocation14 + $0xd58] sm:$0xff] }
0x111b   :  { %v10948_v29 = vpack.c.bf16 %v7971_v28, %v7969_v60  ;;  %v8094_v60 = vld [vmem:[#allocation14 + $0xe78] sm:$0xff] }
0x111d   :  { %10915 = vmatpush1.bf16.msk.msra.mxu1 %vm12239_vm1, %v10913_v51  ;;  %v7975_v51 = vld [vmem:[#allocation14 + $0xd78] sm:$0xff] }
0x111e   :  { %10917 = vmatprep.subr.bf16.mxu1 %v10916_v35  ;;  %v10952_v35 = vpack.c.bf16 %v7975_v51, %v7973_v31  ;;  %v8098_v31 = vld [vmem:[#allocation14 + $0xe98] sm:$0xff] }
0x1120   :  { %7920 = vmatmul.mubr.f32.vlgmr.msra.gmra.mrb[14].mxu1 %v12792_v3 }
0x1121   :  { %9104 = vmatprep.mubr.msk.f32.mxu1 %vm2559_vm2, %v12773_v11  ;;  %10919 = vmatpush1.bf16.msra.mxu1 %v10918_v45  ;;  %v10956_v45 = vpack.c.bf16 %v7979_v38, %v7977_v57  ;;  %v8102_v57 = vld [vmem:[#allocation14 + $0xeb8] sm:$0xff] }
0x1122   :  { %10921 = vmatprep.subr.bf16.mxu1 %v10920_v46  ;;  %v7976_v46 = vld [vmem:[#allocation14 + $0xd80] sm:$0xff] }
0x1123   :  { %v10958_v37 = vpack.c.bf16 %v7978_v48, %v7976_v46  ;;  %v8104_v46 = vld [vmem:[#allocation14 + $0xec8] sm:$0xff]  ;;  %v8106_v48 = vld [vmem:[#allocation14 + $0xed8] sm:$0xff] }
0x1124   :  { %7926 = vmatmul.mubr.f32.gmra.mrb[16].mxu1 %v12786_v20 }
0x1125   :  { %10923 = vmatpush1.bf16.msra.mxu1 %v10922_v39  ;;  %9107 = vmatprep.mubr.msk.f32.mxu1 %vm2559_vm2, %v12780_v25  ;;  %v10960_v39 = vpack.c.bf16 %v7983_v40, %v7981_v18  ;;  %v10998_v40 = vpack.c.bf16 %v8106_v48, %v8104_v46  ;;  %v8304_v46 = vld [vmem:[#allocation17 + $0x8] sm:$0xff] }
0x1126   :  { %10925 = vmatprep.subr.bf16.mxu1 %v10924_v47  ;;  %v7980_v47 = vld [vmem:[#allocation14 + $0xda0] sm:$0xff] }
0x1127   :  { %v10962_v49 = vpack.c.bf16 %v7982_v53, %v7980_v47  ;;  %v8108_v47 = vld [vmem:[#allocation14 + $0xee8] sm:$0xff]  ;;  %v8110_v53 = vld [vmem:[#allocation14 + $0xef8] sm:$0xff] }
0x1129   :  { %10927 = vmatpush1.bf16.msra.mxu1 %v10926_v50  ;;  %v10964_v50 = vpack.c.bf16 %v7987_v16, %v7985_v52  ;;  %v11002_v16 = vpack.c.bf16 %v8110_v53, %v8108_v47  ;;  %v8310_v47 = vld [vmem:[#allocation17 + $0x38] sm:$0xff] }
0x112a   :  { %10929 = vmatprep.subr.bf16.mxu1 %v10928_v54  ;;  %v7984_v54 = vld [vmem:[#allocation14 + $0xdc0] sm:$0xff]  ;;  %v11048_v53 = vpack.c.bf16 %v8310_v47, %v8309_v24 }
0x112b   :  { %v10966_v61 = vpack.c.bf16 %v7986_v55, %v7984_v54  ;;  %v8112_v54 = vld [vmem:[#allocation14 + $0xf08] sm:$0xff]  ;;  %v8114_v55 = vld [vmem:[#allocation14 + $0xf18] sm:$0xff] }
0x112c   :  { %v8656_v47 = vld [vmem:[#allocation19 + $0xd0] sm:$0xff] }
0x112d   :  { %10931 = vmatpush1.bf16.msra.mxu1 %v10930_v62  ;;  %v10968_v62 = vpack.c.bf16 %v7991_v33, %v7989_v56  ;;  %v11006_v33 = vpack.c.bf16 %v8114_v55, %v8112_v54  ;;  %v8314_v54 = vld [vmem:[#allocation17 + $0x58] sm:$0xff] }
0x112e   :  { %10933 = vmatprep.subr.bf16.mxu1 %v10932_v63  ;;  %v7988_v63 = vld [vmem:[#allocation14 + $0xde0] sm:$0xff] }
0x112f   :  { %v10971_v21 = vpack.c.bf16 %v7990_v59, %v7988_v63  ;;  %v8116_v63 = vld [vmem:[#allocation14 + $0xf28] sm:$0xff]  ;;  %v8118_v59 = vld [vmem:[#allocation14 + $0xf38] sm:$0xff] }
0x1131   :  { %10935 = vmatpush1.bf16.msra.mxu1 %v10934_v4  ;;  %v10974_v4 = vpack.c.bf16 %v8082_v0, %v8080_v34  ;;  %v11010_v0 = vpack.c.bf16 %v8118_v59, %v8116_v63  ;;  %v8318_v63 = vld [vmem:[#allocation17 + $0x78] sm:$0xff] }
0x1132   :  { %10937 = vmatprep.subr.bf16.mxu1 %v10936_v6  ;;  %v8079_v6 = vld [vmem:[#allocation14 + $0xe00] sm:$0xff] }
0x1133   :  { %v10976_v10 = vpack.c.bf16 %v8081_v7, %v8079_v6  ;;  %v8120_v6 = vld [vmem:[#allocation14 + $0xf48] sm:$0xff]  ;;  %v8122_v7 = vld [vmem:[#allocation14 + $0xf58] sm:$0xff] }
0x1135   :  { %10939 = vmatpush1.bf16.msra.mxu1 %v10938_v12  ;;  %v10978_v12 = vpack.c.bf16 %v8086_v8, %v8084_v42  ;;  %v11014_v8 = vpack.c.bf16 %v8122_v7, %v8120_v6 }
0x1136   :  { %10941 = vmatprep.subr.bf16.mxu1 %v10940_v14  ;;  %v8083_v14 = vld [vmem:[#allocation14 + $0xe20] sm:$0xff] }
0x1137   :  { %v10980_v22 = vpack.c.bf16 %v8085_v15, %v8083_v14  ;;  %v8124_v14 = vld [vmem:[#allocation14 + $0xf68] sm:$0xff]  ;;  %v8126_v15 = vld [vmem:[#allocation14 + $0xf78] sm:$0xff] }
0x1139   :  { %10943 = vmatpush1.bf16.msra.mxu1 %v10942_v23  ;;  %v10982_v23 = vpack.c.bf16 %v8090_v5, %v8088_v19  ;;  %v11018_v5 = vpack.c.bf16 %v8126_v15, %v8124_v14  ;;  %v8412_v14 = vld [vmem:[#allocation19 + $0x68] sm:$0xff] }
0x113a   :  { %10945 = vmatprep.subr.bf16.mxu1 %v10944_v36  ;;  %v8087_v36 = vld [vmem:[#allocation14 + $0xe40] sm:$0xff] }
0x113b   :  { %v10984_v28 = vpack.c.bf16 %v8089_v41, %v8087_v36  ;;  %v8128_v36 = vld [vmem:[#allocation14 + $0xf88] sm:$0xff]  ;;  %v8130_v41 = vld [vmem:[#allocation14 + $0xf98] sm:$0xff] }
0x113d   :  { %10947 = vmatpush1.bf16.msra.mxu1 %v10946_v27  ;;  %v10986_v27 = vpack.c.bf16 %v8094_v60, %v8092_v26  ;;  %v11022_v60 = vpack.c.bf16 %v8130_v41, %v8128_v36  ;;  %v8398_v41 = vld [vmem:[#allocation19] sm:$0xff] }
0x113e   :  { %10949 = vmatprep.subr.bf16.mxu1 %v10948_v29  ;;  %v8091_v29 = vld [vmem:[#allocation14 + $0xe60] sm:$0xff] }
0x113f   :  { %v10988_v51 = vpack.c.bf16 %v8093_v58, %v8091_v29  ;;  %v8132_v29 = vld [vmem:[#allocation14 + $0xfa8] sm:$0xff]  ;;  %v8134_v58 = vld [vmem:[#allocation14 + $0xfb8] sm:$0xf] }
0x1141   :  { %10951 = vmatpush1.bf16.msra.mxu1 %v10950_v32  ;;  %v10990_v32 = vpack.c.bf16 %v8098_v31, %v8096_v17  ;;  %v11026_v31 = vpack.c.bf16 %v8134_v58, %v8132_v29 }
0x1142   :  { %10953 = vmatprep.subr.bf16.mxu1 %v10952_v35  ;;  %v8095_v35 = vld [vmem:[#allocation14 + $0xe80] sm:$0xff] }
0x1143   :  { %v10992_v38 = vpack.c.bf16 %v8097_v9, %v8095_v35 }
0x1145   :  { %10955 = vmatpush1.bf16.msra.mxu1 %v10954_v43  ;;  %v10994_v43 = vpack.c.bf16 %v8102_v57, %v8100_v13 }
0x1146   :  { %10957 = vmatprep.subr.bf16.mxu1 %v10956_v45  ;;  %v8101_v45 = vld [vmem:[#allocation14 + $0xeb0] sm:$0xff] }
0x1149   :  { %10959 = vmatpush1.bf16.msra.mxu1 %v10958_v37  ;;  %v8103_v37 = vld [vmem:[#allocation14 + $0xec0] sm:$0xff] }
0x114a   :  { %10961 = vmatprep.subr.bf16.mxu1 %v10960_v39  ;;  %v8105_v39 = vld [vmem:[#allocation14 + $0xed0] sm:$0xff] }
0x114b   :  { %v11000_v52 = vpack.c.bf16 %v8105_v39, %v8103_v37  ;;  %v8308_v37 = vld [vmem:[#allocation17 + $0x28] sm:$0xff] }
0x114d   :  { %10963 = vmatpush1.bf16.msra.mxu1 %v10962_v49  ;;  %v8107_v49 = vld [vmem:[#allocation14 + $0xee0] sm:$0xff] }
0x114e   :  { %10965 = vmatprep.subr.bf16.mxu1 %v10964_v50  ;;  %v8109_v50 = vld [vmem:[#allocation14 + $0xef0] sm:$0xff] }
0x114f   :  { %v11004_v56 = vpack.c.bf16 %v8109_v50, %v8107_v49  ;;  %v8313_v50 = vld [vmem:[#allocation17 + $0x50] sm:$0xff] }
0x1150   :  { %v11054_v55 = vpack.c.bf16 %v8314_v54, %v8313_v50  ;;  %v8659_v50 = vld [vmem:[#allocation19 + $0xe8] sm:$0xff] }
0x1151   :  { %10967 = vmatpush1.bf16.msra.mxu1 %v10966_v61  ;;  %v8111_v61 = vld [vmem:[#allocation14 + $0xf00] sm:$0xff] }
0x1152   :  { %10970 = vmatprep.subr.msk.bf16.mxu1 %vm12239_vm1, %v10968_v62  ;;  %v8113_v62 = vld [vmem:[#allocation14 + $0xf10] sm:$0xff] }
0x1153   :  { %v11008_v34 = vpack.c.bf16 %v8113_v62, %v8111_v61  ;;  %v8317_v62 = vld [vmem:[#allocation17 + $0x70] sm:$0xff] }
0x1154   :  { %v11060_v59 = vpack.c.bf16 %v8318_v63, %v8317_v62  ;;  %v8740_v62 = vld [vmem:[#allocation20 + $0x8] sm:$0xff] }
0x1155   :  { %10973 = vmatpush1.bf16.msk.msra.mxu1 %vm12239_vm1, %v10971_v21  ;;  %v8115_v21 = vld [vmem:[#allocation14 + $0xf20] sm:$0xff] }
0x1156   :  { %10975 = vmatprep.subr.bf16.mxu1 %v10974_v4  ;;  %v8117_v4 = vld [vmem:[#allocation14 + $0xf30] sm:$0xff] }
0x1157   :  { %v11012_v42 = vpack.c.bf16 %v8117_v4, %v8115_v21  ;;  %v8408_v21 = vld [vmem:[#allocation19 + $0x48] sm:$0xff] }
0x1158   :  { %8063 = vmatmul.mubr.f32.vlgmr.msra.gmra.mrb[14].mxu1 %v12792_v3 }
0x1159   :  { %9108 = vmatprep.mubr.msk.f32.mxu1 %vm2559_vm2, %v12773_v11  ;;  %10977 = vmatpush1.bf16.msra.mxu1 %v10976_v10  ;;  %v8119_v10 = vld [vmem:[#allocation14 + $0xf40] sm:$0xff] }
0x115a   :  { %10979 = vmatprep.subr.bf16.mxu1 %v10978_v12  ;;  %v8121_v12 = vld [vmem:[#allocation14 + $0xf50] sm:$0xff] }
0x115b   :  { %v11016_v19 = vpack.c.bf16 %v8121_v12, %v8119_v10  ;;  %v8411_v12 = vld [vmem:[#allocation19 + $0x60] sm:$0xff] }
0x115c   :  { %8069 = vmatmul.mubr.f32.gmra.mrb[16].mxu1 %v12786_v20  ;;  %v11069_v15 = vpack.c.bf16 %v8412_v14, %v8411_v12  ;;  %v8748_v12 = vld [vmem:[#allocation20 + $0x48] sm:$0x3f] }
0x115d   :  { %10981 = vmatpush1.bf16.msra.mxu1 %v10980_v22  ;;  %9111 = vmatprep.mubr.msk.f32.mxu1 %vm2559_vm2, %v12780_v25  ;;  %v8099_v25 = vld [vmem:[#allocation14 + $0xea0] sm:$0xff] }
0x115e   :  { %10983 = vmatprep.subr.bf16.mxu1 %v10982_v23  ;;  %v10996_v18 = vpack.c.bf16 %v8101_v45, %v8099_v25  ;;  %v8123_v22 = vld [vmem:[#allocation14 + $0xf60] sm:$0xff]  ;;  %v8125_v23 = vld [vmem:[#allocation14 + $0xf70] sm:$0xff] }
0x115f   :  { %v11020_v26 = vpack.c.bf16 %v8125_v23, %v8123_v22  ;;  %v8303_v45 = vld [vmem:[#allocation17] sm:$0xff] }
0x1160   :  { %v11039_v48 = vpack.c.bf16 %v8304_v46, %v8303_v45 }
0x1161   :  { %10985 = vmatpush1.bf16.msra.mxu1 %v10984_v28  ;;  %v8127_v28 = vld [vmem:[#allocation14 + $0xf80] sm:$0xff] }
0x1162   :  { %10987 = vmatprep.subr.bf16.mxu1 %v10986_v27  ;;  %v8129_v27 = vld [vmem:[#allocation14 + $0xf90] sm:$0xff] }
0x1163   :  { %v11024_v17 = vpack.c.bf16 %v8129_v27, %v8127_v28  ;;  %v8400_v28 = vld [vmem:[#allocation19 + $0x10] sm:$0xff]  ;;  %v8401_v27 = vld [vmem:[#allocation19 + $0x18] sm:$0xff] }
0x1164   :  { %v11079_v58 = vpack.c.bf16 %v8401_v27, %v8400_v28 }
0x1165   :  { %10989 = vmatpush1.bf16.msra.mxu1 %v10988_v51  ;;  %v8131_v51 = vld [vmem:[#allocation14 + $0xfa0] sm:$0xff] }
0x1166   :  { %10991 = vmatprep.subr.bf16.mxu1 %v10990_v32  ;;  %v8133_v32 = vld [vmem:[#allocation14 + $0xfb0] sm:$0xf] }
0x1167   :  { %v11029_v35 = vpack.c.bf16 %v8133_v32, %v8131_v51  ;;  %v8404_v32 = vld [vmem:[#allocation19 + $0x30] sm:$0xff] }
0x1169   :  { %10993 = vmatpush1.bf16.msra.mxu1 %v10992_v38 }
0x116a   :  { %10995 = vmatprep.subr.bf16.mxu1 %v10994_v43 }
0x116d   :  { %10997 = vmatpush1.bf16.msra.mxu1 %v10996_v18 }
0x116e   :  { %10999 = vmatprep.subr.bf16.mxu1 %v10998_v40  ;;  %v8307_v40 = vld [vmem:[#allocation17 + $0x20] sm:$0xff] }
0x116f   :  { %v11045_v39 = vpack.c.bf16 %v8308_v37, %v8307_v40  ;;  %v8654_v37 = vld [vmem:[#allocation19 + $0xc0] sm:$0xff] }
0x1171   :  { %11001 = vmatpush1.bf16.msra.mxu1 %v11000_v52  ;;  %v8311_v52 = vld [vmem:[#allocation17 + $0x40] sm:$0xff] }
0x1172   :  { %11003 = vmatprep.subr.bf16.mxu1 %v11002_v16  ;;  %v8312_v16 = vld [vmem:[#allocation17 + $0x48] sm:$0xff] }
0x1173   :  { %v11051_v49 = vpack.c.bf16 %v8312_v16, %v8311_v52 }
0x1175   :  { %11005 = vmatpush1.bf16.msra.mxu1 %v11004_v56  ;;  %v8315_v56 = vld [vmem:[#allocation17 + $0x60] sm:$0xff] }
0x1176   :  { %11007 = vmatprep.subr.bf16.mxu1 %v11006_v33  ;;  %v8316_v33 = vld [vmem:[#allocation17 + $0x68] sm:$0xff] }
0x1177   :  { %v11057_v61 = vpack.c.bf16 %v8316_v33, %v8315_v56  ;;  %v8661_v56 = vld [vmem:[#allocation19 + $0xf8] sm:$0xf] }
0x1179   :  { %11009 = vmatpush1.bf16.msra.mxu1 %v11008_v34  ;;  %v8319_v34 = vld [vmem:[#allocation17 + $0x80] sm:$0x7f] }
0x117a   :  { %11011 = vmatprep.subr.bf16.mxu1 %v11010_v0  ;;  %v8407_v0 = vld [vmem:[#allocation19 + $0x40] sm:$0xff] }
0x117b   :  { %v11063_v6 = vpack.c.bf16 %v8408_v21, %v8407_v0 }
0x117d   :  { %11013 = vmatpush1.bf16.msra.mxu1 %v11012_v42  ;;  %v8409_v42 = vld [vmem:[#allocation19 + $0x50] sm:$0xff] }
0x117e   :  { %11015 = vmatprep.subr.bf16.mxu1 %v11014_v8  ;;  %v8410_v8 = vld [vmem:[#allocation19 + $0x58] sm:$0xff] }
0x117f   :  { %v11066_v10 = vpack.c.bf16 %v8410_v8, %v8409_v42  ;;  %v8746_v42 = vld [vmem:[#allocation20 + $0x38] sm:$0xff] }
0x1181   :  { %11017 = vmatpush1.bf16.msra.mxu1 %v11016_v19  ;;  %v8413_v19 = vld [vmem:[#allocation19 + $0x70] sm:$0xff] }
0x1182   :  { %11019 = vmatprep.subr.bf16.mxu1 %v11018_v5  ;;  %v8414_v5 = vld [vmem:[#allocation19 + $0x78] sm:$0xf] }
0x1183   :  { %v11072_v22 = vpack.c.bf16 %v8414_v5, %v8413_v19 }
0x1185   :  { %11021 = vmatpush1.bf16.msra.mxu1 %v11020_v26  ;;  %v8399_v26 = vld [vmem:[#allocation19 + $0x8] sm:$0xff] }
0x1186   :  { %11023 = vmatprep.subr.bf16.mxu1 %v11022_v60  ;;  %v11076_v60 = vpack.c.bf16 %v8399_v26, %v8398_v41 }
0x1189   :  { %11025 = vmatpush1.bf16.msra.mxu1 %v11024_v17  ;;  %v8402_v17 = vld [vmem:[#allocation19 + $0x20] sm:$0xff] }
0x118a   :  { %11028 = vmatprep.subr.msk.bf16.mxu1 %vm12239_vm1, %v11026_v31  ;;  %v8403_v31 = vld [vmem:[#allocation19 + $0x28] sm:$0xff] }
0x118b   :  { %v11082_v51 = vpack.c.bf16 %v8403_v31, %v8402_v17 }
0x118d   :  { %11031 = vmatpush1.bf16.msk.msra.mxu1 %vm12239_vm1, %v11029_v35  ;;  %v8405_v35 = vld [vmem:[#allocation19 + $0x38] sm:$0xf] }
0x1190   :  { %8206 = vmatmul.mubr.f32.vlgmr.msra.gmra.mrb[14].mxu1 %v12792_v3  ;;  %v8222_v3 = vld [vmem:[#allocation16] sm:$0xf] }
0x1191   :  { %9112 = vmatprep.mubr.msk.f32.mxu1 %vm2559_vm2, %v12773_v11  ;;  %v8305_v11 = vld [vmem:[#allocation17 + $0x10] sm:$0xff]  ;;  %vm12940_vm2 = vcmask 490496  }
0x1192   :  { %vm12941_vm3 = vmmov %vm12940_vm2 }
0x1193   :  { %vm12943_vm6 = vmmov %vm12940_vm2 }
0x1194   :  { %8212 = vmatmul.mubr.f32.gmra.mrb[16].mxu1 %v12786_v20  ;;  %v8306_v20 = vld [vmem:[#allocation17 + $0x18] sm:$0xff] }
0x1195   :  { %v11042_v18 = vpack.c.bf16 %v8306_v20, %v8305_v11  ;;  %v8574_v20 = vld [vmem:[#allocation19 + $0xb0] sm:$0xff] }
0x1263   :  { %v8207_v9 = vpop.f32.mrb[14].mxu1 }
0x1264   :  { %v8209_v13 = vpop.f32.mrb[15].mxu1 }
0x1267   :  { %v8213_v57 = vpop.f32.mrb[16].mxu1 }
0x1268   :  { %v11035_v38 = vpack.c.bf16 %v8213_v57, %v8207_v9  ;;  %v8215_v43 = vpop.f32.mrb[17].mxu1  ;;  %v11085_v9 = vpack.c.bf16 %v8405_v35, %v8404_v32  ;;  %v8569_v57 = vld [vmem:[#allocation19 + $0x88] sm:$0xff] }
0x1269   :  { %v11032_v25 = vpack.c.bf16 %v8215_v43, %v8209_v13  ;;  %v8568_v13 = vld [vmem:[#allocation19 + $0x80] sm:$0xff]  ;;  %v8570_v43 = vld [vmem:[#allocation19 + $0x90] sm:$0xff] }
0x126b   :  { %11034 = vmatprep.subr.msk.bf16.mxu0 %vm12377_vm7, %v11032_v25  ;;  %v8571_v25 = vld [vmem:[#allocation19 + $0x98] sm:$0xff] }
0x126c   :  { %11037 = vmatpush1.bf16.msk.msra.mxu0 %vm12377_vm7, %v11035_v38  ;;  %v11089_v38 = vpack.c.bf16 %v8569_v57, %v8568_v13  ;;  %v11092_v46 = vpack.c.bf16 %v8571_v25, %v8570_v43  ;;  %vm12942_vm7 = vmmov %vm12940_vm2 }
0x126d   :  { %11038 = vmatprep.subr.bf16.mxu0 %v11739_v1 }
0x126f   :  { %9115 = vmatmul.mubr.msk.f32.vlgmr.msra.gmra.mrb[80].mxu0 %vm12936_vm10, %v8222_v3  ;;  %v8572_v3 = vld [vmem:[#allocation19 + $0xa0] sm:$0xff] }
0x1270   :  { %11040 = vmatpush1.bf16.msra.mxu0 %v11039_v48  ;;  %v8573_v48 = vld [vmem:[#allocation19 + $0xa8] sm:$0xff] }
0x1271   :  { %11041 = vmatprep.subr.bf16.mxu0 %v11739_v1  ;;  %v11095_v11 = vpack.c.bf16 %v8573_v48, %v8572_v3 }
0x1274   :  { %11043 = vmatpush1.bf16.msra.mxu0 %v11042_v18  ;;  %v8575_v18 = vld [vmem:[#allocation19 + $0xb8] sm:$0xf] }
0x1275   :  { %11044 = vmatprep.subr.bf16.mxu0 %v11739_v1  ;;  %v11098_v40 = vpack.c.bf16 %v8575_v18, %v8574_v20 }
0x1278   :  { %11046 = vmatpush1.bf16.msra.mxu0 %v11045_v39  ;;  %v8655_v39 = vld [vmem:[#allocation19 + $0xc8] sm:$0xff] }
0x1279   :  { %11047 = vmatprep.subr.bf16.mxu0 %v11739_v1  ;;  %v11102_v24 = vpack.c.bf16 %v8655_v39, %v8654_v37 }
0x127c   :  { %11049 = vmatpush1.bf16.msra.mxu0 %v11048_v53  ;;  %v8657_v53 = vld [vmem:[#allocation19 + $0xd8] sm:$0xff] }
0x127d   :  { %11050 = vmatprep.subr.bf16.mxu0 %v11739_v1  ;;  %v11105_v16 = vpack.c.bf16 %v8657_v53, %v8656_v47 }
0x1280   :  { %11052 = vmatpush1.bf16.msra.mxu0 %v11051_v49  ;;  %v8658_v49 = vld [vmem:[#allocation19 + $0xe0] sm:$0xff] }
0x1281   :  { %11053 = vmatprep.subr.bf16.mxu0 %v11739_v1  ;;  %v11108_v54 = vpack.c.bf16 %v8659_v50, %v8658_v49 }
0x1284   :  { %11055 = vmatpush1.bf16.msra.mxu0 %v11054_v55  ;;  %v8660_v55 = vld [vmem:[#allocation19 + $0xf0] sm:$0xff] }
0x1285   :  { %11056 = vmatprep.subr.bf16.mxu0 %v11739_v1  ;;  %v11111_v33 = vpack.c.bf16 %v8661_v56, %v8660_v55 }
0x1288   :  { %11058 = vmatpush1.bf16.msra.mxu0 %v11057_v61  ;;  %v8739_v61 = vld [vmem:[#allocation20] sm:$0xff] }
0x1289   :  { %11059 = vmatprep.subr.bf16.mxu0 %v11739_v1  ;;  %v11115_v63 = vpack.c.bf16 %v8740_v62, %v8739_v61 }
0x128c   :  { %11061 = vmatpush1.bf16.msra.mxu0 %v11060_v59  ;;  %v8741_v59 = vld [vmem:[#allocation20 + $0x10] sm:$0xff] }
0x128d   :  { %8358 = vmatprep.subr.mxu0 %v11740_v2 }
0x1290   :  { %9116 = vmatpush1.msk.msra.mxu0 %vm12937_vm11, %v8319_v34  ;;  %v8742_v34 = vld [vmem:[#allocation20 + $0x18] sm:$0xff] }
0x1291   :  { %11062 = vmatprep.subr.bf16.mxu0 %v11739_v1  ;;  %v11118_v21 = vpack.c.bf16 %v8742_v34, %v8741_v59 }
0x1342   :  { %v8298_v4 = vpop.f32.mrb[80].mxu0 }
0x1343   :  { %v8300_v7 = vpop.f32.mrb[81].mxu0 }
0x1344   :  { %9117 = vmatprep.mubr.msk.f32.mxu0 %vm12938_vm12, %v8300_v7  ;;  %v8745_v7 = vld [vmem:[#allocation20 + $0x30] sm:$0xff] }
0x1345   :  { %8391 = vmatmul.mubr.f32.vlgmr.msra.gmra.mrb[82].mxu0 %v8298_v4  ;;  %v8743_v4 = vld [vmem:[#allocation20 + $0x20] sm:$0xff]  ;;  %v11124_v8 = vpack.c.bf16 %v8746_v42, %v8745_v7 }
0x1346   :  { %11064 = vmatpush3.bf16.msra.mxu0 %v11063_v6  ;;  %9415 = vmatprep.mubr.msk.f32.mxu0 %vm11741_vm0, %v11740_v2  ;;  %v8744_v6 = vld [vmem:[#allocation20 + $0x28] sm:$0xff] }
0x1347   :  { %11065 = vmatprep.subr.bf16.mxu0 %v11739_v1  ;;  %v11121_v44 = vpack.c.bf16 %v8744_v6, %v8743_v4 }
0x134a   :  { %11067 = vmatpush3.bf16.msra.mxu0 %v11066_v10  ;;  %v8747_v10 = vld [vmem:[#allocation20 + $0x40] sm:$0xff] }
0x134b   :  { %11068 = vmatprep.subr.bf16.mxu0 %v11739_v1  ;;  %v11127_v14 = vpack.c.bf16 %v8748_v12, %v8747_v10 }
0x134e   :  { %11070 = vmatpush3.bf16.msra.mxu0 %v11069_v15 }
0x134f   :  { %11071 = vmatprep.subr.bf16.mxu0 %v11739_v1 }
0x1352   :  { %11074 = vmatpush3.bf16.msk.msra.mxu0 %vm12239_vm1, %v11072_v22 }
0x1353   :  { %11075 = vmatprep.subr.bf16.mxu0 %v11739_v1 }
0x1418   :  { %v8392_v23 = vpop.f32.mrb[82].mxu0 }
0x1419   :  { %8396 = vst.msk [vmem:[#allocation4] sm:$0xf] %vm12939_vm13, %v8392_v23  ;;  %v8394_v36 = vpop.f32.mrb[83].mxu0 }
0x1420   :  { %v8406_v29 = vld [vmem:[#allocation4 + $0x1] sm:$0x1]  ;;  %v8397_v45 = vld [vmem:[#allocation4] sm:$0x1]  ;;  %v8567_v52 = vld [vmem:[#allocation4 + $0x2] sm:$0x1] }
0x1421   :  { %9416 = vmatmul.mubr.msk.f32.vlgmr.msra.gmra.mrb[84].mxu0 %vm12940_vm2, %v8406_v29  ;;  %v8653_v0 = vld [vmem:[#allocation4 + $0x3] sm:$0x1] }
0x1422   :  { %11077 = vmatpush3.bf16.msra.mxu0 %v11076_v60  ;;  %9434 = vmatprep.mubr.msk.f32.mxu0 %vm11741_vm0, %v11740_v2 }
0x1423   :  { %11078 = vmatprep.subr.bf16.mxu0 %v11739_v1 }
0x1426   :  { %11080 = vmatpush3.bf16.msra.mxu0 %v11079_v58 }
0x1427   :  { %11081 = vmatprep.subr.bf16.mxu0 %v11739_v1 }
0x142a   :  { %11083 = vmatpush3.bf16.msra.mxu0 %v11082_v51 }
0x142b   :  { %11084 = vmatprep.subr.bf16.mxu0 %v11739_v1 }
0x142e   :  { %11087 = vmatpush3.bf16.msk.msra.mxu0 %vm12239_vm1, %v11085_v9 }
0x142f   :  { %11088 = vmatprep.subr.bf16.mxu0 %v11739_v1 }
0x1431   :  { %9435 = vmatmul.mubr.msk.f32.vlgmr.msra.gmra.mrb[84].mxu0 %vm12941_vm3, %v8397_v45 }
0x1432   :  { %11090 = vmatpush3.bf16.msra.mxu0 %v11089_v38  ;;  %9453 = vmatprep.mubr.msk.f32.mxu0 %vm11741_vm0, %v11740_v2 }
0x1433   :  { %11091 = vmatprep.subr.bf16.mxu0 %v11739_v1 }
0x1436   :  { %11093 = vmatpush3.bf16.msra.mxu0 %v11092_v46 }
0x1437   :  { %11094 = vmatprep.subr.bf16.mxu0 %v11739_v1 }
0x143a   :  { %11096 = vmatpush3.bf16.msra.mxu0 %v11095_v11 }
0x143b   :  { %11097 = vmatprep.subr.bf16.mxu0 %v11739_v1 }
0x143e   :  { %11100 = vmatpush3.bf16.msk.msra.mxu0 %vm12239_vm1, %v11098_v40 }
0x143f   :  { %11101 = vmatprep.subr.bf16.mxu0 %v11739_v1 }
0x1441   :  { %9454 = vmatmul.mubr.msk.f32.vlgmr.msra.gmra.mrb[84].mxu0 %vm12942_vm7, %v8567_v52 }
0x1442   :  { %11103 = vmatpush3.bf16.msra.mxu0 %v11102_v24  ;;  %9472 = vmatprep.mubr.msk.f32.mxu0 %vm11741_vm0, %v11740_v2 }
0x1443   :  { %11104 = vmatprep.subr.bf16.mxu0 %v11739_v1 }
0x1446   :  { %11106 = vmatpush3.bf16.msra.mxu0 %v11105_v16 }
0x1447   :  { %11107 = vmatprep.subr.bf16.mxu0 %v11739_v1 }
0x144a   :  { %11109 = vmatpush3.bf16.msra.mxu0 %v11108_v54 }
0x144b   :  { %11110 = vmatprep.subr.bf16.mxu0 %v11739_v1 }
0x144e   :  { %11113 = vmatpush3.bf16.msk.msra.mxu0 %vm12239_vm1, %v11111_v33 }
0x144f   :  { %11114 = vmatprep.subr.bf16.mxu0 %v11739_v1 }
0x1451   :  { %9473 = vmatmul.mubr.msk.f32.vlgmr.msra.gmra.mrb[84].mxu0 %vm12943_vm6, %v8653_v0 }
0x1452   :  { %11116 = vmatpush3.bf16.msra.mxu0 %v11115_v63  ;;  %9495 = vmatprep.mubr.msk.f32.mxu0 %vm11741_vm0, %v11740_v2 }
0x1453   :  { %11117 = vmatprep.subr.bf16.mxu0 %v11739_v1 }
0x1456   :  { %11119 = vmatpush3.bf16.msra.mxu0 %v11118_v21 }
0x1457   :  { %11120 = vmatprep.subr.bf16.mxu0 %v11739_v1 }
0x145a   :  { %11122 = vmatpush3.bf16.msra.mxu0 %v11121_v44 }
0x145b   :  { %11123 = vmatprep.subr.bf16.mxu0 %v11739_v1 }
0x145e   :  { %11125 = vmatpush3.bf16.msra.mxu0 %v11124_v8 }
0x145f   :  { %11126 = vmatprep.subr.bf16.mxu0 %v11739_v1 }
0x1462   :  { %11129 = vmatpush3.bf16.msk.msra.mxu0 %vm12443_vm14, %v11127_v14 }
0x1524   :  { %v8734_v2 = vpop.f32.mrb[84].mxu0 }
0x1525   :  { %8836 = vst.msk [vmem:[#allocation22 + $0x1] sm:$0x1] %vm4527_vm15, %v8734_v2  ;;  %v9474_v15 = vpop.f32.mrb[85].mxu0  ;;  %9496 = vmatmul.mubr.msk.f32.vlgmr.msra.gmra.mrb[86].mxu0 %vm4438_vm4, %v8734_v2 }
0x15f8   :  { %v8821_v19 = vpop.f32.mrb[86].mxu0 }
0x15f9   :  { %v9497_v5 = vpop.f32.mrb[87].mxu0  ;;  %v8825_v22 = vsel %vm4515_vm8, %v8821_v19, -inf }
0x15fa   :  { %8826 = vmax.xlane.f32.xlu0 %v8825_v22 }
0x1687   :  { %v8827_v23 = vpop.xlane.xlu0 %8826 }
0x1688   :  { %v8828_v36 = vsub.f32 %v8821_v19, %v8827_v23 }
0x168a   :  { %v8829_v41 = vmul.f32 1.442695, %v8828_v36 }
0x168c   :  { %11436 = vpow2.f32 %v8829_v41 }
0x1696   :  { %v11437_v26 = vpop.eup %11436 }
0x1697   :  { %v8831_v1 = vsel %vm4515_vm8, %v11437_v26, 0.0 }
0x1698   :  { %8832 = vadd.xlane.f32.xlu1 %v8831_v1 }
0x1699   :  { %11674 = shalt.err (!%p11671_p0)
}
0x169a   :  { %s11675_s19 = scalar_lea.hbm %s12919_s10, 32 }
0x169b   :  { %p11676_p1 = scmp.ne.s32.totalorder %s12919_s10, %s11675_s19  ;;  %p11679_p2 = scmp.lt.u32.totalorder %s11675_s19, %s12919_s10 }
0x169d   :  { %p11681_p3 = pnand %p11679_p2, %p11676_p1 }
0x169f   :  { %11684 = shalt.err (!%p11681_p3)
}
0x16a0   :  { %8847 = dma.vmem_to_hbm [thread:$0]  %s8845_s27, 32, %s12919_s10, [#allocation7]  }
0x16a1   :  { %s11744_s30 = smov [#allocation23]  }
0x16a2   :  { %s8854_s12 = sshll.u32 %s11744_s30, 4  ;;  %s8855_s12 = int_to_ptr.vmem [resolvable:$true] %s8854_s12 }
0x16a3   :  { %s11685_s5 = scalar_lea.vmem %s8855_s12, 32  ;;  %p11690_p5 = scmp.lt.s32.totalorder %s8855_s12, %s8855_s12 }
0x16a4   :  { %p11686_p4 = scmp.ne.s32.totalorder %s8855_s12, %s11685_s5  ;;  %p11691_p6 = scmp.lt.s32.totalorder %s11685_s5, %s11685_s5 }
0x16a6   :  { %p11692_p7 = por %p11691_p6, %p11690_p5 }
0x16a8   :  { %p11693_p8 = pnand %p11692_p7, %p11686_p4 }
0x1725   :  { %v8833_v30 = vpop.xlane.xlu1 %8832 }
0x1726   :  { %11438 = vrcp.f32 %v8833_v30 }
0x1730   :  { %v11439_v60 = vpop.eup %11438 }
0x1731   :  { %v8835_v28 = vmul.f32 %v11439_v60, %v11437_v26 }
0x1733   :  { %8837 = vst.msk [vmem:[#allocation23 + $0x1] sm:$0x1] %vm4515_vm8, %v8835_v28 }
0x1734   :  { %11696 = shalt.err (!%p11693_p8)
}
0x1735   :  { %s11697_s10 = scalar_lea.hbm %s12920_s11, 32 }
0x1736   :  { %p11698_p9 = scmp.ne.s32.totalorder %s12920_s11, %s11697_s10  ;;  %p11701_p10 = scmp.lt.u32.totalorder %s11697_s10, %s12920_s11 }
0x1738   :  { %p11703_p11 = pnand %p11701_p10, %p11698_p9 }
0x173a   :  { %11706 = shalt.err (!%p11703_p11)
}
0x173b   :  { %8857 = dma.vmem_to_hbm [thread:$0]  %s8855_s12, 32, %s12920_s11, [#allocation24]  }
0x173c   :  { %11719 = dma.done.wait [#allocation7], 32  }
0x173d   :  { %11720 = vsyncadd [#allocation7], 4294967264 }
0x173e   :  { %11721 = dma.done.wait [#allocation24], 32  }
0x173f   :  { %11722 = vsyncadd [#allocation24], 4294967264 }
0x1740   :  { %8864 = vsyncpa [#allocation6], 1 }
0x1741   :  { %8865 = vsyncpa [#allocation9], 1 }
0x1742   :  { %8866 = vsyncpa [#allocation12], 1 }
0x1743   :  { %8867 = vsyncpa [#allocation15], 1 }
0x1744   :  { %8868 = vsyncpa [#allocation18], 1 }
0x1745   :  { %8869 = vsyncpa [#allocation21], 1 }
0x1746   :  { %8870 = vsyncpa [#allocation7], 1 }
0x1747   :  { %8871 = vsyncpa [#allocation24], 1 }

</bundles_post_ra>
